<compile_context>
chip_gen: v7x
topology: tpu7x:2x2x1
jax: 0.10.0
libtpu: 0.0.40
codegen_flags: <defaults>
</compile_context>

<pallas_src>
import functools
import math

import jax
import jax.numpy as jnp
from jax import lax
from jax.experimental import pallas as pl
from jax.experimental.pallas import tpu as pltpu

_VMEM_LIMIT = 32 * 1024 * 1024  # safe on v5e/v6e/v7x


def _pick_tile(n, candidates):
    """Largest candidate that divides n, else the full extent."""
    for c in candidates:
        if n >= c and n % c == 0:
            return c
    return n


# ----------------------------------------------------------------------------
# Tiled linear:  y = act(x @ w + b)   (bf16 MXU feed, f32 accumulator)
# Shared kernel body for the plain linear and the stacked fused projections.
# ----------------------------------------------------------------------------
def _matmul_kernel(x_ref, w_ref, b_ref, o_ref, acc_ref, *, activation):
    @pl.when(pl.program_id(2) == 0)
    def _():
        acc_ref[...] = jnp.zeros_like(acc_ref)

    acc_ref[...] += jnp.dot(x_ref[...].astype(jnp.bfloat16),
                            w_ref[...].astype(jnp.bfloat16),
                            preferred_element_type=jnp.float32)

    @pl.when(pl.program_id(2) == pl.num_programs(2) - 1)
    def _():
        y = acc_ref[...] + b_ref[...].astype(jnp.float32)
        if activation == "relu":          # F.threshold(x, 0.0, 0.0) == relu
            y = jnp.maximum(y, 0.0)
        o_ref[...] = y.astype(o_ref.dtype)


def linear(x, w, b, activation=None):
    """x: (N, Din), w: (Din, Dout) (PyTorch weight already transposed), b: (Dout,)."""
    N, Din = x.shape
    Dout = w.shape[1]
    tm = _pick_tile(N, (256, 128, 64, 32, 16, 8))
    tn = _pick_tile(Dout, (1024, 512, 256, 128))
    tk = _pick_tile(Din, (512, 256, 128))
    grid = (N // tm, Dout // tn, Din // tk)
    # TODO(synk): if a v5e profile shows exposed DMA, set pipeline_mode=pl.Buffered(3)
    # on the (tk, tn) weight BlockSpec.
    return pl.pallas_call(
        functools.partial(_matmul_kernel, activation=activation),
        out_shape=jax.ShapeDtypeStruct((N, Dout), x.dtype),
        grid=grid,
        in_specs=[
            pl.BlockSpec((tm, tk), lambda i, j, k: (i, k)),
            pl.BlockSpec((tk, tn), lambda i, j, k: (k, j)),
            pl.BlockSpec((1, tn), lambda i, j, k: (0, j)),
        ],
        out_specs=pl.BlockSpec((tm, tn), lambda i, j, k: (i, j)),
        scratch_shapes=[pltpu.VMEM((tm, tn), jnp.float32)],
        compiler_params=pltpu.CompilerParams(
            dimension_semantics=("parallel", "parallel", "arbitrary"),
            vmem_limit_bytes=_VMEM_LIMIT),
    )(x, w, b.reshape(1, Dout))


def fused_proj(x, w_g, b_g):
    """Fused multi-output projection.

    x: (N, Din), w_g: (G, Din, D), b_g: (G, 1, D)  ->  (G, N, D).
    Each of the G planes is a lane-dense (N, D) slab, so downstream attention
    kernels select Q/K/V purely via a leading-axis BlockSpec index.
    """
    N, Din = x.shape
    G, _, D = w_g.shape
    tm = _pick_tile(N, (256, 128, 64, 32, 16, 8))
    tk = _pick_tile(Din, (512, 256, 128))
    grid = (G, N // tm, Din // tk)
    return pl.pallas_call(
        functools.partial(_matmul_kernel, activation=None),
        out_shape=jax.ShapeDtypeStruct((G, N, D), x.dtype),
        grid=grid,
        in_specs=[
            pl.BlockSpec((tm, tk), lambda g, i, k: (i, k)),
            pl.BlockSpec((None, tk, D), lambda g, i, k: (g, k, 0)),
            pl.BlockSpec((None, 1, D), lambda g, i, k: (g, 0, 0)),
        ],
        out_specs=pl.BlockSpec((None, tm, D), lambda g, i, k: (g, i, 0)),
        scratch_shapes=[pltpu.VMEM((tm, D), jnp.float32)],
        compiler_params=pltpu.CompilerParams(
            dimension_semantics=("parallel", "parallel", "arbitrary"),
            vmem_limit_bytes=_VMEM_LIMIT),
    )(x, w_g, b_g)


# ----------------------------------------------------------------------------
# Tiled linear fused with residual add + LayerNorm:  y = LN(res + x @ w + b)
# ----------------------------------------------------------------------------
def _matmul_add_ln_kernel(x_ref, w_ref, b_ref, res_ref, g_ref, bb_ref,
                          o_ref, acc_ref, *, eps):
    @pl.when(pl.program_id(1) == 0)
    def _():
        acc_ref[...] = jnp.zeros_like(acc_ref)

    acc_ref[...] += jnp.dot(x_ref[...].astype(jnp.bfloat16),
                            w_ref[...].astype(jnp.bfloat16),
                            preferred_element_type=jnp.float32)

    @pl.when(pl.program_id(1) == pl.num_programs(1) - 1)
    def _():
        h = acc_ref[...] + b_ref[...] + res_ref[...].astype(jnp.float32)
        mu = jnp.mean(h, axis=-1, keepdims=True)
        d = h - mu
        var = jnp.mean(d * d, axis=-1, keepdims=True)
        y = d * lax.rsqrt(var + eps)
        o_ref[...] = (y * g_ref[...] + bb_ref[...]).astype(o_ref.dtype)


def linear_add_ln(x, w, b, residual, gamma, beta, eps=1e-5):
    """LayerNorm(residual + x @ w + b) over the last dim (full Dout per block)."""
    N, Din = x.shape
    Dout = w.shape[1]
    tm = _pick_tile(N, (256, 128, 64, 32, 16, 8))
    tk = _pick_tile(Din, (512, 256, 128))
    grid = (N // tm, Din // tk)
    return pl.pallas_call(
        functools.partial(_matmul_add_ln_kernel, eps=eps),
        out_shape=jax.ShapeDtypeStruct((N, Dout), x.dtype),
        grid=grid,
        in_specs=[
            pl.BlockSpec((tm, tk), lambda i, k: (i, k)),
            pl.BlockSpec((tk, Dout), lambda i, k: (k, 0)),
            pl.BlockSpec((1, Dout), lambda i, k: (0, 0)),
            pl.BlockSpec((tm, Dout), lambda i, k: (i, 0)),
            pl.BlockSpec((1, Dout), lambda i, k: (0, 0)),
            pl.BlockSpec((1, Dout), lambda i, k: (0, 0)),
        ],
        out_specs=pl.BlockSpec((tm, Dout), lambda i, k: (i, 0)),
        scratch_shapes=[pltpu.VMEM((tm, Dout), jnp.float32)],
        compiler_params=pltpu.CompilerParams(
            dimension_semantics=("parallel", "arbitrary"),
            vmem_limit_bytes=_VMEM_LIMIT),
    )(x, w, b.reshape(1, Dout), residual,
      gamma.reshape(1, Dout), beta.reshape(1, Dout))


# ----------------------------------------------------------------------------
# Attention: grid = (batch, q_tiles, kv_tiles), heads in-kernel, flash-style
# online softmax over the kv axis, no attention-weight output (need_weights=False).
# Scale (head_dim**-0.5) is pre-folded into the Q projection weights.
# ----------------------------------------------------------------------------
def _attn_kernel(q_ref, k_ref, v_ref, bias_ref, o_ref, m_ref, l_ref, acc_ref,
                 *, n_head, head_dim):
    kv = pl.program_id(2)

    @pl.when(kv == 0)
    def _():
        m_ref[...] = jnp.full_like(m_ref, -jnp.inf)
        l_ref[...] = jnp.zeros_like(l_ref)
        acc_ref[...] = jnp.zeros_like(acc_ref)

    q = q_ref[...].astype(jnp.bfloat16)          # (tq, D); scale already in weights
    k = k_ref[...].astype(jnp.bfloat16)          # (tkv, D)
    v = v_ref[...].astype(jnp.bfloat16)          # (tkv, D)
    bias = bias_ref[...].astype(jnp.float32)     # (1, tkv) additive key-padding bias

    for h in range(n_head):
        sl = slice(h * head_dim, (h + 1) * head_dim)
        hs = slice(h, h + 1)
        s = lax.dot_general(q[:, sl], k[:, sl], (((1,), (1,)), ((), ())),
                            preferred_element_type=jnp.float32) + bias   # (tq, tkv)
        m_prev = m_ref[:, hs]                                            # (tq, 1)
        m_new = jnp.maximum(m_prev, jnp.max(s, axis=-1, keepdims=True))
        alpha = jnp.exp(m_prev - m_new)
        p = jnp.exp(s - m_new)
        l_ref[:, hs] = alpha * l_ref[:, hs] + jnp.sum(p, axis=-1, keepdims=True)
        acc_ref[:, sl] = alpha * acc_ref[:, sl] + lax.dot_general(
            p.astype(jnp.bfloat16), v[:, sl], (((1,), (0,)), ((), ())),
            preferred_element_type=jnp.float32)
        m_ref[:, hs] = m_new

    @pl.when(kv == pl.num_programs(2) - 1)
    def _():
        # l >= 1 always (finite -1e9 bias + max subtraction): no guard needed.
        # Exact divide for parity with torch softmax.
        for h in range(n_head):
            sl = slice(h * head_dim, (h + 1) * head_dim)
            o_ref[:, sl] = (acc_ref[:, sl] / l_ref[:, h:h + 1]).astype(o_ref.dtype)


def _attn_scratch(tq, n_head, d_model):
    return [pltpu.VMEM((tq, n_head), jnp.float32),   # running max per head
            pltpu.VMEM((tq, n_head), jnp.float32),   # running denom per head
            pltpu.VMEM((tq, d_model), jnp.float32)]  # output accumulator


def self_attention(qkv, bias, n_head):
    """qkv: (3, B, T, D) stacked Q/K/V planes; bias: (B, 1, T) -> (B, T, D)."""
    _, B, T, D = qkv.shape
    hd = D // n_head
    tq = _pick_tile(T, (128,))
    tkv = _pick_tile(T, (128,))
    grid = (B, T // tq, T // tkv)
    return pl.pallas_call(
        functools.partial(_attn_kernel, n_head=n_head, head_dim=hd),
        out_shape=jax.ShapeDtypeStruct((B, T, D), qkv.dtype),
        grid=grid,
        in_specs=[
            pl.BlockSpec((None, None, tq, D), lambda b, qi, ki: (0, b, qi, 0)),
            pl.BlockSpec((None, None, tkv, D), lambda b, qi, ki: (1, b, ki, 0)),
            pl.BlockSpec((None, None, tkv, D), lambda b, qi, ki: (2, b, ki, 0)),
            pl.BlockSpec((None, 1, tkv), lambda b, qi, ki: (b, 0, ki)),
        ],
        out_specs=pl.BlockSpec((None, tq, D), lambda b, qi, ki: (b, qi, 0)),
        scratch_shapes=_attn_scratch(tq, n_head, D),
        compiler_params=pltpu.CompilerParams(
            dimension_semantics=("parallel", "parallel", "arbitrary")),
    )(qkv, qkv, qkv, bias)


def cross_attention(q, kv, bias, n_head):
    """q: (B, Tq, D), kv: (2, B, S, D) stacked K/V planes, bias: (B, 1, S)."""
    B, Tq, D = q.shape
    S = kv.shape[2]
    hd = D // n_head
    tq = _pick_tile(Tq, (128,))
    tkv = _pick_tile(S, (128,))
    grid = (B, Tq // tq, S // tkv)
    return pl.pallas_call(
        functools.partial(_attn_kernel, n_head=n_head, head_dim=hd),
        out_shape=jax.ShapeDtypeStruct((B, Tq, D), q.dtype),
        grid=grid,
        in_specs=[
            pl.BlockSpec((None, tq, D), lambda b, qi, ki: (b, qi, 0)),
            pl.BlockSpec((None, None, tkv, D), lambda b, qi, ki: (0, b, ki, 0)),
            pl.BlockSpec((None, None, tkv, D), lambda b, qi, ki: (1, b, ki, 0)),
            pl.BlockSpec((None, 1, tkv), lambda b, qi, ki: (b, 0, ki)),
        ],
        out_specs=pl.BlockSpec((None, tq, D), lambda b, qi, ki: (b, qi, 0)),
        scratch_shapes=_attn_scratch(tq, n_head, D),
        compiler_params=pltpu.CompilerParams(
            dimension_semantics=("parallel", "parallel", "arbitrary")),
    )(q, kv, kv, bias)


# ----------------------------------------------------------------------------
# Parameter init (matches the module's shapes; xavier_uniform weights, zero bias).
# 1/sqrt(head_dim) is folded into the Q projection weights/bias (math-equivalent
# to the module's post-projection q scaling).
# ----------------------------------------------------------------------------
def _xavier(key, out_f, in_f):
    bound = math.sqrt(6.0 / (in_f + out_f))
    return jax.random.uniform(key, (out_f, in_f), jnp.float32, -bound, bound)


def init_params(key, d_model, n_head, d_ffn):
    scale = (d_model // n_head) ** -0.5

    def stream(k):
        ks = jax.random.split(k, 6)
        D, F = d_model, d_ffn
        p = {}
        # self attention: fused in-proj stacked as (3, Din, D), Q rows pre-scaled
        w_in = _xavier(ks[0], 3 * D, D)                          # torch (3D, D)
        w3 = jnp.transpose(w_in.reshape(3, D, D), (0, 2, 1))     # (3, Din, D)
        b3 = jnp.zeros((3, 1, D), jnp.float32)
        p["self_qkv_w"] = w3.at[0].multiply(scale)
        p["self_qkv_b"] = b3.at[0].multiply(scale)
        p["self_out_w"] = _xavier(ks[1], D, D).T
        p["self_out_b"] = jnp.zeros((D,), jnp.float32)
        # cross attention: Q proj (pre-scaled) + stacked KV (2, Din, D)
        w_cross = _xavier(ks[2], 3 * D, D)
        p["cross_q_w"] = w_cross[:D].T * scale
        p["cross_q_b"] = jnp.zeros((D,), jnp.float32)
        p["cross_kv_w"] = jnp.transpose(w_cross[D:].reshape(2, D, D), (0, 2, 1))
        p["cross_kv_b"] = jnp.zeros((2, 1, D), jnp.float32)
        p["cross_out_w"] = _xavier(ks[3], D, D).T
        p["cross_out_b"] = jnp.zeros((D,), jnp.float32)
        # feed-forward
        p["ffn1_w"] = _xavier(ks[4], F, D).T                     # (D, F)
        p["ffn1_b"] = jnp.zeros((F,), jnp.float32)
        p["ffn2_w"] = _xavier(ks[5], D, F).T                     # (F, D)
        p["ffn2_b"] = jnp.zeros((D,), jnp.float32)
        # layer norms
        for name in ("ln1", "ln2", "ln3"):
            p[name + "_g"] = jnp.ones((D,), jnp.float32)
            p[name + "_b"] = jnp.zeros((D,), jnp.float32)
        return p

    ka, kb = jax.random.split(key)
    return {"a": stream(ka), "b": stream(kb)}


# ----------------------------------------------------------------------------
# Sub-blocks (batch-first layout)
# ----------------------------------------------------------------------------
def _self_attn_block(x, bias, p, n_head):
    """x: (B, T, D). out = LayerNorm(x + SelfAttn(x))  (norm1)."""
    B, T, D = x.shape
    x_flat = x.reshape(B * T, D)
    qkv = fused_proj(x_flat, p["self_qkv_w"], p["self_qkv_b"])      # (3, B*T, D)
    ctx = self_attention(qkv.reshape(3, B, T, D), bias, n_head)      # (B, T, D)
    y = linear_add_ln(ctx.reshape(B * T, D), p["self_out_w"], p["self_out_b"],
                      x_flat, p["ln1_g"], p["ln1_b"])
    return y.reshape(B, T, D)


def _cross_attn_block(query, kv_src, kv_bias, p, n_head):
    """query: (B, Tq, D) (also the residual), kv_src: (B, S, D)."""
    B, Tq, D = query.shape
    S = kv_src.shape[1]
    q_flat = query.reshape(B * Tq, D)
    q = linear(q_flat, p["cross_q_w"], p["cross_q_b"]).reshape(B, Tq, D)
    kv = fused_proj(kv_src.reshape(B * S, D),
                    p["cross_kv_w"], p["cross_kv_b"])                # (2, B*S, D)
    ctx = cross_attention(q, kv.reshape(2, B, S, D), kv_bias, n_head)
    y = linear_add_ln(ctx.reshape(B * Tq, D), p["cross_out_w"], p["cross_out_b"],
                      q_flat, p["ln2_g"], p["ln2_b"])
    return y.reshape(B, Tq, D)


def _ffn_block(x, p):
    """x: (B, T, D). out = LayerNorm(x + FFN(x))  (norm3)."""
    B, T, D = x.shape
    x_flat = x.reshape(B * T, D)
    h = linear(x_flat, p["ffn1_w"], p["ffn1_b"], activation="relu")
    y = linear_add_ln(h, p["ffn2_w"], p["ffn2_b"],
                      x_flat, p["ln3_g"], p["ln3_b"])
    return y.reshape(B, T, D)


# ----------------------------------------------------------------------------
# Full OptFormerEncoderLayer forward (eval mode)
# ----------------------------------------------------------------------------
def optformer_encoder_layer(x_a, x_a_pad, x_b, x_b_pad, params, n_head):
    """x_*: (seq_len, bsz, d); pad masks: (seq_len, bsz) bool, True = padded key."""
    # Single relayout to batch-first at entry / exit.
    xa = jnp.transpose(x_a, (1, 0, 2))                 # (B, Ta, D)
    xb = jnp.transpose(x_b, (1, 0, 2))                 # (B, Tb, D)
    bias_a = jnp.where(x_a_pad.T, -1e9, 0.0).astype(jnp.float32)[:, None, :]
    bias_b = jnp.where(x_b_pad.T, -1e9, 0.0).astype(jnp.float32)[:, None, :]
    pa, pb = params["a"], params["b"]

    # TODO(synk): dropout / attn_dropout / relu_dropout skipped (eval-mode identity).

    # ---- self attention + norm1 ----
    ya = _self_attn_block(xa, bias_a, pa, n_head)
    yb = _self_attn_block(xb, bias_b, pb, n_head)

    # ---- cross attention + norm2 (a attends to b, b attends to a) ----
    za = _cross_attn_block(ya, yb, bias_b, pa, n_head)
    zb = _cross_attn_block(yb, ya, bias_a, pb, n_head)

    # ---- FFN + norm3 ----
    oa = _ffn_block(za, pa)
    ob = _ffn_block(zb, pb)

    return jnp.transpose(oa, (1, 0, 2)), jnp.transpose(ob, (1, 0, 2))


# ----------------------------------------------------------------------------
if __name__ == "__main__":
    SEQ_A, SEQ_B, BSZ, D_MODEL, N_HEAD, D_FFN = 8, 16, 2, 32, 4, 64

    root = jax.random.PRNGKey(0)
    k_par, k_xa, k_xb = jax.random.split(root, 3)

    params = init_params(k_par, D_MODEL, N_HEAD, D_FFN)

    x_a = jax.random.normal(k_xa, (SEQ_A, BSZ, D_MODEL), jnp.float32)
    x_b = jax.random.normal(k_xb, (SEQ_B, BSZ, D_MODEL), jnp.float32)
    # True = padded key position (shape: seq_len, bsz).
    x_a_pad = jnp.zeros((SEQ_A, BSZ), jnp.bool_).at[-1, 1].set(True)
    x_b_pad = jnp.zeros((SEQ_B, BSZ), jnp.bool_).at[-3:, 1].set(True)

    fwd = jax.jit(functools.partial(optformer_encoder_layer, n_head=N_HEAD))
    out_a, out_b = fwd(x_a, x_a_pad, x_b, x_b_pad, params)
    jax.block_until_ready((out_a, out_b))

    assert out_a.shape == (SEQ_A, BSZ, D_MODEL)
    assert out_b.shape == (SEQ_B, BSZ, D_MODEL)
    assert bool(jnp.all(jnp.isfinite(out_a))) and bool(jnp.all(jnp.isfinite(out_b)))
    print("KERNEL_OK")
</pallas_src>

<mosaic_0001>
module attributes {stable_mosaic.version = 11 : i64} {
  func.func @_matmul_kernel(%arg0: i32, %arg1: i32, %arg2: i32, %arg3: memref<16x32xf32, #tpu.memory_space<vmem>>, %arg4: memref<1x32x32xf32, #tpu.memory_space<vmem>>, %arg5: memref<1x1x32xf32, #tpu.memory_space<vmem>>, %arg6: memref<1x16x32xf32, #tpu.memory_space<vmem>>, %arg7: memref<16x32xf32, #tpu.memory_space<vmem>>) attributes {dimension_semantics = [#tpu.dimension_semantics<parallel>, #tpu.dimension_semantics<parallel>, #tpu.dimension_semantics<arbitrary>], iteration_bounds = array<i64: 3, 1, 1>, scalar_prefetch = 0 : i64, scratch_operands = 1 : i64, tpu.core_type = #tpu.core_type<tc>, window_params = [{transform_indices = @transform_0, window_bounds = array<i64: 16, 32>}, {transform_indices = @transform_1, window_bounds = array<i64: 1, 32, 32>}, {transform_indices = @transform_2, window_bounds = array<i64: 1, 1, 32>}, {transform_indices = @transform_3, window_bounds = array<i64: 1, 16, 32>}]} {
    %c0_i32 = arith.constant 0 : i32
    %0 = arith.cmpi eq, %arg2, %c0_i32 : i32
    %1 = arith.extui %0 : i1 to i32
    %c0_i32_0 = arith.constant 0 : i32
    %2 = arith.cmpi ne, %1, %c0_i32_0 : i32
    scf.if %2 {
      %cst_11 = arith.constant 0.000000e+00 : f32
      %15 = vector.broadcast %cst_11 : f32 to vector<16x32xf32>
      %c0_12 = arith.constant 0 : index
      %c0_13 = arith.constant 0 : index
      %16 = vector.load %arg7[%c0_12, %c0_13] : memref<16x32xf32, #tpu.memory_space<vmem>>, vector<16x32xf32>
      tpu.vector_store %arg7[%c0_12, %c0_13], %15 {strides = array<i32>} : memref<16x32xf32, #tpu.memory_space<vmem>>, vector<16x32xf32>,
    } else {
    }
    %c0 = arith.constant 0 : index
    %c0_1 = arith.constant 0 : index
    %3 = vector.load %arg7[%c0, %c0_1] : memref<16x32xf32, #tpu.memory_space<vmem>>, vector<16x32xf32>
    %c0_2 = arith.constant 0 : index
    %c0_3 = arith.constant 0 : index
    %4 = vector.load %arg3[%c0_2, %c0_3] : memref<16x32xf32, #tpu.memory_space<vmem>>, vector<16x32xf32>
    %5 = arith.truncf %4 : vector<16x32xf32> to vector<16x32xbf16>
    %c0_4 = arith.constant 0 : index
    %c0_5 = arith.constant 0 : index
    %c0_6 = arith.constant 0 : index
    %6 = vector.load %arg4[%c0_4, %c0_5, %c0_6] : memref<1x32x32xf32, #tpu.memory_space<vmem>>, vector<1x32x32xf32>
    %7 = vector.shape_cast %6 : vector<1x32x32xf32> to vector<32x32xf32>
    %8 = arith.truncf %7 : vector<32x32xf32> to vector<32x32xbf16>
    %cst = arith.constant dense<0.000000e+00> : vector<16x32xf32>
    %9 = tpu.matmul %5, %8, %cst {dimension_numbers = #tpu.dot_dimension_numbers<[1], [0], [0], [1], [0, 0, 1, 1], [], []>} : vector<16x32xbf16>, vector<32x32xbf16>, vector<16x32xf32> -> vector<16x32xf32>
    %10 = arith.addf %3, %9 : vector<16x32xf32>
    %c0_7 = arith.constant 0 : index
    %c0_8 = arith.constant 0 : index
    %11 = vector.load %arg7[%c0_7, %c0_8] : memref<16x32xf32, #tpu.memory_space<vmem>>, vector<16x32xf32>
    tpu.vector_store %arg7[%c0_7, %c0_8], %10 {strides = array<i32>} : memref<16x32xf32, #tpu.memory_space<vmem>>, vector<16x32xf32>,
    %c0_i32_9 = arith.constant 0 : i32
    %12 = arith.cmpi eq, %arg2, %c0_i32_9 : i32
    %13 = arith.extui %12 : i1 to i32
    %c0_i32_10 = arith.constant 0 : i32
    %14 = arith.cmpi ne, %13, %c0_i32_10 : i32
    scf.if %14 {
      %c0_11 = arith.constant 0 : index
      %c0_12 = arith.constant 0 : index
      %15 = vector.load %arg7[%c0_11, %c0_12] : memref<16x32xf32, #tpu.memory_space<vmem>>, vector<16x32xf32>
      %c0_13 = arith.constant 0 : index
      %c0_14 = arith.constant 0 : index
      %c0_15 = arith.constant 0 : index
      %16 = vector.load %arg5[%c0_13, %c0_14, %c0_15] : memref<1x1x32xf32, #tpu.memory_space<vmem>>, vector<1x1x32xf32>
      %17 = vector.shape_cast %16 : vector<1x1x32xf32> to vector<1x32xf32>
      %18 = vector.broadcast %17 : vector<1x32xf32> to vector<16x32xf32>
      %19 = arith.addf %15, %18 : vector<16x32xf32>
      %c0_16 = arith.constant 0 : index
      %c0_17 = arith.constant 0 : index
      %c0_18 = arith.constant 0 : index
      %20 = vector.load %arg6[%c0_16, %c0_17, %c0_18] : memref<1x16x32xf32, #tpu.memory_space<vmem>>, vector<1x16x32xf32>
      %21 = vector.shape_cast %20 : vector<1x16x32xf32> to vector<16x32xf32>
      %22 = vector.shape_cast %19 : vector<16x32xf32> to vector<1x16x32xf32>
      tpu.vector_store %arg6[%c0_16, %c0_17, %c0_18], %22 {strides = array<i32>} : memref<1x16x32xf32, #tpu.memory_space<vmem>>, vector<1x16x32xf32>,
    } else {
    }
    return
  }
  func.func @transform_0(%arg0: i32, %arg1: i32, %arg2: i32) -> (i32, i32) {
    %c0_i32 = arith.constant 0 : i32
    return %arg1, %arg2 : i32, i32
  }
  func.func @transform_1(%arg0: i32, %arg1: i32, %arg2: i32) -> (i32, i32, i32) {
    %c0_i32 = arith.constant 0 : i32
    %c0_i32_0 = arith.constant 0 : i32
    return %arg0, %arg2, %c0_i32 : i32, i32, i32
  }
  func.func @transform_2(%arg0: i32, %arg1: i32, %arg2: i32) -> (i32, i32, i32) {
    %c0_i32 = arith.constant 0 : i32
    %c0_i32_0 = arith.constant 0 : i32
    %c0_i32_1 = arith.constant 0 : i32
    return %arg0, %c0_i32, %c0_i32_0 : i32, i32, i32
  }
  func.func @transform_3(%arg0: i32, %arg1: i32, %arg2: i32) -> (i32, i32, i32) {
    %c0_i32 = arith.constant 0 : i32
    %c0_i32_0 = arith.constant 0 : i32
    return %arg0, %arg1, %c0_i32 : i32, i32, i32
  }
}

module attributes {stable_mosaic.version = 11 : i64} {
  func.func @_attn_kernel(%arg0: i32, %arg1: i32, %arg2: i32, %arg3: memref<1x1x8x32xf32, #tpu.memory_space<vmem>>, %arg4: memref<1x1x8x32xf32, #tpu.memory_space<vmem>>, %arg5: memref<1x1x8x32xf32, #tpu.memory_space<vmem>>, %arg6: memref<1x1x8xf32, #tpu.memory_space<vmem>>, %arg7: memref<1x8x32xf32, #tpu.memory_space<vmem>>, %arg8: memref<8x4xf32, #tpu.memory_space<vmem>>, %arg9: memref<8x4xf32, #tpu.memory_space<vmem>>, %arg10: memref<8x32xf32, #tpu.memory_space<vmem>>) attributes {dimension_semantics = [#tpu.dimension_semantics<parallel>, #tpu.dimension_semantics<parallel>, #tpu.dimension_semantics<arbitrary>], iteration_bounds = array<i64: 2, 1, 1>, scalar_prefetch = 0 : i64, scratch_operands = 3 : i64, tpu.core_type = #tpu.core_type<tc>, window_params = [{transform_indices = @transform_0, window_bounds = array<i64: 1, 1, 8, 32>}, {transform_indices = @transform_1, window_bounds = array<i64: 1, 1, 8, 32>}, {transform_indices = @transform_2, window_bounds = array<i64: 1, 1, 8, 32>}, {transform_indices = @transform_3, window_bounds = array<i64: 1, 1, 8>}, {transform_indices = @transform_4, window_bounds = array<i64: 1, 8, 32>}]} {
    %c0_i32 = arith.constant 0 : i32
    %0 = arith.cmpi eq, %arg2, %c0_i32 : i32
    %1 = arith.extui %0 : i1 to i32
    %c0_i32_0 = arith.constant 0 : i32
    %2 = arith.cmpi ne, %1, %c0_i32_0 : i32
    scf.if %2 {
      %cst_74 = arith.constant 0xFF800000 : f32
      %133 = vector.broadcast %cst_74 : f32 to vector<8x4xf32>
      %c0_75 = arith.constant 0 : index
      %c0_76 = arith.constant 0 : index
      %134 = vector.load %arg8[%c0_75, %c0_76] : memref<8x4xf32, #tpu.memory_space<vmem>>, vector<8x4xf32>
      tpu.vector_store %arg8[%c0_75, %c0_76], %133 {strides = array<i32>} : memref<8x4xf32, #tpu.memory_space<vmem>>, vector<8x4xf32>,
      %cst_77 = arith.constant 0.000000e+00 : f32
      %135 = vector.broadcast %cst_77 : f32 to vector<8x4xf32>
      %c0_78 = arith.constant 0 : index
      %c0_79 = arith.constant 0 : index
      %136 = vector.load %arg9[%c0_78, %c0_79] : memref<8x4xf32, #tpu.memory_space<vmem>>, vector<8x4xf32>
      tpu.vector_store %arg9[%c0_78, %c0_79], %135 {strides = array<i32>} : memref<8x4xf32, #tpu.memory_space<vmem>>, vector<8x4xf32>,
      %cst_80 = arith.constant 0.000000e+00 : f32
      %137 = vector.broadcast %cst_80 : f32 to vector<8x32xf32>
      %c0_81 = arith.constant 0 : index
      %c0_82 = arith.constant 0 : index
      %138 = vector.load %arg10[%c0_81, %c0_82] : memref<8x32xf32, #tpu.memory_space<vmem>>, vector<8x32xf32>
      tpu.vector_store %arg10[%c0_81, %c0_82], %137 {strides = array<i32>} : memref<8x32xf32, #tpu.memory_space<vmem>>, vector<8x32xf32>,
    } else {
    }
    %c0 = arith.constant 0 : index
    %c0_1 = arith.constant 0 : index
    %c0_2 = arith.constant 0 : index
    %c0_3 = arith.constant 0 : index
    %3 = vector.load %arg3[%c0, %c0_1, %c0_2, %c0_3] : memref<1x1x8x32xf32, #tpu.memory_space<vmem>>, vector<1x1x8x32xf32>
    %4 = vector.shape_cast %3 : vector<1x1x8x32xf32> to vector<8x32xf32>
    %5 = arith.truncf %4 : vector<8x32xf32> to vector<8x32xbf16>
    %c0_4 = arith.constant 0 : index
    %c0_5 = arith.constant 0 : index
    %c0_6 = arith.constant 0 : index
    %c0_7 = arith.constant 0 : index
    %6 = vector.load %arg4[%c0_4, %c0_5, %c0_6, %c0_7] : memref<1x1x8x32xf32, #tpu.memory_space<vmem>>, vector<1x1x8x32xf32>
    %7 = vector.shape_cast %6 : vector<1x1x8x32xf32> to vector<8x32xf32>
    %8 = arith.truncf %7 : vector<8x32xf32> to vector<8x32xbf16>
    %c0_8 = arith.constant 0 : index
    %c0_9 = arith.constant 0 : index
    %c0_10 = arith.constant 0 : index
    %c0_11 = arith.constant 0 : index
    %9 = vector.load %arg5[%c0_8, %c0_9, %c0_10, %c0_11] : memref<1x1x8x32xf32, #tpu.memory_space<vmem>>, vector<1x1x8x32xf32>
    %10 = vector.shape_cast %9 : vector<1x1x8x32xf32> to vector<8x32xf32>
    %11 = arith.truncf %10 : vector<8x32xf32> to vector<8x32xbf16>
    %c0_12 = arith.constant 0 : index
    %c0_13 = arith.constant 0 : index
    %c0_14 = arith.constant 0 : index
    %12 = vector.load %arg6[%c0_12, %c0_13, %c0_14] : memref<1x1x8xf32, #tpu.memory_space<vmem>>, vector<1x1x8xf32>
    %13 = vector.shape_cast %12 : vector<1x1x8xf32> to vector<1x8xf32>
    %14 = vector.extract_strided_slice %5 {offsets = [0, 0], sizes = [8, 8], strides = [1, 1]} : vector<8x32xbf16> to vector<8x8xbf16>
    %15 = vector.extract_strided_slice %8 {offsets = [0, 0], sizes = [8, 8], strides = [1, 1]} : vector<8x32xbf16> to vector<8x8xbf16>
    %cst = arith.constant dense<0.000000e+00> : vector<8x8xf32>
    %16 = tpu.matmul %14, %15, %cst {dimension_numbers = #tpu.dot_dimension_numbers<[1], [1], [0], [0], [0, 0, 1, 0], [], []>} : vector<8x8xbf16>, vector<8x8xbf16>, vector<8x8xf32> -> vector<8x8xf32>
    %17 = vector.broadcast %13 : vector<1x8xf32> to vector<8x8xf32>
    %18 = arith.addf %16, %17 : vector<8x8xf32>
    %c0_15 = arith.constant 0 : index
    %c0_16 = arith.constant 0 : index
    %19 = vector.load %arg8[%c0_15, %c0_16] : memref<8x4xf32, #tpu.memory_space<vmem>>, vector<8x1xf32>
    %cst_17 = arith.constant dense<0xFF800000> : vector<8xf32>
    %20 = vector.multi_reduction <maximumf>, %18, %cst_17 [1] : vector<8x8xf32> to vector<8xf32>
    %21 = vector.shape_cast %20 : vector<8xf32> to vector<8x1xf32>
    %22 = arith.maximumf %19, %21 : vector<8x1xf32>
    %23 = arith.subf %19, %22 : vector<8x1xf32>
    %24 = math.exp %23 : vector<8x1xf32>
    %25 = vector.broadcast %22 : vector<8x1xf32> to vector<8x8xf32>
    %26 = arith.subf %18, %25 : vector<8x8xf32>
    %27 = math.exp %26 : vector<8x8xf32>
    %c0_18 = arith.constant 0 : index
    %c0_19 = arith.constant 0 : index
    %28 = vector.load %arg9[%c0_18, %c0_19] : memref<8x4xf32, #tpu.memory_space<vmem>>, vector<8x1xf32>
    %29 = arith.mulf %24, %28 : vector<8x1xf32>
    %cst_20 = arith.constant dense<0.000000e+00> : vector<8xf32>
    %30 = vector.multi_reduction <add>, %27, %cst_20 [1] : vector<8x8xf32> to vector<8xf32>
    %31 = vector.shape_cast %30 : vector<8xf32> to vector<8x1xf32>
    %32 = arith.addf %29, %31 : vector<8x1xf32>
    %c0_21 = arith.constant 0 : index
    %c0_22 = arith.constant 0 : index
    %33 = vector.load %arg9[%c0_21, %c0_22] : memref<8x4xf32, #tpu.memory_space<vmem>>, vector<8x1xf32>
    tpu.vector_store %arg9[%c0_21, %c0_22], %32 {strides = array<i32>} : memref<8x4xf32, #tpu.memory_space<vmem>>, vector<8x1xf32>,
    %c0_23 = arith.constant 0 : index
    %c0_24 = arith.constant 0 : index
    %34 = vector.load %arg10[%c0_23, %c0_24] : memref<8x32xf32, #tpu.memory_space<vmem>>, vector<8x8xf32>
    %35 = vector.broadcast %24 : vector<8x1xf32> to vector<8x8xf32>
    %36 = arith.mulf %35, %34 : vector<8x8xf32>
    %37 = arith.truncf %27 : vector<8x8xf32> to vector<8x8xbf16>
    %38 = vector.extract_strided_slice %11 {offsets = [0, 0], sizes = [8, 8], strides = [1, 1]} : vector<8x32xbf16> to vector<8x8xbf16>
    %cst_25 = arith.constant dense<0.000000e+00> : vector<8x8xf32>
    %39 = tpu.matmul %37, %38, %cst_25 {dimension_numbers = #tpu.dot_dimension_numbers<[1], [0], [0], [1], [0, 0, 1, 1], [], []>} : vector<8x8xbf16>, vector<8x8xbf16>, vector<8x8xf32> -> vector<8x8xf32>
    %40 = arith.addf %36, %39 : vector<8x8xf32>
    %c0_26 = arith.constant 0 : index
    %c0_27 = arith.constant 0 : index
    %41 = vector.load %arg10[%c0_26, %c0_27] : memref<8x32xf32, #tpu.memory_space<vmem>>, vector<8x8xf32>
    tpu.vector_store %arg10[%c0_26, %c0_27], %40 {strides = array<i32>} : memref<8x32xf32, #tpu.memory_space<vmem>>, vector<8x8xf32>,
    %c0_28 = arith.constant 0 : index
    %c0_29 = arith.constant 0 : index
    %42 = vector.load %arg8[%c0_28, %c0_29] : memref<8x4xf32, #tpu.memory_space<vmem>>, vector<8x1xf32>
    tpu.vector_store %arg8[%c0_28, %c0_29], %22 {strides = array<i32>} : memref<8x4xf32, #tpu.memory_space<vmem>>, vector<8x1xf32>,
    %43 = vector.extract_strided_slice %5 {offsets = [0, 8], sizes = [8, 8], strides = [1, 1]} : vector<8x32xbf16> to vector<8x8xbf16>
    %44 = vector.extract_strided_slice %8 {offsets = [0, 8], sizes = [8, 8], strides = [1, 1]} : vector<8x32xbf16> to vector<8x8xbf16>
    %cst_30 = arith.constant dense<0.000000e+00> : vector<8x8xf32>
    %45 = tpu.matmul %43, %44, %cst_30 {dimension_numbers = #tpu.dot_dimension_numbers<[1], [1], [0], [0], [0, 0, 1, 0], [], []>} : vector<8x8xbf16>, vector<8x8xbf16>, vector<8x8xf32> -> vector<8x8xf32>
    %46 = vector.broadcast %13 : vector<1x8xf32> to vector<8x8xf32>
    %47 = arith.addf %45, %46 : vector<8x8xf32>
    %c0_31 = arith.constant 0 : index
    %c1 = arith.constant 1 : index
    %48 = vector.load %arg8[%c0_31, %c1] : memref<8x4xf32, #tpu.memory_space<vmem>>, vector<8x1xf32>
    %cst_32 = arith.constant dense<0xFF800000> : vector<8xf32>
    %49 = vector.multi_reduction <maximumf>, %47, %cst_32 [1] : vector<8x8xf32> to vector<8xf32>
    %50 = vector.shape_cast %49 : vector<8xf32> to vector<8x1xf32>
    %51 = arith.maximumf %48, %50 : vector<8x1xf32>
    %52 = arith.subf %48, %51 : vector<8x1xf32>
    %53 = math.exp %52 : vector<8x1xf32>
    %54 = vector.broadcast %51 : vector<8x1xf32> to vector<8x8xf32>
    %55 = arith.subf %47, %54 : vector<8x8xf32>
    %56 = math.exp %55 : vector<8x8xf32>
    %c0_33 = arith.constant 0 : index
    %c1_34 = arith.constant 1 : index
    %57 = vector.load %arg9[%c0_33, %c1_34] : memref<8x4xf32, #tpu.memory_space<vmem>>, vector<8x1xf32>
    %58 = arith.mulf %53, %57 : vector<8x1xf32>
    %cst_35 = arith.constant dense<0.000000e+00> : vector<8xf32>
    %59 = vector.multi_reduction <add>, %56, %cst_35 [1] : vector<8x8xf32> to vector<8xf32>
    %60 = vector.shape_cast %59 : vector<8xf32> to vector<8x1xf32>
    %61 = arith.addf %58, %60 : vector<8x1xf32>
    %c0_36 = arith.constant 0 : index
    %c1_37 = arith.constant 1 : index
    %62 = vector.load %arg9[%c0_36, %c1_37] : memref<8x4xf32, #tpu.memory_space<vmem>>, vector<8x1xf32>
    tpu.vector_store %arg9[%c0_36, %c1_37], %61 {strides = array<i32>} : memref<8x4xf32, #tpu.memory_space<vmem>>, vector<8x1xf32>,
    %c0_38 = arith.constant 0 : index
    %c8 = arith.constant 8 : index
    %63 = vector.load %arg10[%c0_38, %c8] : memref<8x32xf32, #tpu.memory_space<vmem>>, vector<8x8xf32>
    %64 = vector.broadcast %53 : vector<8x1xf32> to vector<8x8xf32>
    %65 = arith.mulf %64, %63 : vector<8x8xf32>
    %66 = arith.truncf %56 : vector<8x8xf32> to vector<8x8xbf16>
    %67 = vector.extract_strided_slice %11 {offsets = [0, 8], sizes = [8, 8], strides = [1, 1]} : vector<8x32xbf16> to vector<8x8xbf16>
    %cst_39 = arith.constant dense<0.000000e+00> : vector<8x8xf32>
    %68 = tpu.matmul %66, %67, %cst_39 {dimension_numbers = #tpu.dot_dimension_numbers<[1], [0], [0], [1], [0, 0, 1, 1], [], []>} : vector<8x8xbf16>, vector<8x8xbf16>, vector<8x8xf32> -> vector<8x8xf32>
    %69 = arith.addf %65, %68 : vector<8x8xf32>
    %c0_40 = arith.constant 0 : index
    %c8_41 = arith.constant 8 : index
    %70 = vector.load %arg10[%c0_40, %c8_41] : memref<8x32xf32, #tpu.memory_space<vmem>>, vector<8x8xf32>
    tpu.vector_store %arg10[%c0_40, %c8_41], %69 {strides = array<i32>} : memref<8x32xf32, #tpu.memory_space<vmem>>, vector<8x8xf32>,
    %c0_42 = arith.constant 0 : index
    %c1_43 = arith.constant 1 : index
    %71 = vector.load %arg8[%c0_42, %c1_43] : memref<8x4xf32, #tpu.memory_space<vmem>>, vector<8x1xf32>
    tpu.vector_store %arg8[%c0_42, %c1_43], %51 {strides = array<i32>} : memref<8x4xf32, #tpu.memory_space<vmem>>, vector<8x1xf32>,
    %72 = vector.extract_strided_slice %5 {offsets = [0, 16], sizes = [8, 8], strides = [1, 1]} : vector<8x32xbf16> to vector<8x8xbf16>
    %73 = vector.extract_strided_slice %8 {offsets = [0, 16], sizes = [8, 8], strides = [1, 1]} : vector<8x32xbf16> to vector<8x8xbf16>
    %cst_44 = arith.constant dense<0.000000e+00> : vector<8x8xf32>
    %74 = tpu.matmul %72, %73, %cst_44 {dimension_numbers = #tpu.dot_dimension_numbers<[1], [1], [0], [0], [0, 0, 1, 0], [], []>} : vector<8x8xbf16>, vector<8x8xbf16>, vector<8x8xf32> -> vector<8x8xf32>
    %75 = vector.broadcast %13 : vector<1x8xf32> to vector<8x8xf32>
    %76 = arith.addf %74, %75 : vector<8x8xf32>
    %c0_45 = arith.constant 0 : index
    %c2 = arith.constant 2 : index
    %77 = vector.load %arg8[%c0_45, %c2] : memref<8x4xf32, #tpu.memory_space<vmem>>, vector<8x1xf32>
    %cst_46 = arith.constant dense<0xFF800000> : vector<8xf32>
    %78 = vector.multi_reduction <maximumf>, %76, %cst_46 [1] : vector<8x8xf32> to vector<8xf32>
    %79 = vector.shape_cast %78 : vector<8xf32> to vector<8x1xf32>
    %80 = arith.maximumf %77, %79 : vector<8x1xf32>
    %81 = arith.subf %77, %80 : vector<8x1xf32>
    %82 = math.exp %81 : vector<8x1xf32>
    %83 = vector.broadcast %80 : vector<8x1xf32> to vector<8x8xf32>
    %84 = arith.subf %76, %83 : vector<8x8xf32>
    %85 = math.exp %84 : vector<8x8xf32>
    %c0_47 = arith.constant 0 : index
    %c2_48 = arith.constant 2 : index
    %86 = vector.load %arg9[%c0_47, %c2_48] : memref<8x4xf32, #tpu.memory_space<vmem>>, vector<8x1xf32>
    %87 = arith.mulf %82, %86 : vector<8x1xf32>
    %cst_49 = arith.constant dense<0.000000e+00> : vector<8xf32>
    %88 = vector.multi_reduction <add>, %85, %cst_49 [1] : vector<8x8xf32> to vector<8xf32>
    %89 = vector.shape_cast %88 : vector<8xf32> to vector<8x1xf32>
    %90 = arith.addf %87, %89 : vector<8x1xf32>
    %c0_50 = arith.constant 0 : index
    %c2_51 = arith.constant 2 : index
    %91 = vector.load %arg9[%c0_50, %c2_51] : memref<8x4xf32, #tpu.memory_space<vmem>>, vector<8x1xf32>
    tpu.vector_store %arg9[%c0_50, %c2_51], %90 {strides = array<i32>} : memref<8x4xf32, #tpu.memory_space<vmem>>, vector<8x1xf32>,
    %c0_52 = arith.constant 0 : index
    %c16 = arith.constant 16 : index
    %92 = vector.load %arg10[%c0_52, %c16] : memref<8x32xf32, #tpu.memory_space<vmem>>, vector<8x8xf32>
    %93 = vector.broadcast %82 : vector<8x1xf32> to vector<8x8xf32>
    %94 = arith.mulf %93, %92 : vector<8x8xf32>
    %95 = arith.truncf %85 : vector<8x8xf32> to vector<8x8xbf16>
    %96 = vector.extract_strided_slice %11 {offsets = [0, 16], sizes = [8, 8], strides = [1, 1]} : vector<8x32xbf16> to vector<8x8xbf16>
    %cst_53 = arith.constant dense<0.000000e+00> : vector<8x8xf32>
    %97 = tpu.matmul %95, %96, %cst_53 {dimension_numbers = #tpu.dot_dimension_numbers<[1], [0], [0], [1], [0, 0, 1, 1], [], []>} : vector<8x8xbf16>, vector<8x8xbf16>, vector<8x8xf32> -> vector<8x8xf32>
    %98 = arith.addf %94, %97 : vector<8x8xf32>
    %c0_54 = arith.constant 0 : index
    %c16_55 = arith.constant 16 : index
    %99 = vector.load %arg10[%c0_54, %c16_55] : memref<8x32xf32, #tpu.memory_space<vmem>>, vector<8x8xf32>
    tpu.vector_store %arg10[%c0_54, %c16_55], %98 {strides = array<i32>} : memref<8x32xf32, #tpu.memory_space<vmem>>, vector<8x8xf32>,
    %c0_56 = arith.constant 0 : index
    %c2_57 = arith.constant 2 : index
    %100 = vector.load %arg8[%c0_56, %c2_57] : memref<8x4xf32, #tpu.memory_space<vmem>>, vector<8x1xf32>
    tpu.vector_store %arg8[%c0_56, %c2_57], %80 {strides = array<i32>} : memref<8x4xf32, #tpu.memory_space<vmem>>, vector<8x1xf32>,
    %101 = vector.extract_strided_slice %5 {offsets = [0, 24], sizes = [8, 8], strides = [1, 1]} : vector<8x32xbf16> to vector<8x8xbf16>
    %102 = vector.extract_strided_slice %8 {offsets = [0, 24], sizes = [8, 8], strides = [1, 1]} : vector<8x32xbf16> to vector<8x8xbf16>
    %cst_58 = arith.constant dense<0.000000e+00> : vector<8x8xf32>
    %103 = tpu.matmul %101, %102, %cst_58 {dimension_numbers = #tpu.dot_dimension_numbers<[1], [1], [0], [0], [0, 0, 1, 0], [], []>} : vector<8x8xbf16>, vector<8x8xbf16>, vector<8x8xf32> -> vector<8x8xf32>
    %104 = vector.broadcast %13 : vector<1x8xf32> to vector<8x8xf32>
    %105 = arith.addf %103, %104 : vector<8x8xf32>
    %c0_59 = arith.constant 0 : index
    %c3 = arith.constant 3 : index
    %106 = vector.load %arg8[%c0_59, %c3] : memref<8x4xf32, #tpu.memory_space<vmem>>, vector<8x1xf32>
    %cst_60 = arith.constant dense<0xFF800000> : vector<8xf32>
    %107 = vector.multi_reduction <maximumf>, %105, %cst_60 [1] : vector<8x8xf32> to vector<8xf32>
    %108 = vector.shape_cast %107 : vector<8xf32> to vector<8x1xf32>
    %109 = arith.maximumf %106, %108 : vector<8x1xf32>
    %110 = arith.subf %106, %109 : vector<8x1xf32>
    %111 = math.exp %110 : vector<8x1xf32>
    %112 = vector.broadcast %109 : vector<8x1xf32> to vector<8x8xf32>
    %113 = arith.subf %105, %112 : vector<8x8xf32>
    %114 = math.exp %113 : vector<8x8xf32>
    %c0_61 = arith.constant 0 : index
    %c3_62 = arith.constant 3 : index
    %115 = vector.load %arg9[%c0_61, %c3_62] : memref<8x4xf32, #tpu.memory_space<vmem>>, vector<8x1xf32>
    %116 = arith.mulf %111, %115 : vector<8x1xf32>
    %cst_63 = arith.constant dense<0.000000e+00> : vector<8xf32>
    %117 = vector.multi_reduction <add>, %114, %cst_63 [1] : vector<8x8xf32> to vector<8xf32>
    %118 = vector.shape_cast %117 : vector<8xf32> to vector<8x1xf32>
    %119 = arith.addf %116, %118 : vector<8x1xf32>
    %c0_64 = arith.constant 0 : index
    %c3_65 = arith.constant 3 : index
    %120 = vector.load %arg9[%c0_64, %c3_65] : memref<8x4xf32, #tpu.memory_space<vmem>>, vector<8x1xf32>
    tpu.vector_store %arg9[%c0_64, %c3_65], %119 {strides = array<i32>} : memref<8x4xf32, #tpu.memory_space<vmem>>, vector<8x1xf32>,
    %c0_66 = arith.constant 0 : index
    %c24 = arith.constant 24 : index
    %121 = vector.load %arg10[%c0_66, %c24] : memref<8x32xf32, #tpu.memory_space<vmem>>, vector<8x8xf32>
    %122 = vector.broadcast %111 : vector<8x1xf32> to vector<8x8xf32>
    %123 = arith.mulf %122, %121 : vector<8x8xf32>
    %124 = arith.truncf %114 : vector<8x8xf32> to vector<8x8xbf16>
    %125 = vector.extract_strided_slice %11 {offsets = [0, 24], sizes = [8, 8], strides = [1, 1]} : vector<8x32xbf16> to vector<8x8xbf16>
    %cst_67 = arith.constant dense<0.000000e+00> : vector<8x8xf32>
    %126 = tpu.matmul %124, %125, %cst_67 {dimension_numbers = #tpu.dot_dimension_numbers<[1], [0], [0], [1], [0, 0, 1, 1], [], []>} : vector<8x8xbf16>, vector<8x8xbf16>, vector<8x8xf32> -> vector<8x8xf32>
    %127 = arith.addf %123, %126 : vector<8x8xf32>
    %c0_68 = arith.constant 0 : index
    %c24_69 = arith.constant 24 : index
    %128 = vector.load %arg10[%c0_68, %c24_69] : memref<8x32xf32, #tpu.memory_space<vmem>>, vector<8x8xf32>
    tpu.vector_store %arg10[%c0_68, %c24_69], %127 {strides = array<i32>} : memref<8x32xf32, #tpu.memory_space<vmem>>, vector<8x8xf32>,
    %c0_70 = arith.constant 0 : index
    %c3_71 = arith.constant 3 : index
    %129 = vector.load %arg8[%c0_70, %c3_71] : memref<8x4xf32, #tpu.memory_space<vmem>>, vector<8x1xf32>
    tpu.vector_store %arg8[%c0_70, %c3_71], %109 {strides = array<i32>} : memref<8x4xf32, #tpu.memory_space<vmem>>, vector<8x1xf32>,
    %c0_i32_72 = arith.constant 0 : i32
    %130 = arith.cmpi eq, %arg2, %c0_i32_72 : i32
    %131 = arith.extui %130 : i1 to i32
    %c0_i32_73 = arith.constant 0 : i32
    %132 = arith.cmpi ne, %131, %c0_i32_73 : i32
    scf.if %132 {
      %c0_74 = arith.constant 0 : index
      %c0_75 = arith.constant 0 : index
      %133 = vector.load %arg10[%c0_74, %c0_75] : memref<8x32xf32, #tpu.memory_space<vmem>>, vector<8x8xf32>
      %c0_76 = arith.constant 0 : index
      %c0_77 = arith.constant 0 : index
      %134 = vector.load %arg9[%c0_76, %c0_77] : memref<8x4xf32, #tpu.memory_space<vmem>>, vector<8x1xf32>
      %135 = vector.broadcast %134 : vector<8x1xf32> to vector<8x8xf32>
      %136 = arith.divf %133, %135 : vector<8x8xf32>
      %c0_78 = arith.constant 0 : index
      %c0_79 = arith.constant 0 : index
      %c0_80 = arith.constant 0 : index
      %137 = vector.load %arg7[%c0_78, %c0_79, %c0_80] : memref<1x8x32xf32, #tpu.memory_space<vmem>>, vector<1x8x8xf32>
      %138 = vector.shape_cast %137 : vector<1x8x8xf32> to vector<8x8xf32>
      %139 = vector.shape_cast %136 : vector<8x8xf32> to vector<1x8x8xf32>
      tpu.vector_store %arg7[%c0_78, %c0_79, %c0_80], %139 {strides = array<i32>} : memref<1x8x32xf32, #tpu.memory_space<vmem>>, vector<1x8x8xf32>,
      %c0_81 = arith.constant 0 : index
      %c8_82 = arith.constant 8 : index
      %140 = vector.load %arg10[%c0_81, %c8_82] : memref<8x32xf32, #tpu.memory_space<vmem>>, vector<8x8xf32>
      %c0_83 = arith.constant 0 : index
      %c1_84 = arith.constant 1 : index
      %141 = vector.load %arg9[%c0_83, %c1_84] : memref<8x4xf32, #tpu.memory_space<vmem>>, vector<8x1xf32>
      %142 = vector.broadcast %141 : vector<8x1xf32> to vector<8x8xf32>
      %143 = arith.divf %140, %142 : vector<8x8xf32>
      %c0_85 = arith.constant 0 : index
      %c0_86 = arith.constant 0 : index
      %c8_87 = arith.constant 8 : index
      %144 = vector.load %arg7[%c0_85, %c0_86, %c8_87] : memref<1x8x32xf32, #tpu.memory_space<vmem>>, vector<1x8x8xf32>
      %145 = vector.shape_cast %144 : vector<1x8x8xf32> to vector<8x8xf32>
      %146 = vector.shape_cast %143 : vector<8x8xf32> to vector<1x8x8xf32>
      tpu.vector_store %arg7[%c0_85, %c0_86, %c8_87], %146 {strides = array<i32>} : memref<1x8x32xf32, #tpu.memory_space<vmem>>, vector<1x8x8xf32>,
      %c0_88 = arith.constant 0 : index
      %c16_89 = arith.constant 16 : index
      %147 = vector.load %arg10[%c0_88, %c16_89] : memref<8x32xf32, #tpu.memory_space<vmem>>, vector<8x8xf32>
      %c0_90 = arith.constant 0 : index
      %c2_91 = arith.constant 2 : index
      %148 = vector.load %arg9[%c0_90, %c2_91] : memref<8x4xf32, #tpu.memory_space<vmem>>, vector<8x1xf32>
      %149 = vector.broadcast %148 : vector<8x1xf32> to vector<8x8xf32>
      %150 = arith.divf %147, %149 : vector<8x8xf32>
      %c0_92 = arith.constant 0 : index
      %c0_93 = arith.constant 0 : index
      %c16_94 = arith.constant 16 : index
      %151 = vector.load %arg7[%c0_92, %c0_93, %c16_94] : memref<1x8x32xf32, #tpu.memory_space<vmem>>, vector<1x8x8xf32>
      %152 = vector.shape_cast %151 : vector<1x8x8xf32> to vector<8x8xf32>
      %153 = vector.shape_cast %150 : vector<8x8xf32> to vector<1x8x8xf32>
      tpu.vector_store %arg7[%c0_92, %c0_93, %c16_94], %153 {strides = array<i32>} : memref<1x8x32xf32, #tpu.memory_space<vmem>>, vector<1x8x8xf32>,
      %c0_95 = arith.constant 0 : index
      %c24_96 = arith.constant 24 : index
      %154 = vector.load %arg10[%c0_95, %c24_96] : memref<8x32xf32, #tpu.memory_space<vmem>>, vector<8x8xf32>
      %c0_97 = arith.constant 0 : index
      %c3_98 = arith.constant 3 : index
      %155 = vector.load %arg9[%c0_97, %c3_98] : memref<8x4xf32, #tpu.memory_space<vmem>>, vector<8x1xf32>
      %156 = vector.broadcast %155 : vector<8x1xf32> to vector<8x8xf32>
      %157 = arith.divf %154, %156 : vector<8x8xf32>
      %c0_99 = arith.constant 0 : index
      %c0_100 = arith.constant 0 : index
      %c24_101 = arith.constant 24 : index
      %158 = vector.load %arg7[%c0_99, %c0_100, %c24_101] : memref<1x8x32xf32, #tpu.memory_space<vmem>>, vector<1x8x8xf32>
      %159 = vector.shape_cast %158 : vector<1x8x8xf32> to vector<8x8xf32>
      %160 = vector.shape_cast %157 : vector<8x8xf32> to vector<1x8x8xf32>
      tpu.vector_store %arg7[%c0_99, %c0_100, %c24_101], %160 {strides = array<i32>} : memref<1x8x32xf32, #tpu.memory_space<vmem>>, vector<1x8x8xf32>,
    } else {
    }
    return
  }
  func.func @transform_0(%arg0: i32, %arg1: i32, %arg2: i32) -> (i32, i32, i32, i32) {
    %c0_i32 = arith.constant 0 : i32
    %c0_i32_0 = arith.constant 0 : i32
    %c0_i32_1 = arith.constant 0 : i32
    return %c0_i32, %arg0, %arg1, %c0_i32_0 : i32, i32, i32, i32
  }
  func.func @transform_1(%arg0: i32, %arg1: i32, %arg2: i32) -> (i32, i32, i32, i32) {
    %c1_i32 = arith.constant 1 : i32
    %c0_i32 = arith.constant 0 : i32
    %c0_i32_0 = arith.constant 0 : i32
    return %c1_i32, %arg0, %arg2, %c0_i32 : i32, i32, i32, i32
  }
  func.func @transform_2(%arg0: i32, %arg1: i32, %arg2: i32) -> (i32, i32, i32, i32) {
    %c2_i32 = arith.constant 2 : i32
    %c0_i32 = arith.constant 0 : i32
    %c0_i32_0 = arith.constant 0 : i32
    return %c2_i32, %arg0, %arg2, %c0_i32 : i32, i32, i32, i32
  }
  func.func @transform_3(%arg0: i32, %arg1: i32, %arg2: i32) -> (i32, i32, i32) {
    %c0_i32 = arith.constant 0 : i32
    %c0_i32_0 = arith.constant 0 : i32
    return %arg0, %c0_i32, %arg2 : i32, i32, i32
  }
  func.func @transform_4(%arg0: i32, %arg1: i32, %arg2: i32) -> (i32, i32, i32) {
    %c0_i32 = arith.constant 0 : i32
    %c0_i32_0 = arith.constant 0 : i32
    return %arg0, %arg1, %c0_i32 : i32, i32, i32
  }
}

module attributes {stable_mosaic.version = 11 : i64} {
  func.func @_matmul_kernel(%arg0: i32, %arg1: i32, %arg2: i32, %arg3: memref<16x32xf32, #tpu.memory_space<vmem>>, %arg4: memref<32x32xf32, #tpu.memory_space<vmem>>, %arg5: memref<1x32xf32, #tpu.memory_space<vmem>>, %arg6: memref<16x32xf32, #tpu.memory_space<vmem>>, %arg7: memref<16x32xf32, #tpu.memory_space<vmem>>) attributes {dimension_semantics = [#tpu.dimension_semantics<parallel>, #tpu.dimension_semantics<parallel>, #tpu.dimension_semantics<arbitrary>], iteration_bounds = array<i64: 1, 1, 1>, scalar_prefetch = 0 : i64, scratch_operands = 1 : i64, tpu.core_type = #tpu.core_type<tc>, window_params = [{transform_indices = @transform_0, window_bounds = array<i64: 16, 32>}, {transform_indices = @transform_1, window_bounds = array<i64: 32, 32>}, {transform_indices = @transform_2, window_bounds = array<i64: 1, 32>}, {transform_indices = @transform_3, window_bounds = array<i64: 16, 32>}]} {
    %c0_i32 = arith.constant 0 : i32
    %0 = arith.cmpi eq, %arg2, %c0_i32 : i32
    %1 = arith.extui %0 : i1 to i32
    %c0_i32_0 = arith.constant 0 : i32
    %2 = arith.cmpi ne, %1, %c0_i32_0 : i32
    scf.if %2 {
      %cst_10 = arith.constant 0.000000e+00 : f32
      %14 = vector.broadcast %cst_10 : f32 to vector<16x32xf32>
      %c0_11 = arith.constant 0 : index
      %c0_12 = arith.constant 0 : index
      %15 = vector.load %arg7[%c0_11, %c0_12] : memref<16x32xf32, #tpu.memory_space<vmem>>, vector<16x32xf32>
      tpu.vector_store %arg7[%c0_11, %c0_12], %14 {strides = array<i32>} : memref<16x32xf32, #tpu.memory_space<vmem>>, vector<16x32xf32>,
    } else {
    }
    %c0 = arith.constant 0 : index
    %c0_1 = arith.constant 0 : index
    %3 = vector.load %arg7[%c0, %c0_1] : memref<16x32xf32, #tpu.memory_space<vmem>>, vector<16x32xf32>
    %c0_2 = arith.constant 0 : index
    %c0_3 = arith.constant 0 : index
    %4 = vector.load %arg3[%c0_2, %c0_3] : memref<16x32xf32, #tpu.memory_space<vmem>>, vector<16x32xf32>
    %5 = arith.truncf %4 : vector<16x32xf32> to vector<16x32xbf16>
    %c0_4 = arith.constant 0 : index
    %c0_5 = arith.constant 0 : index
    %6 = vector.load %arg4[%c0_4, %c0_5] : memref<32x32xf32, #tpu.memory_space<vmem>>, vector<32x32xf32>
    %7 = arith.truncf %6 : vector<32x32xf32> to vector<32x32xbf16>
    %cst = arith.constant dense<0.000000e+00> : vector<16x32xf32>
    %8 = tpu.matmul %5, %7, %cst {dimension_numbers = #tpu.dot_dimension_numbers<[1], [0], [0], [1], [0, 0, 1, 1], [], []>} : vector<16x32xbf16>, vector<32x32xbf16>, vector<16x32xf32> -> vector<16x32xf32>
    %9 = arith.addf %3, %8 : vector<16x32xf32>
    %c0_6 = arith.constant 0 : index
    %c0_7 = arith.constant 0 : index
    %10 = vector.load %arg7[%c0_6, %c0_7] : memref<16x32xf32, #tpu.memory_space<vmem>>, vector<16x32xf32>
    tpu.vector_store %arg7[%c0_6, %c0_7], %9 {strides = array<i32>} : memref<16x32xf32, #tpu.memory_space<vmem>>, vector<16x32xf32>,
    %c0_i32_8 = arith.constant 0 : i32
    %11 = arith.cmpi eq, %arg2, %c0_i32_8 : i32
    %12 = arith.extui %11 : i1 to i32
    %c0_i32_9 = arith.constant 0 : i32
    %13 = arith.cmpi ne, %12, %c0_i32_9 : i32
    scf.if %13 {
      %c0_10 = arith.constant 0 : index
      %c0_11 = arith.constant 0 : index
      %14 = vector.load %arg7[%c0_10, %c0_11] : memref<16x32xf32, #tpu.memory_space<vmem>>, vector<16x32xf32>
      %c0_12 = arith.constant 0 : index
      %c0_13 = arith.constant 0 : index
      %15 = vector.load %arg5[%c0_12, %c0_13] : memref<1x32xf32, #tpu.memory_space<vmem>>, vector<1x32xf32>
      %16 = vector.broadcast %15 : vector<1x32xf32> to vector<16x32xf32>
      %17 = arith.addf %14, %16 : vector<16x32xf32>
      %c0_14 = arith.constant 0 : index
      %c0_15 = arith.constant 0 : index
      %18 = vector.load %arg6[%c0_14, %c0_15] : memref<16x32xf32, #tpu.memory_space<vmem>>, vector<16x32xf32>
      tpu.vector_store %arg6[%c0_14, %c0_15], %17 {strides = array<i32>} : memref<16x32xf32, #tpu.memory_space<vmem>>, vector<16x32xf32>,
    } else {
    }
    return
  }
  func.func @transform_0(%arg0: i32, %arg1: i32, %arg2: i32) -> (i32, i32) {
    %c0_i32 = arith.constant 0 : i32
    return %arg0, %arg2 : i32, i32
  }
  func.func @transform_1(%arg0: i32, %arg1: i32, %arg2: i32) -> (i32, i32) {
    %c0_i32 = arith.constant 0 : i32
    return %arg2, %arg1 : i32, i32
  }
  func.func @transform_2(%arg0: i32, %arg1: i32, %arg2: i32) -> (i32, i32) {
    %c0_i32 = arith.constant 0 : i32
    %c0_i32_0 = arith.constant 0 : i32
    return %c0_i32, %arg1 : i32, i32
  }
  func.func @transform_3(%arg0: i32, %arg1: i32, %arg2: i32) -> (i32, i32) {
    %c0_i32 = arith.constant 0 : i32
    return %arg0, %arg1 : i32, i32
  }
}

module attributes {stable_mosaic.version = 11 : i64} {
  func.func @_matmul_add_ln_kernel(%arg0: i32, %arg1: i32, %arg2: memref<16x32xf32, #tpu.memory_space<vmem>>, %arg3: memref<32x32xf32, #tpu.memory_space<vmem>>, %arg4: memref<1x32xf32, #tpu.memory_space<vmem>>, %arg5: memref<16x32xf32, #tpu.memory_space<vmem>>, %arg6: memref<1x32xf32, #tpu.memory_space<vmem>>, %arg7: memref<1x32xf32, #tpu.memory_space<vmem>>, %arg8: memref<16x32xf32, #tpu.memory_space<vmem>>, %arg9: memref<16x32xf32, #tpu.memory_space<vmem>>) attributes {dimension_semantics = [#tpu.dimension_semantics<parallel>, #tpu.dimension_semantics<arbitrary>], iteration_bounds = array<i64: 1, 1>, scalar_prefetch = 0 : i64, scratch_operands = 1 : i64, tpu.core_type = #tpu.core_type<tc>, window_params = [{transform_indices = @transform_0, window_bounds = array<i64: 16, 32>}, {transform_indices = @transform_1, window_bounds = array<i64: 32, 32>}, {pipeline_mode = #tpu.pipeline_mode<synchronous>, transform_indices = @transform_2, window_bounds = array<i64: 1, 32>}, {transform_indices = @transform_3, window_bounds = array<i64: 16, 32>}, {pipeline_mode = #tpu.pipeline_mode<synchronous>, transform_indices = @transform_4, window_bounds = array<i64: 1, 32>}, {pipeline_mode = #tpu.pipeline_mode<synchronous>, transform_indices = @transform_5, window_bounds = array<i64: 1, 32>}, {transform_indices = @transform_6, window_bounds = array<i64: 16, 32>}]} {
    %c0_i32 = arith.constant 0 : i32
    %0 = arith.cmpi eq, %arg1, %c0_i32 : i32
    %1 = arith.extui %0 : i1 to i32
    %c0_i32_0 = arith.constant 0 : i32
    %2 = arith.cmpi ne, %1, %c0_i32_0 : i32
    scf.if %2 {
      %cst_10 = arith.constant 0.000000e+00 : f32
      %14 = vector.broadcast %cst_10 : f32 to vector<16x32xf32>
      %c0_11 = arith.constant 0 : index
      %c0_12 = arith.constant 0 : index
      %15 = vector.load %arg9[%c0_11, %c0_12] : memref<16x32xf32, #tpu.memory_space<vmem>>, vector<16x32xf32>
      tpu.vector_store %arg9[%c0_11, %c0_12], %14 {strides = array<i32>} : memref<16x32xf32, #tpu.memory_space<vmem>>, vector<16x32xf32>,
    } else {
    }
    %c0 = arith.constant 0 : index
    %c0_1 = arith.constant 0 : index
    %3 = vector.load %arg9[%c0, %c0_1] : memref<16x32xf32, #tpu.memory_space<vmem>>, vector<16x32xf32>
    %c0_2 = arith.constant 0 : index
    %c0_3 = arith.constant 0 : index
    %4 = vector.load %arg2[%c0_2, %c0_3] : memref<16x32xf32, #tpu.memory_space<vmem>>, vector<16x32xf32>
    %5 = arith.truncf %4 : vector<16x32xf32> to vector<16x32xbf16>
    %c0_4 = arith.constant 0 : index
    %c0_5 = arith.constant 0 : index
    %6 = vector.load %arg3[%c0_4, %c0_5] : memref<32x32xf32, #tpu.memory_space<vmem>>, vector<32x32xf32>
    %7 = arith.truncf %6 : vector<32x32xf32> to vector<32x32xbf16>
    %cst = arith.constant dense<0.000000e+00> : vector<16x32xf32>
    %8 = tpu.matmul %5, %7, %cst {dimension_numbers = #tpu.dot_dimension_numbers<[1], [0], [0], [1], [0, 0, 1, 1], [], []>} : vector<16x32xbf16>, vector<32x32xbf16>, vector<16x32xf32> -> vector<16x32xf32>
    %9 = arith.addf %3, %8 : vector<16x32xf32>
    %c0_6 = arith.constant 0 : index
    %c0_7 = arith.constant 0 : index
    %10 = vector.load %arg9[%c0_6, %c0_7] : memref<16x32xf32, #tpu.memory_space<vmem>>, vector<16x32xf32>
    tpu.vector_store %arg9[%c0_6, %c0_7], %9 {strides = array<i32>} : memref<16x32xf32, #tpu.memory_space<vmem>>, vector<16x32xf32>,
    %c0_i32_8 = arith.constant 0 : i32
    %11 = arith.cmpi eq, %arg1, %c0_i32_8 : i32
    %12 = arith.extui %11 : i1 to i32
    %c0_i32_9 = arith.constant 0 : i32
    %13 = arith.cmpi ne, %12, %c0_i32_9 : i32
    scf.if %13 {
      %c0_10 = arith.constant 0 : index
      %c0_11 = arith.constant 0 : index
      %14 = vector.load %arg9[%c0_10, %c0_11] : memref<16x32xf32, #tpu.memory_space<vmem>>, vector<16x32xf32>
      %c0_12 = arith.constant 0 : index
      %c0_13 = arith.constant 0 : index
      %15 = vector.load %arg4[%c0_12, %c0_13] : memref<1x32xf32, #tpu.memory_space<vmem>>, vector<1x32xf32>
      %16 = vector.broadcast %15 : vector<1x32xf32> to vector<16x32xf32>
      %17 = arith.addf %14, %16 : vector<16x32xf32>
      %c0_14 = arith.constant 0 : index
      %c0_15 = arith.constant 0 : index
      %18 = vector.load %arg5[%c0_14, %c0_15] : memref<16x32xf32, #tpu.memory_space<vmem>>, vector<16x32xf32>
      %19 = arith.addf %17, %18 : vector<16x32xf32>
      %cst_16 = arith.constant dense<0.000000e+00> : vector<16xf32>
      %20 = vector.multi_reduction <add>, %19, %cst_16 [1] : vector<16x32xf32> to vector<16xf32>
      %21 = vector.shape_cast %20 : vector<16xf32> to vector<16x1xf32>
      %cst_17 = arith.constant 3.200000e+01 : f32
      %22 = vector.broadcast %cst_17 : f32 to vector<16x1xf32>
      %23 = arith.divf %21, %22 : vector<16x1xf32>
      %24 = vector.broadcast %23 : vector<16x1xf32> to vector<16x32xf32>
      %25 = arith.subf %19, %24 : vector<16x32xf32>
      %26 = arith.mulf %25, %25 : vector<16x32xf32>
      %cst_18 = arith.constant dense<0.000000e+00> : vector<16xf32>
      %27 = vector.multi_reduction <add>, %26, %cst_18 [1] : vector<16x32xf32> to vector<16xf32>
      %28 = vector.shape_cast %27 : vector<16xf32> to vector<16x1xf32>
      %cst_19 = arith.constant 3.200000e+01 : f32
      %29 = vector.broadcast %cst_19 : f32 to vector<16x1xf32>
      %30 = arith.divf %28, %29 : vector<16x1xf32>
      %cst_20 = arith.constant 9.99999974E-6 : f32
      %31 = vector.broadcast %cst_20 : f32 to vector<16x1xf32>
      %32 = arith.addf %30, %31 : vector<16x1xf32>
      %33 = math.rsqrt %32 : vector<16x1xf32>
      %34 = vector.broadcast %33 : vector<16x1xf32> to vector<16x32xf32>
      %35 = arith.mulf %25, %34 : vector<16x32xf32>
      %c0_21 = arith.constant 0 : index
      %c0_22 = arith.constant 0 : index
      %36 = vector.load %arg6[%c0_21, %c0_22] : memref<1x32xf32, #tpu.memory_space<vmem>>, vector<1x32xf32>
      %37 = vector.broadcast %36 : vector<1x32xf32> to vector<16x32xf32>
      %38 = arith.mulf %35, %37 : vector<16x32xf32>
      %c0_23 = arith.constant 0 : index
      %c0_24 = arith.constant 0 : index
      %39 = vector.load %arg7[%c0_23, %c0_24] : memref<1x32xf32, #tpu.memory_space<vmem>>, vector<1x32xf32>
      %40 = vector.broadcast %39 : vector<1x32xf32> to vector<16x32xf32>
      %41 = arith.addf %38, %40 : vector<16x32xf32>
      %c0_25 = arith.constant 0 : index
      %c0_26 = arith.constant 0 : index
      %42 = vector.load %arg8[%c0_25, %c0_26] : memref<16x32xf32, #tpu.memory_space<vmem>>, vector<16x32xf32>
      tpu.vector_store %arg8[%c0_25, %c0_26], %41 {strides = array<i32>} : memref<16x32xf32, #tpu.memory_space<vmem>>, vector<16x32xf32>,
    } else {
    }
    return
  }
  func.func @transform_0(%arg0: i32, %arg1: i32) -> (i32, i32) {
    %c0_i32 = arith.constant 0 : i32
    return %arg0, %arg1 : i32, i32
  }
  func.func @transform_1(%arg0: i32, %arg1: i32) -> (i32, i32) {
    %c0_i32 = arith.constant 0 : i32
    %c0_i32_0 = arith.constant 0 : i32
    return %arg1, %c0_i32 : i32, i32
  }
  func.func @transform_2(%arg0: i32, %arg1: i32) -> (i32, i32) {
    %c0_i32 = arith.constant 0 : i32
    %c0_i32_0 = arith.constant 0 : i32
    %c0_i32_1 = arith.constant 0 : i32
    return %c0_i32, %c0_i32_0 : i32, i32
  }
  func.func @transform_3(%arg0: i32, %arg1: i32) -> (i32, i32) {
    %c0_i32 = arith.constant 0 : i32
    %c0_i32_0 = arith.constant 0 : i32
    return %arg0, %c0_i32 : i32, i32
  }
  func.func @transform_4(%arg0: i32, %arg1: i32) -> (i32, i32) {
    %c0_i32 = arith.constant 0 : i32
    %c0_i32_0 = arith.constant 0 : i32
    %c0_i32_1 = arith.constant 0 : i32
    return %c0_i32, %c0_i32_0 : i32, i32
  }
  func.func @transform_5(%arg0: i32, %arg1: i32) -> (i32, i32) {
    %c0_i32 = arith.constant 0 : i32
    %c0_i32_0 = arith.constant 0 : i32
    %c0_i32_1 = arith.constant 0 : i32
    return %c0_i32, %c0_i32_0 : i32, i32
  }
  func.func @transform_6(%arg0: i32, %arg1: i32) -> (i32, i32) {
    %c0_i32 = arith.constant 0 : i32
    %c0_i32_0 = arith.constant 0 : i32
    return %arg0, %c0_i32 : i32, i32
  }
}

module attributes {stable_mosaic.version = 11 : i64} {
  func.func @_matmul_kernel(%arg0: i32, %arg1: i32, %arg2: i32, %arg3: memref<32x32xf32, #tpu.memory_space<vmem>>, %arg4: memref<1x32x32xf32, #tpu.memory_space<vmem>>, %arg5: memref<1x1x32xf32, #tpu.memory_space<vmem>>, %arg6: memref<1x32x32xf32, #tpu.memory_space<vmem>>, %arg7: memref<32x32xf32, #tpu.memory_space<vmem>>) attributes {dimension_semantics = [#tpu.dimension_semantics<parallel>, #tpu.dimension_semantics<parallel>, #tpu.dimension_semantics<arbitrary>], iteration_bounds = array<i64: 3, 1, 1>, scalar_prefetch = 0 : i64, scratch_operands = 1 : i64, tpu.core_type = #tpu.core_type<tc>, window_params = [{transform_indices = @transform_0, window_bounds = array<i64: 32, 32>}, {transform_indices = @transform_1, window_bounds = array<i64: 1, 32, 32>}, {transform_indices = @transform_2, window_bounds = array<i64: 1, 1, 32>}, {transform_indices = @transform_3, window_bounds = array<i64: 1, 32, 32>}]} {
    %c0_i32 = arith.constant 0 : i32
    %0 = arith.cmpi eq, %arg2, %c0_i32 : i32
    %1 = arith.extui %0 : i1 to i32
    %c0_i32_0 = arith.constant 0 : i32
    %2 = arith.cmpi ne, %1, %c0_i32_0 : i32
    scf.if %2 {
      %cst_11 = arith.constant 0.000000e+00 : f32
      %15 = vector.broadcast %cst_11 : f32 to vector<32x32xf32>
      %c0_12 = arith.constant 0 : index
      %c0_13 = arith.constant 0 : index
      %16 = vector.load %arg7[%c0_12, %c0_13] : memref<32x32xf32, #tpu.memory_space<vmem>>, vector<32x32xf32>
      tpu.vector_store %arg7[%c0_12, %c0_13], %15 {strides = array<i32>} : memref<32x32xf32, #tpu.memory_space<vmem>>, vector<32x32xf32>,
    } else {
    }
    %c0 = arith.constant 0 : index
    %c0_1 = arith.constant 0 : index
    %3 = vector.load %arg7[%c0, %c0_1] : memref<32x32xf32, #tpu.memory_space<vmem>>, vector<32x32xf32>
    %c0_2 = arith.constant 0 : index
    %c0_3 = arith.constant 0 : index
    %4 = vector.load %arg3[%c0_2, %c0_3] : memref<32x32xf32, #tpu.memory_space<vmem>>, vector<32x32xf32>
    %5 = arith.truncf %4 : vector<32x32xf32> to vector<32x32xbf16>
    %c0_4 = arith.constant 0 : index
    %c0_5 = arith.constant 0 : index
    %c0_6 = arith.constant 0 : index
    %6 = vector.load %arg4[%c0_4, %c0_5, %c0_6] : memref<1x32x32xf32, #tpu.memory_space<vmem>>, vector<1x32x32xf32>
    %7 = vector.shape_cast %6 : vector<1x32x32xf32> to vector<32x32xf32>
    %8 = arith.truncf %7 : vector<32x32xf32> to vector<32x32xbf16>
    %cst = arith.constant dense<0.000000e+00> : vector<32x32xf32>
    %9 = tpu.matmul %5, %8, %cst {dimension_numbers = #tpu.dot_dimension_numbers<[1], [0], [0], [1], [0, 0, 1, 1], [], []>} : vector<32x32xbf16>, vector<32x32xbf16>, vector<32x32xf32> -> vector<32x32xf32>
    %10 = arith.addf %3, %9 : vector<32x32xf32>
    %c0_7 = arith.constant 0 : index
    %c0_8 = arith.constant 0 : index
    %11 = vector.load %arg7[%c0_7, %c0_8] : memref<32x32xf32, #tpu.memory_space<vmem>>, vector<32x32xf32>
    tpu.vector_store %arg7[%c0_7, %c0_8], %10 {strides = array<i32>} : memref<32x32xf32, #tpu.memory_space<vmem>>, vector<32x32xf32>,
    %c0_i32_9 = arith.constant 0 : i32
    %12 = arith.cmpi eq, %arg2, %c0_i32_9 : i32
    %13 = arith.extui %12 : i1 to i32
    %c0_i32_10 = arith.constant 0 : i32
    %14 = arith.cmpi ne, %13, %c0_i32_10 : i32
    scf.if %14 {
      %c0_11 = arith.constant 0 : index
      %c0_12 = arith.constant 0 : index
      %15 = vector.load %arg7[%c0_11, %c0_12] : memref<32x32xf32, #tpu.memory_space<vmem>>, vector<32x32xf32>
      %c0_13 = arith.constant 0 : index
      %c0_14 = arith.constant 0 : index
      %c0_15 = arith.constant 0 : index
      %16 = vector.load %arg5[%c0_13, %c0_14, %c0_15] : memref<1x1x32xf32, #tpu.memory_space<vmem>>, vector<1x1x32xf32>
      %17 = vector.shape_cast %16 : vector<1x1x32xf32> to vector<1x32xf32>
      %18 = vector.broadcast %17 : vector<1x32xf32> to vector<32x32xf32>
      %19 = arith.addf %15, %18 : vector<32x32xf32>
      %c0_16 = arith.constant 0 : index
      %c0_17 = arith.constant 0 : index
      %c0_18 = arith.constant 0 : index
      %20 = vector.load %arg6[%c0_16, %c0_17, %c0_18] : memref<1x32x32xf32, #tpu.memory_space<vmem>>, vector<1x32x32xf32>
      %21 = vector.shape_cast %20 : vector<1x32x32xf32> to vector<32x32xf32>
      %22 = vector.shape_cast %19 : vector<32x32xf32> to vector<1x32x32xf32>
      tpu.vector_store %arg6[%c0_16, %c0_17, %c0_18], %22 {strides = array<i32>} : memref<1x32x32xf32, #tpu.memory_space<vmem>>, vector<1x32x32xf32>,
    } else {
    }
    return
  }
  func.func @transform_0(%arg0: i32, %arg1: i32, %arg2: i32) -> (i32, i32) {
    %c0_i32 = arith.constant 0 : i32
    return %arg1, %arg2 : i32, i32
  }
  func.func @transform_1(%arg0: i32, %arg1: i32, %arg2: i32) -> (i32, i32, i32) {
    %c0_i32 = arith.constant 0 : i32
    %c0_i32_0 = arith.constant 0 : i32
    return %arg0, %arg2, %c0_i32 : i32, i32, i32
  }
  func.func @transform_2(%arg0: i32, %arg1: i32, %arg2: i32) -> (i32, i32, i32) {
    %c0_i32 = arith.constant 0 : i32
    %c0_i32_0 = arith.constant 0 : i32
    %c0_i32_1 = arith.constant 0 : i32
    return %arg0, %c0_i32, %c0_i32_0 : i32, i32, i32
  }
  func.func @transform_3(%arg0: i32, %arg1: i32, %arg2: i32) -> (i32, i32, i32) {
    %c0_i32 = arith.constant 0 : i32
    %c0_i32_0 = arith.constant 0 : i32
    return %arg0, %arg1, %c0_i32 : i32, i32, i32
  }
}

module attributes {stable_mosaic.version = 11 : i64} {
  func.func @_matmul_add_ln_kernel(%arg0: i32, %arg1: i32, %arg2: memref<32x32xf32, #tpu.memory_space<vmem>>, %arg3: memref<32x32xf32, #tpu.memory_space<vmem>>, %arg4: memref<1x32xf32, #tpu.memory_space<vmem>>, %arg5: memref<32x32xf32, #tpu.memory_space<vmem>>, %arg6: memref<1x32xf32, #tpu.memory_space<vmem>>, %arg7: memref<1x32xf32, #tpu.memory_space<vmem>>, %arg8: memref<32x32xf32, #tpu.memory_space<vmem>>, %arg9: memref<32x32xf32, #tpu.memory_space<vmem>>) attributes {dimension_semantics = [#tpu.dimension_semantics<parallel>, #tpu.dimension_semantics<arbitrary>], iteration_bounds = array<i64: 1, 1>, scalar_prefetch = 0 : i64, scratch_operands = 1 : i64, tpu.core_type = #tpu.core_type<tc>, window_params = [{transform_indices = @transform_0, window_bounds = array<i64: 32, 32>}, {transform_indices = @transform_1, window_bounds = array<i64: 32, 32>}, {pipeline_mode = #tpu.pipeline_mode<synchronous>, transform_indices = @transform_2, window_bounds = array<i64: 1, 32>}, {transform_indices = @transform_3, window_bounds = array<i64: 32, 32>}, {pipeline_mode = #tpu.pipeline_mode<synchronous>, transform_indices = @transform_4, window_bounds = array<i64: 1, 32>}, {pipeline_mode = #tpu.pipeline_mode<synchronous>, transform_indices = @transform_5, window_bounds = array<i64: 1, 32>}, {transform_indices = @transform_6, window_bounds = array<i64: 32, 32>}]} {
    %c0_i32 = arith.constant 0 : i32
    %0 = arith.cmpi eq, %arg1, %c0_i32 : i32
    %1 = arith.extui %0 : i1 to i32
    %c0_i32_0 = arith.constant 0 : i32
    %2 = arith.cmpi ne, %1, %c0_i32_0 : i32
    scf.if %2 {
      %cst_10 = arith.constant 0.000000e+00 : f32
      %14 = vector.broadcast %cst_10 : f32 to vector<32x32xf32>
      %c0_11 = arith.constant 0 : index
      %c0_12 = arith.constant 0 : index
      %15 = vector.load %arg9[%c0_11, %c0_12] : memref<32x32xf32, #tpu.memory_space<vmem>>, vector<32x32xf32>
      tpu.vector_store %arg9[%c0_11, %c0_12], %14 {strides = array<i32>} : memref<32x32xf32, #tpu.memory_space<vmem>>, vector<32x32xf32>,
    } else {
    }
    %c0 = arith.constant 0 : index
    %c0_1 = arith.constant 0 : index
    %3 = vector.load %arg9[%c0, %c0_1] : memref<32x32xf32, #tpu.memory_space<vmem>>, vector<32x32xf32>
    %c0_2 = arith.constant 0 : index
    %c0_3 = arith.constant 0 : index
    %4 = vector.load %arg2[%c0_2, %c0_3] : memref<32x32xf32, #tpu.memory_space<vmem>>, vector<32x32xf32>
    %5 = arith.truncf %4 : vector<32x32xf32> to vector<32x32xbf16>
    %c0_4 = arith.constant 0 : index
    %c0_5 = arith.constant 0 : index
    %6 = vector.load %arg3[%c0_4, %c0_5] : memref<32x32xf32, #tpu.memory_space<vmem>>, vector<32x32xf32>
    %7 = arith.truncf %6 : vector<32x32xf32> to vector<32x32xbf16>
    %cst = arith.constant dense<0.000000e+00> : vector<32x32xf32>
    %8 = tpu.matmul %5, %7, %cst {dimension_numbers = #tpu.dot_dimension_numbers<[1], [0], [0], [1], [0, 0, 1, 1], [], []>} : vector<32x32xbf16>, vector<32x32xbf16>, vector<32x32xf32> -> vector<32x32xf32>
    %9 = arith.addf %3, %8 : vector<32x32xf32>
    %c0_6 = arith.constant 0 : index
    %c0_7 = arith.constant 0 : index
    %10 = vector.load %arg9[%c0_6, %c0_7] : memref<32x32xf32, #tpu.memory_space<vmem>>, vector<32x32xf32>
    tpu.vector_store %arg9[%c0_6, %c0_7], %9 {strides = array<i32>} : memref<32x32xf32, #tpu.memory_space<vmem>>, vector<32x32xf32>,
    %c0_i32_8 = arith.constant 0 : i32
    %11 = arith.cmpi eq, %arg1, %c0_i32_8 : i32
    %12 = arith.extui %11 : i1 to i32
    %c0_i32_9 = arith.constant 0 : i32
    %13 = arith.cmpi ne, %12, %c0_i32_9 : i32
    scf.if %13 {
      %c0_10 = arith.constant 0 : index
      %c0_11 = arith.constant 0 : index
      %14 = vector.load %arg9[%c0_10, %c0_11] : memref<32x32xf32, #tpu.memory_space<vmem>>, vector<32x32xf32>
      %c0_12 = arith.constant 0 : index
      %c0_13 = arith.constant 0 : index
      %15 = vector.load %arg4[%c0_12, %c0_13] : memref<1x32xf32, #tpu.memory_space<vmem>>, vector<1x32xf32>
      %16 = vector.broadcast %15 : vector<1x32xf32> to vector<32x32xf32>
      %17 = arith.addf %14, %16 : vector<32x32xf32>
      %c0_14 = arith.constant 0 : index
      %c0_15 = arith.constant 0 : index
      %18 = vector.load %arg5[%c0_14, %c0_15] : memref<32x32xf32, #tpu.memory_space<vmem>>, vector<32x32xf32>
      %19 = arith.addf %17, %18 : vector<32x32xf32>
      %cst_16 = arith.constant dense<0.000000e+00> : vector<32xf32>
      %20 = vector.multi_reduction <add>, %19, %cst_16 [1] : vector<32x32xf32> to vector<32xf32>
      %21 = vector.shape_cast %20 : vector<32xf32> to vector<32x1xf32>
      %cst_17 = arith.constant 3.200000e+01 : f32
      %22 = vector.broadcast %cst_17 : f32 to vector<32x1xf32>
      %23 = arith.divf %21, %22 : vector<32x1xf32>
      %24 = vector.broadcast %23 : vector<32x1xf32> to vector<32x32xf32>
      %25 = arith.subf %19, %24 : vector<32x32xf32>
      %26 = arith.mulf %25, %25 : vector<32x32xf32>
      %cst_18 = arith.constant dense<0.000000e+00> : vector<32xf32>
      %27 = vector.multi_reduction <add>, %26, %cst_18 [1] : vector<32x32xf32> to vector<32xf32>
      %28 = vector.shape_cast %27 : vector<32xf32> to vector<32x1xf32>
      %cst_19 = arith.constant 3.200000e+01 : f32
      %29 = vector.broadcast %cst_19 : f32 to vector<32x1xf32>
      %30 = arith.divf %28, %29 : vector<32x1xf32>
      %cst_20 = arith.constant 9.99999974E-6 : f32
      %31 = vector.broadcast %cst_20 : f32 to vector<32x1xf32>
      %32 = arith.addf %30, %31 : vector<32x1xf32>
      %33 = math.rsqrt %32 : vector<32x1xf32>
      %34 = vector.broadcast %33 : vector<32x1xf32> to vector<32x32xf32>
      %35 = arith.mulf %25, %34 : vector<32x32xf32>
      %c0_21 = arith.constant 0 : index
      %c0_22 = arith.constant 0 : index
      %36 = vector.load %arg6[%c0_21, %c0_22] : memref<1x32xf32, #tpu.memory_space<vmem>>, vector<1x32xf32>
      %37 = vector.broadcast %36 : vector<1x32xf32> to vector<32x32xf32>
      %38 = arith.mulf %35, %37 : vector<32x32xf32>
      %c0_23 = arith.constant 0 : index
      %c0_24 = arith.constant 0 : index
      %39 = vector.load %arg7[%c0_23, %c0_24] : memref<1x32xf32, #tpu.memory_space<vmem>>, vector<1x32xf32>
      %40 = vector.broadcast %39 : vector<1x32xf32> to vector<32x32xf32>
      %41 = arith.addf %38, %40 : vector<32x32xf32>
      %c0_25 = arith.constant 0 : index
      %c0_26 = arith.constant 0 : index
      %42 = vector.load %arg8[%c0_25, %c0_26] : memref<32x32xf32, #tpu.memory_space<vmem>>, vector<32x32xf32>
      tpu.vector_store %arg8[%c0_25, %c0_26], %41 {strides = array<i32>} : memref<32x32xf32, #tpu.memory_space<vmem>>, vector<32x32xf32>,
    } else {
    }
    return
  }
  func.func @transform_0(%arg0: i32, %arg1: i32) -> (i32, i32) {
    %c0_i32 = arith.constant 0 : i32
    return %arg0, %arg1 : i32, i32
  }
  func.func @transform_1(%arg0: i32, %arg1: i32) -> (i32, i32) {
    %c0_i32 = arith.constant 0 : i32
    %c0_i32_0 = arith.constant 0 : i32
    return %arg1, %c0_i32 : i32, i32
  }
  func.func @transform_2(%arg0: i32, %arg1: i32) -> (i32, i32) {
    %c0_i32 = arith.constant 0 : i32
    %c0_i32_0 = arith.constant 0 : i32
    %c0_i32_1 = arith.constant 0 : i32
    return %c0_i32, %c0_i32_0 : i32, i32
  }
  func.func @transform_3(%arg0: i32, %arg1: i32) -> (i32, i32) {
    %c0_i32 = arith.constant 0 : i32
    %c0_i32_0 = arith.constant 0 : i32
    return %arg0, %c0_i32 : i32, i32
  }
  func.func @transform_4(%arg0: i32, %arg1: i32) -> (i32, i32) {
    %c0_i32 = arith.constant 0 : i32
    %c0_i32_0 = arith.constant 0 : i32
    %c0_i32_1 = arith.constant 0 : i32
    return %c0_i32, %c0_i32_0 : i32, i32
  }
  func.func @transform_5(%arg0: i32, %arg1: i32) -> (i32, i32) {
    %c0_i32 = arith.constant 0 : i32
    %c0_i32_0 = arith.constant 0 : i32
    %c0_i32_1 = arith.constant 0 : i32
    return %c0_i32, %c0_i32_0 : i32, i32
  }
  func.func @transform_6(%arg0: i32, %arg1: i32) -> (i32, i32) {
    %c0_i32 = arith.constant 0 : i32
    %c0_i32_0 = arith.constant 0 : i32
    return %arg0, %c0_i32 : i32, i32
  }
}

module attributes {stable_mosaic.version = 11 : i64} {
  func.func @_attn_kernel(%arg0: i32, %arg1: i32, %arg2: i32, %arg3: memref<1x1x16x32xf32, #tpu.memory_space<vmem>>, %arg4: memref<1x1x16x32xf32, #tpu.memory_space<vmem>>, %arg5: memref<1x1x16x32xf32, #tpu.memory_space<vmem>>, %arg6: memref<1x1x16xf32, #tpu.memory_space<vmem>>, %arg7: memref<1x16x32xf32, #tpu.memory_space<vmem>>, %arg8: memref<16x4xf32, #tpu.memory_space<vmem>>, %arg9: memref<16x4xf32, #tpu.memory_space<vmem>>, %arg10: memref<16x32xf32, #tpu.memory_space<vmem>>) attributes {dimension_semantics = [#tpu.dimension_semantics<parallel>, #tpu.dimension_semantics<parallel>, #tpu.dimension_semantics<arbitrary>], iteration_bounds = array<i64: 2, 1, 1>, scalar_prefetch = 0 : i64, scratch_operands = 3 : i64, tpu.core_type = #tpu.core_type<tc>, window_params = [{transform_indices = @transform_0, window_bounds = array<i64: 1, 1, 16, 32>}, {transform_indices = @transform_1, window_bounds = array<i64: 1, 1, 16, 32>}, {transform_indices = @transform_2, window_bounds = array<i64: 1, 1, 16, 32>}, {transform_indices = @transform_3, window_bounds = array<i64: 1, 1, 16>}, {transform_indices = @transform_4, window_bounds = array<i64: 1, 16, 32>}]} {
    %c0_i32 = arith.constant 0 : i32
    %0 = arith.cmpi eq, %arg2, %c0_i32 : i32
    %1 = arith.extui %0 : i1 to i32
    %c0_i32_0 = arith.constant 0 : i32
    %2 = arith.cmpi ne, %1, %c0_i32_0 : i32
    scf.if %2 {
      %cst_74 = arith.constant 0xFF800000 : f32
      %133 = vector.broadcast %cst_74 : f32 to vector<16x4xf32>
      %c0_75 = arith.constant 0 : index
      %c0_76 = arith.constant 0 : index
      %134 = vector.load %arg8[%c0_75, %c0_76] : memref<16x4xf32, #tpu.memory_space<vmem>>, vector<16x4xf32>
      tpu.vector_store %arg8[%c0_75, %c0_76], %133 {strides = array<i32>} : memref<16x4xf32, #tpu.memory_space<vmem>>, vector<16x4xf32>,
      %cst_77 = arith.constant 0.000000e+00 : f32
      %135 = vector.broadcast %cst_77 : f32 to vector<16x4xf32>
      %c0_78 = arith.constant 0 : index
      %c0_79 = arith.constant 0 : index
      %136 = vector.load %arg9[%c0_78, %c0_79] : memref<16x4xf32, #tpu.memory_space<vmem>>, vector<16x4xf32>
      tpu.vector_store %arg9[%c0_78, %c0_79], %135 {strides = array<i32>} : memref<16x4xf32, #tpu.memory_space<vmem>>, vector<16x4xf32>,
      %cst_80 = arith.constant 0.000000e+00 : f32
      %137 = vector.broadcast %cst_80 : f32 to vector<16x32xf32>
      %c0_81 = arith.constant 0 : index
      %c0_82 = arith.constant 0 : index
      %138 = vector.load %arg10[%c0_81, %c0_82] : memref<16x32xf32, #tpu.memory_space<vmem>>, vector<16x32xf32>
      tpu.vector_store %arg10[%c0_81, %c0_82], %137 {strides = array<i32>} : memref<16x32xf32, #tpu.memory_space<vmem>>, vector<16x32xf32>,
    } else {
    }
    %c0 = arith.constant 0 : index
    %c0_1 = arith.constant 0 : index
    %c0_2 = arith.constant 0 : index
    %c0_3 = arith.constant 0 : index
    %3 = vector.load %arg3[%c0, %c0_1, %c0_2, %c0_3] : memref<1x1x16x32xf32, #tpu.memory_space<vmem>>, vector<1x1x16x32xf32>
    %4 = vector.shape_cast %3 : vector<1x1x16x32xf32> to vector<16x32xf32>
    %5 = arith.truncf %4 : vector<16x32xf32> to vector<16x32xbf16>
    %c0_4 = arith.constant 0 : index
    %c0_5 = arith.constant 0 : index
    %c0_6 = arith.constant 0 : index
    %c0_7 = arith.constant 0 : index
    %6 = vector.load %arg4[%c0_4, %c0_5, %c0_6, %c0_7] : memref<1x1x16x32xf32, #tpu.memory_space<vmem>>, vector<1x1x16x32xf32>
    %7 = vector.shape_cast %6 : vector<1x1x16x32xf32> to vector<16x32xf32>
    %8 = arith.truncf %7 : vector<16x32xf32> to vector<16x32xbf16>
    %c0_8 = arith.constant 0 : index
    %c0_9 = arith.constant 0 : index
    %c0_10 = arith.constant 0 : index
    %c0_11 = arith.constant 0 : index
    %9 = vector.load %arg5[%c0_8, %c0_9, %c0_10, %c0_11] : memref<1x1x16x32xf32, #tpu.memory_space<vmem>>, vector<1x1x16x32xf32>
    %10 = vector.shape_cast %9 : vector<1x1x16x32xf32> to vector<16x32xf32>
    %11 = arith.truncf %10 : vector<16x32xf32> to vector<16x32xbf16>
    %c0_12 = arith.constant 0 : index
    %c0_13 = arith.constant 0 : index
    %c0_14 = arith.constant 0 : index
    %12 = vector.load %arg6[%c0_12, %c0_13, %c0_14] : memref<1x1x16xf32, #tpu.memory_space<vmem>>, vector<1x1x16xf32>
    %13 = vector.shape_cast %12 : vector<1x1x16xf32> to vector<1x16xf32>
    %14 = vector.extract_strided_slice %5 {offsets = [0, 0], sizes = [16, 8], strides = [1, 1]} : vector<16x32xbf16> to vector<16x8xbf16>
    %15 = vector.extract_strided_slice %8 {offsets = [0, 0], sizes = [16, 8], strides = [1, 1]} : vector<16x32xbf16> to vector<16x8xbf16>
    %cst = arith.constant dense<0.000000e+00> : vector<16x16xf32>
    %16 = tpu.matmul %14, %15, %cst {dimension_numbers = #tpu.dot_dimension_numbers<[1], [1], [0], [0], [0, 0, 1, 0], [], []>} : vector<16x8xbf16>, vector<16x8xbf16>, vector<16x16xf32> -> vector<16x16xf32>
    %17 = vector.broadcast %13 : vector<1x16xf32> to vector<16x16xf32>
    %18 = arith.addf %16, %17 : vector<16x16xf32>
    %c0_15 = arith.constant 0 : index
    %c0_16 = arith.constant 0 : index
    %19 = vector.load %arg8[%c0_15, %c0_16] : memref<16x4xf32, #tpu.memory_space<vmem>>, vector<16x1xf32>
    %cst_17 = arith.constant dense<0xFF800000> : vector<16xf32>
    %20 = vector.multi_reduction <maximumf>, %18, %cst_17 [1] : vector<16x16xf32> to vector<16xf32>
    %21 = vector.shape_cast %20 : vector<16xf32> to vector<16x1xf32>
    %22 = arith.maximumf %19, %21 : vector<16x1xf32>
    %23 = arith.subf %19, %22 : vector<16x1xf32>
    %24 = math.exp %23 : vector<16x1xf32>
    %25 = vector.broadcast %22 : vector<16x1xf32> to vector<16x16xf32>
    %26 = arith.subf %18, %25 : vector<16x16xf32>
    %27 = math.exp %26 : vector<16x16xf32>
    %c0_18 = arith.constant 0 : index
    %c0_19 = arith.constant 0 : index
    %28 = vector.load %arg9[%c0_18, %c0_19] : memref<16x4xf32, #tpu.memory_space<vmem>>, vector<16x1xf32>
    %29 = arith.mulf %24, %28 : vector<16x1xf32>
    %cst_20 = arith.constant dense<0.000000e+00> : vector<16xf32>
    %30 = vector.multi_reduction <add>, %27, %cst_20 [1] : vector<16x16xf32> to vector<16xf32>
    %31 = vector.shape_cast %30 : vector<16xf32> to vector<16x1xf32>
    %32 = arith.addf %29, %31 : vector<16x1xf32>
    %c0_21 = arith.constant 0 : index
    %c0_22 = arith.constant 0 : index
    %33 = vector.load %arg9[%c0_21, %c0_22] : memref<16x4xf32, #tpu.memory_space<vmem>>, vector<16x1xf32>
    tpu.vector_store %arg9[%c0_21, %c0_22], %32 {strides = array<i32>} : memref<16x4xf32, #tpu.memory_space<vmem>>, vector<16x1xf32>,
    %c0_23 = arith.constant 0 : index
    %c0_24 = arith.constant 0 : index
    %34 = vector.load %arg10[%c0_23, %c0_24] : memref<16x32xf32, #tpu.memory_space<vmem>>, vector<16x8xf32>
    %35 = vector.broadcast %24 : vector<16x1xf32> to vector<16x8xf32>
    %36 = arith.mulf %35, %34 : vector<16x8xf32>
    %37 = arith.truncf %27 : vector<16x16xf32> to vector<16x16xbf16>
    %38 = vector.extract_strided_slice %11 {offsets = [0, 0], sizes = [16, 8], strides = [1, 1]} : vector<16x32xbf16> to vector<16x8xbf16>
    %cst_25 = arith.constant dense<0.000000e+00> : vector<16x8xf32>
    %39 = tpu.matmul %37, %38, %cst_25 {dimension_numbers = #tpu.dot_dimension_numbers<[1], [0], [0], [1], [0, 0, 1, 1], [], []>} : vector<16x16xbf16>, vector<16x8xbf16>, vector<16x8xf32> -> vector<16x8xf32>
    %40 = arith.addf %36, %39 : vector<16x8xf32>
    %c0_26 = arith.constant 0 : index
    %c0_27 = arith.constant 0 : index
    %41 = vector.load %arg10[%c0_26, %c0_27] : memref<16x32xf32, #tpu.memory_space<vmem>>, vector<16x8xf32>
    tpu.vector_store %arg10[%c0_26, %c0_27], %40 {strides = array<i32>} : memref<16x32xf32, #tpu.memory_space<vmem>>, vector<16x8xf32>,
    %c0_28 = arith.constant 0 : index
    %c0_29 = arith.constant 0 : index
    %42 = vector.load %arg8[%c0_28, %c0_29] : memref<16x4xf32, #tpu.memory_space<vmem>>, vector<16x1xf32>
    tpu.vector_store %arg8[%c0_28, %c0_29], %22 {strides = array<i32>} : memref<16x4xf32, #tpu.memory_space<vmem>>, vector<16x1xf32>,
    %43 = vector.extract_strided_slice %5 {offsets = [0, 8], sizes = [16, 8], strides = [1, 1]} : vector<16x32xbf16> to vector<16x8xbf16>
    %44 = vector.extract_strided_slice %8 {offsets = [0, 8], sizes = [16, 8], strides = [1, 1]} : vector<16x32xbf16> to vector<16x8xbf16>
    %cst_30 = arith.constant dense<0.000000e+00> : vector<16x16xf32>
    %45 = tpu.matmul %43, %44, %cst_30 {dimension_numbers = #tpu.dot_dimension_numbers<[1], [1], [0], [0], [0, 0, 1, 0], [], []>} : vector<16x8xbf16>, vector<16x8xbf16>, vector<16x16xf32> -> vector<16x16xf32>
    %46 = vector.broadcast %13 : vector<1x16xf32> to vector<16x16xf32>
    %47 = arith.addf %45, %46 : vector<16x16xf32>
    %c0_31 = arith.constant 0 : index
    %c1 = arith.constant 1 : index
    %48 = vector.load %arg8[%c0_31, %c1] : memref<16x4xf32, #tpu.memory_space<vmem>>, vector<16x1xf32>
    %cst_32 = arith.constant dense<0xFF800000> : vector<16xf32>
    %49 = vector.multi_reduction <maximumf>, %47, %cst_32 [1] : vector<16x16xf32> to vector<16xf32>
    %50 = vector.shape_cast %49 : vector<16xf32> to vector<16x1xf32>
    %51 = arith.maximumf %48, %50 : vector<16x1xf32>
    %52 = arith.subf %48, %51 : vector<16x1xf32>
    %53 = math.exp %52 : vector<16x1xf32>
    %54 = vector.broadcast %51 : vector<16x1xf32> to vector<16x16xf32>
    %55 = arith.subf %47, %54 : vector<16x16xf32>
    %56 = math.exp %55 : vector<16x16xf32>
    %c0_33 = arith.constant 0 : index
    %c1_34 = arith.constant 1 : index
    %57 = vector.load %arg9[%c0_33, %c1_34] : memref<16x4xf32, #tpu.memory_space<vmem>>, vector<16x1xf32>
    %58 = arith.mulf %53, %57 : vector<16x1xf32>
    %cst_35 = arith.constant dense<0.000000e+00> : vector<16xf32>
    %59 = vector.multi_reduction <add>, %56, %cst_35 [1] : vector<16x16xf32> to vector<16xf32>
    %60 = vector.shape_cast %59 : vector<16xf32> to vector<16x1xf32>
    %61 = arith.addf %58, %60 : vector<16x1xf32>
    %c0_36 = arith.constant 0 : index
    %c1_37 = arith.constant 1 : index
    %62 = vector.load %arg9[%c0_36, %c1_37] : memref<16x4xf32, #tpu.memory_space<vmem>>, vector<16x1xf32>
    tpu.vector_store %arg9[%c0_36, %c1_37], %61 {strides = array<i32>} : memref<16x4xf32, #tpu.memory_space<vmem>>, vector<16x1xf32>,
    %c0_38 = arith.constant 0 : index
    %c8 = arith.constant 8 : index
    %63 = vector.load %arg10[%c0_38, %c8] : memref<16x32xf32, #tpu.memory_space<vmem>>, vector<16x8xf32>
    %64 = vector.broadcast %53 : vector<16x1xf32> to vector<16x8xf32>
    %65 = arith.mulf %64, %63 : vector<16x8xf32>
    %66 = arith.truncf %56 : vector<16x16xf32> to vector<16x16xbf16>
    %67 = vector.extract_strided_slice %11 {offsets = [0, 8], sizes = [16, 8], strides = [1, 1]} : vector<16x32xbf16> to vector<16x8xbf16>
    %cst_39 = arith.constant dense<0.000000e+00> : vector<16x8xf32>
    %68 = tpu.matmul %66, %67, %cst_39 {dimension_numbers = #tpu.dot_dimension_numbers<[1], [0], [0], [1], [0, 0, 1, 1], [], []>} : vector<16x16xbf16>, vector<16x8xbf16>, vector<16x8xf32> -> vector<16x8xf32>
    %69 = arith.addf %65, %68 : vector<16x8xf32>
    %c0_40 = arith.constant 0 : index
    %c8_41 = arith.constant 8 : index
    %70 = vector.load %arg10[%c0_40, %c8_41] : memref<16x32xf32, #tpu.memory_space<vmem>>, vector<16x8xf32>
    tpu.vector_store %arg10[%c0_40, %c8_41], %69 {strides = array<i32>} : memref<16x32xf32, #tpu.memory_space<vmem>>, vector<16x8xf32>,
    %c0_42 = arith.constant 0 : index
    %c1_43 = arith.constant 1 : index
    %71 = vector.load %arg8[%c0_42, %c1_43] : memref<16x4xf32, #tpu.memory_space<vmem>>, vector<16x1xf32>
    tpu.vector_store %arg8[%c0_42, %c1_43], %51 {strides = array<i32>} : memref<16x4xf32, #tpu.memory_space<vmem>>, vector<16x1xf32>,
    %72 = vector.extract_strided_slice %5 {offsets = [0, 16], sizes = [16, 8], strides = [1, 1]} : vector<16x32xbf16> to vector<16x8xbf16>
    %73 = vector.extract_strided_slice %8 {offsets = [0, 16], sizes = [16, 8], strides = [1, 1]} : vector<16x32xbf16> to vector<16x8xbf16>
    %cst_44 = arith.constant dense<0.000000e+00> : vector<16x16xf32>
    %74 = tpu.matmul %72, %73, %cst_44 {dimension_numbers = #tpu.dot_dimension_numbers<[1], [1], [0], [0], [0, 0, 1, 0], [], []>} : vector<16x8xbf16>, vector<16x8xbf16>, vector<16x16xf32> -> vector<16x16xf32>
    %75 = vector.broadcast %13 : vector<1x16xf32> to vector<16x16xf32>
    %76 = arith.addf %74, %75 : vector<16x16xf32>
    %c0_45 = arith.constant 0 : index
    %c2 = arith.constant 2 : index
    %77 = vector.load %arg8[%c0_45, %c2] : memref<16x4xf32, #tpu.memory_space<vmem>>, vector<16x1xf32>
    %cst_46 = arith.constant dense<0xFF800000> : vector<16xf32>
    %78 = vector.multi_reduction <maximumf>, %76, %cst_46 [1] : vector<16x16xf32> to vector<16xf32>
    %79 = vector.shape_cast %78 : vector<16xf32> to vector<16x1xf32>
    %80 = arith.maximumf %77, %79 : vector<16x1xf32>
    %81 = arith.subf %77, %80 : vector<16x1xf32>
    %82 = math.exp %81 : vector<16x1xf32>
    %83 = vector.broadcast %80 : vector<16x1xf32> to vector<16x16xf32>
    %84 = arith.subf %76, %83 : vector<16x16xf32>
    %85 = math.exp %84 : vector<16x16xf32>
    %c0_47 = arith.constant 0 : index
    %c2_48 = arith.constant 2 : index
    %86 = vector.load %arg9[%c0_47, %c2_48] : memref<16x4xf32, #tpu.memory_space<vmem>>, vector<16x1xf32>
    %87 = arith.mulf %82, %86 : vector<16x1xf32>
    %cst_49 = arith.constant dense<0.000000e+00> : vector<16xf32>
    %88 = vector.multi_reduction <add>, %85, %cst_49 [1] : vector<16x16xf32> to vector<16xf32>
    %89 = vector.shape_cast %88 : vector<16xf32> to vector<16x1xf32>
    %90 = arith.addf %87, %89 : vector<16x1xf32>
    %c0_50 = arith.constant 0 : index
    %c2_51 = arith.constant 2 : index
    %91 = vector.load %arg9[%c0_50, %c2_51] : memref<16x4xf32, #tpu.memory_space<vmem>>, vector<16x1xf32>
    tpu.vector_store %arg9[%c0_50, %c2_51], %90 {strides = array<i32>} : memref<16x4xf32, #tpu.memory_space<vmem>>, vector<16x1xf32>,
    %c0_52 = arith.constant 0 : index
    %c16 = arith.constant 16 : index
    %92 = vector.load %arg10[%c0_52, %c16] : memref<16x32xf32, #tpu.memory_space<vmem>>, vector<16x8xf32>
    %93 = vector.broadcast %82 : vector<16x1xf32> to vector<16x8xf32>
    %94 = arith.mulf %93, %92 : vector<16x8xf32>
    %95 = arith.truncf %85 : vector<16x16xf32> to vector<16x16xbf16>
    %96 = vector.extract_strided_slice %11 {offsets = [0, 16], sizes = [16, 8], strides = [1, 1]} : vector<16x32xbf16> to vector<16x8xbf16>
    %cst_53 = arith.constant dense<0.000000e+00> : vector<16x8xf32>
    %97 = tpu.matmul %95, %96, %cst_53 {dimension_numbers = #tpu.dot_dimension_numbers<[1], [0], [0], [1], [0, 0, 1, 1], [], []>} : vector<16x16xbf16>, vector<16x8xbf16>, vector<16x8xf32> -> vector<16x8xf32>
    %98 = arith.addf %94, %97 : vector<16x8xf32>
    %c0_54 = arith.constant 0 : index
    %c16_55 = arith.constant 16 : index
    %99 = vector.load %arg10[%c0_54, %c16_55] : memref<16x32xf32, #tpu.memory_space<vmem>>, vector<16x8xf32>
    tpu.vector_store %arg10[%c0_54, %c16_55], %98 {strides = array<i32>} : memref<16x32xf32, #tpu.memory_space<vmem>>, vector<16x8xf32>,
    %c0_56 = arith.constant 0 : index
    %c2_57 = arith.constant 2 : index
    %100 = vector.load %arg8[%c0_56, %c2_57] : memref<16x4xf32, #tpu.memory_space<vmem>>, vector<16x1xf32>
    tpu.vector_store %arg8[%c0_56, %c2_57], %80 {strides = array<i32>} : memref<16x4xf32, #tpu.memory_space<vmem>>, vector<16x1xf32>,
    %101 = vector.extract_strided_slice %5 {offsets = [0, 24], sizes = [16, 8], strides = [1, 1]} : vector<16x32xbf16> to vector<16x8xbf16>
    %102 = vector.extract_strided_slice %8 {offsets = [0, 24], sizes = [16, 8], strides = [1, 1]} : vector<16x32xbf16> to vector<16x8xbf16>
    %cst_58 = arith.constant dense<0.000000e+00> : vector<16x16xf32>
    %103 = tpu.matmul %101, %102, %cst_58 {dimension_numbers = #tpu.dot_dimension_numbers<[1], [1], [0], [0], [0, 0, 1, 0], [], []>} : vector<16x8xbf16>, vector<16x8xbf16>, vector<16x16xf32> -> vector<16x16xf32>
    %104 = vector.broadcast %13 : vector<1x16xf32> to vector<16x16xf32>
    %105 = arith.addf %103, %104 : vector<16x16xf32>
    %c0_59 = arith.constant 0 : index
    %c3 = arith.constant 3 : index
    %106 = vector.load %arg8[%c0_59, %c3] : memref<16x4xf32, #tpu.memory_space<vmem>>, vector<16x1xf32>
    %cst_60 = arith.constant dense<0xFF800000> : vector<16xf32>
    %107 = vector.multi_reduction <maximumf>, %105, %cst_60 [1] : vector<16x16xf32> to vector<16xf32>
    %108 = vector.shape_cast %107 : vector<16xf32> to vector<16x1xf32>
    %109 = arith.maximumf %106, %108 : vector<16x1xf32>
    %110 = arith.subf %106, %109 : vector<16x1xf32>
    %111 = math.exp %110 : vector<16x1xf32>
    %112 = vector.broadcast %109 : vector<16x1xf32> to vector<16x16xf32>
    %113 = arith.subf %105, %112 : vector<16x16xf32>
    %114 = math.exp %113 : vector<16x16xf32>
    %c0_61 = arith.constant 0 : index
    %c3_62 = arith.constant 3 : index
    %115 = vector.load %arg9[%c0_61, %c3_62] : memref<16x4xf32, #tpu.memory_space<vmem>>, vector<16x1xf32>
    %116 = arith.mulf %111, %115 : vector<16x1xf32>
    %cst_63 = arith.constant dense<0.000000e+00> : vector<16xf32>
    %117 = vector.multi_reduction <add>, %114, %cst_63 [1] : vector<16x16xf32> to vector<16xf32>
    %118 = vector.shape_cast %117 : vector<16xf32> to vector<16x1xf32>
    %119 = arith.addf %116, %118 : vector<16x1xf32>
    %c0_64 = arith.constant 0 : index
    %c3_65 = arith.constant 3 : index
    %120 = vector.load %arg9[%c0_64, %c3_65] : memref<16x4xf32, #tpu.memory_space<vmem>>, vector<16x1xf32>
    tpu.vector_store %arg9[%c0_64, %c3_65], %119 {strides = array<i32>} : memref<16x4xf32, #tpu.memory_space<vmem>>, vector<16x1xf32>,
    %c0_66 = arith.constant 0 : index
    %c24 = arith.constant 24 : index
    %121 = vector.load %arg10[%c0_66, %c24] : memref<16x32xf32, #tpu.memory_space<vmem>>, vector<16x8xf32>
    %122 = vector.broadcast %111 : vector<16x1xf32> to vector<16x8xf32>
    %123 = arith.mulf %122, %121 : vector<16x8xf32>
    %124 = arith.truncf %114 : vector<16x16xf32> to vector<16x16xbf16>
    %125 = vector.extract_strided_slice %11 {offsets = [0, 24], sizes = [16, 8], strides = [1, 1]} : vector<16x32xbf16> to vector<16x8xbf16>
    %cst_67 = arith.constant dense<0.000000e+00> : vector<16x8xf32>
    %126 = tpu.matmul %124, %125, %cst_67 {dimension_numbers = #tpu.dot_dimension_numbers<[1], [0], [0], [1], [0, 0, 1, 1], [], []>} : vector<16x16xbf16>, vector<16x8xbf16>, vector<16x8xf32> -> vector<16x8xf32>
    %127 = arith.addf %123, %126 : vector<16x8xf32>
    %c0_68 = arith.constant 0 : index
    %c24_69 = arith.constant 24 : index
    %128 = vector.load %arg10[%c0_68, %c24_69] : memref<16x32xf32, #tpu.memory_space<vmem>>, vector<16x8xf32>
    tpu.vector_store %arg10[%c0_68, %c24_69], %127 {strides = array<i32>} : memref<16x32xf32, #tpu.memory_space<vmem>>, vector<16x8xf32>,
    %c0_70 = arith.constant 0 : index
    %c3_71 = arith.constant 3 : index
    %129 = vector.load %arg8[%c0_70, %c3_71] : memref<16x4xf32, #tpu.memory_space<vmem>>, vector<16x1xf32>
    tpu.vector_store %arg8[%c0_70, %c3_71], %109 {strides = array<i32>} : memref<16x4xf32, #tpu.memory_space<vmem>>, vector<16x1xf32>,
    %c0_i32_72 = arith.constant 0 : i32
    %130 = arith.cmpi eq, %arg2, %c0_i32_72 : i32
    %131 = arith.extui %130 : i1 to i32
    %c0_i32_73 = arith.constant 0 : i32
    %132 = arith.cmpi ne, %131, %c0_i32_73 : i32
    scf.if %132 {
      %c0_74 = arith.constant 0 : index
      %c0_75 = arith.constant 0 : index
      %133 = vector.load %arg10[%c0_74, %c0_75] : memref<16x32xf32, #tpu.memory_space<vmem>>, vector<16x8xf32>
      %c0_76 = arith.constant 0 : index
      %c0_77 = arith.constant 0 : index
      %134 = vector.load %arg9[%c0_76, %c0_77] : memref<16x4xf32, #tpu.memory_space<vmem>>, vector<16x1xf32>
      %135 = vector.broadcast %134 : vector<16x1xf32> to vector<16x8xf32>
      %136 = arith.divf %133, %135 : vector<16x8xf32>
      %c0_78 = arith.constant 0 : index
      %c0_79 = arith.constant 0 : index
      %c0_80 = arith.constant 0 : index
      %137 = vector.load %arg7[%c0_78, %c0_79, %c0_80] : memref<1x16x32xf32, #tpu.memory_space<vmem>>, vector<1x16x8xf32>
      %138 = vector.shape_cast %137 : vector<1x16x8xf32> to vector<16x8xf32>
      %139 = vector.shape_cast %136 : vector<16x8xf32> to vector<1x16x8xf32>
      tpu.vector_store %arg7[%c0_78, %c0_79, %c0_80], %139 {strides = array<i32>} : memref<1x16x32xf32, #tpu.memory_space<vmem>>, vector<1x16x8xf32>,
      %c0_81 = arith.constant 0 : index
      %c8_82 = arith.constant 8 : index
      %140 = vector.load %arg10[%c0_81, %c8_82] : memref<16x32xf32, #tpu.memory_space<vmem>>, vector<16x8xf32>
      %c0_83 = arith.constant 0 : index
      %c1_84 = arith.constant 1 : index
      %141 = vector.load %arg9[%c0_83, %c1_84] : memref<16x4xf32, #tpu.memory_space<vmem>>, vector<16x1xf32>
      %142 = vector.broadcast %141 : vector<16x1xf32> to vector<16x8xf32>
      %143 = arith.divf %140, %142 : vector<16x8xf32>
      %c0_85 = arith.constant 0 : index
      %c0_86 = arith.constant 0 : index
      %c8_87 = arith.constant 8 : index
      %144 = vector.load %arg7[%c0_85, %c0_86, %c8_87] : memref<1x16x32xf32, #tpu.memory_space<vmem>>, vector<1x16x8xf32>
      %145 = vector.shape_cast %144 : vector<1x16x8xf32> to vector<16x8xf32>
      %146 = vector.shape_cast %143 : vector<16x8xf32> to vector<1x16x8xf32>
      tpu.vector_store %arg7[%c0_85, %c0_86, %c8_87], %146 {strides = array<i32>} : memref<1x16x32xf32, #tpu.memory_space<vmem>>, vector<1x16x8xf32>,
      %c0_88 = arith.constant 0 : index
      %c16_89 = arith.constant 16 : index
      %147 = vector.load %arg10[%c0_88, %c16_89] : memref<16x32xf32, #tpu.memory_space<vmem>>, vector<16x8xf32>
      %c0_90 = arith.constant 0 : index
      %c2_91 = arith.constant 2 : index
      %148 = vector.load %arg9[%c0_90, %c2_91] : memref<16x4xf32, #tpu.memory_space<vmem>>, vector<16x1xf32>
      %149 = vector.broadcast %148 : vector<16x1xf32> to vector<16x8xf32>
      %150 = arith.divf %147, %149 : vector<16x8xf32>
      %c0_92 = arith.constant 0 : index
      %c0_93 = arith.constant 0 : index
      %c16_94 = arith.constant 16 : index
      %151 = vector.load %arg7[%c0_92, %c0_93, %c16_94] : memref<1x16x32xf32, #tpu.memory_space<vmem>>, vector<1x16x8xf32>
      %152 = vector.shape_cast %151 : vector<1x16x8xf32> to vector<16x8xf32>
      %153 = vector.shape_cast %150 : vector<16x8xf32> to vector<1x16x8xf32>
      tpu.vector_store %arg7[%c0_92, %c0_93, %c16_94], %153 {strides = array<i32>} : memref<1x16x32xf32, #tpu.memory_space<vmem>>, vector<1x16x8xf32>,
      %c0_95 = arith.constant 0 : index
      %c24_96 = arith.constant 24 : index
      %154 = vector.load %arg10[%c0_95, %c24_96] : memref<16x32xf32, #tpu.memory_space<vmem>>, vector<16x8xf32>
      %c0_97 = arith.constant 0 : index
      %c3_98 = arith.constant 3 : index
      %155 = vector.load %arg9[%c0_97, %c3_98] : memref<16x4xf32, #tpu.memory_space<vmem>>, vector<16x1xf32>
      %156 = vector.broadcast %155 : vector<16x1xf32> to vector<16x8xf32>
      %157 = arith.divf %154, %156 : vector<16x8xf32>
      %c0_99 = arith.constant 0 : index
      %c0_100 = arith.constant 0 : index
      %c24_101 = arith.constant 24 : index
      %158 = vector.load %arg7[%c0_99, %c0_100, %c24_101] : memref<1x16x32xf32, #tpu.memory_space<vmem>>, vector<1x16x8xf32>
      %159 = vector.shape_cast %158 : vector<1x16x8xf32> to vector<16x8xf32>
      %160 = vector.shape_cast %157 : vector<16x8xf32> to vector<1x16x8xf32>
      tpu.vector_store %arg7[%c0_99, %c0_100, %c24_101], %160 {strides = array<i32>} : memref<1x16x32xf32, #tpu.memory_space<vmem>>, vector<1x16x8xf32>,
    } else {
    }
    return
  }
  func.func @transform_0(%arg0: i32, %arg1: i32, %arg2: i32) -> (i32, i32, i32, i32) {
    %c0_i32 = arith.constant 0 : i32
    %c0_i32_0 = arith.constant 0 : i32
    %c0_i32_1 = arith.constant 0 : i32
    return %c0_i32, %arg0, %arg1, %c0_i32_0 : i32, i32, i32, i32
  }
  func.func @transform_1(%arg0: i32, %arg1: i32, %arg2: i32) -> (i32, i32, i32, i32) {
    %c1_i32 = arith.constant 1 : i32
    %c0_i32 = arith.constant 0 : i32
    %c0_i32_0 = arith.constant 0 : i32
    return %c1_i32, %arg0, %arg2, %c0_i32 : i32, i32, i32, i32
  }
  func.func @transform_2(%arg0: i32, %arg1: i32, %arg2: i32) -> (i32, i32, i32, i32) {
    %c2_i32 = arith.constant 2 : i32
    %c0_i32 = arith.constant 0 : i32
    %c0_i32_0 = arith.constant 0 : i32
    return %c2_i32, %arg0, %arg2, %c0_i32 : i32, i32, i32, i32
  }
  func.func @transform_3(%arg0: i32, %arg1: i32, %arg2: i32) -> (i32, i32, i32) {
    %c0_i32 = arith.constant 0 : i32
    %c0_i32_0 = arith.constant 0 : i32
    return %arg0, %c0_i32, %arg2 : i32, i32, i32
  }
  func.func @transform_4(%arg0: i32, %arg1: i32, %arg2: i32) -> (i32, i32, i32) {
    %c0_i32 = arith.constant 0 : i32
    %c0_i32_0 = arith.constant 0 : i32
    return %arg0, %arg1, %c0_i32 : i32, i32, i32
  }
}

module attributes {stable_mosaic.version = 11 : i64} {
  func.func @_matmul_kernel(%arg0: i32, %arg1: i32, %arg2: i32, %arg3: memref<32x32xf32, #tpu.memory_space<vmem>>, %arg4: memref<1x32x32xf32, #tpu.memory_space<vmem>>, %arg5: memref<1x1x32xf32, #tpu.memory_space<vmem>>, %arg6: memref<1x32x32xf32, #tpu.memory_space<vmem>>, %arg7: memref<32x32xf32, #tpu.memory_space<vmem>>) attributes {dimension_semantics = [#tpu.dimension_semantics<parallel>, #tpu.dimension_semantics<parallel>, #tpu.dimension_semantics<arbitrary>], iteration_bounds = array<i64: 2, 1, 1>, scalar_prefetch = 0 : i64, scratch_operands = 1 : i64, tpu.core_type = #tpu.core_type<tc>, window_params = [{transform_indices = @transform_0, window_bounds = array<i64: 32, 32>}, {transform_indices = @transform_1, window_bounds = array<i64: 1, 32, 32>}, {transform_indices = @transform_2, window_bounds = array<i64: 1, 1, 32>}, {transform_indices = @transform_3, window_bounds = array<i64: 1, 32, 32>}]} {
    %c0_i32 = arith.constant 0 : i32
    %0 = arith.cmpi eq, %arg2, %c0_i32 : i32
    %1 = arith.extui %0 : i1 to i32
    %c0_i32_0 = arith.constant 0 : i32
    %2 = arith.cmpi ne, %1, %c0_i32_0 : i32
    scf.if %2 {
      %cst_11 = arith.constant 0.000000e+00 : f32
      %15 = vector.broadcast %cst_11 : f32 to vector<32x32xf32>
      %c0_12 = arith.constant 0 : index
      %c0_13 = arith.constant 0 : index
      %16 = vector.load %arg7[%c0_12, %c0_13] : memref<32x32xf32, #tpu.memory_space<vmem>>, vector<32x32xf32>
      tpu.vector_store %arg7[%c0_12, %c0_13], %15 {strides = array<i32>} : memref<32x32xf32, #tpu.memory_space<vmem>>, vector<32x32xf32>,
    } else {
    }
    %c0 = arith.constant 0 : index
    %c0_1 = arith.constant 0 : index
    %3 = vector.load %arg7[%c0, %c0_1] : memref<32x32xf32, #tpu.memory_space<vmem>>, vector<32x32xf32>
    %c0_2 = arith.constant 0 : index
    %c0_3 = arith.constant 0 : index
    %4 = vector.load %arg3[%c0_2, %c0_3] : memref<32x32xf32, #tpu.memory_space<vmem>>, vector<32x32xf32>
    %5 = arith.truncf %4 : vector<32x32xf32> to vector<32x32xbf16>
    %c0_4 = arith.constant 0 : index
    %c0_5 = arith.constant 0 : index
    %c0_6 = arith.constant 0 : index
    %6 = vector.load %arg4[%c0_4, %c0_5, %c0_6] : memref<1x32x32xf32, #tpu.memory_space<vmem>>, vector<1x32x32xf32>
    %7 = vector.shape_cast %6 : vector<1x32x32xf32> to vector<32x32xf32>
    %8 = arith.truncf %7 : vector<32x32xf32> to vector<32x32xbf16>
    %cst = arith.constant dense<0.000000e+00> : vector<32x32xf32>
    %9 = tpu.matmul %5, %8, %cst {dimension_numbers = #tpu.dot_dimension_numbers<[1], [0], [0], [1], [0, 0, 1, 1], [], []>} : vector<32x32xbf16>, vector<32x32xbf16>, vector<32x32xf32> -> vector<32x32xf32>
    %10 = arith.addf %3, %9 : vector<32x32xf32>
    %c0_7 = arith.constant 0 : index
    %c0_8 = arith.constant 0 : index
    %11 = vector.load %arg7[%c0_7, %c0_8] : memref<32x32xf32, #tpu.memory_space<vmem>>, vector<32x32xf32>
    tpu.vector_store %arg7[%c0_7, %c0_8], %10 {strides = array<i32>} : memref<32x32xf32, #tpu.memory_space<vmem>>, vector<32x32xf32>,
    %c0_i32_9 = arith.constant 0 : i32
    %12 = arith.cmpi eq, %arg2, %c0_i32_9 : i32
    %13 = arith.extui %12 : i1 to i32
    %c0_i32_10 = arith.constant 0 : i32
    %14 = arith.cmpi ne, %13, %c0_i32_10 : i32
    scf.if %14 {
      %c0_11 = arith.constant 0 : index
      %c0_12 = arith.constant 0 : index
      %15 = vector.load %arg7[%c0_11, %c0_12] : memref<32x32xf32, #tpu.memory_space<vmem>>, vector<32x32xf32>
      %c0_13 = arith.constant 0 : index
      %c0_14 = arith.constant 0 : index
      %c0_15 = arith.constant 0 : index
      %16 = vector.load %arg5[%c0_13, %c0_14, %c0_15] : memref<1x1x32xf32, #tpu.memory_space<vmem>>, vector<1x1x32xf32>
      %17 = vector.shape_cast %16 : vector<1x1x32xf32> to vector<1x32xf32>
      %18 = vector.broadcast %17 : vector<1x32xf32> to vector<32x32xf32>
      %19 = arith.addf %15, %18 : vector<32x32xf32>
      %c0_16 = arith.constant 0 : index
      %c0_17 = arith.constant 0 : index
      %c0_18 = arith.constant 0 : index
      %20 = vector.load %arg6[%c0_16, %c0_17, %c0_18] : memref<1x32x32xf32, #tpu.memory_space<vmem>>, vector<1x32x32xf32>
      %21 = vector.shape_cast %20 : vector<1x32x32xf32> to vector<32x32xf32>
      %22 = vector.shape_cast %19 : vector<32x32xf32> to vector<1x32x32xf32>
      tpu.vector_store %arg6[%c0_16, %c0_17, %c0_18], %22 {strides = array<i32>} : memref<1x32x32xf32, #tpu.memory_space<vmem>>, vector<1x32x32xf32>,
    } else {
    }
    return
  }
  func.func @transform_0(%arg0: i32, %arg1: i32, %arg2: i32) -> (i32, i32) {
    %c0_i32 = arith.constant 0 : i32
    return %arg1, %arg2 : i32, i32
  }
  func.func @transform_1(%arg0: i32, %arg1: i32, %arg2: i32) -> (i32, i32, i32) {
    %c0_i32 = arith.constant 0 : i32
    %c0_i32_0 = arith.constant 0 : i32
    return %arg0, %arg2, %c0_i32 : i32, i32, i32
  }
  func.func @transform_2(%arg0: i32, %arg1: i32, %arg2: i32) -> (i32, i32, i32) {
    %c0_i32 = arith.constant 0 : i32
    %c0_i32_0 = arith.constant 0 : i32
    %c0_i32_1 = arith.constant 0 : i32
    return %arg0, %c0_i32, %c0_i32_0 : i32, i32, i32
  }
  func.func @transform_3(%arg0: i32, %arg1: i32, %arg2: i32) -> (i32, i32, i32) {
    %c0_i32 = arith.constant 0 : i32
    %c0_i32_0 = arith.constant 0 : i32
    return %arg0, %arg1, %c0_i32 : i32, i32, i32
  }
}

module attributes {stable_mosaic.version = 11 : i64} {
  func.func @_attn_kernel(%arg0: i32, %arg1: i32, %arg2: i32, %arg3: memref<1x8x32xf32, #tpu.memory_space<vmem>>, %arg4: memref<1x1x16x32xf32, #tpu.memory_space<vmem>>, %arg5: memref<1x1x16x32xf32, #tpu.memory_space<vmem>>, %arg6: memref<1x1x16xf32, #tpu.memory_space<vmem>>, %arg7: memref<1x8x32xf32, #tpu.memory_space<vmem>>, %arg8: memref<8x4xf32, #tpu.memory_space<vmem>>, %arg9: memref<8x4xf32, #tpu.memory_space<vmem>>, %arg10: memref<8x32xf32, #tpu.memory_space<vmem>>) attributes {dimension_semantics = [#tpu.dimension_semantics<parallel>, #tpu.dimension_semantics<parallel>, #tpu.dimension_semantics<arbitrary>], iteration_bounds = array<i64: 2, 1, 1>, scalar_prefetch = 0 : i64, scratch_operands = 3 : i64, tpu.core_type = #tpu.core_type<tc>, window_params = [{transform_indices = @transform_0, window_bounds = array<i64: 1, 8, 32>}, {transform_indices = @transform_1, window_bounds = array<i64: 1, 1, 16, 32>}, {transform_indices = @transform_2, window_bounds = array<i64: 1, 1, 16, 32>}, {transform_indices = @transform_3, window_bounds = array<i64: 1, 1, 16>}, {transform_indices = @transform_4, window_bounds = array<i64: 1, 8, 32>}]} {
    %c0_i32 = arith.constant 0 : i32
    %0 = arith.cmpi eq, %arg2, %c0_i32 : i32
    %1 = arith.extui %0 : i1 to i32
    %c0_i32_0 = arith.constant 0 : i32
    %2 = arith.cmpi ne, %1, %c0_i32_0 : i32
    scf.if %2 {
      %cst_73 = arith.constant 0xFF800000 : f32
      %133 = vector.broadcast %cst_73 : f32 to vector<8x4xf32>
      %c0_74 = arith.constant 0 : index
      %c0_75 = arith.constant 0 : index
      %134 = vector.load %arg8[%c0_74, %c0_75] : memref<8x4xf32, #tpu.memory_space<vmem>>, vector<8x4xf32>
      tpu.vector_store %arg8[%c0_74, %c0_75], %133 {strides = array<i32>} : memref<8x4xf32, #tpu.memory_space<vmem>>, vector<8x4xf32>,
      %cst_76 = arith.constant 0.000000e+00 : f32
      %135 = vector.broadcast %cst_76 : f32 to vector<8x4xf32>
      %c0_77 = arith.constant 0 : index
      %c0_78 = arith.constant 0 : index
      %136 = vector.load %arg9[%c0_77, %c0_78] : memref<8x4xf32, #tpu.memory_space<vmem>>, vector<8x4xf32>
      tpu.vector_store %arg9[%c0_77, %c0_78], %135 {strides = array<i32>} : memref<8x4xf32, #tpu.memory_space<vmem>>, vector<8x4xf32>,
      %cst_79 = arith.constant 0.000000e+00 : f32
      %137 = vector.broadcast %cst_79 : f32 to vector<8x32xf32>
      %c0_80 = arith.constant 0 : index
      %c0_81 = arith.constant 0 : index
      %138 = vector.load %arg10[%c0_80, %c0_81] : memref<8x32xf32, #tpu.memory_space<vmem>>, vector<8x32xf32>
      tpu.vector_store %arg10[%c0_80, %c0_81], %137 {strides = array<i32>} : memref<8x32xf32, #tpu.memory_space<vmem>>, vector<8x32xf32>,
    } else {
    }
    %c0 = arith.constant 0 : index
    %c0_1 = arith.constant 0 : index
    %c0_2 = arith.constant 0 : index
    %3 = vector.load %arg3[%c0, %c0_1, %c0_2] : memref<1x8x32xf32, #tpu.memory_space<vmem>>, vector<1x8x32xf32>
    %4 = vector.shape_cast %3 : vector<1x8x32xf32> to vector<8x32xf32>
    %5 = arith.truncf %4 : vector<8x32xf32> to vector<8x32xbf16>
    %c0_3 = arith.constant 0 : index
    %c0_4 = arith.constant 0 : index
    %c0_5 = arith.constant 0 : index
    %c0_6 = arith.constant 0 : index
    %6 = vector.load %arg4[%c0_3, %c0_4, %c0_5, %c0_6] : memref<1x1x16x32xf32, #tpu.memory_space<vmem>>, vector<1x1x16x32xf32>
    %7 = vector.shape_cast %6 : vector<1x1x16x32xf32> to vector<16x32xf32>
    %8 = arith.truncf %7 : vector<16x32xf32> to vector<16x32xbf16>
    %c0_7 = arith.constant 0 : index
    %c0_8 = arith.constant 0 : index
    %c0_9 = arith.constant 0 : index
    %c0_10 = arith.constant 0 : index
    %9 = vector.load %arg5[%c0_7, %c0_8, %c0_9, %c0_10] : memref<1x1x16x32xf32, #tpu.memory_space<vmem>>, vector<1x1x16x32xf32>
    %10 = vector.shape_cast %9 : vector<1x1x16x32xf32> to vector<16x32xf32>
    %11 = arith.truncf %10 : vector<16x32xf32> to vector<16x32xbf16>
    %c0_11 = arith.constant 0 : index
    %c0_12 = arith.constant 0 : index
    %c0_13 = arith.constant 0 : index
    %12 = vector.load %arg6[%c0_11, %c0_12, %c0_13] : memref<1x1x16xf32, #tpu.memory_space<vmem>>, vector<1x1x16xf32>
    %13 = vector.shape_cast %12 : vector<1x1x16xf32> to vector<1x16xf32>
    %14 = vector.extract_strided_slice %5 {offsets = [0, 0], sizes = [8, 8], strides = [1, 1]} : vector<8x32xbf16> to vector<8x8xbf16>
    %15 = vector.extract_strided_slice %8 {offsets = [0, 0], sizes = [16, 8], strides = [1, 1]} : vector<16x32xbf16> to vector<16x8xbf16>
    %cst = arith.constant dense<0.000000e+00> : vector<8x16xf32>
    %16 = tpu.matmul %14, %15, %cst {dimension_numbers = #tpu.dot_dimension_numbers<[1], [1], [0], [0], [0, 0, 1, 0], [], []>} : vector<8x8xbf16>, vector<16x8xbf16>, vector<8x16xf32> -> vector<8x16xf32>
    %17 = vector.broadcast %13 : vector<1x16xf32> to vector<8x16xf32>
    %18 = arith.addf %16, %17 : vector<8x16xf32>
    %c0_14 = arith.constant 0 : index
    %c0_15 = arith.constant 0 : index
    %19 = vector.load %arg8[%c0_14, %c0_15] : memref<8x4xf32, #tpu.memory_space<vmem>>, vector<8x1xf32>
    %cst_16 = arith.constant dense<0xFF800000> : vector<8xf32>
    %20 = vector.multi_reduction <maximumf>, %18, %cst_16 [1] : vector<8x16xf32> to vector<8xf32>
    %21 = vector.shape_cast %20 : vector<8xf32> to vector<8x1xf32>
    %22 = arith.maximumf %19, %21 : vector<8x1xf32>
    %23 = arith.subf %19, %22 : vector<8x1xf32>
    %24 = math.exp %23 : vector<8x1xf32>
    %25 = vector.broadcast %22 : vector<8x1xf32> to vector<8x16xf32>
    %26 = arith.subf %18, %25 : vector<8x16xf32>
    %27 = math.exp %26 : vector<8x16xf32>
    %c0_17 = arith.constant 0 : index
    %c0_18 = arith.constant 0 : index
    %28 = vector.load %arg9[%c0_17, %c0_18] : memref<8x4xf32, #tpu.memory_space<vmem>>, vector<8x1xf32>
    %29 = arith.mulf %24, %28 : vector<8x1xf32>
    %cst_19 = arith.constant dense<0.000000e+00> : vector<8xf32>
    %30 = vector.multi_reduction <add>, %27, %cst_19 [1] : vector<8x16xf32> to vector<8xf32>
    %31 = vector.shape_cast %30 : vector<8xf32> to vector<8x1xf32>
    %32 = arith.addf %29, %31 : vector<8x1xf32>
    %c0_20 = arith.constant 0 : index
    %c0_21 = arith.constant 0 : index
    %33 = vector.load %arg9[%c0_20, %c0_21] : memref<8x4xf32, #tpu.memory_space<vmem>>, vector<8x1xf32>
    tpu.vector_store %arg9[%c0_20, %c0_21], %32 {strides = array<i32>} : memref<8x4xf32, #tpu.memory_space<vmem>>, vector<8x1xf32>,
    %c0_22 = arith.constant 0 : index
    %c0_23 = arith.constant 0 : index
    %34 = vector.load %arg10[%c0_22, %c0_23] : memref<8x32xf32, #tpu.memory_space<vmem>>, vector<8x8xf32>
    %35 = vector.broadcast %24 : vector<8x1xf32> to vector<8x8xf32>
    %36 = arith.mulf %35, %34 : vector<8x8xf32>
    %37 = arith.truncf %27 : vector<8x16xf32> to vector<8x16xbf16>
    %38 = vector.extract_strided_slice %11 {offsets = [0, 0], sizes = [16, 8], strides = [1, 1]} : vector<16x32xbf16> to vector<16x8xbf16>
    %cst_24 = arith.constant dense<0.000000e+00> : vector<8x8xf32>
    %39 = tpu.matmul %37, %38, %cst_24 {dimension_numbers = #tpu.dot_dimension_numbers<[1], [0], [0], [1], [0, 0, 1, 1], [], []>} : vector<8x16xbf16>, vector<16x8xbf16>, vector<8x8xf32> -> vector<8x8xf32>
    %40 = arith.addf %36, %39 : vector<8x8xf32>
    %c0_25 = arith.constant 0 : index
    %c0_26 = arith.constant 0 : index
    %41 = vector.load %arg10[%c0_25, %c0_26] : memref<8x32xf32, #tpu.memory_space<vmem>>, vector<8x8xf32>
    tpu.vector_store %arg10[%c0_25, %c0_26], %40 {strides = array<i32>} : memref<8x32xf32, #tpu.memory_space<vmem>>, vector<8x8xf32>,
    %c0_27 = arith.constant 0 : index
    %c0_28 = arith.constant 0 : index
    %42 = vector.load %arg8[%c0_27, %c0_28] : memref<8x4xf32, #tpu.memory_space<vmem>>, vector<8x1xf32>
    tpu.vector_store %arg8[%c0_27, %c0_28], %22 {strides = array<i32>} : memref<8x4xf32, #tpu.memory_space<vmem>>, vector<8x1xf32>,
    %43 = vector.extract_strided_slice %5 {offsets = [0, 8], sizes = [8, 8], strides = [1, 1]} : vector<8x32xbf16> to vector<8x8xbf16>
    %44 = vector.extract_strided_slice %8 {offsets = [0, 8], sizes = [16, 8], strides = [1, 1]} : vector<16x32xbf16> to vector<16x8xbf16>
    %cst_29 = arith.constant dense<0.000000e+00> : vector<8x16xf32>
    %45 = tpu.matmul %43, %44, %cst_29 {dimension_numbers = #tpu.dot_dimension_numbers<[1], [1], [0], [0], [0, 0, 1, 0], [], []>} : vector<8x8xbf16>, vector<16x8xbf16>, vector<8x16xf32> -> vector<8x16xf32>
    %46 = vector.broadcast %13 : vector<1x16xf32> to vector<8x16xf32>
    %47 = arith.addf %45, %46 : vector<8x16xf32>
    %c0_30 = arith.constant 0 : index
    %c1 = arith.constant 1 : index
    %48 = vector.load %arg8[%c0_30, %c1] : memref<8x4xf32, #tpu.memory_space<vmem>>, vector<8x1xf32>
    %cst_31 = arith.constant dense<0xFF800000> : vector<8xf32>
    %49 = vector.multi_reduction <maximumf>, %47, %cst_31 [1] : vector<8x16xf32> to vector<8xf32>
    %50 = vector.shape_cast %49 : vector<8xf32> to vector<8x1xf32>
    %51 = arith.maximumf %48, %50 : vector<8x1xf32>
    %52 = arith.subf %48, %51 : vector<8x1xf32>
    %53 = math.exp %52 : vector<8x1xf32>
    %54 = vector.broadcast %51 : vector<8x1xf32> to vector<8x16xf32>
    %55 = arith.subf %47, %54 : vector<8x16xf32>
    %56 = math.exp %55 : vector<8x16xf32>
    %c0_32 = arith.constant 0 : index
    %c1_33 = arith.constant 1 : index
    %57 = vector.load %arg9[%c0_32, %c1_33] : memref<8x4xf32, #tpu.memory_space<vmem>>, vector<8x1xf32>
    %58 = arith.mulf %53, %57 : vector<8x1xf32>
    %cst_34 = arith.constant dense<0.000000e+00> : vector<8xf32>
    %59 = vector.multi_reduction <add>, %56, %cst_34 [1] : vector<8x16xf32> to vector<8xf32>
    %60 = vector.shape_cast %59 : vector<8xf32> to vector<8x1xf32>
    %61 = arith.addf %58, %60 : vector<8x1xf32>
    %c0_35 = arith.constant 0 : index
    %c1_36 = arith.constant 1 : index
    %62 = vector.load %arg9[%c0_35, %c1_36] : memref<8x4xf32, #tpu.memory_space<vmem>>, vector<8x1xf32>
    tpu.vector_store %arg9[%c0_35, %c1_36], %61 {strides = array<i32>} : memref<8x4xf32, #tpu.memory_space<vmem>>, vector<8x1xf32>,
    %c0_37 = arith.constant 0 : index
    %c8 = arith.constant 8 : index
    %63 = vector.load %arg10[%c0_37, %c8] : memref<8x32xf32, #tpu.memory_space<vmem>>, vector<8x8xf32>
    %64 = vector.broadcast %53 : vector<8x1xf32> to vector<8x8xf32>
    %65 = arith.mulf %64, %63 : vector<8x8xf32>
    %66 = arith.truncf %56 : vector<8x16xf32> to vector<8x16xbf16>
    %67 = vector.extract_strided_slice %11 {offsets = [0, 8], sizes = [16, 8], strides = [1, 1]} : vector<16x32xbf16> to vector<16x8xbf16>
    %cst_38 = arith.constant dense<0.000000e+00> : vector<8x8xf32>
    %68 = tpu.matmul %66, %67, %cst_38 {dimension_numbers = #tpu.dot_dimension_numbers<[1], [0], [0], [1], [0, 0, 1, 1], [], []>} : vector<8x16xbf16>, vector<16x8xbf16>, vector<8x8xf32> -> vector<8x8xf32>
    %69 = arith.addf %65, %68 : vector<8x8xf32>
    %c0_39 = arith.constant 0 : index
    %c8_40 = arith.constant 8 : index
    %70 = vector.load %arg10[%c0_39, %c8_40] : memref<8x32xf32, #tpu.memory_space<vmem>>, vector<8x8xf32>
    tpu.vector_store %arg10[%c0_39, %c8_40], %69 {strides = array<i32>} : memref<8x32xf32, #tpu.memory_space<vmem>>, vector<8x8xf32>,
    %c0_41 = arith.constant 0 : index
    %c1_42 = arith.constant 1 : index
    %71 = vector.load %arg8[%c0_41, %c1_42] : memref<8x4xf32, #tpu.memory_space<vmem>>, vector<8x1xf32>
    tpu.vector_store %arg8[%c0_41, %c1_42], %51 {strides = array<i32>} : memref<8x4xf32, #tpu.memory_space<vmem>>, vector<8x1xf32>,
    %72 = vector.extract_strided_slice %5 {offsets = [0, 16], sizes = [8, 8], strides = [1, 1]} : vector<8x32xbf16> to vector<8x8xbf16>
    %73 = vector.extract_strided_slice %8 {offsets = [0, 16], sizes = [16, 8], strides = [1, 1]} : vector<16x32xbf16> to vector<16x8xbf16>
    %cst_43 = arith.constant dense<0.000000e+00> : vector<8x16xf32>
    %74 = tpu.matmul %72, %73, %cst_43 {dimension_numbers = #tpu.dot_dimension_numbers<[1], [1], [0], [0], [0, 0, 1, 0], [], []>} : vector<8x8xbf16>, vector<16x8xbf16>, vector<8x16xf32> -> vector<8x16xf32>
    %75 = vector.broadcast %13 : vector<1x16xf32> to vector<8x16xf32>
    %76 = arith.addf %74, %75 : vector<8x16xf32>
    %c0_44 = arith.constant 0 : index
    %c2 = arith.constant 2 : index
    %77 = vector.load %arg8[%c0_44, %c2] : memref<8x4xf32, #tpu.memory_space<vmem>>, vector<8x1xf32>
    %cst_45 = arith.constant dense<0xFF800000> : vector<8xf32>
    %78 = vector.multi_reduction <maximumf>, %76, %cst_45 [1] : vector<8x16xf32> to vector<8xf32>
    %79 = vector.shape_cast %78 : vector<8xf32> to vector<8x1xf32>
    %80 = arith.maximumf %77, %79 : vector<8x1xf32>
    %81 = arith.subf %77, %80 : vector<8x1xf32>
    %82 = math.exp %81 : vector<8x1xf32>
    %83 = vector.broadcast %80 : vector<8x1xf32> to vector<8x16xf32>
    %84 = arith.subf %76, %83 : vector<8x16xf32>
    %85 = math.exp %84 : vector<8x16xf32>
    %c0_46 = arith.constant 0 : index
    %c2_47 = arith.constant 2 : index
    %86 = vector.load %arg9[%c0_46, %c2_47] : memref<8x4xf32, #tpu.memory_space<vmem>>, vector<8x1xf32>
    %87 = arith.mulf %82, %86 : vector<8x1xf32>
    %cst_48 = arith.constant dense<0.000000e+00> : vector<8xf32>
    %88 = vector.multi_reduction <add>, %85, %cst_48 [1] : vector<8x16xf32> to vector<8xf32>
    %89 = vector.shape_cast %88 : vector<8xf32> to vector<8x1xf32>
    %90 = arith.addf %87, %89 : vector<8x1xf32>
    %c0_49 = arith.constant 0 : index
    %c2_50 = arith.constant 2 : index
    %91 = vector.load %arg9[%c0_49, %c2_50] : memref<8x4xf32, #tpu.memory_space<vmem>>, vector<8x1xf32>
    tpu.vector_store %arg9[%c0_49, %c2_50], %90 {strides = array<i32>} : memref<8x4xf32, #tpu.memory_space<vmem>>, vector<8x1xf32>,
    %c0_51 = arith.constant 0 : index
    %c16 = arith.constant 16 : index
    %92 = vector.load %arg10[%c0_51, %c16] : memref<8x32xf32, #tpu.memory_space<vmem>>, vector<8x8xf32>
    %93 = vector.broadcast %82 : vector<8x1xf32> to vector<8x8xf32>
    %94 = arith.mulf %93, %92 : vector<8x8xf32>
    %95 = arith.truncf %85 : vector<8x16xf32> to vector<8x16xbf16>
    %96 = vector.extract_strided_slice %11 {offsets = [0, 16], sizes = [16, 8], strides = [1, 1]} : vector<16x32xbf16> to vector<16x8xbf16>
    %cst_52 = arith.constant dense<0.000000e+00> : vector<8x8xf32>
    %97 = tpu.matmul %95, %96, %cst_52 {dimension_numbers = #tpu.dot_dimension_numbers<[1], [0], [0], [1], [0, 0, 1, 1], [], []>} : vector<8x16xbf16>, vector<16x8xbf16>, vector<8x8xf32> -> vector<8x8xf32>
    %98 = arith.addf %94, %97 : vector<8x8xf32>
    %c0_53 = arith.constant 0 : index
    %c16_54 = arith.constant 16 : index
    %99 = vector.load %arg10[%c0_53, %c16_54] : memref<8x32xf32, #tpu.memory_space<vmem>>, vector<8x8xf32>
    tpu.vector_store %arg10[%c0_53, %c16_54], %98 {strides = array<i32>} : memref<8x32xf32, #tpu.memory_space<vmem>>, vector<8x8xf32>,
    %c0_55 = arith.constant 0 : index
    %c2_56 = arith.constant 2 : index
    %100 = vector.load %arg8[%c0_55, %c2_56] : memref<8x4xf32, #tpu.memory_space<vmem>>, vector<8x1xf32>
    tpu.vector_store %arg8[%c0_55, %c2_56], %80 {strides = array<i32>} : memref<8x4xf32, #tpu.memory_space<vmem>>, vector<8x1xf32>,
    %101 = vector.extract_strided_slice %5 {offsets = [0, 24], sizes = [8, 8], strides = [1, 1]} : vector<8x32xbf16> to vector<8x8xbf16>
    %102 = vector.extract_strided_slice %8 {offsets = [0, 24], sizes = [16, 8], strides = [1, 1]} : vector<16x32xbf16> to vector<16x8xbf16>
    %cst_57 = arith.constant dense<0.000000e+00> : vector<8x16xf32>
    %103 = tpu.matmul %101, %102, %cst_57 {dimension_numbers = #tpu.dot_dimension_numbers<[1], [1], [0], [0], [0, 0, 1, 0], [], []>} : vector<8x8xbf16>, vector<16x8xbf16>, vector<8x16xf32> -> vector<8x16xf32>
    %104 = vector.broadcast %13 : vector<1x16xf32> to vector<8x16xf32>
    %105 = arith.addf %103, %104 : vector<8x16xf32>
    %c0_58 = arith.constant 0 : index
    %c3 = arith.constant 3 : index
    %106 = vector.load %arg8[%c0_58, %c3] : memref<8x4xf32, #tpu.memory_space<vmem>>, vector<8x1xf32>
    %cst_59 = arith.constant dense<0xFF800000> : vector<8xf32>
    %107 = vector.multi_reduction <maximumf>, %105, %cst_59 [1] : vector<8x16xf32> to vector<8xf32>
    %108 = vector.shape_cast %107 : vector<8xf32> to vector<8x1xf32>
    %109 = arith.maximumf %106, %108 : vector<8x1xf32>
    %110 = arith.subf %106, %109 : vector<8x1xf32>
    %111 = math.exp %110 : vector<8x1xf32>
    %112 = vector.broadcast %109 : vector<8x1xf32> to vector<8x16xf32>
    %113 = arith.subf %105, %112 : vector<8x16xf32>
    %114 = math.exp %113 : vector<8x16xf32>
    %c0_60 = arith.constant 0 : index
    %c3_61 = arith.constant 3 : index
    %115 = vector.load %arg9[%c0_60, %c3_61] : memref<8x4xf32, #tpu.memory_space<vmem>>, vector<8x1xf32>
    %116 = arith.mulf %111, %115 : vector<8x1xf32>
    %cst_62 = arith.constant dense<0.000000e+00> : vector<8xf32>
    %117 = vector.multi_reduction <add>, %114, %cst_62 [1] : vector<8x16xf32> to vector<8xf32>
    %118 = vector.shape_cast %117 : vector<8xf32> to vector<8x1xf32>
    %119 = arith.addf %116, %118 : vector<8x1xf32>
    %c0_63 = arith.constant 0 : index
    %c3_64 = arith.constant 3 : index
    %120 = vector.load %arg9[%c0_63, %c3_64] : memref<8x4xf32, #tpu.memory_space<vmem>>, vector<8x1xf32>
    tpu.vector_store %arg9[%c0_63, %c3_64], %119 {strides = array<i32>} : memref<8x4xf32, #tpu.memory_space<vmem>>, vector<8x1xf32>,
    %c0_65 = arith.constant 0 : index
    %c24 = arith.constant 24 : index
    %121 = vector.load %arg10[%c0_65, %c24] : memref<8x32xf32, #tpu.memory_space<vmem>>, vector<8x8xf32>
    %122 = vector.broadcast %111 : vector<8x1xf32> to vector<8x8xf32>
    %123 = arith.mulf %122, %121 : vector<8x8xf32>
    %124 = arith.truncf %114 : vector<8x16xf32> to vector<8x16xbf16>
    %125 = vector.extract_strided_slice %11 {offsets = [0, 24], sizes = [16, 8], strides = [1, 1]} : vector<16x32xbf16> to vector<16x8xbf16>
    %cst_66 = arith.constant dense<0.000000e+00> : vector<8x8xf32>
    %126 = tpu.matmul %124, %125, %cst_66 {dimension_numbers = #tpu.dot_dimension_numbers<[1], [0], [0], [1], [0, 0, 1, 1], [], []>} : vector<8x16xbf16>, vector<16x8xbf16>, vector<8x8xf32> -> vector<8x8xf32>
    %127 = arith.addf %123, %126 : vector<8x8xf32>
    %c0_67 = arith.constant 0 : index
    %c24_68 = arith.constant 24 : index
    %128 = vector.load %arg10[%c0_67, %c24_68] : memref<8x32xf32, #tpu.memory_space<vmem>>, vector<8x8xf32>
    tpu.vector_store %arg10[%c0_67, %c24_68], %127 {strides = array<i32>} : memref<8x32xf32, #tpu.memory_space<vmem>>, vector<8x8xf32>,
    %c0_69 = arith.constant 0 : index
    %c3_70 = arith.constant 3 : index
    %129 = vector.load %arg8[%c0_69, %c3_70] : memref<8x4xf32, #tpu.memory_space<vmem>>, vector<8x1xf32>
    tpu.vector_store %arg8[%c0_69, %c3_70], %109 {strides = array<i32>} : memref<8x4xf32, #tpu.memory_space<vmem>>, vector<8x1xf32>,
    %c0_i32_71 = arith.constant 0 : i32
    %130 = arith.cmpi eq, %arg2, %c0_i32_71 : i32
    %131 = arith.extui %130 : i1 to i32
    %c0_i32_72 = arith.constant 0 : i32
    %132 = arith.cmpi ne, %131, %c0_i32_72 : i32
    scf.if %132 {
      %c0_73 = arith.constant 0 : index
      %c0_74 = arith.constant 0 : index
      %133 = vector.load %arg10[%c0_73, %c0_74] : memref<8x32xf32, #tpu.memory_space<vmem>>, vector<8x8xf32>
      %c0_75 = arith.constant 0 : index
      %c0_76 = arith.constant 0 : index
      %134 = vector.load %arg9[%c0_75, %c0_76] : memref<8x4xf32, #tpu.memory_space<vmem>>, vector<8x1xf32>
      %135 = vector.broadcast %134 : vector<8x1xf32> to vector<8x8xf32>
      %136 = arith.divf %133, %135 : vector<8x8xf32>
      %c0_77 = arith.constant 0 : index
      %c0_78 = arith.constant 0 : index
      %c0_79 = arith.constant 0 : index
      %137 = vector.load %arg7[%c0_77, %c0_78, %c0_79] : memref<1x8x32xf32, #tpu.memory_space<vmem>>, vector<1x8x8xf32>
      %138 = vector.shape_cast %137 : vector<1x8x8xf32> to vector<8x8xf32>
      %139 = vector.shape_cast %136 : vector<8x8xf32> to vector<1x8x8xf32>
      tpu.vector_store %arg7[%c0_77, %c0_78, %c0_79], %139 {strides = array<i32>} : memref<1x8x32xf32, #tpu.memory_space<vmem>>, vector<1x8x8xf32>,
      %c0_80 = arith.constant 0 : index
      %c8_81 = arith.constant 8 : index
      %140 = vector.load %arg10[%c0_80, %c8_81] : memref<8x32xf32, #tpu.memory_space<vmem>>, vector<8x8xf32>
      %c0_82 = arith.constant 0 : index
      %c1_83 = arith.constant 1 : index
      %141 = vector.load %arg9[%c0_82, %c1_83] : memref<8x4xf32, #tpu.memory_space<vmem>>, vector<8x1xf32>
      %142 = vector.broadcast %141 : vector<8x1xf32> to vector<8x8xf32>
      %143 = arith.divf %140, %142 : vector<8x8xf32>
      %c0_84 = arith.constant 0 : index
      %c0_85 = arith.constant 0 : index
      %c8_86 = arith.constant 8 : index
      %144 = vector.load %arg7[%c0_84, %c0_85, %c8_86] : memref<1x8x32xf32, #tpu.memory_space<vmem>>, vector<1x8x8xf32>
      %145 = vector.shape_cast %144 : vector<1x8x8xf32> to vector<8x8xf32>
      %146 = vector.shape_cast %143 : vector<8x8xf32> to vector<1x8x8xf32>
      tpu.vector_store %arg7[%c0_84, %c0_85, %c8_86], %146 {strides = array<i32>} : memref<1x8x32xf32, #tpu.memory_space<vmem>>, vector<1x8x8xf32>,
      %c0_87 = arith.constant 0 : index
      %c16_88 = arith.constant 16 : index
      %147 = vector.load %arg10[%c0_87, %c16_88] : memref<8x32xf32, #tpu.memory_space<vmem>>, vector<8x8xf32>
      %c0_89 = arith.constant 0 : index
      %c2_90 = arith.constant 2 : index
      %148 = vector.load %arg9[%c0_89, %c2_90] : memref<8x4xf32, #tpu.memory_space<vmem>>, vector<8x1xf32>
      %149 = vector.broadcast %148 : vector<8x1xf32> to vector<8x8xf32>
      %150 = arith.divf %147, %149 : vector<8x8xf32>
      %c0_91 = arith.constant 0 : index
      %c0_92 = arith.constant 0 : index
      %c16_93 = arith.constant 16 : index
      %151 = vector.load %arg7[%c0_91, %c0_92, %c16_93] : memref<1x8x32xf32, #tpu.memory_space<vmem>>, vector<1x8x8xf32>
      %152 = vector.shape_cast %151 : vector<1x8x8xf32> to vector<8x8xf32>
      %153 = vector.shape_cast %150 : vector<8x8xf32> to vector<1x8x8xf32>
      tpu.vector_store %arg7[%c0_91, %c0_92, %c16_93], %153 {strides = array<i32>} : memref<1x8x32xf32, #tpu.memory_space<vmem>>, vector<1x8x8xf32>,
      %c0_94 = arith.constant 0 : index
      %c24_95 = arith.constant 24 : index
      %154 = vector.load %arg10[%c0_94, %c24_95] : memref<8x32xf32, #tpu.memory_space<vmem>>, vector<8x8xf32>
      %c0_96 = arith.constant 0 : index
      %c3_97 = arith.constant 3 : index
      %155 = vector.load %arg9[%c0_96, %c3_97] : memref<8x4xf32, #tpu.memory_space<vmem>>, vector<8x1xf32>
      %156 = vector.broadcast %155 : vector<8x1xf32> to vector<8x8xf32>
      %157 = arith.divf %154, %156 : vector<8x8xf32>
      %c0_98 = arith.constant 0 : index
      %c0_99 = arith.constant 0 : index
      %c24_100 = arith.constant 24 : index
      %158 = vector.load %arg7[%c0_98, %c0_99, %c24_100] : memref<1x8x32xf32, #tpu.memory_space<vmem>>, vector<1x8x8xf32>
      %159 = vector.shape_cast %158 : vector<1x8x8xf32> to vector<8x8xf32>
      %160 = vector.shape_cast %157 : vector<8x8xf32> to vector<1x8x8xf32>
      tpu.vector_store %arg7[%c0_98, %c0_99, %c24_100], %160 {strides = array<i32>} : memref<1x8x32xf32, #tpu.memory_space<vmem>>, vector<1x8x8xf32>,
    } else {
    }
    return
  }
  func.func @transform_0(%arg0: i32, %arg1: i32, %arg2: i32) -> (i32, i32, i32) {
    %c0_i32 = arith.constant 0 : i32
    %c0_i32_0 = arith.constant 0 : i32
    return %arg0, %arg1, %c0_i32 : i32, i32, i32
  }
  func.func @transform_1(%arg0: i32, %arg1: i32, %arg2: i32) -> (i32, i32, i32, i32) {
    %c0_i32 = arith.constant 0 : i32
    %c0_i32_0 = arith.constant 0 : i32
    %c0_i32_1 = arith.constant 0 : i32
    return %c0_i32, %arg0, %arg2, %c0_i32_0 : i32, i32, i32, i32
  }
  func.func @transform_2(%arg0: i32, %arg1: i32, %arg2: i32) -> (i32, i32, i32, i32) {
    %c1_i32 = arith.constant 1 : i32
    %c0_i32 = arith.constant 0 : i32
    %c0_i32_0 = arith.constant 0 : i32
    return %c1_i32, %arg0, %arg2, %c0_i32 : i32, i32, i32, i32
  }
  func.func @transform_3(%arg0: i32, %arg1: i32, %arg2: i32) -> (i32, i32, i32) {
    %c0_i32 = arith.constant 0 : i32
    %c0_i32_0 = arith.constant 0 : i32
    return %arg0, %c0_i32, %arg2 : i32, i32, i32
  }
  func.func @transform_4(%arg0: i32, %arg1: i32, %arg2: i32) -> (i32, i32, i32) {
    %c0_i32 = arith.constant 0 : i32
    %c0_i32_0 = arith.constant 0 : i32
    return %arg0, %arg1, %c0_i32 : i32, i32, i32
  }
}

module attributes {stable_mosaic.version = 11 : i64} {
  func.func @_matmul_kernel(%arg0: i32, %arg1: i32, %arg2: i32, %arg3: memref<16x32xf32, #tpu.memory_space<vmem>>, %arg4: memref<32x64xf32, #tpu.memory_space<vmem>>, %arg5: memref<1x64xf32, #tpu.memory_space<vmem>>, %arg6: memref<16x64xf32, #tpu.memory_space<vmem>>, %arg7: memref<16x64xf32, #tpu.memory_space<vmem>>) attributes {dimension_semantics = [#tpu.dimension_semantics<parallel>, #tpu.dimension_semantics<parallel>, #tpu.dimension_semantics<arbitrary>], iteration_bounds = array<i64: 1, 1, 1>, scalar_prefetch = 0 : i64, scratch_operands = 1 : i64, tpu.core_type = #tpu.core_type<tc>, window_params = [{transform_indices = @transform_0, window_bounds = array<i64: 16, 32>}, {transform_indices = @transform_1, window_bounds = array<i64: 32, 64>}, {transform_indices = @transform_2, window_bounds = array<i64: 1, 64>}, {transform_indices = @transform_3, window_bounds = array<i64: 16, 64>}]} {
    %c0_i32 = arith.constant 0 : i32
    %0 = arith.cmpi eq, %arg2, %c0_i32 : i32
    %1 = arith.extui %0 : i1 to i32
    %c0_i32_0 = arith.constant 0 : i32
    %2 = arith.cmpi ne, %1, %c0_i32_0 : i32
    scf.if %2 {
      %cst_10 = arith.constant 0.000000e+00 : f32
      %14 = vector.broadcast %cst_10 : f32 to vector<16x64xf32>
      %c0_11 = arith.constant 0 : index
      %c0_12 = arith.constant 0 : index
      %15 = vector.load %arg7[%c0_11, %c0_12] : memref<16x64xf32, #tpu.memory_space<vmem>>, vector<16x64xf32>
      tpu.vector_store %arg7[%c0_11, %c0_12], %14 {strides = array<i32>} : memref<16x64xf32, #tpu.memory_space<vmem>>, vector<16x64xf32>,
    } else {
    }
    %c0 = arith.constant 0 : index
    %c0_1 = arith.constant 0 : index
    %3 = vector.load %arg7[%c0, %c0_1] : memref<16x64xf32, #tpu.memory_space<vmem>>, vector<16x64xf32>
    %c0_2 = arith.constant 0 : index
    %c0_3 = arith.constant 0 : index
    %4 = vector.load %arg3[%c0_2, %c0_3] : memref<16x32xf32, #tpu.memory_space<vmem>>, vector<16x32xf32>
    %5 = arith.truncf %4 : vector<16x32xf32> to vector<16x32xbf16>
    %c0_4 = arith.constant 0 : index
    %c0_5 = arith.constant 0 : index
    %6 = vector.load %arg4[%c0_4, %c0_5] : memref<32x64xf32, #tpu.memory_space<vmem>>, vector<32x64xf32>
    %7 = arith.truncf %6 : vector<32x64xf32> to vector<32x64xbf16>
    %cst = arith.constant dense<0.000000e+00> : vector<16x64xf32>
    %8 = tpu.matmul %5, %7, %cst {dimension_numbers = #tpu.dot_dimension_numbers<[1], [0], [0], [1], [0, 0, 1, 1], [], []>} : vector<16x32xbf16>, vector<32x64xbf16>, vector<16x64xf32> -> vector<16x64xf32>
    %9 = arith.addf %3, %8 : vector<16x64xf32>
    %c0_6 = arith.constant 0 : index
    %c0_7 = arith.constant 0 : index
    %10 = vector.load %arg7[%c0_6, %c0_7] : memref<16x64xf32, #tpu.memory_space<vmem>>, vector<16x64xf32>
    tpu.vector_store %arg7[%c0_6, %c0_7], %9 {strides = array<i32>} : memref<16x64xf32, #tpu.memory_space<vmem>>, vector<16x64xf32>,
    %c0_i32_8 = arith.constant 0 : i32
    %11 = arith.cmpi eq, %arg2, %c0_i32_8 : i32
    %12 = arith.extui %11 : i1 to i32
    %c0_i32_9 = arith.constant 0 : i32
    %13 = arith.cmpi ne, %12, %c0_i32_9 : i32
    scf.if %13 {
      %c0_10 = arith.constant 0 : index
      %c0_11 = arith.constant 0 : index
      %14 = vector.load %arg7[%c0_10, %c0_11] : memref<16x64xf32, #tpu.memory_space<vmem>>, vector<16x64xf32>
      %c0_12 = arith.constant 0 : index
      %c0_13 = arith.constant 0 : index
      %15 = vector.load %arg5[%c0_12, %c0_13] : memref<1x64xf32, #tpu.memory_space<vmem>>, vector<1x64xf32>
      %16 = vector.broadcast %15 : vector<1x64xf32> to vector<16x64xf32>
      %17 = arith.addf %14, %16 : vector<16x64xf32>
      %cst_14 = arith.constant 0.000000e+00 : f32
      %18 = vector.broadcast %cst_14 : f32 to vector<16x64xf32>
      %19 = arith.maximumf %17, %18 : vector<16x64xf32>
      %c0_15 = arith.constant 0 : index
      %c0_16 = arith.constant 0 : index
      %20 = vector.load %arg6[%c0_15, %c0_16] : memref<16x64xf32, #tpu.memory_space<vmem>>, vector<16x64xf32>
      tpu.vector_store %arg6[%c0_15, %c0_16], %19 {strides = array<i32>} : memref<16x64xf32, #tpu.memory_space<vmem>>, vector<16x64xf32>,
    } else {
    }
    return
  }
  func.func @transform_0(%arg0: i32, %arg1: i32, %arg2: i32) -> (i32, i32) {
    %c0_i32 = arith.constant 0 : i32
    return %arg0, %arg2 : i32, i32
  }
  func.func @transform_1(%arg0: i32, %arg1: i32, %arg2: i32) -> (i32, i32) {
    %c0_i32 = arith.constant 0 : i32
    return %arg2, %arg1 : i32, i32
  }
  func.func @transform_2(%arg0: i32, %arg1: i32, %arg2: i32) -> (i32, i32) {
    %c0_i32 = arith.constant 0 : i32
    %c0_i32_0 = arith.constant 0 : i32
    return %c0_i32, %arg1 : i32, i32
  }
  func.func @transform_3(%arg0: i32, %arg1: i32, %arg2: i32) -> (i32, i32) {
    %c0_i32 = arith.constant 0 : i32
    return %arg0, %arg1 : i32, i32
  }
}

module attributes {stable_mosaic.version = 11 : i64} {
  func.func @_matmul_add_ln_kernel(%arg0: i32, %arg1: i32, %arg2: memref<16x64xf32, #tpu.memory_space<vmem>>, %arg3: memref<64x32xf32, #tpu.memory_space<vmem>>, %arg4: memref<1x32xf32, #tpu.memory_space<vmem>>, %arg5: memref<16x32xf32, #tpu.memory_space<vmem>>, %arg6: memref<1x32xf32, #tpu.memory_space<vmem>>, %arg7: memref<1x32xf32, #tpu.memory_space<vmem>>, %arg8: memref<16x32xf32, #tpu.memory_space<vmem>>, %arg9: memref<16x32xf32, #tpu.memory_space<vmem>>) attributes {dimension_semantics = [#tpu.dimension_semantics<parallel>, #tpu.dimension_semantics<arbitrary>], iteration_bounds = array<i64: 1, 1>, scalar_prefetch = 0 : i64, scratch_operands = 1 : i64, tpu.core_type = #tpu.core_type<tc>, window_params = [{transform_indices = @transform_0, window_bounds = array<i64: 16, 64>}, {transform_indices = @transform_1, window_bounds = array<i64: 64, 32>}, {pipeline_mode = #tpu.pipeline_mode<synchronous>, transform_indices = @transform_2, window_bounds = array<i64: 1, 32>}, {transform_indices = @transform_3, window_bounds = array<i64: 16, 32>}, {pipeline_mode = #tpu.pipeline_mode<synchronous>, transform_indices = @transform_4, window_bounds = array<i64: 1, 32>}, {pipeline_mode = #tpu.pipeline_mode<synchronous>, transform_indices = @transform_5, window_bounds = array<i64: 1, 32>}, {transform_indices = @transform_6, window_bounds = array<i64: 16, 32>}]} {
    %c0_i32 = arith.constant 0 : i32
    %0 = arith.cmpi eq, %arg1, %c0_i32 : i32
    %1 = arith.extui %0 : i1 to i32
    %c0_i32_0 = arith.constant 0 : i32
    %2 = arith.cmpi ne, %1, %c0_i32_0 : i32
    scf.if %2 {
      %cst_10 = arith.constant 0.000000e+00 : f32
      %14 = vector.broadcast %cst_10 : f32 to vector<16x32xf32>
      %c0_11 = arith.constant 0 : index
      %c0_12 = arith.constant 0 : index
      %15 = vector.load %arg9[%c0_11, %c0_12] : memref<16x32xf32, #tpu.memory_space<vmem>>, vector<16x32xf32>
      tpu.vector_store %arg9[%c0_11, %c0_12], %14 {strides = array<i32>} : memref<16x32xf32, #tpu.memory_space<vmem>>, vector<16x32xf32>,
    } else {
    }
    %c0 = arith.constant 0 : index
    %c0_1 = arith.constant 0 : index
    %3 = vector.load %arg9[%c0, %c0_1] : memref<16x32xf32, #tpu.memory_space<vmem>>, vector<16x32xf32>
    %c0_2 = arith.constant 0 : index
    %c0_3 = arith.constant 0 : index
    %4 = vector.load %arg2[%c0_2, %c0_3] : memref<16x64xf32, #tpu.memory_space<vmem>>, vector<16x64xf32>
    %5 = arith.truncf %4 : vector<16x64xf32> to vector<16x64xbf16>
    %c0_4 = arith.constant 0 : index
    %c0_5 = arith.constant 0 : index
    %6 = vector.load %arg3[%c0_4, %c0_5] : memref<64x32xf32, #tpu.memory_space<vmem>>, vector<64x32xf32>
    %7 = arith.truncf %6 : vector<64x32xf32> to vector<64x32xbf16>
    %cst = arith.constant dense<0.000000e+00> : vector<16x32xf32>
    %8 = tpu.matmul %5, %7, %cst {dimension_numbers = #tpu.dot_dimension_numbers<[1], [0], [0], [1], [0, 0, 1, 1], [], []>} : vector<16x64xbf16>, vector<64x32xbf16>, vector<16x32xf32> -> vector<16x32xf32>
    %9 = arith.addf %3, %8 : vector<16x32xf32>
    %c0_6 = arith.constant 0 : index
    %c0_7 = arith.constant 0 : index
    %10 = vector.load %arg9[%c0_6, %c0_7] : memref<16x32xf32, #tpu.memory_space<vmem>>, vector<16x32xf32>
    tpu.vector_store %arg9[%c0_6, %c0_7], %9 {strides = array<i32>} : memref<16x32xf32, #tpu.memory_space<vmem>>, vector<16x32xf32>,
    %c0_i32_8 = arith.constant 0 : i32
    %11 = arith.cmpi eq, %arg1, %c0_i32_8 : i32
    %12 = arith.extui %11 : i1 to i32
    %c0_i32_9 = arith.constant 0 : i32
    %13 = arith.cmpi ne, %12, %c0_i32_9 : i32
    scf.if %13 {
      %c0_10 = arith.constant 0 : index
      %c0_11 = arith.constant 0 : index
      %14 = vector.load %arg9[%c0_10, %c0_11] : memref<16x32xf32, #tpu.memory_space<vmem>>, vector<16x32xf32>
      %c0_12 = arith.constant 0 : index
      %c0_13 = arith.constant 0 : index
      %15 = vector.load %arg4[%c0_12, %c0_13] : memref<1x32xf32, #tpu.memory_space<vmem>>, vector<1x32xf32>
      %16 = vector.broadcast %15 : vector<1x32xf32> to vector<16x32xf32>
      %17 = arith.addf %14, %16 : vector<16x32xf32>
      %c0_14 = arith.constant 0 : index
      %c0_15 = arith.constant 0 : index
      %18 = vector.load %arg5[%c0_14, %c0_15] : memref<16x32xf32, #tpu.memory_space<vmem>>, vector<16x32xf32>
      %19 = arith.addf %17, %18 : vector<16x32xf32>
      %cst_16 = arith.constant dense<0.000000e+00> : vector<16xf32>
      %20 = vector.multi_reduction <add>, %19, %cst_16 [1] : vector<16x32xf32> to vector<16xf32>
      %21 = vector.shape_cast %20 : vector<16xf32> to vector<16x1xf32>
      %cst_17 = arith.constant 3.200000e+01 : f32
      %22 = vector.broadcast %cst_17 : f32 to vector<16x1xf32>
      %23 = arith.divf %21, %22 : vector<16x1xf32>
      %24 = vector.broadcast %23 : vector<16x1xf32> to vector<16x32xf32>
      %25 = arith.subf %19, %24 : vector<16x32xf32>
      %26 = arith.mulf %25, %25 : vector<16x32xf32>
      %cst_18 = arith.constant dense<0.000000e+00> : vector<16xf32>
      %27 = vector.multi_reduction <add>, %26, %cst_18 [1] : vector<16x32xf32> to vector<16xf32>
      %28 = vector.shape_cast %27 : vector<16xf32> to vector<16x1xf32>
      %cst_19 = arith.constant 3.200000e+01 : f32
      %29 = vector.broadcast %cst_19 : f32 to vector<16x1xf32>
      %30 = arith.divf %28, %29 : vector<16x1xf32>
      %cst_20 = arith.constant 9.99999974E-6 : f32
      %31 = vector.broadcast %cst_20 : f32 to vector<16x1xf32>
      %32 = arith.addf %30, %31 : vector<16x1xf32>
      %33 = math.rsqrt %32 : vector<16x1xf32>
      %34 = vector.broadcast %33 : vector<16x1xf32> to vector<16x32xf32>
      %35 = arith.mulf %25, %34 : vector<16x32xf32>
      %c0_21 = arith.constant 0 : index
      %c0_22 = arith.constant 0 : index
      %36 = vector.load %arg6[%c0_21, %c0_22] : memref<1x32xf32, #tpu.memory_space<vmem>>, vector<1x32xf32>
      %37 = vector.broadcast %36 : vector<1x32xf32> to vector<16x32xf32>
      %38 = arith.mulf %35, %37 : vector<16x32xf32>
      %c0_23 = arith.constant 0 : index
      %c0_24 = arith.constant 0 : index
      %39 = vector.load %arg7[%c0_23, %c0_24] : memref<1x32xf32, #tpu.memory_space<vmem>>, vector<1x32xf32>
      %40 = vector.broadcast %39 : vector<1x32xf32> to vector<16x32xf32>
      %41 = arith.addf %38, %40 : vector<16x32xf32>
      %c0_25 = arith.constant 0 : index
      %c0_26 = arith.constant 0 : index
      %42 = vector.load %arg8[%c0_25, %c0_26] : memref<16x32xf32, #tpu.memory_space<vmem>>, vector<16x32xf32>
      tpu.vector_store %arg8[%c0_25, %c0_26], %41 {strides = array<i32>} : memref<16x32xf32, #tpu.memory_space<vmem>>, vector<16x32xf32>,
    } else {
    }
    return
  }
  func.func @transform_0(%arg0: i32, %arg1: i32) -> (i32, i32) {
    %c0_i32 = arith.constant 0 : i32
    return %arg0, %arg1 : i32, i32
  }
  func.func @transform_1(%arg0: i32, %arg1: i32) -> (i32, i32) {
    %c0_i32 = arith.constant 0 : i32
    %c0_i32_0 = arith.constant 0 : i32
    return %arg1, %c0_i32 : i32, i32
  }
  func.func @transform_2(%arg0: i32, %arg1: i32) -> (i32, i32) {
    %c0_i32 = arith.constant 0 : i32
    %c0_i32_0 = arith.constant 0 : i32
    %c0_i32_1 = arith.constant 0 : i32
    return %c0_i32, %c0_i32_0 : i32, i32
  }
  func.func @transform_3(%arg0: i32, %arg1: i32) -> (i32, i32) {
    %c0_i32 = arith.constant 0 : i32
    %c0_i32_0 = arith.constant 0 : i32
    return %arg0, %c0_i32 : i32, i32
  }
  func.func @transform_4(%arg0: i32, %arg1: i32) -> (i32, i32) {
    %c0_i32 = arith.constant 0 : i32
    %c0_i32_0 = arith.constant 0 : i32
    %c0_i32_1 = arith.constant 0 : i32
    return %c0_i32, %c0_i32_0 : i32, i32
  }
  func.func @transform_5(%arg0: i32, %arg1: i32) -> (i32, i32) {
    %c0_i32 = arith.constant 0 : i32
    %c0_i32_0 = arith.constant 0 : i32
    %c0_i32_1 = arith.constant 0 : i32
    return %c0_i32, %c0_i32_0 : i32, i32
  }
  func.func @transform_6(%arg0: i32, %arg1: i32) -> (i32, i32) {
    %c0_i32 = arith.constant 0 : i32
    %c0_i32_0 = arith.constant 0 : i32
    return %arg0, %c0_i32 : i32, i32
  }
}

module attributes {stable_mosaic.version = 11 : i64} {
  func.func @_matmul_kernel(%arg0: i32, %arg1: i32, %arg2: i32, %arg3: memref<32x32xf32, #tpu.memory_space<vmem>>, %arg4: memref<32x32xf32, #tpu.memory_space<vmem>>, %arg5: memref<1x32xf32, #tpu.memory_space<vmem>>, %arg6: memref<32x32xf32, #tpu.memory_space<vmem>>, %arg7: memref<32x32xf32, #tpu.memory_space<vmem>>) attributes {dimension_semantics = [#tpu.dimension_semantics<parallel>, #tpu.dimension_semantics<parallel>, #tpu.dimension_semantics<arbitrary>], iteration_bounds = array<i64: 1, 1, 1>, scalar_prefetch = 0 : i64, scratch_operands = 1 : i64, tpu.core_type = #tpu.core_type<tc>, window_params = [{transform_indices = @transform_0, window_bounds = array<i64: 32, 32>}, {transform_indices = @transform_1, window_bounds = array<i64: 32, 32>}, {transform_indices = @transform_2, window_bounds = array<i64: 1, 32>}, {transform_indices = @transform_3, window_bounds = array<i64: 32, 32>}]} {
    %c0_i32 = arith.constant 0 : i32
    %0 = arith.cmpi eq, %arg2, %c0_i32 : i32
    %1 = arith.extui %0 : i1 to i32
    %c0_i32_0 = arith.constant 0 : i32
    %2 = arith.cmpi ne, %1, %c0_i32_0 : i32
    scf.if %2 {
      %cst_10 = arith.constant 0.000000e+00 : f32
      %14 = vector.broadcast %cst_10 : f32 to vector<32x32xf32>
      %c0_11 = arith.constant 0 : index
      %c0_12 = arith.constant 0 : index
      %15 = vector.load %arg7[%c0_11, %c0_12] : memref<32x32xf32, #tpu.memory_space<vmem>>, vector<32x32xf32>
      tpu.vector_store %arg7[%c0_11, %c0_12], %14 {strides = array<i32>} : memref<32x32xf32, #tpu.memory_space<vmem>>, vector<32x32xf32>,
    } else {
    }
    %c0 = arith.constant 0 : index
    %c0_1 = arith.constant 0 : index
    %3 = vector.load %arg7[%c0, %c0_1] : memref<32x32xf32, #tpu.memory_space<vmem>>, vector<32x32xf32>
    %c0_2 = arith.constant 0 : index
    %c0_3 = arith.constant 0 : index
    %4 = vector.load %arg3[%c0_2, %c0_3] : memref<32x32xf32, #tpu.memory_space<vmem>>, vector<32x32xf32>
    %5 = arith.truncf %4 : vector<32x32xf32> to vector<32x32xbf16>
    %c0_4 = arith.constant 0 : index
    %c0_5 = arith.constant 0 : index
    %6 = vector.load %arg4[%c0_4, %c0_5] : memref<32x32xf32, #tpu.memory_space<vmem>>, vector<32x32xf32>
    %7 = arith.truncf %6 : vector<32x32xf32> to vector<32x32xbf16>
    %cst = arith.constant dense<0.000000e+00> : vector<32x32xf32>
    %8 = tpu.matmul %5, %7, %cst {dimension_numbers = #tpu.dot_dimension_numbers<[1], [0], [0], [1], [0, 0, 1, 1], [], []>} : vector<32x32xbf16>, vector<32x32xbf16>, vector<32x32xf32> -> vector<32x32xf32>
    %9 = arith.addf %3, %8 : vector<32x32xf32>
    %c0_6 = arith.constant 0 : index
    %c0_7 = arith.constant 0 : index
    %10 = vector.load %arg7[%c0_6, %c0_7] : memref<32x32xf32, #tpu.memory_space<vmem>>, vector<32x32xf32>
    tpu.vector_store %arg7[%c0_6, %c0_7], %9 {strides = array<i32>} : memref<32x32xf32, #tpu.memory_space<vmem>>, vector<32x32xf32>,
    %c0_i32_8 = arith.constant 0 : i32
    %11 = arith.cmpi eq, %arg2, %c0_i32_8 : i32
    %12 = arith.extui %11 : i1 to i32
    %c0_i32_9 = arith.constant 0 : i32
    %13 = arith.cmpi ne, %12, %c0_i32_9 : i32
    scf.if %13 {
      %c0_10 = arith.constant 0 : index
      %c0_11 = arith.constant 0 : index
      %14 = vector.load %arg7[%c0_10, %c0_11] : memref<32x32xf32, #tpu.memory_space<vmem>>, vector<32x32xf32>
      %c0_12 = arith.constant 0 : index
      %c0_13 = arith.constant 0 : index
      %15 = vector.load %arg5[%c0_12, %c0_13] : memref<1x32xf32, #tpu.memory_space<vmem>>, vector<1x32xf32>
      %16 = vector.broadcast %15 : vector<1x32xf32> to vector<32x32xf32>
      %17 = arith.addf %14, %16 : vector<32x32xf32>
      %c0_14 = arith.constant 0 : index
      %c0_15 = arith.constant 0 : index
      %18 = vector.load %arg6[%c0_14, %c0_15] : memref<32x32xf32, #tpu.memory_space<vmem>>, vector<32x32xf32>
      tpu.vector_store %arg6[%c0_14, %c0_15], %17 {strides = array<i32>} : memref<32x32xf32, #tpu.memory_space<vmem>>, vector<32x32xf32>,
    } else {
    }
    return
  }
  func.func @transform_0(%arg0: i32, %arg1: i32, %arg2: i32) -> (i32, i32) {
    %c0_i32 = arith.constant 0 : i32
    return %arg0, %arg2 : i32, i32
  }
  func.func @transform_1(%arg0: i32, %arg1: i32, %arg2: i32) -> (i32, i32) {
    %c0_i32 = arith.constant 0 : i32
    return %arg2, %arg1 : i32, i32
  }
  func.func @transform_2(%arg0: i32, %arg1: i32, %arg2: i32) -> (i32, i32) {
    %c0_i32 = arith.constant 0 : i32
    %c0_i32_0 = arith.constant 0 : i32
    return %c0_i32, %arg1 : i32, i32
  }
  func.func @transform_3(%arg0: i32, %arg1: i32, %arg2: i32) -> (i32, i32) {
    %c0_i32 = arith.constant 0 : i32
    return %arg0, %arg1 : i32, i32
  }
}

module attributes {stable_mosaic.version = 11 : i64} {
  func.func @_matmul_kernel(%arg0: i32, %arg1: i32, %arg2: i32, %arg3: memref<16x32xf32, #tpu.memory_space<vmem>>, %arg4: memref<1x32x32xf32, #tpu.memory_space<vmem>>, %arg5: memref<1x1x32xf32, #tpu.memory_space<vmem>>, %arg6: memref<1x16x32xf32, #tpu.memory_space<vmem>>, %arg7: memref<16x32xf32, #tpu.memory_space<vmem>>) attributes {dimension_semantics = [#tpu.dimension_semantics<parallel>, #tpu.dimension_semantics<parallel>, #tpu.dimension_semantics<arbitrary>], iteration_bounds = array<i64: 2, 1, 1>, scalar_prefetch = 0 : i64, scratch_operands = 1 : i64, tpu.core_type = #tpu.core_type<tc>, window_params = [{transform_indices = @transform_0, window_bounds = array<i64: 16, 32>}, {transform_indices = @transform_1, window_bounds = array<i64: 1, 32, 32>}, {transform_indices = @transform_2, window_bounds = array<i64: 1, 1, 32>}, {transform_indices = @transform_3, window_bounds = array<i64: 1, 16, 32>}]} {
    %c0_i32 = arith.constant 0 : i32
    %0 = arith.cmpi eq, %arg2, %c0_i32 : i32
    %1 = arith.extui %0 : i1 to i32
    %c0_i32_0 = arith.constant 0 : i32
    %2 = arith.cmpi ne, %1, %c0_i32_0 : i32
    scf.if %2 {
      %cst_11 = arith.constant 0.000000e+00 : f32
      %15 = vector.broadcast %cst_11 : f32 to vector<16x32xf32>
      %c0_12 = arith.constant 0 : index
      %c0_13 = arith.constant 0 : index
      %16 = vector.load %arg7[%c0_12, %c0_13] : memref<16x32xf32, #tpu.memory_space<vmem>>, vector<16x32xf32>
      tpu.vector_store %arg7[%c0_12, %c0_13], %15 {strides = array<i32>} : memref<16x32xf32, #tpu.memory_space<vmem>>, vector<16x32xf32>,
    } else {
    }
    %c0 = arith.constant 0 : index
    %c0_1 = arith.constant 0 : index
    %3 = vector.load %arg7[%c0, %c0_1] : memref<16x32xf32, #tpu.memory_space<vmem>>, vector<16x32xf32>
    %c0_2 = arith.constant 0 : index
    %c0_3 = arith.constant 0 : index
    %4 = vector.load %arg3[%c0_2, %c0_3] : memref<16x32xf32, #tpu.memory_space<vmem>>, vector<16x32xf32>
    %5 = arith.truncf %4 : vector<16x32xf32> to vector<16x32xbf16>
    %c0_4 = arith.constant 0 : index
    %c0_5 = arith.constant 0 : index
    %c0_6 = arith.constant 0 : index
    %6 = vector.load %arg4[%c0_4, %c0_5, %c0_6] : memref<1x32x32xf32, #tpu.memory_space<vmem>>, vector<1x32x32xf32>
    %7 = vector.shape_cast %6 : vector<1x32x32xf32> to vector<32x32xf32>
    %8 = arith.truncf %7 : vector<32x32xf32> to vector<32x32xbf16>
    %cst = arith.constant dense<0.000000e+00> : vector<16x32xf32>
    %9 = tpu.matmul %5, %8, %cst {dimension_numbers = #tpu.dot_dimension_numbers<[1], [0], [0], [1], [0, 0, 1, 1], [], []>} : vector<16x32xbf16>, vector<32x32xbf16>, vector<16x32xf32> -> vector<16x32xf32>
    %10 = arith.addf %3, %9 : vector<16x32xf32>
    %c0_7 = arith.constant 0 : index
    %c0_8 = arith.constant 0 : index
    %11 = vector.load %arg7[%c0_7, %c0_8] : memref<16x32xf32, #tpu.memory_space<vmem>>, vector<16x32xf32>
    tpu.vector_store %arg7[%c0_7, %c0_8], %10 {strides = array<i32>} : memref<16x32xf32, #tpu.memory_space<vmem>>, vector<16x32xf32>,
    %c0_i32_9 = arith.constant 0 : i32
    %12 = arith.cmpi eq, %arg2, %c0_i32_9 : i32
    %13 = arith.extui %12 : i1 to i32
    %c0_i32_10 = arith.constant 0 : i32
    %14 = arith.cmpi ne, %13, %c0_i32_10 : i32
    scf.if %14 {
      %c0_11 = arith.constant 0 : index
      %c0_12 = arith.constant 0 : index
      %15 = vector.load %arg7[%c0_11, %c0_12] : memref<16x32xf32, #tpu.memory_space<vmem>>, vector<16x32xf32>
      %c0_13 = arith.constant 0 : index
      %c0_14 = arith.constant 0 : index
      %c0_15 = arith.constant 0 : index
      %16 = vector.load %arg5[%c0_13, %c0_14, %c0_15] : memref<1x1x32xf32, #tpu.memory_space<vmem>>, vector<1x1x32xf32>
      %17 = vector.shape_cast %16 : vector<1x1x32xf32> to vector<1x32xf32>
      %18 = vector.broadcast %17 : vector<1x32xf32> to vector<16x32xf32>
      %19 = arith.addf %15, %18 : vector<16x32xf32>
      %c0_16 = arith.constant 0 : index
      %c0_17 = arith.constant 0 : index
      %c0_18 = arith.constant 0 : index
      %20 = vector.load %arg6[%c0_16, %c0_17, %c0_18] : memref<1x16x32xf32, #tpu.memory_space<vmem>>, vector<1x16x32xf32>
      %21 = vector.shape_cast %20 : vector<1x16x32xf32> to vector<16x32xf32>
      %22 = vector.shape_cast %19 : vector<16x32xf32> to vector<1x16x32xf32>
      tpu.vector_store %arg6[%c0_16, %c0_17, %c0_18], %22 {strides = array<i32>} : memref<1x16x32xf32, #tpu.memory_space<vmem>>, vector<1x16x32xf32>,
    } else {
    }
    return
  }
  func.func @transform_0(%arg0: i32, %arg1: i32, %arg2: i32) -> (i32, i32) {
    %c0_i32 = arith.constant 0 : i32
    return %arg1, %arg2 : i32, i32
  }
  func.func @transform_1(%arg0: i32, %arg1: i32, %arg2: i32) -> (i32, i32, i32) {
    %c0_i32 = arith.constant 0 : i32
    %c0_i32_0 = arith.constant 0 : i32
    return %arg0, %arg2, %c0_i32 : i32, i32, i32
  }
  func.func @transform_2(%arg0: i32, %arg1: i32, %arg2: i32) -> (i32, i32, i32) {
    %c0_i32 = arith.constant 0 : i32
    %c0_i32_0 = arith.constant 0 : i32
    %c0_i32_1 = arith.constant 0 : i32
    return %arg0, %c0_i32, %c0_i32_0 : i32, i32, i32
  }
  func.func @transform_3(%arg0: i32, %arg1: i32, %arg2: i32) -> (i32, i32, i32) {
    %c0_i32 = arith.constant 0 : i32
    %c0_i32_0 = arith.constant 0 : i32
    return %arg0, %arg1, %c0_i32 : i32, i32, i32
  }
}

module attributes {stable_mosaic.version = 11 : i64} {
  func.func @_matmul_kernel(%arg0: i32, %arg1: i32, %arg2: i32, %arg3: memref<32x32xf32, #tpu.memory_space<vmem>>, %arg4: memref<32x64xf32, #tpu.memory_space<vmem>>, %arg5: memref<1x64xf32, #tpu.memory_space<vmem>>, %arg6: memref<32x64xf32, #tpu.memory_space<vmem>>, %arg7: memref<32x64xf32, #tpu.memory_space<vmem>>) attributes {dimension_semantics = [#tpu.dimension_semantics<parallel>, #tpu.dimension_semantics<parallel>, #tpu.dimension_semantics<arbitrary>], iteration_bounds = array<i64: 1, 1, 1>, scalar_prefetch = 0 : i64, scratch_operands = 1 : i64, tpu.core_type = #tpu.core_type<tc>, window_params = [{transform_indices = @transform_0, window_bounds = array<i64: 32, 32>}, {transform_indices = @transform_1, window_bounds = array<i64: 32, 64>}, {transform_indices = @transform_2, window_bounds = array<i64: 1, 64>}, {transform_indices = @transform_3, window_bounds = array<i64: 32, 64>}]} {
    %c0_i32 = arith.constant 0 : i32
    %0 = arith.cmpi eq, %arg2, %c0_i32 : i32
    %1 = arith.extui %0 : i1 to i32
    %c0_i32_0 = arith.constant 0 : i32
    %2 = arith.cmpi ne, %1, %c0_i32_0 : i32
    scf.if %2 {
      %cst_10 = arith.constant 0.000000e+00 : f32
      %14 = vector.broadcast %cst_10 : f32 to vector<32x64xf32>
      %c0_11 = arith.constant 0 : index
      %c0_12 = arith.constant 0 : index
      %15 = vector.load %arg7[%c0_11, %c0_12] : memref<32x64xf32, #tpu.memory_space<vmem>>, vector<32x64xf32>
      tpu.vector_store %arg7[%c0_11, %c0_12], %14 {strides = array<i32>} : memref<32x64xf32, #tpu.memory_space<vmem>>, vector<32x64xf32>,
    } else {
    }
    %c0 = arith.constant 0 : index
    %c0_1 = arith.constant 0 : index
    %3 = vector.load %arg7[%c0, %c0_1] : memref<32x64xf32, #tpu.memory_space<vmem>>, vector<32x64xf32>
    %c0_2 = arith.constant 0 : index
    %c0_3 = arith.constant 0 : index
    %4 = vector.load %arg3[%c0_2, %c0_3] : memref<32x32xf32, #tpu.memory_space<vmem>>, vector<32x32xf32>
    %5 = arith.truncf %4 : vector<32x32xf32> to vector<32x32xbf16>
    %c0_4 = arith.constant 0 : index
    %c0_5 = arith.constant 0 : index
    %6 = vector.load %arg4[%c0_4, %c0_5] : memref<32x64xf32, #tpu.memory_space<vmem>>, vector<32x64xf32>
    %7 = arith.truncf %6 : vector<32x64xf32> to vector<32x64xbf16>
    %cst = arith.constant dense<0.000000e+00> : vector<32x64xf32>
    %8 = tpu.matmul %5, %7, %cst {dimension_numbers = #tpu.dot_dimension_numbers<[1], [0], [0], [1], [0, 0, 1, 1], [], []>} : vector<32x32xbf16>, vector<32x64xbf16>, vector<32x64xf32> -> vector<32x64xf32>
    %9 = arith.addf %3, %8 : vector<32x64xf32>
    %c0_6 = arith.constant 0 : index
    %c0_7 = arith.constant 0 : index
    %10 = vector.load %arg7[%c0_6, %c0_7] : memref<32x64xf32, #tpu.memory_space<vmem>>, vector<32x64xf32>
    tpu.vector_store %arg7[%c0_6, %c0_7], %9 {strides = array<i32>} : memref<32x64xf32, #tpu.memory_space<vmem>>, vector<32x64xf32>,
    %c0_i32_8 = arith.constant 0 : i32
    %11 = arith.cmpi eq, %arg2, %c0_i32_8 : i32
    %12 = arith.extui %11 : i1 to i32
    %c0_i32_9 = arith.constant 0 : i32
    %13 = arith.cmpi ne, %12, %c0_i32_9 : i32
    scf.if %13 {
      %c0_10 = arith.constant 0 : index
      %c0_11 = arith.constant 0 : index
      %14 = vector.load %arg7[%c0_10, %c0_11] : memref<32x64xf32, #tpu.memory_space<vmem>>, vector<32x64xf32>
      %c0_12 = arith.constant 0 : index
      %c0_13 = arith.constant 0 : index
      %15 = vector.load %arg5[%c0_12, %c0_13] : memref<1x64xf32, #tpu.memory_space<vmem>>, vector<1x64xf32>
      %16 = vector.broadcast %15 : vector<1x64xf32> to vector<32x64xf32>
      %17 = arith.addf %14, %16 : vector<32x64xf32>
      %cst_14 = arith.constant 0.000000e+00 : f32
      %18 = vector.broadcast %cst_14 : f32 to vector<32x64xf32>
      %19 = arith.maximumf %17, %18 : vector<32x64xf32>
      %c0_15 = arith.constant 0 : index
      %c0_16 = arith.constant 0 : index
      %20 = vector.load %arg6[%c0_15, %c0_16] : memref<32x64xf32, #tpu.memory_space<vmem>>, vector<32x64xf32>
      tpu.vector_store %arg6[%c0_15, %c0_16], %19 {strides = array<i32>} : memref<32x64xf32, #tpu.memory_space<vmem>>, vector<32x64xf32>,
    } else {
    }
    return
  }
  func.func @transform_0(%arg0: i32, %arg1: i32, %arg2: i32) -> (i32, i32) {
    %c0_i32 = arith.constant 0 : i32
    return %arg0, %arg2 : i32, i32
  }
  func.func @transform_1(%arg0: i32, %arg1: i32, %arg2: i32) -> (i32, i32) {
    %c0_i32 = arith.constant 0 : i32
    return %arg2, %arg1 : i32, i32
  }
  func.func @transform_2(%arg0: i32, %arg1: i32, %arg2: i32) -> (i32, i32) {
    %c0_i32 = arith.constant 0 : i32
    %c0_i32_0 = arith.constant 0 : i32
    return %c0_i32, %arg1 : i32, i32
  }
  func.func @transform_3(%arg0: i32, %arg1: i32, %arg2: i32) -> (i32, i32) {
    %c0_i32 = arith.constant 0 : i32
    return %arg0, %arg1 : i32, i32
  }
}

module attributes {stable_mosaic.version = 11 : i64} {
  func.func @_attn_kernel(%arg0: i32, %arg1: i32, %arg2: i32, %arg3: memref<1x16x32xf32, #tpu.memory_space<vmem>>, %arg4: memref<1x1x8x32xf32, #tpu.memory_space<vmem>>, %arg5: memref<1x1x8x32xf32, #tpu.memory_space<vmem>>, %arg6: memref<1x1x8xf32, #tpu.memory_space<vmem>>, %arg7: memref<1x16x32xf32, #tpu.memory_space<vmem>>, %arg8: memref<16x4xf32, #tpu.memory_space<vmem>>, %arg9: memref<16x4xf32, #tpu.memory_space<vmem>>, %arg10: memref<16x32xf32, #tpu.memory_space<vmem>>) attributes {dimension_semantics = [#tpu.dimension_semantics<parallel>, #tpu.dimension_semantics<parallel>, #tpu.dimension_semantics<arbitrary>], iteration_bounds = array<i64: 2, 1, 1>, scalar_prefetch = 0 : i64, scratch_operands = 3 : i64, tpu.core_type = #tpu.core_type<tc>, window_params = [{transform_indices = @transform_0, window_bounds = array<i64: 1, 16, 32>}, {transform_indices = @transform_1, window_bounds = array<i64: 1, 1, 8, 32>}, {transform_indices = @transform_2, window_bounds = array<i64: 1, 1, 8, 32>}, {transform_indices = @transform_3, window_bounds = array<i64: 1, 1, 8>}, {transform_indices = @transform_4, window_bounds = array<i64: 1, 16, 32>}]} {
    %c0_i32 = arith.constant 0 : i32
    %0 = arith.cmpi eq, %arg2, %c0_i32 : i32
    %1 = arith.extui %0 : i1 to i32
    %c0_i32_0 = arith.constant 0 : i32
    %2 = arith.cmpi ne, %1, %c0_i32_0 : i32
    scf.if %2 {
      %cst_73 = arith.constant 0xFF800000 : f32
      %133 = vector.broadcast %cst_73 : f32 to vector<16x4xf32>
      %c0_74 = arith.constant 0 : index
      %c0_75 = arith.constant 0 : index
      %134 = vector.load %arg8[%c0_74, %c0_75] : memref<16x4xf32, #tpu.memory_space<vmem>>, vector<16x4xf32>
      tpu.vector_store %arg8[%c0_74, %c0_75], %133 {strides = array<i32>} : memref<16x4xf32, #tpu.memory_space<vmem>>, vector<16x4xf32>,
      %cst_76 = arith.constant 0.000000e+00 : f32
      %135 = vector.broadcast %cst_76 : f32 to vector<16x4xf32>
      %c0_77 = arith.constant 0 : index
      %c0_78 = arith.constant 0 : index
      %136 = vector.load %arg9[%c0_77, %c0_78] : memref<16x4xf32, #tpu.memory_space<vmem>>, vector<16x4xf32>
      tpu.vector_store %arg9[%c0_77, %c0_78], %135 {strides = array<i32>} : memref<16x4xf32, #tpu.memory_space<vmem>>, vector<16x4xf32>,
      %cst_79 = arith.constant 0.000000e+00 : f32
      %137 = vector.broadcast %cst_79 : f32 to vector<16x32xf32>
      %c0_80 = arith.constant 0 : index
      %c0_81 = arith.constant 0 : index
      %138 = vector.load %arg10[%c0_80, %c0_81] : memref<16x32xf32, #tpu.memory_space<vmem>>, vector<16x32xf32>
      tpu.vector_store %arg10[%c0_80, %c0_81], %137 {strides = array<i32>} : memref<16x32xf32, #tpu.memory_space<vmem>>, vector<16x32xf32>,
    } else {
    }
    %c0 = arith.constant 0 : index
    %c0_1 = arith.constant 0 : index
    %c0_2 = arith.constant 0 : index
    %3 = vector.load %arg3[%c0, %c0_1, %c0_2] : memref<1x16x32xf32, #tpu.memory_space<vmem>>, vector<1x16x32xf32>
    %4 = vector.shape_cast %3 : vector<1x16x32xf32> to vector<16x32xf32>
    %5 = arith.truncf %4 : vector<16x32xf32> to vector<16x32xbf16>
    %c0_3 = arith.constant 0 : index
    %c0_4 = arith.constant 0 : index
    %c0_5 = arith.constant 0 : index
    %c0_6 = arith.constant 0 : index
    %6 = vector.load %arg4[%c0_3, %c0_4, %c0_5, %c0_6] : memref<1x1x8x32xf32, #tpu.memory_space<vmem>>, vector<1x1x8x32xf32>
    %7 = vector.shape_cast %6 : vector<1x1x8x32xf32> to vector<8x32xf32>
    %8 = arith.truncf %7 : vector<8x32xf32> to vector<8x32xbf16>
    %c0_7 = arith.constant 0 : index
    %c0_8 = arith.constant 0 : index
    %c0_9 = arith.constant 0 : index
    %c0_10 = arith.constant 0 : index
    %9 = vector.load %arg5[%c0_7, %c0_8, %c0_9, %c0_10] : memref<1x1x8x32xf32, #tpu.memory_space<vmem>>, vector<1x1x8x32xf32>
    %10 = vector.shape_cast %9 : vector<1x1x8x32xf32> to vector<8x32xf32>
    %11 = arith.truncf %10 : vector<8x32xf32> to vector<8x32xbf16>
    %c0_11 = arith.constant 0 : index
    %c0_12 = arith.constant 0 : index
    %c0_13 = arith.constant 0 : index
    %12 = vector.load %arg6[%c0_11, %c0_12, %c0_13] : memref<1x1x8xf32, #tpu.memory_space<vmem>>, vector<1x1x8xf32>
    %13 = vector.shape_cast %12 : vector<1x1x8xf32> to vector<1x8xf32>
    %14 = vector.extract_strided_slice %5 {offsets = [0, 0], sizes = [16, 8], strides = [1, 1]} : vector<16x32xbf16> to vector<16x8xbf16>
    %15 = vector.extract_strided_slice %8 {offsets = [0, 0], sizes = [8, 8], strides = [1, 1]} : vector<8x32xbf16> to vector<8x8xbf16>
    %cst = arith.constant dense<0.000000e+00> : vector<16x8xf32>
    %16 = tpu.matmul %14, %15, %cst {dimension_numbers = #tpu.dot_dimension_numbers<[1], [1], [0], [0], [0, 0, 1, 0], [], []>} : vector<16x8xbf16>, vector<8x8xbf16>, vector<16x8xf32> -> vector<16x8xf32>
    %17 = vector.broadcast %13 : vector<1x8xf32> to vector<16x8xf32>
    %18 = arith.addf %16, %17 : vector<16x8xf32>
    %c0_14 = arith.constant 0 : index
    %c0_15 = arith.constant 0 : index
    %19 = vector.load %arg8[%c0_14, %c0_15] : memref<16x4xf32, #tpu.memory_space<vmem>>, vector<16x1xf32>
    %cst_16 = arith.constant dense<0xFF800000> : vector<16xf32>
    %20 = vector.multi_reduction <maximumf>, %18, %cst_16 [1] : vector<16x8xf32> to vector<16xf32>
    %21 = vector.shape_cast %20 : vector<16xf32> to vector<16x1xf32>
    %22 = arith.maximumf %19, %21 : vector<16x1xf32>
    %23 = arith.subf %19, %22 : vector<16x1xf32>
    %24 = math.exp %23 : vector<16x1xf32>
    %25 = vector.broadcast %22 : vector<16x1xf32> to vector<16x8xf32>
    %26 = arith.subf %18, %25 : vector<16x8xf32>
    %27 = math.exp %26 : vector<16x8xf32>
    %c0_17 = arith.constant 0 : index
    %c0_18 = arith.constant 0 : index
    %28 = vector.load %arg9[%c0_17, %c0_18] : memref<16x4xf32, #tpu.memory_space<vmem>>, vector<16x1xf32>
    %29 = arith.mulf %24, %28 : vector<16x1xf32>
    %cst_19 = arith.constant dense<0.000000e+00> : vector<16xf32>
    %30 = vector.multi_reduction <add>, %27, %cst_19 [1] : vector<16x8xf32> to vector<16xf32>
    %31 = vector.shape_cast %30 : vector<16xf32> to vector<16x1xf32>
    %32 = arith.addf %29, %31 : vector<16x1xf32>
    %c0_20 = arith.constant 0 : index
    %c0_21 = arith.constant 0 : index
    %33 = vector.load %arg9[%c0_20, %c0_21] : memref<16x4xf32, #tpu.memory_space<vmem>>, vector<16x1xf32>
    tpu.vector_store %arg9[%c0_20, %c0_21], %32 {strides = array<i32>} : memref<16x4xf32, #tpu.memory_space<vmem>>, vector<16x1xf32>,
    %c0_22 = arith.constant 0 : index
    %c0_23 = arith.constant 0 : index
    %34 = vector.load %arg10[%c0_22, %c0_23] : memref<16x32xf32, #tpu.memory_space<vmem>>, vector<16x8xf32>
    %35 = vector.broadcast %24 : vector<16x1xf32> to vector<16x8xf32>
    %36 = arith.mulf %35, %34 : vector<16x8xf32>
    %37 = arith.truncf %27 : vector<16x8xf32> to vector<16x8xbf16>
    %38 = vector.extract_strided_slice %11 {offsets = [0, 0], sizes = [8, 8], strides = [1, 1]} : vector<8x32xbf16> to vector<8x8xbf16>
    %cst_24 = arith.constant dense<0.000000e+00> : vector<16x8xf32>
    %39 = tpu.matmul %37, %38, %cst_24 {dimension_numbers = #tpu.dot_dimension_numbers<[1], [0], [0], [1], [0, 0, 1, 1], [], []>} : vector<16x8xbf16>, vector<8x8xbf16>, vector<16x8xf32> -> vector<16x8xf32>
    %40 = arith.addf %36, %39 : vector<16x8xf32>
    %c0_25 = arith.constant 0 : index
    %c0_26 = arith.constant 0 : index
    %41 = vector.load %arg10[%c0_25, %c0_26] : memref<16x32xf32, #tpu.memory_space<vmem>>, vector<16x8xf32>
    tpu.vector_store %arg10[%c0_25, %c0_26], %40 {strides = array<i32>} : memref<16x32xf32, #tpu.memory_space<vmem>>, vector<16x8xf32>,
    %c0_27 = arith.constant 0 : index
    %c0_28 = arith.constant 0 : index
    %42 = vector.load %arg8[%c0_27, %c0_28] : memref<16x4xf32, #tpu.memory_space<vmem>>, vector<16x1xf32>
    tpu.vector_store %arg8[%c0_27, %c0_28], %22 {strides = array<i32>} : memref<16x4xf32, #tpu.memory_space<vmem>>, vector<16x1xf32>,
    %43 = vector.extract_strided_slice %5 {offsets = [0, 8], sizes = [16, 8], strides = [1, 1]} : vector<16x32xbf16> to vector<16x8xbf16>
    %44 = vector.extract_strided_slice %8 {offsets = [0, 8], sizes = [8, 8], strides = [1, 1]} : vector<8x32xbf16> to vector<8x8xbf16>
    %cst_29 = arith.constant dense<0.000000e+00> : vector<16x8xf32>
    %45 = tpu.matmul %43, %44, %cst_29 {dimension_numbers = #tpu.dot_dimension_numbers<[1], [1], [0], [0], [0, 0, 1, 0], [], []>} : vector<16x8xbf16>, vector<8x8xbf16>, vector<16x8xf32> -> vector<16x8xf32>
    %46 = vector.broadcast %13 : vector<1x8xf32> to vector<16x8xf32>
    %47 = arith.addf %45, %46 : vector<16x8xf32>
    %c0_30 = arith.constant 0 : index
    %c1 = arith.constant 1 : index
    %48 = vector.load %arg8[%c0_30, %c1] : memref<16x4xf32, #tpu.memory_space<vmem>>, vector<16x1xf32>
    %cst_31 = arith.constant dense<0xFF800000> : vector<16xf32>
    %49 = vector.multi_reduction <maximumf>, %47, %cst_31 [1] : vector<16x8xf32> to vector<16xf32>
    %50 = vector.shape_cast %49 : vector<16xf32> to vector<16x1xf32>
    %51 = arith.maximumf %48, %50 : vector<16x1xf32>
    %52 = arith.subf %48, %51 : vector<16x1xf32>
    %53 = math.exp %52 : vector<16x1xf32>
    %54 = vector.broadcast %51 : vector<16x1xf32> to vector<16x8xf32>
    %55 = arith.subf %47, %54 : vector<16x8xf32>
    %56 = math.exp %55 : vector<16x8xf32>
    %c0_32 = arith.constant 0 : index
    %c1_33 = arith.constant 1 : index
    %57 = vector.load %arg9[%c0_32, %c1_33] : memref<16x4xf32, #tpu.memory_space<vmem>>, vector<16x1xf32>
    %58 = arith.mulf %53, %57 : vector<16x1xf32>
    %cst_34 = arith.constant dense<0.000000e+00> : vector<16xf32>
    %59 = vector.multi_reduction <add>, %56, %cst_34 [1] : vector<16x8xf32> to vector<16xf32>
    %60 = vector.shape_cast %59 : vector<16xf32> to vector<16x1xf32>
    %61 = arith.addf %58, %60 : vector<16x1xf32>
    %c0_35 = arith.constant 0 : index
    %c1_36 = arith.constant 1 : index
    %62 = vector.load %arg9[%c0_35, %c1_36] : memref<16x4xf32, #tpu.memory_space<vmem>>, vector<16x1xf32>
    tpu.vector_store %arg9[%c0_35, %c1_36], %61 {strides = array<i32>} : memref<16x4xf32, #tpu.memory_space<vmem>>, vector<16x1xf32>,
    %c0_37 = arith.constant 0 : index
    %c8 = arith.constant 8 : index
    %63 = vector.load %arg10[%c0_37, %c8] : memref<16x32xf32, #tpu.memory_space<vmem>>, vector<16x8xf32>
    %64 = vector.broadcast %53 : vector<16x1xf32> to vector<16x8xf32>
    %65 = arith.mulf %64, %63 : vector<16x8xf32>
    %66 = arith.truncf %56 : vector<16x8xf32> to vector<16x8xbf16>
    %67 = vector.extract_strided_slice %11 {offsets = [0, 8], sizes = [8, 8], strides = [1, 1]} : vector<8x32xbf16> to vector<8x8xbf16>
    %cst_38 = arith.constant dense<0.000000e+00> : vector<16x8xf32>
    %68 = tpu.matmul %66, %67, %cst_38 {dimension_numbers = #tpu.dot_dimension_numbers<[1], [0], [0], [1], [0, 0, 1, 1], [], []>} : vector<16x8xbf16>, vector<8x8xbf16>, vector<16x8xf32> -> vector<16x8xf32>
    %69 = arith.addf %65, %68 : vector<16x8xf32>
    %c0_39 = arith.constant 0 : index
    %c8_40 = arith.constant 8 : index
    %70 = vector.load %arg10[%c0_39, %c8_40] : memref<16x32xf32, #tpu.memory_space<vmem>>, vector<16x8xf32>
    tpu.vector_store %arg10[%c0_39, %c8_40], %69 {strides = array<i32>} : memref<16x32xf32, #tpu.memory_space<vmem>>, vector<16x8xf32>,
    %c0_41 = arith.constant 0 : index
    %c1_42 = arith.constant 1 : index
    %71 = vector.load %arg8[%c0_41, %c1_42] : memref<16x4xf32, #tpu.memory_space<vmem>>, vector<16x1xf32>
    tpu.vector_store %arg8[%c0_41, %c1_42], %51 {strides = array<i32>} : memref<16x4xf32, #tpu.memory_space<vmem>>, vector<16x1xf32>,
    %72 = vector.extract_strided_slice %5 {offsets = [0, 16], sizes = [16, 8], strides = [1, 1]} : vector<16x32xbf16> to vector<16x8xbf16>
    %73 = vector.extract_strided_slice %8 {offsets = [0, 16], sizes = [8, 8], strides = [1, 1]} : vector<8x32xbf16> to vector<8x8xbf16>
    %cst_43 = arith.constant dense<0.000000e+00> : vector<16x8xf32>
    %74 = tpu.matmul %72, %73, %cst_43 {dimension_numbers = #tpu.dot_dimension_numbers<[1], [1], [0], [0], [0, 0, 1, 0], [], []>} : vector<16x8xbf16>, vector<8x8xbf16>, vector<16x8xf32> -> vector<16x8xf32>
    %75 = vector.broadcast %13 : vector<1x8xf32> to vector<16x8xf32>
    %76 = arith.addf %74, %75 : vector<16x8xf32>
    %c0_44 = arith.constant 0 : index
    %c2 = arith.constant 2 : index
    %77 = vector.load %arg8[%c0_44, %c2] : memref<16x4xf32, #tpu.memory_space<vmem>>, vector<16x1xf32>
    %cst_45 = arith.constant dense<0xFF800000> : vector<16xf32>
    %78 = vector.multi_reduction <maximumf>, %76, %cst_45 [1] : vector<16x8xf32> to vector<16xf32>
    %79 = vector.shape_cast %78 : vector<16xf32> to vector<16x1xf32>
    %80 = arith.maximumf %77, %79 : vector<16x1xf32>
    %81 = arith.subf %77, %80 : vector<16x1xf32>
    %82 = math.exp %81 : vector<16x1xf32>
    %83 = vector.broadcast %80 : vector<16x1xf32> to vector<16x8xf32>
    %84 = arith.subf %76, %83 : vector<16x8xf32>
    %85 = math.exp %84 : vector<16x8xf32>
    %c0_46 = arith.constant 0 : index
    %c2_47 = arith.constant 2 : index
    %86 = vector.load %arg9[%c0_46, %c2_47] : memref<16x4xf32, #tpu.memory_space<vmem>>, vector<16x1xf32>
    %87 = arith.mulf %82, %86 : vector<16x1xf32>
    %cst_48 = arith.constant dense<0.000000e+00> : vector<16xf32>
    %88 = vector.multi_reduction <add>, %85, %cst_48 [1] : vector<16x8xf32> to vector<16xf32>
    %89 = vector.shape_cast %88 : vector<16xf32> to vector<16x1xf32>
    %90 = arith.addf %87, %89 : vector<16x1xf32>
    %c0_49 = arith.constant 0 : index
    %c2_50 = arith.constant 2 : index
    %91 = vector.load %arg9[%c0_49, %c2_50] : memref<16x4xf32, #tpu.memory_space<vmem>>, vector<16x1xf32>
    tpu.vector_store %arg9[%c0_49, %c2_50], %90 {strides = array<i32>} : memref<16x4xf32, #tpu.memory_space<vmem>>, vector<16x1xf32>,
    %c0_51 = arith.constant 0 : index
    %c16 = arith.constant 16 : index
    %92 = vector.load %arg10[%c0_51, %c16] : memref<16x32xf32, #tpu.memory_space<vmem>>, vector<16x8xf32>
    %93 = vector.broadcast %82 : vector<16x1xf32> to vector<16x8xf32>
    %94 = arith.mulf %93, %92 : vector<16x8xf32>
    %95 = arith.truncf %85 : vector<16x8xf32> to vector<16x8xbf16>
    %96 = vector.extract_strided_slice %11 {offsets = [0, 16], sizes = [8, 8], strides = [1, 1]} : vector<8x32xbf16> to vector<8x8xbf16>
    %cst_52 = arith.constant dense<0.000000e+00> : vector<16x8xf32>
    %97 = tpu.matmul %95, %96, %cst_52 {dimension_numbers = #tpu.dot_dimension_numbers<[1], [0], [0], [1], [0, 0, 1, 1], [], []>} : vector<16x8xbf16>, vector<8x8xbf16>, vector<16x8xf32> -> vector<16x8xf32>
    %98 = arith.addf %94, %97 : vector<16x8xf32>
    %c0_53 = arith.constant 0 : index
    %c16_54 = arith.constant 16 : index
    %99 = vector.load %arg10[%c0_53, %c16_54] : memref<16x32xf32, #tpu.memory_space<vmem>>, vector<16x8xf32>
    tpu.vector_store %arg10[%c0_53, %c16_54], %98 {strides = array<i32>} : memref<16x32xf32, #tpu.memory_space<vmem>>, vector<16x8xf32>,
    %c0_55 = arith.constant 0 : index
    %c2_56 = arith.constant 2 : index
    %100 = vector.load %arg8[%c0_55, %c2_56] : memref<16x4xf32, #tpu.memory_space<vmem>>, vector<16x1xf32>
    tpu.vector_store %arg8[%c0_55, %c2_56], %80 {strides = array<i32>} : memref<16x4xf32, #tpu.memory_space<vmem>>, vector<16x1xf32>,
    %101 = vector.extract_strided_slice %5 {offsets = [0, 24], sizes = [16, 8], strides = [1, 1]} : vector<16x32xbf16> to vector<16x8xbf16>
    %102 = vector.extract_strided_slice %8 {offsets = [0, 24], sizes = [8, 8], strides = [1, 1]} : vector<8x32xbf16> to vector<8x8xbf16>
    %cst_57 = arith.constant dense<0.000000e+00> : vector<16x8xf32>
    %103 = tpu.matmul %101, %102, %cst_57 {dimension_numbers = #tpu.dot_dimension_numbers<[1], [1], [0], [0], [0, 0, 1, 0], [], []>} : vector<16x8xbf16>, vector<8x8xbf16>, vector<16x8xf32> -> vector<16x8xf32>
    %104 = vector.broadcast %13 : vector<1x8xf32> to vector<16x8xf32>
    %105 = arith.addf %103, %104 : vector<16x8xf32>
    %c0_58 = arith.constant 0 : index
    %c3 = arith.constant 3 : index
    %106 = vector.load %arg8[%c0_58, %c3] : memref<16x4xf32, #tpu.memory_space<vmem>>, vector<16x1xf32>
    %cst_59 = arith.constant dense<0xFF800000> : vector<16xf32>
    %107 = vector.multi_reduction <maximumf>, %105, %cst_59 [1] : vector<16x8xf32> to vector<16xf32>
    %108 = vector.shape_cast %107 : vector<16xf32> to vector<16x1xf32>
    %109 = arith.maximumf %106, %108 : vector<16x1xf32>
    %110 = arith.subf %106, %109 : vector<16x1xf32>
    %111 = math.exp %110 : vector<16x1xf32>
    %112 = vector.broadcast %109 : vector<16x1xf32> to vector<16x8xf32>
    %113 = arith.subf %105, %112 : vector<16x8xf32>
    %114 = math.exp %113 : vector<16x8xf32>
    %c0_60 = arith.constant 0 : index
    %c3_61 = arith.constant 3 : index
    %115 = vector.load %arg9[%c0_60, %c3_61] : memref<16x4xf32, #tpu.memory_space<vmem>>, vector<16x1xf32>
    %116 = arith.mulf %111, %115 : vector<16x1xf32>
    %cst_62 = arith.constant dense<0.000000e+00> : vector<16xf32>
    %117 = vector.multi_reduction <add>, %114, %cst_62 [1] : vector<16x8xf32> to vector<16xf32>
    %118 = vector.shape_cast %117 : vector<16xf32> to vector<16x1xf32>
    %119 = arith.addf %116, %118 : vector<16x1xf32>
    %c0_63 = arith.constant 0 : index
    %c3_64 = arith.constant 3 : index
    %120 = vector.load %arg9[%c0_63, %c3_64] : memref<16x4xf32, #tpu.memory_space<vmem>>, vector<16x1xf32>
    tpu.vector_store %arg9[%c0_63, %c3_64], %119 {strides = array<i32>} : memref<16x4xf32, #tpu.memory_space<vmem>>, vector<16x1xf32>,
    %c0_65 = arith.constant 0 : index
    %c24 = arith.constant 24 : index
    %121 = vector.load %arg10[%c0_65, %c24] : memref<16x32xf32, #tpu.memory_space<vmem>>, vector<16x8xf32>
    %122 = vector.broadcast %111 : vector<16x1xf32> to vector<16x8xf32>
    %123 = arith.mulf %122, %121 : vector<16x8xf32>
    %124 = arith.truncf %114 : vector<16x8xf32> to vector<16x8xbf16>
    %125 = vector.extract_strided_slice %11 {offsets = [0, 24], sizes = [8, 8], strides = [1, 1]} : vector<8x32xbf16> to vector<8x8xbf16>
    %cst_66 = arith.constant dense<0.000000e+00> : vector<16x8xf32>
    %126 = tpu.matmul %124, %125, %cst_66 {dimension_numbers = #tpu.dot_dimension_numbers<[1], [0], [0], [1], [0, 0, 1, 1], [], []>} : vector<16x8xbf16>, vector<8x8xbf16>, vector<16x8xf32> -> vector<16x8xf32>
    %127 = arith.addf %123, %126 : vector<16x8xf32>
    %c0_67 = arith.constant 0 : index
    %c24_68 = arith.constant 24 : index
    %128 = vector.load %arg10[%c0_67, %c24_68] : memref<16x32xf32, #tpu.memory_space<vmem>>, vector<16x8xf32>
    tpu.vector_store %arg10[%c0_67, %c24_68], %127 {strides = array<i32>} : memref<16x32xf32, #tpu.memory_space<vmem>>, vector<16x8xf32>,
    %c0_69 = arith.constant 0 : index
    %c3_70 = arith.constant 3 : index
    %129 = vector.load %arg8[%c0_69, %c3_70] : memref<16x4xf32, #tpu.memory_space<vmem>>, vector<16x1xf32>
    tpu.vector_store %arg8[%c0_69, %c3_70], %109 {strides = array<i32>} : memref<16x4xf32, #tpu.memory_space<vmem>>, vector<16x1xf32>,
    %c0_i32_71 = arith.constant 0 : i32
    %130 = arith.cmpi eq, %arg2, %c0_i32_71 : i32
    %131 = arith.extui %130 : i1 to i32
    %c0_i32_72 = arith.constant 0 : i32
    %132 = arith.cmpi ne, %131, %c0_i32_72 : i32
    scf.if %132 {
      %c0_73 = arith.constant 0 : index
      %c0_74 = arith.constant 0 : index
      %133 = vector.load %arg10[%c0_73, %c0_74] : memref<16x32xf32, #tpu.memory_space<vmem>>, vector<16x8xf32>
      %c0_75 = arith.constant 0 : index
      %c0_76 = arith.constant 0 : index
      %134 = vector.load %arg9[%c0_75, %c0_76] : memref<16x4xf32, #tpu.memory_space<vmem>>, vector<16x1xf32>
      %135 = vector.broadcast %134 : vector<16x1xf32> to vector<16x8xf32>
      %136 = arith.divf %133, %135 : vector<16x8xf32>
      %c0_77 = arith.constant 0 : index
      %c0_78 = arith.constant 0 : index
      %c0_79 = arith.constant 0 : index
      %137 = vector.load %arg7[%c0_77, %c0_78, %c0_79] : memref<1x16x32xf32, #tpu.memory_space<vmem>>, vector<1x16x8xf32>
      %138 = vector.shape_cast %137 : vector<1x16x8xf32> to vector<16x8xf32>
      %139 = vector.shape_cast %136 : vector<16x8xf32> to vector<1x16x8xf32>
      tpu.vector_store %arg7[%c0_77, %c0_78, %c0_79], %139 {strides = array<i32>} : memref<1x16x32xf32, #tpu.memory_space<vmem>>, vector<1x16x8xf32>,
      %c0_80 = arith.constant 0 : index
      %c8_81 = arith.constant 8 : index
      %140 = vector.load %arg10[%c0_80, %c8_81] : memref<16x32xf32, #tpu.memory_space<vmem>>, vector<16x8xf32>
      %c0_82 = arith.constant 0 : index
      %c1_83 = arith.constant 1 : index
      %141 = vector.load %arg9[%c0_82, %c1_83] : memref<16x4xf32, #tpu.memory_space<vmem>>, vector<16x1xf32>
      %142 = vector.broadcast %141 : vector<16x1xf32> to vector<16x8xf32>
      %143 = arith.divf %140, %142 : vector<16x8xf32>
      %c0_84 = arith.constant 0 : index
      %c0_85 = arith.constant 0 : index
      %c8_86 = arith.constant 8 : index
      %144 = vector.load %arg7[%c0_84, %c0_85, %c8_86] : memref<1x16x32xf32, #tpu.memory_space<vmem>>, vector<1x16x8xf32>
      %145 = vector.shape_cast %144 : vector<1x16x8xf32> to vector<16x8xf32>
      %146 = vector.shape_cast %143 : vector<16x8xf32> to vector<1x16x8xf32>
      tpu.vector_store %arg7[%c0_84, %c0_85, %c8_86], %146 {strides = array<i32>} : memref<1x16x32xf32, #tpu.memory_space<vmem>>, vector<1x16x8xf32>,
      %c0_87 = arith.constant 0 : index
      %c16_88 = arith.constant 16 : index
      %147 = vector.load %arg10[%c0_87, %c16_88] : memref<16x32xf32, #tpu.memory_space<vmem>>, vector<16x8xf32>
      %c0_89 = arith.constant 0 : index
      %c2_90 = arith.constant 2 : index
      %148 = vector.load %arg9[%c0_89, %c2_90] : memref<16x4xf32, #tpu.memory_space<vmem>>, vector<16x1xf32>
      %149 = vector.broadcast %148 : vector<16x1xf32> to vector<16x8xf32>
      %150 = arith.divf %147, %149 : vector<16x8xf32>
      %c0_91 = arith.constant 0 : index
      %c0_92 = arith.constant 0 : index
      %c16_93 = arith.constant 16 : index
      %151 = vector.load %arg7[%c0_91, %c0_92, %c16_93] : memref<1x16x32xf32, #tpu.memory_space<vmem>>, vector<1x16x8xf32>
      %152 = vector.shape_cast %151 : vector<1x16x8xf32> to vector<16x8xf32>
      %153 = vector.shape_cast %150 : vector<16x8xf32> to vector<1x16x8xf32>
      tpu.vector_store %arg7[%c0_91, %c0_92, %c16_93], %153 {strides = array<i32>} : memref<1x16x32xf32, #tpu.memory_space<vmem>>, vector<1x16x8xf32>,
      %c0_94 = arith.constant 0 : index
      %c24_95 = arith.constant 24 : index
      %154 = vector.load %arg10[%c0_94, %c24_95] : memref<16x32xf32, #tpu.memory_space<vmem>>, vector<16x8xf32>
      %c0_96 = arith.constant 0 : index
      %c3_97 = arith.constant 3 : index
      %155 = vector.load %arg9[%c0_96, %c3_97] : memref<16x4xf32, #tpu.memory_space<vmem>>, vector<16x1xf32>
      %156 = vector.broadcast %155 : vector<16x1xf32> to vector<16x8xf32>
      %157 = arith.divf %154, %156 : vector<16x8xf32>
      %c0_98 = arith.constant 0 : index
      %c0_99 = arith.constant 0 : index
      %c24_100 = arith.constant 24 : index
      %158 = vector.load %arg7[%c0_98, %c0_99, %c24_100] : memref<1x16x32xf32, #tpu.memory_space<vmem>>, vector<1x16x8xf32>
      %159 = vector.shape_cast %158 : vector<1x16x8xf32> to vector<16x8xf32>
      %160 = vector.shape_cast %157 : vector<16x8xf32> to vector<1x16x8xf32>
      tpu.vector_store %arg7[%c0_98, %c0_99, %c24_100], %160 {strides = array<i32>} : memref<1x16x32xf32, #tpu.memory_space<vmem>>, vector<1x16x8xf32>,
    } else {
    }
    return
  }
  func.func @transform_0(%arg0: i32, %arg1: i32, %arg2: i32) -> (i32, i32, i32) {
    %c0_i32 = arith.constant 0 : i32
    %c0_i32_0 = arith.constant 0 : i32
    return %arg0, %arg1, %c0_i32 : i32, i32, i32
  }
  func.func @transform_1(%arg0: i32, %arg1: i32, %arg2: i32) -> (i32, i32, i32, i32) {
    %c0_i32 = arith.constant 0 : i32
    %c0_i32_0 = arith.constant 0 : i32
    %c0_i32_1 = arith.constant 0 : i32
    return %c0_i32, %arg0, %arg2, %c0_i32_0 : i32, i32, i32, i32
  }
  func.func @transform_2(%arg0: i32, %arg1: i32, %arg2: i32) -> (i32, i32, i32, i32) {
    %c1_i32 = arith.constant 1 : i32
    %c0_i32 = arith.constant 0 : i32
    %c0_i32_0 = arith.constant 0 : i32
    return %c1_i32, %arg0, %arg2, %c0_i32 : i32, i32, i32, i32
  }
  func.func @transform_3(%arg0: i32, %arg1: i32, %arg2: i32) -> (i32, i32, i32) {
    %c0_i32 = arith.constant 0 : i32
    %c0_i32_0 = arith.constant 0 : i32
    return %arg0, %c0_i32, %arg2 : i32, i32, i32
  }
  func.func @transform_4(%arg0: i32, %arg1: i32, %arg2: i32) -> (i32, i32, i32) {
    %c0_i32 = arith.constant 0 : i32
    %c0_i32_0 = arith.constant 0 : i32
    return %arg0, %arg1, %c0_i32 : i32, i32, i32
  }
}

module attributes {stable_mosaic.version = 11 : i64} {
  func.func @_matmul_add_ln_kernel(%arg0: i32, %arg1: i32, %arg2: memref<32x64xf32, #tpu.memory_space<vmem>>, %arg3: memref<64x32xf32, #tpu.memory_space<vmem>>, %arg4: memref<1x32xf32, #tpu.memory_space<vmem>>, %arg5: memref<32x32xf32, #tpu.memory_space<vmem>>, %arg6: memref<1x32xf32, #tpu.memory_space<vmem>>, %arg7: memref<1x32xf32, #tpu.memory_space<vmem>>, %arg8: memref<32x32xf32, #tpu.memory_space<vmem>>, %arg9: memref<32x32xf32, #tpu.memory_space<vmem>>) attributes {dimension_semantics = [#tpu.dimension_semantics<parallel>, #tpu.dimension_semantics<arbitrary>], iteration_bounds = array<i64: 1, 1>, scalar_prefetch = 0 : i64, scratch_operands = 1 : i64, tpu.core_type = #tpu.core_type<tc>, window_params = [{transform_indices = @transform_0, window_bounds = array<i64: 32, 64>}, {transform_indices = @transform_1, window_bounds = array<i64: 64, 32>}, {pipeline_mode = #tpu.pipeline_mode<synchronous>, transform_indices = @transform_2, window_bounds = array<i64: 1, 32>}, {transform_indices = @transform_3, window_bounds = array<i64: 32, 32>}, {pipeline_mode = #tpu.pipeline_mode<synchronous>, transform_indices = @transform_4, window_bounds = array<i64: 1, 32>}, {pipeline_mode = #tpu.pipeline_mode<synchronous>, transform_indices = @transform_5, window_bounds = array<i64: 1, 32>}, {transform_indices = @transform_6, window_bounds = array<i64: 32, 32>}]} {
    %c0_i32 = arith.constant 0 : i32
    %0 = arith.cmpi eq, %arg1, %c0_i32 : i32
    %1 = arith.extui %0 : i1 to i32
    %c0_i32_0 = arith.constant 0 : i32
    %2 = arith.cmpi ne, %1, %c0_i32_0 : i32
    scf.if %2 {
      %cst_10 = arith.constant 0.000000e+00 : f32
      %14 = vector.broadcast %cst_10 : f32 to vector<32x32xf32>
      %c0_11 = arith.constant 0 : index
      %c0_12 = arith.constant 0 : index
      %15 = vector.load %arg9[%c0_11, %c0_12] : memref<32x32xf32, #tpu.memory_space<vmem>>, vector<32x32xf32>
      tpu.vector_store %arg9[%c0_11, %c0_12], %14 {strides = array<i32>} : memref<32x32xf32, #tpu.memory_space<vmem>>, vector<32x32xf32>,
    } else {
    }
    %c0 = arith.constant 0 : index
    %c0_1 = arith.constant 0 : index
    %3 = vector.load %arg9[%c0, %c0_1] : memref<32x32xf32, #tpu.memory_space<vmem>>, vector<32x32xf32>
    %c0_2 = arith.constant 0 : index
    %c0_3 = arith.constant 0 : index
    %4 = vector.load %arg2[%c0_2, %c0_3] : memref<32x64xf32, #tpu.memory_space<vmem>>, vector<32x64xf32>
    %5 = arith.truncf %4 : vector<32x64xf32> to vector<32x64xbf16>
    %c0_4 = arith.constant 0 : index
    %c0_5 = arith.constant 0 : index
    %6 = vector.load %arg3[%c0_4, %c0_5] : memref<64x32xf32, #tpu.memory_space<vmem>>, vector<64x32xf32>
    %7 = arith.truncf %6 : vector<64x32xf32> to vector<64x32xbf16>
    %cst = arith.constant dense<0.000000e+00> : vector<32x32xf32>
    %8 = tpu.matmul %5, %7, %cst {dimension_numbers = #tpu.dot_dimension_numbers<[1], [0], [0], [1], [0, 0, 1, 1], [], []>} : vector<32x64xbf16>, vector<64x32xbf16>, vector<32x32xf32> -> vector<32x32xf32>
    %9 = arith.addf %3, %8 : vector<32x32xf32>
    %c0_6 = arith.constant 0 : index
    %c0_7 = arith.constant 0 : index
    %10 = vector.load %arg9[%c0_6, %c0_7] : memref<32x32xf32, #tpu.memory_space<vmem>>, vector<32x32xf32>
    tpu.vector_store %arg9[%c0_6, %c0_7], %9 {strides = array<i32>} : memref<32x32xf32, #tpu.memory_space<vmem>>, vector<32x32xf32>,
    %c0_i32_8 = arith.constant 0 : i32
    %11 = arith.cmpi eq, %arg1, %c0_i32_8 : i32
    %12 = arith.extui %11 : i1 to i32
    %c0_i32_9 = arith.constant 0 : i32
    %13 = arith.cmpi ne, %12, %c0_i32_9 : i32
    scf.if %13 {
      %c0_10 = arith.constant 0 : index
      %c0_11 = arith.constant 0 : index
      %14 = vector.load %arg9[%c0_10, %c0_11] : memref<32x32xf32, #tpu.memory_space<vmem>>, vector<32x32xf32>
      %c0_12 = arith.constant 0 : index
      %c0_13 = arith.constant 0 : index
      %15 = vector.load %arg4[%c0_12, %c0_13] : memref<1x32xf32, #tpu.memory_space<vmem>>, vector<1x32xf32>
      %16 = vector.broadcast %15 : vector<1x32xf32> to vector<32x32xf32>
      %17 = arith.addf %14, %16 : vector<32x32xf32>
      %c0_14 = arith.constant 0 : index
      %c0_15 = arith.constant 0 : index
      %18 = vector.load %arg5[%c0_14, %c0_15] : memref<32x32xf32, #tpu.memory_space<vmem>>, vector<32x32xf32>
      %19 = arith.addf %17, %18 : vector<32x32xf32>
      %cst_16 = arith.constant dense<0.000000e+00> : vector<32xf32>
      %20 = vector.multi_reduction <add>, %19, %cst_16 [1] : vector<32x32xf32> to vector<32xf32>
      %21 = vector.shape_cast %20 : vector<32xf32> to vector<32x1xf32>
      %cst_17 = arith.constant 3.200000e+01 : f32
      %22 = vector.broadcast %cst_17 : f32 to vector<32x1xf32>
      %23 = arith.divf %21, %22 : vector<32x1xf32>
      %24 = vector.broadcast %23 : vector<32x1xf32> to vector<32x32xf32>
      %25 = arith.subf %19, %24 : vector<32x32xf32>
      %26 = arith.mulf %25, %25 : vector<32x32xf32>
      %cst_18 = arith.constant dense<0.000000e+00> : vector<32xf32>
      %27 = vector.multi_reduction <add>, %26, %cst_18 [1] : vector<32x32xf32> to vector<32xf32>
      %28 = vector.shape_cast %27 : vector<32xf32> to vector<32x1xf32>
      %cst_19 = arith.constant 3.200000e+01 : f32
      %29 = vector.broadcast %cst_19 : f32 to vector<32x1xf32>
      %30 = arith.divf %28, %29 : vector<32x1xf32>
      %cst_20 = arith.constant 9.99999974E-6 : f32
      %31 = vector.broadcast %cst_20 : f32 to vector<32x1xf32>
      %32 = arith.addf %30, %31 : vector<32x1xf32>
      %33 = math.rsqrt %32 : vector<32x1xf32>
      %34 = vector.broadcast %33 : vector<32x1xf32> to vector<32x32xf32>
      %35 = arith.mulf %25, %34 : vector<32x32xf32>
      %c0_21 = arith.constant 0 : index
      %c0_22 = arith.constant 0 : index
      %36 = vector.load %arg6[%c0_21, %c0_22] : memref<1x32xf32, #tpu.memory_space<vmem>>, vector<1x32xf32>
      %37 = vector.broadcast %36 : vector<1x32xf32> to vector<32x32xf32>
      %38 = arith.mulf %35, %37 : vector<32x32xf32>
      %c0_23 = arith.constant 0 : index
      %c0_24 = arith.constant 0 : index
      %39 = vector.load %arg7[%c0_23, %c0_24] : memref<1x32xf32, #tpu.memory_space<vmem>>, vector<1x32xf32>
      %40 = vector.broadcast %39 : vector<1x32xf32> to vector<32x32xf32>
      %41 = arith.addf %38, %40 : vector<32x32xf32>
      %c0_25 = arith.constant 0 : index
      %c0_26 = arith.constant 0 : index
      %42 = vector.load %arg8[%c0_25, %c0_26] : memref<32x32xf32, #tpu.memory_space<vmem>>, vector<32x32xf32>
      tpu.vector_store %arg8[%c0_25, %c0_26], %41 {strides = array<i32>} : memref<32x32xf32, #tpu.memory_space<vmem>>, vector<32x32xf32>,
    } else {
    }
    return
  }
  func.func @transform_0(%arg0: i32, %arg1: i32) -> (i32, i32) {
    %c0_i32 = arith.constant 0 : i32
    return %arg0, %arg1 : i32, i32
  }
  func.func @transform_1(%arg0: i32, %arg1: i32) -> (i32, i32) {
    %c0_i32 = arith.constant 0 : i32
    %c0_i32_0 = arith.constant 0 : i32
    return %arg1, %c0_i32 : i32, i32
  }
  func.func @transform_2(%arg0: i32, %arg1: i32) -> (i32, i32) {
    %c0_i32 = arith.constant 0 : i32
    %c0_i32_0 = arith.constant 0 : i32
    %c0_i32_1 = arith.constant 0 : i32
    return %c0_i32, %c0_i32_0 : i32, i32
  }
  func.func @transform_3(%arg0: i32, %arg1: i32) -> (i32, i32) {
    %c0_i32 = arith.constant 0 : i32
    %c0_i32_0 = arith.constant 0 : i32
    return %arg0, %c0_i32 : i32, i32
  }
  func.func @transform_4(%arg0: i32, %arg1: i32) -> (i32, i32) {
    %c0_i32 = arith.constant 0 : i32
    %c0_i32_0 = arith.constant 0 : i32
    %c0_i32_1 = arith.constant 0 : i32
    return %c0_i32, %c0_i32_0 : i32, i32
  }
  func.func @transform_5(%arg0: i32, %arg1: i32) -> (i32, i32) {
    %c0_i32 = arith.constant 0 : i32
    %c0_i32_0 = arith.constant 0 : i32
    %c0_i32_1 = arith.constant 0 : i32
    return %c0_i32, %c0_i32_0 : i32, i32
  }
  func.func @transform_6(%arg0: i32, %arg1: i32) -> (i32, i32) {
    %c0_i32 = arith.constant 0 : i32
    %c0_i32_0 = arith.constant 0 : i32
    return %arg0, %c0_i32 : i32, i32
  }
}

</mosaic_0001>

<bundles_post_ra>
// kernel: optformer_encoder_layer.18
= control target key start
LH: loop header
LB: loop body
LE: loop exit
PB: predicated region body
PF: predicated region fallthrough
CT: control target
= control target key end

     0   :  { %s564_s12 = smov 0   ;;  %s566_s13 = smov 0   ;;  %s618_s0 = inlined_call_operand.vmem [shape: f32[16,32], index: 0, kind: input, shape index: {}]   ;;  %s619_s1 = inlined_call_operand.vmem [shape: f32[3,32,32], index: 1, kind: input, shape index: {}]   ;;  %s620_s2 = inlined_call_operand.vmem [shape: f32[3,1,32], index: 2, kind: input, shape index: {}]   ;;  %s621_s3 = inlined_call_operand.vmem [shape: f32[3,16,32], index: 3, kind: output, shape index: {}]  }
   0x1   :  { %s568_s14 = smov 0  }
   0x2 LB: > { %s32_s15 = sadd.s32 1, %s536_s13  ;;  %p470_p0 = scmp.ge.s32.totalorder %s540_s14, 1  ;;  %s540_s14 = sphi %s568_s14, %s13_s14   ;;  %s536_s13 = sphi %s566_s13, %s623_s13   ;;  %s532_s12 = sphi %s564_s12, %s622_s12  }
   0x3   : > { %p34_p1 = scmp.ge.s32.totalorder %s32_s15, 3  ;;  %p189_p2 = scmp.lt.s32.totalorder %s540_s14, 4 }
   0x5   : > { %s625_s15 = smov (%p34_p1, %s32_s15), 0  ;;  %p190_p3 = pnand %p470_p0, %p189_p2 }
   0x6   : > { %p242_p4 = scmp.lt.s32.totalorder (!%p190_p3), %s532_s12, 2  ;;  %vm269_vm0 = vcmask (!%p190_p3), 261120   ;;  %v542_v0 = vmov (!%p190_p3), 0.0   ;;  %vm543_vm1 = vmmov (!%p190_p3), 0   ;;  %v274_v7 = vld [vmem:[%s618_s0] sm:$0xff] (!%p190_p3)  ;;  %v275_v8 = vld [vmem:[%s618_s0 + $0x8] sm:$0xff] (!%p190_p3) }
   0x7   : > { %193 = sbr.rel (%p190_p3) target bundleno = 254 (0xfe), region = 32  ;;  %484 = vmatprep.subr.bf16.mxu0 (!%p190_p3), %v542_v0  ;;  %488 = vmatprep.mubr.msk.bf16.mxu0 (!%p190_p3), %vm543_vm1, %v542_v0  ;;  %270 = vst.msk [vmem:[#allocation2] sm:$0xff] (!%p190_p3), %vm269_vm0, %v542_v0  ;;  %271 = vst.msk [vmem:[#allocation2 + $0x8] sm:$0xff] (!%p190_p3), %vm269_vm0, %v542_v0  ;;  %v276_v9 = vpack.c.bf16 (!%p190_p3), %v275_v8, %v274_v7 }
   0xe   : > { %s627_s12 = smov (!%p242_p4, %s532_s12), 2  ;;  %v272_v10 = vld [vmem:[#allocation2] sm:$0xff]  ;;  %v273_v12 = vld [vmem:[#allocation2 + $0x8] sm:$0xff] }
   0xf   : > { %s479_s16 = sshll.u32 %s627_s12, 5  ;;  %s253_s26 = scalar_lea.vmem %s620_s2, %s627_s12 }
  0x10   : > { %s249_s19 = scalar_lea.vmem %s619_s1, %s479_s16  ;;  %s480_s27 = sshll.u32 %s627_s12, 4  ;;  %v476_v18 = vld [vmem:[%s253_s26] ss:$0 sm:$0xff] }
  0x11   : > { %v277_v1 = vld [vmem:[%s249_s19] sm:$0xff]  ;;  %v278_v2 = vld [vmem:[%s249_s19 + $0x8] sm:$0xff]  ;;  %v279_v3 = vld [vmem:[%s249_s19 + $0x10] sm:$0xff]  ;;  %s262_s30 = scalar_lea.vmem %s621_s3, %s480_s27 }
  0x12   : > { %v281_v4 = vpack.c.bf16 %v278_v2, %v277_v1  ;;  %v280_v5 = vld [vmem:[%s249_s19 + $0x18] sm:$0xff] }
  0x13   : > { %v282_v6 = vpack.c.bf16 %v280_v5, %v279_v3 }
  0x14   : > { %485 = vmatpush3.bf16.msra.mxu0 %v281_v4 }
  0x15   : > { %486 = vmatprep.subr.bf16.mxu0 %v542_v0 }
  0x18   : > { %487 = vmatpush3.bf16.msra.mxu0 %v282_v6 }
  0x1b   : > { %489 = vmatmul.mubr.msk.bf16.vlgmr.msra.gmra.mrb[0].mxu0 %vm269_vm0, %v276_v9 }
  0xee   : > { %v321_v11 = vpop.f32.mrb[0].mxu0 }
  0xef   : > { %v328_v13 = vadd.f32 %v321_v11, %v272_v10  ;;  %v490_v14 = vpop.f32.mrb[1].mxu0 }
  0xf0   : > { %v324_v15 = vpop.f32.mrb[2].mxu0 }
  0xf1   : > { %330 = vst.msk [vmem:[#allocation2] sm:$0xff] %vm269_vm0, %v328_v13  ;;  %v329_v16 = vadd.f32 %v324_v15, %v273_v12  ;;  %v491_v17 = vpop.f32.mrb[3].mxu0 }
  0xf3   : > { %331 = vst.msk [vmem:[#allocation2 + $0x8] sm:$0xff] %vm269_vm0, %v329_v16 }
  0xf8   : > { %v335_v19 = vld [vmem:[#allocation2] sm:$0xff] }
  0xf9   : > { %v344_v20 = vadd.f32 %v476_v18, %v335_v19 }
  0xfa   : > { %v336_v21 = vld [vmem:[#allocation2 + $0x8] sm:$0xff] }
  0xfb   : > { %346 = vst.msk [vmem:[%s262_s30] sm:$0xff] %vm269_vm0, %v344_v20  ;;  %v345_v22 = vadd.f32 %v476_v18, %v336_v21 }
  0xfd   : > { %347 = vst.msk [vmem:[%s262_s30 + $0x8] sm:$0xff] %vm269_vm0, %v345_v22 }
  0xfe PF: > { %s13_s14 = sadd.s32 1, %s540_s14   ;;  %s622_s12 = smov %s536_s13 }
  0xff   : > { %p10_p5 = scmp.ge.s32.totalorder %s13_s14, 5   ;;  %s623_s13 = smov %s625_s15 }
 0x101   :  { %12 = sbr.rel (!%p10_p5) target bundleno = 2 (0x2), region = 76 }

// kernel: optformer_encoder_layer.24
= control target key start
LH: loop header
LB: loop body
LE: loop exit
PB: predicated region body
PF: predicated region fallthrough
CT: control target
= control target key end

     0   :  { %vm19_vm0 = vcmask 261120   ;;  %v117_v0 = vmov 0.0   ;;  %vm118_vm1 = vmmov 0   ;;  %s173_s1 = inlined_call_operand.vmem [shape: f32[32,32], index: 1, kind: input, shape index: {}]   ;;  %s174_s0 = inlined_call_operand.vmem [shape: f32[16,32], index: 0, kind: input, shape index: {}]   ;;  %s175_s2 = inlined_call_operand.vmem [shape: f32[1,32], index: 2, kind: input, shape index: {}]   ;;  %s176_s3 = inlined_call_operand.vmem [shape: f32[16,32], index: 3, kind: output, shape index: {}]  }
   0x1   :  { %107 = vmatprep.subr.bf16.mxu0 %v117_v0  ;;  %v27_v1 = vld [vmem:[%s173_s1] sm:$0xff]  ;;  %v28_v2 = vld [vmem:[%s173_s1 + $0x8] sm:$0xff]  ;;  %v29_v3 = vld [vmem:[%s173_s1 + $0x10] sm:$0xff]  ;;  %111 = vmatprep.mubr.msk.bf16.mxu0 %vm118_vm1, %v117_v0  ;;  %20 = vst.msk [vmem:[#allocation2] sm:$0xff] %vm19_vm0, %v117_v0 }
   0x2   :  { %21 = vst.msk [vmem:[#allocation2 + $0x8] sm:$0xff] %vm19_vm0, %v117_v0  ;;  %v31_v4 = vpack.c.bf16 %v28_v2, %v27_v1  ;;  %v30_v5 = vld [vmem:[%s173_s1 + $0x18] sm:$0xff]  ;;  %v24_v7 = vld [vmem:[%s174_s0] sm:$0xff]  ;;  %v25_v8 = vld [vmem:[%s174_s0 + $0x8] sm:$0xff] }
   0x3   :  { %v32_v6 = vpack.c.bf16 %v30_v5, %v29_v3  ;;  %v26_v9 = vpack.c.bf16 %v25_v8, %v24_v7  ;;  %v103_v18 = vld [vmem:[%s175_s2] ss:$0 sm:$0xff] }
   0x4   :  { %108 = vmatpush3.bf16.msra.mxu0 %v31_v4 }
   0x5   :  { %109 = vmatprep.subr.bf16.mxu0 %v117_v0 }
   0x8   :  { %110 = vmatpush3.bf16.msra.mxu0 %v32_v6  ;;  %v22_v10 = vld [vmem:[#allocation2] sm:$0xff] }
   0x9   :  { %v23_v12 = vld [vmem:[#allocation2 + $0x8] sm:$0xff] }
   0xb   :  { %112 = vmatmul.mubr.msk.bf16.vlgmr.msra.gmra.mrb[0].mxu0 %vm19_vm0, %v26_v9 }
  0xde   :  { %v71_v11 = vpop.f32.mrb[0].mxu0 }
  0xdf   :  { %v78_v13 = vadd.f32 %v71_v11, %v22_v10  ;;  %v113_v14 = vpop.f32.mrb[1].mxu0 }
  0xe0   :  { %v74_v15 = vpop.f32.mrb[2].mxu0 }
  0xe1   :  { %80 = vst.msk [vmem:[#allocation2] sm:$0xff] %vm19_vm0, %v78_v13  ;;  %v79_v16 = vadd.f32 %v74_v15, %v23_v12  ;;  %v114_v17 = vpop.f32.mrb[3].mxu0 }
  0xe3   :  { %81 = vst.msk [vmem:[#allocation2 + $0x8] sm:$0xff] %vm19_vm0, %v79_v16 }
  0xe8   :  { %v85_v19 = vld [vmem:[#allocation2] sm:$0xff] }
  0xe9   :  { %v94_v20 = vadd.f32 %v103_v18, %v85_v19 }
  0xea   :  { %v86_v21 = vld [vmem:[#allocation2 + $0x8] sm:$0xff] }
  0xeb   :  { %96 = vst.msk [vmem:[%s176_s3] sm:$0xff] %vm19_vm0, %v94_v20  ;;  %v95_v22 = vadd.f32 %v103_v18, %v86_v21 }
  0xed   :  { %97 = vst.msk [vmem:[%s176_s3 + $0x8] sm:$0xff] %vm19_vm0, %v95_v22 }

// kernel: optformer_encoder_layer.19
= control target key start
LH: loop header
LB: loop body
LE: loop exit
PB: predicated region body
PF: predicated region fallthrough
CT: control target
= control target key end

     0   :  { %s1277_s15 = smov 0   ;;  %s1279_s16 = smov 0   ;;  %s1477_s0 = inlined_call_operand.vmem [shape: f32[3,2,8,32], index: 0, kind: input, shape index: {}, may-alias: {0,1,2}]   ;;  %s1478_s1 = inlined_call_operand.vmem [shape: f32[3,2,8,32], index: 1, kind: input, shape index: {}, may-alias: {0,1,2}]   ;;  %s1479_s2 = inlined_call_operand.vmem [shape: f32[3,2,8,32], index: 2, kind: input, shape index: {}, may-alias: {0,1,2}]   ;;  %s1480_s3 = inlined_call_operand.vmem [shape: f32[2,1,8], index: 3, kind: input, shape index: {}]   ;;  %s1481_s4 = inlined_call_operand.vmem [shape: f32[2,8,32], index: 4, kind: output, shape index: {}]  }
   0x1   :  { %s1281_s17 = smov 0  }
   0x2 LB: > { %s33_s18 = sadd.s32 1, %s1233_s16  ;;  %p1059_p0 = scmp.ge.s32.totalorder %s1237_s17, 1  ;;  %s1237_s17 = sphi %s1281_s17, %s14_s17   ;;  %s1233_s16 = sphi %s1279_s16, %s1483_s16   ;;  %s1229_s15 = sphi %s1277_s15, %s1482_s15  }
   0x3   : > { %p35_p1 = scmp.ge.s32.totalorder %s33_s18, 2  ;;  %p230_p2 = scmp.lt.s32.totalorder %s1237_s17, 3 }
   0x5   : > { %s1485_s18 = smov (%p35_p1, %s33_s18), 0  ;;  %p231_p3 = pnand %p1059_p0, %p230_p2 }
   0x6   : > { %p282_p4 = scmp.lt.s32.totalorder (!%p231_p3), %s1229_s15, 1  ;;  %v1239_v0 = vmov (!%p231_p3), 0.0   ;;  %vm1240_vm0 = vmmov (!%p231_p3), 0   ;;  %vm341_vm1 = vcmask (!%p231_p3), 64512   ;;  %vm323_vm2 = vcmask (!%p231_p3), 31744   ;;  %s1243_s29 = smov (!%p231_p3), 120  }
   0x7   : > { %234 = sbr.rel (%p231_p3) target bundleno = 1424 (0x590), region = 36  ;;  %1093 = vmatprep.subr.bf16.mxu0 (!%p231_p3), %v1239_v0  ;;  %1095 = vmatprep.mubr.msk.bf16.mxu0 (!%p231_p3), %vm1240_vm0, %v1239_v0  ;;  %v1241_v6 = vmov (!%p231_p3), -inf   ;;  %325 = vst.msk [vmem:[#allocation3] sm:$0xff] (!%p231_p3), %vm323_vm2, %v1239_v0  ;;  %v1242_v14 = vmov (!%p231_p3), 0   ;;  %s1244_s30 = smov (!%p231_p3), 112   ;;  %vm410_vm3 = vcmask (!%p231_p3), 7168  }
   0x8   : > { %1099 = vmatprep.subr.bf16.mxu1 (!%p231_p3), %v1239_v0  ;;  %1101 = vmatprep.mubr.msk.bf16.mxu1 (!%p231_p3), %vm1240_vm0, %v1239_v0  ;;  %324 = vst.msk [vmem:[#allocation2] sm:$0xff] (!%p231_p3), %vm323_vm2, %v1241_v6  ;;  %s1245_s5 = smov (!%p231_p3), 104   ;;  %vm423_vm4 = vcmask (!%p231_p3), 1043456   ;;  %v1246_v58 = vmov (!%p231_p3), 1   ;;  %v1247_v59 = vmov (!%p231_p3), 2   ;;  %vm544_vm5 = vcmask (!%p231_p3), 15368  }
   0x9   : > { %1178 = vset.pattern.permute.xlu0 (!%p231_p3), %v1242_v14  ;;  %1179 = vset.pattern.permute.xlu1 (!%p231_p3), %v1246_v58  ;;  %vm326_vm6 = vcmask (!%p231_p3), 261120   ;;  %vm683_vm7 = vcmask (!%p231_p3), 23568   ;;  %vm821_vm8 = vcmask (!%p231_p3), 31768   ;;  %s1249_s9 = smov (!%p231_p3), 8   ;;  %s1250_s10 = smov (!%p231_p3), 16   ;;  %vm608_vm9 = vcmask (!%p231_p3), 130112  }
   0xa   : > { %327 = vst.msk [vmem:[#allocation4] sm:$0xff] (!%p231_p3), %vm326_vm6, %v1239_v0  ;;  %s1251_s11 = smov (!%p231_p3), 24   ;;  %vm746_vm10 = vcmask (!%p231_p3), 195712   ;;  %vm884_vm11 = vcmask (!%p231_p3), 261312  }
   0xe   : > { %s1487_s15 = smov (!%p282_p4, %s1229_s15), 1 }
   0xf   : > { %s1301_s19 = sshll.u32 %s1487_s15, 3  ;;  %s310_s28 = scalar_lea.vmem %s1480_s3, %s1487_s15  ;;  %v1331_v15 = vld [vmem:[#allocation2] sm:$0xff] }
  0x10   : > { %s989_s22 = scalar_lea.vmem %s1478_s1, %s1301_s19  ;;  %s288_s25 = scalar_lea.vmem %s1477_s0, %s1301_s19  ;;  %v1320_v7 = vld [vmem:[%s310_s28] ss:$0 sm:$0xff] }
  0x11   : > { %v1064_v1 = vld [vmem:[%s989_s22 + $0x10] sm:$0xff]  ;;  %v328_v4 = vld [vmem:[%s288_s25] sm:$0xff]  ;;  %s993_s8 = scalar_lea.vmem %s1479_s2, %s1301_s19  ;;  %s317_s14 = scalar_lea.vmem %s1481_s4, %s1301_s19 }
  0x12   : > { %v331_v2 = vpack.c.bf16 %v1064_v1, %v1064_v1  ;;  %v329_v5 = vpack.c.bf16 %v328_v4, %v328_v4  ;;  %v1065_v19 = vld [vmem:[%s993_s8 + $0x20] sm:$0xff] }
  0x13   : > { %v1345_v20 = vpack.c.bf16 %v1065_v19, %v1065_v19 }
  0x14   : > { %v346_v3 = vsel %vm341_vm1, %v331_v2, 0  ;;  %474 = vrot.lane.b32.xlu1 %v331_v2, %s1243_s29 }
  0x15   : > { %1094 = vmatpush3.bf16.xpose.msra.mxu0 %v346_v3  ;;  %v425_v21 = vsel %vm423_vm4, %v1345_v20, 0 }
  0x16   : > { %1111 = vmatprep.subr.bf16.mxu0 %v1239_v0  ;;  %1100 = vmatpush3.bf16.msra.mxu1 %v425_v21 }
  0x17   : > { %1105 = vmatprep.subr.bf16.mxu1 %v1239_v0 }
  0x18   : > { %471 = vrot.lane.b32.xlu1 %v329_v5, %s1243_s29 }
  0x1c   : > { %1096 = vmatmul.mubr.msk.bf16.vlgmr.msra.gmra.mrb[0].mxu0 %vm341_vm1, %v329_v5  ;;  %613 = vrot.lane.b32.xlu1 %v331_v2, %s1244_s30 }
  0x1d   : > { %1113 = vmatprep.mubr.msk.bf16.mxu0 %vm1240_vm0, %v1239_v0 }
  0x20   : > { %611 = vrot.lane.b32.xlu1 %v329_v5, %s1244_s30 }
  0x24   : > { %751 = vrot.lane.b32.xlu1 %v331_v2, %s1245_s5  ;;  %v1248_v2 = vmov 3  }
  0x28   : > { %749 = vrot.lane.b32.xlu1 %v329_v5, %s1245_s5 }
  0x86   : > { %v475_v25 = vpop.permute.xlu1 %474 }
  0x87   : > { %v480_v28 = vsel %vm341_vm1, %v475_v25, 0 }
  0x8a   : > { %v472_v26 = vpop.permute.xlu1 %471 }
  0x8e   : > { %v614_v30 = vpop.permute.xlu1 %613 }
  0x8f   : > { %v619_v32 = vsel %vm341_vm1, %v614_v30, 0 }
  0x92   : > { %v612_v31 = vpop.permute.xlu1 %611 }
  0x96   : > { %v752_v33 = vpop.permute.xlu1 %751 }
  0x97   : > { %v757_v34 = vsel %vm341_vm1, %v752_v33, 0 }
  0x9a   : > { %v750_v35 = vpop.permute.xlu1 %749 }
  0xef   : > { %v382_v8 = vpop.f32.mrb[0].mxu0 }
  0xf0   : > { %v383_v9 = vadd.f32 %v1320_v7, %v382_v8  ;;  %v1097_v10 = vpop.f32.mrb[1].mxu0 }
  0xf1   : > { %v385_v11 = vpop.f32.mrb[2].mxu0 }
  0xf2   : > { %v1098_v12 = vpop.f32.mrb[3].mxu0  ;;  %v389_v13 = vsel %vm341_vm1, %v383_v9, -inf }
  0xf3   : > { %390 = vmax.xlane.f32.xlu0 %v389_v13 }
 0x180   : > { %v391_v16 = vpop.xlane.xlu0 %390 }
 0x181   : > { %v1334_v17 = vmax.f32 %v1331_v15, %v391_v16 }
 0x183   : > { %v393_v18 = vsub.f32 %v1331_v15, %v1334_v17  ;;  %469 = vst.msk [vmem:[#allocation2] sm:$0xff] %vm410_vm3, %v1334_v17  ;;  %398 = vperm.xlu0 %1178, %v1334_v17  }
 0x185   : > { %v394_v63 = vmul.f32 1.442695, %v393_v18 }
 0x187   : > { %1180 = vset.pattern.permute.xlu0 %v1247_v59 }
 0x18a   : > { %v522_v61 = vld [vmem:[#allocation2] sm:$0xff] }
 0x202   : > { %v399_v22 = vpop.permute.xlu0 %398 }
 0x203   : > { %v401_v23 = vsub.f32 %v383_v9, %v399_v22 }
 0x205   : > { %v402_v24 = vmul.f32 1.442695, %v401_v23 }
 0x207   : > { %1191 = vpow2.f32 %v402_v24  ;;  %v412_v24 = vld [vmem:[#allocation4] sm:$0xff] }
 0x208   : > { %1193 = vpow2.f32 %v394_v63 }
 0x211   : > { %v1350_v27 = vpop.eup %1191 }
 0x212   : > { %v419_v29 = vpack.c.bf16 %v1350_v27, %v1350_v27  ;;  %v406_v12 = vsel %vm341_vm1, %v1350_v27, 0.0 }
 0x214   : > { %1102 = vmatmul.mubr.msk.bf16.vlgmr.msra.gmra.mrb[0].mxu1 %vm341_vm1, %v419_v29 }
 0x215   : > { %1106 = vmatpush3.bf16.xpose.msra.mxu1 %v480_v28  ;;  %1107 = vmatprep.mubr.msk.bf16.mxu1 %vm1240_vm0, %v1239_v0 }
 0x216   : > { %1117 = vmatprep.subr.bf16.mxu1 %v1239_v0 }
 0x21c   : > { %1108 = vmatmul.mubr.msk.bf16.vlgmr.msra.gmra.mrb[4].mxu1 %vm341_vm1, %v472_v26 }
 0x21d   : > { %1118 = vmatpush3.bf16.xpose.msra.mxu1 %v619_v32  ;;  %1119 = vmatprep.mubr.msk.bf16.mxu1 %vm1240_vm0, %v1239_v0 }
 0x21e   : > { %1129 = vmatprep.subr.bf16.mxu1 %v1239_v0 }
 0x224   : > { %1120 = vmatmul.mubr.msk.bf16.vlgmr.msra.gmra.mrb[8].mxu1 %vm341_vm1, %v612_v31 }
 0x225   : > { %1130 = vmatpush3.bf16.xpose.msra.mxu1 %v757_v34  ;;  %1131 = vmatprep.mubr.msk.bf16.mxu1 %vm1240_vm0, %v1239_v0 }
 0x22c   : > { %1132 = vmatmul.mubr.msk.bf16.vlgmr.msra.gmra.mrb[12].mxu1 %vm341_vm1, %v750_v35 }
 0x2e7   : > { %v1369_v36 = vpop.f32.mrb[0].mxu1 }
 0x2e8   : > { %v1103_v37 = vpop.f32.mrb[1].mxu1 }
 0x2e9   : > { %v464_v38 = vpop.f32.mrb[2].mxu1 }
 0x2ea   : > { %v1104_v39 = vpop.f32.mrb[3].mxu1 }
 0x2ef   : > { %v516_v40 = vpop.f32.mrb[4].mxu1 }
 0x2f0   : > { %v1372_v41 = vadd.f32 %v1320_v7, %v516_v40  ;;  %v1109_v42 = vpop.f32.mrb[5].mxu1 }
 0x2f1   : > { %v519_v43 = vpop.f32.mrb[6].mxu1 }
 0x2f2   : > { %v1110_v44 = vpop.f32.mrb[7].mxu1  ;;  %v523_v45 = vsel %vm341_vm1, %v1372_v41, -inf }
 0x2f3   : > { %524 = vmax.xlane.f32.xlu1 %v523_v45 }
 0x2f7   : > { %v655_v46 = vpop.f32.mrb[8].mxu1 }
 0x2f8   : > { %v1377_v47 = vadd.f32 %v1320_v7, %v655_v46  ;;  %v1121_v48 = vpop.f32.mrb[9].mxu1  ;;  %v404_v46 = vld [vmem:[#allocation3] sm:$0xff] }
 0x2f9   : > { %v658_v49 = vpop.f32.mrb[10].mxu1 }
 0x2fa   : > { %v1122_v50 = vpop.f32.mrb[11].mxu1  ;;  %v662_v51 = vsel %vm341_vm1, %v1377_v47, -inf }
 0x2fb   : > { %663 = vmax.xlane.f32.xlu0 %v662_v51 }
 0x2ff   : > { %v793_v52 = vpop.f32.mrb[12].mxu1 }
 0x300   : > { %v1382_v53 = vadd.f32 %v1320_v7, %v793_v52  ;;  %v1133_v54 = vpop.f32.mrb[13].mxu1  ;;  %v1401_v7 = vpop.eup %1193 }
 0x301   : > { %v796_v55 = vpop.f32.mrb[14].mxu1 }
 0x302   : > { %v1134_v56 = vpop.f32.mrb[15].mxu1  ;;  %v800_v57 = vsel %vm341_vm1, %v1382_v53, -inf }
 0x303   : > { %801 = vmax.xlane.f32.xlu1 %v800_v57 }
 0x380   : > { %v525_v60 = vpop.xlane.xlu1 %524 }
 0x381   : > { %v526_v62 = vmax.f32 %v522_v61, %v525_v60 }
 0x383   : > { %v527_v1 = vsub.f32 %v522_v61, %v526_v62  ;;  %610 = vst.msk [vmem:[#allocation2] sm:$0xff] %vm544_vm5, %v526_v62  ;;  %532 = vperm.xlu1 %1179, %v526_v62  }
 0x385   : > { %v528_v13 = vmul.f32 1.442695, %v527_v1 }
 0x387   : > { %555 = vrot.lane.b32.xlu1 %v1345_v20, %s1243_s29  ;;  %1195 = vpow2.f32 %v528_v13 }
 0x388   : > { %1181 = vset.pattern.permute.xlu1 %v1248_v2  ;;  %v664_v3 = vpop.xlane.xlu0 %663 }
 0x38a   : > { %v1395_v4 = vld [vmem:[#allocation2] sm:$0xff] }
 0x38b   : > { %v665_v5 = vmax.f32 %v1395_v4, %v664_v3 }
 0x38d   : > { %v666_v6 = vsub.f32 %v1395_v4, %v665_v5  ;;  %748 = vst.msk [vmem:[#allocation2] sm:$0xff] %vm683_vm7, %v665_v5  ;;  %671 = vperm.xlu0 %1180, %v665_v5  }
 0x38f   : > { %v667_v40 = vmul.f32 1.442695, %v666_v6 }
 0x390   : > { %v802_v8 = vpop.xlane.xlu1 %801 }
 0x391   : > { %1182 = vset.pattern.permute.xlu0 %v1242_v14  ;;  %v1196_v15 = vpop.eup %1195 }
 0x392   : > { %415 = vperm.xlu0 %1182, %v1401_v7  }
 0x394   : > { %v1405_v9 = vld [vmem:[#allocation2] sm:$0xff] }
 0x395   : > { %v1408_v10 = vmax.f32 %v1405_v9, %v802_v8 }
 0x396   : > { %1185 = vset.pattern.permute.xlu0 %v1248_v2 }
 0x397   : > { %v804_v11 = vsub.f32 %v1405_v9, %v1408_v10  ;;  %886 = vst.msk [vmem:[#allocation2] sm:$0xff] %vm821_vm8, %v1408_v10  ;;  %809 = vperm.xlu1 %1181, %v1408_v10  }
 0x39b   : > { %693 = vrot.lane.b32.xlu1 %v1345_v20, %s1244_s30 }
 0x39c   : > { %1183 = vset.pattern.permute.xlu1 %v1246_v58 }
 0x39f   : > { %831 = vrot.lane.b32.xlu1 %v1345_v20, %s1245_s5 }
 0x3c3   : > { %407 = vadd.xlane.f32.xlu1 %v406_v12 }
 0x3d4   : > { %549 = vperm.xlu1 %1183, %v1196_v15  }
 0x3d8   : > { %1184 = vset.pattern.permute.xlu1 %v1247_v59 }
 0x402   : > { %v533_v16 = vpop.permute.xlu1 %532 }
 0x403   : > { %v535_v17 = vsub.f32 %v1372_v41, %v533_v16 }
 0x405   : > { %v536_v18 = vmul.f32 1.442695, %v535_v17 }
 0x406   : > { %v556_v19 = vpop.permute.xlu1 %555 }
 0x407   : > { %1197 = vpow2.f32 %v536_v18  ;;  %v561_v21 = vsel %vm423_vm4, %v556_v19, 0 }
 0x408   : > { %1112 = vmatpush3.bf16.msra.mxu0 %v561_v21 }
 0x409   : > { %1123 = vmatprep.subr.bf16.mxu0 %v1239_v0 }
 0x40c   : > { %v672_v20 = vpop.permute.xlu0 %671 }
 0x40d   : > { %v674_v22 = vsub.f32 %v1377_v47, %v672_v20  ;;  %v405_v47 = vmul.f32 %v1401_v7, %v404_v46 }
 0x40f   : > { %v675_v23 = vmul.f32 1.442695, %v674_v22 }
 0x411   : > { %v1198_v25 = vpop.eup %1197  ;;  %1199 = vpow2.f32 %v675_v23  ;;  %v416_v26 = vpop.permute.xlu0 %415 }
 0x412   : > { %v418_v27 = vmul.f32 %v416_v26, %v412_v24  ;;  %v540_v28 = vsel %vm341_vm1, %v1198_v25, 0.0  ;;  %v553_v29 = vpack.c.bf16 %v1198_v25, %v1198_v25 }
 0x413   : > { %541 = vadd.xlane.f32.xlu0 %v540_v28 }
 0x414   : > { %v467_v30 = vadd.f32 %v1369_v36, %v418_v27  ;;  %1114 = vmatmul.mubr.msk.bf16.vlgmr.msra.gmra.mrb[4].mxu0 %vm341_vm1, %v553_v29 }
 0x415   : > { %1125 = vmatprep.mubr.msk.bf16.mxu0 %vm1240_vm0, %v1239_v0 }
 0x416   : > { %468 = vst.msk [vmem:[#allocation4] sm:$0xff] %vm341_vm1, %v467_v30  ;;  %v810_v31 = vpop.permute.xlu1 %809 }
 0x417   : > { %v812_v32 = vsub.f32 %v1382_v53, %v810_v31  ;;  %v805_v53 = vmul.f32 1.442695, %v804_v11 }
 0x419   : > { %v813_v33 = vmul.f32 1.442695, %v812_v32 }
 0x41a   : > { %v694_v34 = vpop.permute.xlu1 %693 }
 0x41b   : > { %v1200_v35 = vpop.eup %1199  ;;  %1201 = vpow2.f32 %v813_v33  ;;  %v699_v37 = vsel %vm423_vm4, %v694_v34, 0 }
 0x41c   : > { %1124 = vmatpush3.bf16.msra.mxu0 %v699_v37  ;;  %v679_v38 = vsel %vm341_vm1, %v1200_v35, 0.0  ;;  %v692_v36 = vpack.c.bf16 %v1200_v35, %v1200_v35  ;;  %1203 = vpow2.f32 %v667_v40 }
 0x41d   : > { %680 = vadd.xlane.f32.xlu1 %v679_v38  ;;  %1135 = vmatprep.subr.bf16.mxu0 %v1239_v0  ;;  %1205 = vpow2.f32 %v805_v53  ;;  %v546_v16 = vld [vmem:[#allocation4] sm:$0xff] }
 0x41e   : > { %v832_v39 = vpop.permute.xlu1 %831 }
 0x41f   : > { %1126 = vmatmul.mubr.msk.bf16.vlgmr.msra.gmra.mrb[8].mxu0 %vm341_vm1, %v692_v36  ;;  %v837_v41 = vsel %vm423_vm4, %v832_v39, 0 }
 0x420   : > { %1136 = vmatpush3.bf16.msra.mxu0 %v837_v41  ;;  %1137 = vmatprep.mubr.msk.bf16.mxu0 %vm1240_vm0, %v1239_v0 }
 0x425   : > { %v1202_v42 = vpop.eup %1201 }
 0x426   : > { %v817_v43 = vsel %vm341_vm1, %v1202_v42, 0.0  ;;  %v830_v44 = vpack.c.bf16 %v1202_v42, %v1202_v42  ;;  %v1204_v45 = vpop.eup %1203 }
 0x427   : > { %818 = vadd.xlane.f32.xlu0 %v817_v43  ;;  %v1206_v60 = vpop.eup %1205 }
 0x428   : > { %1138 = vmatmul.mubr.msk.bf16.vlgmr.msra.gmra.mrb[12].mxu0 %vm341_vm1, %v830_v44 }
 0x42e   : > { %688 = vperm.xlu1 %1184, %v1204_v45  }
 0x432   : > { %1186 = vset.pattern.permute.xlu1 %v1242_v14 }
 0x450   : > { %v408_v48 = vpop.xlane.xlu1 %407 }
 0x451   : > { %v409_v49 = vadd.f32 %v408_v48, %v405_v47 }
 0x453   : > { %411 = vst.msk [vmem:[#allocation3] sm:$0xff] %vm410_vm3, %v409_v49 }
 0x454   : > { %v550_v54 = vpop.permute.xlu1 %549 }
 0x455   : > { %v552_v17 = vmul.f32 %v550_v54, %v546_v16 }
 0x45a   : > { %v538_v0 = vld [vmem:[#allocation3] sm:$0xff] }
 0x45b   : > { %v539_v50 = vmul.f32 %v1196_v15, %v538_v0 }
 0x4a0   : > { %v542_v51 = vpop.xlane.xlu0 %541 }
 0x4a1   : > { %v543_v52 = vadd.f32 %v542_v51, %v539_v50 }
 0x4a3   : > { %545 = vst.msk [vmem:[#allocation3] sm:$0xff] %vm544_vm5, %v543_v52 }
 0x4aa   : > { %v677_v55 = vld [vmem:[#allocation3] sm:$0xff]  ;;  %v681_v56 = vpop.xlane.xlu1 %680 }
 0x4ab   : > { %v678_v14 = vmul.f32 %v1204_v45, %v677_v55 }
 0x4ad   : > { %v682_v57 = vadd.f32 %v681_v56, %v678_v14 }
 0x4ae   : > { %v689_v20 = vpop.permute.xlu1 %688 }
 0x4af   : > { %684 = vst.msk [vmem:[#allocation3] sm:$0xff] %vm683_vm7, %v682_v57 }
 0x4b4   : > { %v819_v63 = vpop.xlane.xlu0 %818 }
 0x4b6   : > { %v815_v61 = vld [vmem:[#allocation3] sm:$0xff] }
 0x4b7   : > { %v816_v62 = vmul.f32 %v1206_v60, %v815_v61 }
 0x4b9   : > { %v820_v1 = vadd.f32 %v819_v63, %v816_v62 }
 0x4bb   : > { %822 = vst.msk [vmem:[#allocation3] sm:$0xff] %vm821_vm8, %v820_v1 }
 0x4c2   : > { %v891_v3 = vld [vmem:[#allocation3] sm:$0xff] }
 0x4c3   : > { %894 = vperm.xlu1 %1186, %v891_v3  }
 0x4c7   : > { %1188 = vset.pattern.permute.xlu1 %v1247_v59 }
 0x4c8   : > { %914 = vperm.xlu1 %1188, %v891_v3  }
 0x4cc   : > { %1189 = vset.pattern.permute.xlu1 %v1248_v2 }
 0x4cd   : > { %924 = vperm.xlu1 %1189, %v891_v3  }
 0x4e7   : > { %v597_v4 = vpop.f32.mrb[4].mxu0 }
 0x4e8   : > { %604 = vrot.lane.b32.xlu0 %v597_v4, %s1249_s9  ;;  %v1115_v5 = vpop.f32.mrb[5].mxu0 }
 0x4e9   : > { %v600_v6 = vpop.f32.mrb[6].mxu0 }
 0x4ea   : > { %v1116_v7 = vpop.f32.mrb[7].mxu0 }
 0x4ec   : > { %826 = vperm.xlu0 %1185, %v1206_v60  }
 0x4f0   : > { %1187 = vset.pattern.permute.xlu0 %v1246_v58 }
 0x4f2   : > { %v735_v8 = vpop.f32.mrb[8].mxu0 }
 0x4f3   : > { %742 = vrot.lane.b32.xlu0 %v735_v8, %s1250_s10  ;;  %v1127_v9 = vpop.f32.mrb[9].mxu0 }
 0x4f4   : > { %v738_v10 = vpop.f32.mrb[10].mxu0 }
 0x4f5   : > { %v1128_v11 = vpop.f32.mrb[11].mxu0 }
 0x4fb   : > { %v873_v59 = vpop.f32.mrb[12].mxu0 }
 0x4fc   : > { %880 = vrot.lane.b32.xlu0 %v873_v59, %s1251_s11  ;;  %v1139_v12 = vpop.f32.mrb[13].mxu0 }
 0x4fd   : > { %v876_v13 = vpop.f32.mrb[14].mxu0 }
 0x4fe   : > { %v1140_v15 = vpop.f32.mrb[15].mxu0 }
 0x500   : > { %904 = vperm.xlu0 %1187, %v891_v3  }
 0x504   : > { %1190 = vset.pattern.permute.xlu0 %v1248_v2 }
 0x542   : > { %v895_v25 = vpop.permute.xlu1 %894 }
 0x543   : > { %1207 = vrcp.f32 %v895_v25 }
 0x547   : > { %v915_v26 = vpop.permute.xlu1 %914 }
 0x54c   : > { %v925_v30 = vpop.permute.xlu1 %924 }
 0x54d   : > { %v1208_v32 = vpop.eup %1207 }
 0x55a   : > { %v605_v18 = vpop.permute.xlu0 %604 }
 0x55b   : > { %v607_v58 = vadd.f32 %v605_v18, %v552_v17 }
 0x55d   : > { %609 = vst.msk [vmem:[#allocation4] sm:$0xff] %vm608_vm9, %v607_v58 }
 0x564   : > { %v685_v21 = vld [vmem:[#allocation4] sm:$0xff] }
 0x565   : > { %v691_v22 = vmul.f32 %v689_v20, %v685_v21 }
 0x56b   : > { %v827_v19 = vpop.permute.xlu0 %826 }
 0x56f   : > { %v743_v23 = vpop.permute.xlu0 %742 }
 0x570   : > { %v745_v24 = vadd.f32 %v743_v23, %v691_v22 }
 0x572   : > { %747 = vst.msk [vmem:[#allocation4] sm:$0xff] %vm746_vm10, %v745_v24 }
 0x573   : > { %v881_v28 = vpop.permute.xlu0 %880 }
 0x579   : > { %v823_v2 = vld [vmem:[#allocation4] sm:$0xff] }
 0x57a   : > { %v829_v27 = vmul.f32 %v827_v19, %v823_v2 }
 0x57c   : > { %v883_v29 = vadd.f32 %v881_v28, %v829_v27 }
 0x57e   : > { %885 = vst.msk [vmem:[#allocation4] sm:$0xff] %vm884_vm11, %v883_v29 }
 0x57f   : > { %v905_v31 = vpop.permute.xlu0 %904 }
 0x580   : > { %1209 = vrcp.f32 %v905_v31 }
 0x581   : > { %1211 = vrcp.f32 %v915_v26 }
 0x582   : > { %1213 = vrcp.f32 %v925_v30 }
 0x585   : > { %v890_v33 = vld [vmem:[#allocation4] sm:$0xff] }
 0x586   : > { %v898_v34 = vmul.f32 %v1208_v32, %v890_v33 }
 0x588   : > { %899 = vst.msk [vmem:[%s317_s14] sm:$0xff] %vm341_vm1, %v898_v34 }
 0x58a   : > { %v1210_v35 = vpop.eup %1209 }
 0x58b   : > { %v1212_v37 = vpop.eup %1211  ;;  %v908_v38 = vmul.f32 %v1210_v35, %v890_v33 }
 0x58c   : > { %v1214_v36 = vpop.eup %1213  ;;  %v918_v39 = vmul.f32 %v1212_v37, %v890_v33 }
 0x58d   : > { %v928_v40 = vmul.f32 %v1214_v36, %v890_v33  ;;  %909 = vst.msk [vmem:[%s317_s14] sm:$0xff] %vm608_vm9, %v908_v38 }
 0x58e   : > { %919 = vst.msk [vmem:[%s317_s14] sm:$0xff] %vm746_vm10, %v918_v39 }
 0x58f   : > { %929 = vst.msk [vmem:[%s317_s14] sm:$0xff] %vm884_vm11, %v928_v40 }
 0x590 PF: > { %s14_s17 = sadd.s32 1, %s1237_s17   ;;  %s1482_s15 = smov %s1233_s16 }
 0x591   : > { %p11_p5 = scmp.ge.s32.totalorder %s14_s17, 4   ;;  %s1483_s16 = smov %s1485_s18 }
 0x593   :  { %13 = sbr.rel (!%p11_p5) target bundleno = 2 (0x2), region = 83 }

// kernel: optformer_encoder_layer.20
= control target key start
LH: loop header
LB: loop body
LE: loop exit
PB: predicated region body
PF: predicated region fallthrough
CT: control target
= control target key end

     0   :  { %vm28_vm0 = vcmask 261120   ;;  %v181_v0 = vmov 0.0   ;;  %vm182_vm1 = vmmov 0   ;;  %s268_s1 = inlined_call_operand.vmem [shape: f32[32,32], index: 1, kind: input, shape index: {}]   ;;  %s269_s0 = inlined_call_operand.vmem [shape: f32[16,32], index: 0, kind: input, shape index: {}]   ;;  %s270_s2 = inlined_call_operand.vmem [shape: f32[1,32], index: 2, kind: input, shape index: {}]   ;;  %s271_s3 = inlined_call_operand.vmem [shape: f32[16,32], index: 3, kind: input, shape index: {}]   ;;  %s272_s4 = inlined_call_operand.vmem [shape: f32[1,32], index: 4, kind: input, shape index: {}]   ;;  %s273_s5 = inlined_call_operand.vmem [shape: f32[1,32], index: 5, kind: input, shape index: {}]   ;;  %s274_s6 = inlined_call_operand.vmem [shape: f32[16,32], index: 6, kind: output, shape index: {}]  }
   0x1   :  { %167 = vmatprep.subr.bf16.mxu0 %v181_v0  ;;  %v36_v1 = vld [vmem:[%s268_s1] sm:$0xff]  ;;  %v37_v2 = vld [vmem:[%s268_s1 + $0x8] sm:$0xff]  ;;  %v38_v3 = vld [vmem:[%s268_s1 + $0x10] sm:$0xff]  ;;  %171 = vmatprep.mubr.msk.bf16.mxu0 %vm182_vm1, %v181_v0  ;;  %29 = vst.msk [vmem:[#allocation2] sm:$0xff] %vm28_vm0, %v181_v0 }
   0x2   :  { %30 = vst.msk [vmem:[#allocation2 + $0x8] sm:$0xff] %vm28_vm0, %v181_v0  ;;  %v40_v4 = vpack.c.bf16 %v37_v2, %v36_v1  ;;  %v39_v5 = vld [vmem:[%s268_s1 + $0x18] sm:$0xff]  ;;  %v33_v7 = vld [vmem:[%s269_s0] sm:$0xff]  ;;  %v34_v8 = vld [vmem:[%s269_s0 + $0x8] sm:$0xff] }
   0x3   :  { %v41_v6 = vpack.c.bf16 %v39_v5, %v38_v3  ;;  %v35_v9 = vpack.c.bf16 %v34_v8, %v33_v7  ;;  %v161_v18 = vld [vmem:[%s270_s2] ss:$0 sm:$0xff]  ;;  %v106_v23 = vld [vmem:[%s271_s3 + $0x8] sm:$0xff] }
   0x4   :  { %168 = vmatpush3.bf16.msra.mxu0 %v40_v4  ;;  %v105_v20 = vld [vmem:[%s271_s3] sm:$0xff] }
   0x5   :  { %169 = vmatprep.subr.bf16.mxu0 %v181_v0  ;;  %v162_v46 = vld [vmem:[%s272_s4] ss:$0 sm:$0xff] }
   0x6   :  { %v163_v48 = vld [vmem:[%s273_s5] ss:$0 sm:$0xff] }
   0x8   :  { %170 = vmatpush3.bf16.msra.mxu0 %v41_v6  ;;  %v31_v10 = vld [vmem:[#allocation2] sm:$0xff] }
   0x9   :  { %v32_v12 = vld [vmem:[#allocation2 + $0x8] sm:$0xff] }
   0xb   :  { %172 = vmatmul.mubr.msk.bf16.vlgmr.msra.gmra.mrb[0].mxu0 %vm28_vm0, %v35_v9 }
  0xde   :  { %v80_v11 = vpop.f32.mrb[0].mxu0 }
  0xdf   :  { %v87_v13 = vadd.f32 %v80_v11, %v31_v10  ;;  %v173_v14 = vpop.f32.mrb[1].mxu0 }
  0xe0   :  { %v83_v15 = vpop.f32.mrb[2].mxu0 }
  0xe1   :  { %89 = vst.msk [vmem:[#allocation2] sm:$0xff] %vm28_vm0, %v87_v13  ;;  %v88_v16 = vadd.f32 %v83_v15, %v32_v12  ;;  %v174_v17 = vpop.f32.mrb[3].mxu0 }
  0xe3   :  { %90 = vst.msk [vmem:[#allocation2 + $0x8] sm:$0xff] %vm28_vm0, %v88_v16 }
  0xe8   :  { %v94_v19 = vld [vmem:[#allocation2] sm:$0xff] }
  0xe9   :  { %v103_v21 = vadd.f32 %v161_v18, %v94_v19 }
  0xea   :  { %v95_v22 = vld [vmem:[#allocation2 + $0x8] sm:$0xff] }
  0xeb   :  { %v107_v24 = vadd.f32 %v105_v20, %v103_v21  ;;  %v104_v25 = vadd.f32 %v161_v18, %v95_v22 }
  0xed   :  { %v109_v26 = vsel %vm28_vm0, %v107_v24, 0.0  ;;  %v108_v27 = vadd.f32 %v106_v23, %v104_v25 }
  0xee   :  { %110 = vadd.xlane.f32.xlu0 %v109_v26 }
  0xef   :  { %v112_v28 = vsel %vm28_vm0, %v108_v27, 0.0 }
  0xf2   :  { %113 = vadd.xlane.f32.xlu0 %v112_v28 }
 0x17b   :  { %v111_v29 = vpop.xlane.xlu0 %110 }
 0x17c   :  { %v116_v30 = vmul.f32 0.03125, %v111_v29 }
 0x17e   :  { %v118_v31 = vsub.f32 %v107_v24, %v116_v30 }
 0x17f   :  { %v114_v32 = vpop.xlane.xlu0 %113 }
 0x180   :  { %v117_v33 = vmul.f32 0.03125, %v114_v32  ;;  %v120_v34 = vmul.f32 %v118_v31, %v118_v31 }
 0x182   :  { %v119_v35 = vsub.f32 %v108_v27, %v117_v33  ;;  %v122_v36 = vsel %vm28_vm0, %v120_v34, 0.0 }
 0x183   :  { %123 = vadd.xlane.f32.xlu1 %v122_v36 }
 0x184   :  { %v121_v37 = vmul.f32 %v119_v35, %v119_v35 }
 0x186   :  { %v125_v38 = vsel %vm28_vm0, %v121_v37, 0.0 }
 0x187   :  { %126 = vadd.xlane.f32.xlu1 %v125_v38 }
 0x210   :  { %v124_v39 = vpop.xlane.xlu1 %123 }
 0x211   :  { %v128_v40 = vmul.f32 0.03125, %v124_v39 }
 0x213   :  { %v130_v41 = vadd.f32 1e-05, %v128_v40 }
 0x214   :  { %v127_v42 = vpop.xlane.xlu1 %126 }
 0x215   :  { %177 = vrsqrt.f32 %v130_v41  ;;  %v129_v43 = vmul.f32 0.03125, %v127_v42 }
 0x217   :  { %v131_v44 = vadd.f32 1e-05, %v129_v43 }
 0x219   :  { %179 = vrsqrt.f32 %v131_v44 }
 0x21f   :  { %v178_v45 = vpop.eup %177 }
 0x220   :  { %v134_v47 = vmul.f32 %v178_v45, %v118_v31 }
 0x222   :  { %v143_v49 = vmul.f32 %v162_v46, %v134_v47 }
 0x223   :  { %v180_v50 = vpop.eup %179 }
 0x224   :  { %v152_v51 = vadd.f32 %v163_v48, %v143_v49  ;;  %v135_v52 = vmul.f32 %v180_v50, %v119_v35 }
 0x226   :  { %154 = vst.msk [vmem:[%s274_s6] sm:$0xff] %vm28_vm0, %v152_v51  ;;  %v144_v53 = vmul.f32 %v162_v46, %v135_v52 }
 0x228   :  { %v153_v54 = vadd.f32 %v163_v48, %v144_v53 }
 0x22a   :  { %155 = vst.msk [vmem:[%s274_s6 + $0x8] sm:$0xff] %vm28_vm0, %v153_v54 }

// kernel: optformer_encoder_layer.21
= control target key start
LH: loop header
LB: loop body
LE: loop exit
PB: predicated region body
PF: predicated region fallthrough
CT: control target
= control target key end

     0   :  { %s592_s12 = smov 0   ;;  %s594_s13 = smov 0   ;;  %s662_s0 = inlined_call_operand.vmem [shape: f32[32,32], index: 0, kind: input, shape index: {}]   ;;  %s663_s1 = inlined_call_operand.vmem [shape: f32[3,32,32], index: 1, kind: input, shape index: {}]   ;;  %s664_s2 = inlined_call_operand.vmem [shape: f32[3,1,32], index: 2, kind: input, shape index: {}]   ;;  %s665_s3 = inlined_call_operand.vmem [shape: f32[3,32,32], index: 3, kind: output, shape index: {}]  }
   0x1   :  { %s596_s14 = smov 0  }
   0x2 LB: > { %s32_s15 = sadd.s32 1, %s565_s13  ;;  %p498_p0 = scmp.ge.s32.totalorder %s569_s14, 1  ;;  %s569_s14 = sphi %s596_s14, %s13_s14   ;;  %s565_s13 = sphi %s594_s13, %s667_s13   ;;  %s561_s12 = sphi %s592_s12, %s666_s12  }
   0x3   : > { %p34_p1 = scmp.ge.s32.totalorder %s32_s15, 3  ;;  %p189_p2 = scmp.lt.s32.totalorder %s569_s14, 4 }
   0x5   : > { %s669_s15 = smov (%p34_p1, %s32_s15), 0  ;;  %p190_p3 = pnand %p498_p0, %p189_p2 }
   0x6   : > { %p242_p4 = scmp.lt.s32.totalorder (!%p190_p3), %s561_s12, 2  ;;  %vm269_vm0 = vcmask (!%p190_p3), 261120   ;;  %v278_v0 = vld [vmem:[%s662_s0] sm:$0xff] (!%p190_p3)  ;;  %v279_v1 = vld [vmem:[%s662_s0 + $0x8] sm:$0xff] (!%p190_p3)  ;;  %v571_v3 = vmov (!%p190_p3), 0.0   ;;  %v280_v10 = vld [vmem:[%s662_s0 + $0x10] sm:$0xff] (!%p190_p3) }
   0x7   : > { %193 = sbr.rel (%p190_p3) target bundleno = 256 (0x100), region = 32  ;;  %v282_v2 = vpack.c.bf16 (!%p190_p3), %v279_v1, %v278_v0  ;;  %272 = vst.msk [vmem:[#allocation2 + $0x10] sm:$0xff] (!%p190_p3), %vm269_vm0, %v571_v3  ;;  %270 = vst.msk [vmem:[#allocation2] sm:$0xff] (!%p190_p3), %vm269_vm0, %v571_v3  ;;  %v281_v11 = vld [vmem:[%s662_s0 + $0x18] sm:$0xff] (!%p190_p3) }
   0x8   : > { %271 = vst.msk [vmem:[#allocation2 + $0x8] sm:$0xff] (!%p190_p3), %vm269_vm0, %v571_v3  ;;  %273 = vst.msk [vmem:[#allocation2 + $0x18] sm:$0xff] (!%p190_p3), %vm269_vm0, %v571_v3  ;;  %v283_v12 = vpack.c.bf16 (!%p190_p3), %v281_v11, %v280_v10 }
   0x9   : > { %518 = vmatprep.mubr.msk.bf16.mxu0 (!%p190_p3), %vm269_vm0, %v282_v2 }
   0xe   : > { %s671_s12 = smov (!%p242_p4, %s561_s12), 2  ;;  %v276_v13 = vld [vmem:[#allocation2 + $0x10] sm:$0xff]  ;;  %v274_v14 = vld [vmem:[#allocation2] sm:$0xff] }
   0xf   : > { %s508_s20 = sshll.u32 %s671_s12, 5  ;;  %v277_v16 = vld [vmem:[#allocation2 + $0x18] sm:$0xff]  ;;  %v275_v19 = vld [vmem:[#allocation2 + $0x8] sm:$0xff]  ;;  %s253_s30 = scalar_lea.vmem %s664_s2, %s671_s12 }
  0x10   : > { %s249_s23 = scalar_lea.vmem %s663_s1, %s508_s20  ;;  %v505_v25 = vld [vmem:[%s253_s30] ss:$0 sm:$0xff]  ;;  %s262_s6 = scalar_lea.vmem %s665_s3, %s508_s20 }
  0x11   : > { %v284_v4 = vld [vmem:[%s249_s23] sm:$0xff]  ;;  %v285_v5 = vld [vmem:[%s249_s23 + $0x8] sm:$0xff]  ;;  %v286_v6 = vld [vmem:[%s249_s23 + $0x10] sm:$0xff] }
  0x12   : > { %v288_v7 = vpack.c.bf16 %v285_v5, %v284_v4  ;;  %v287_v8 = vld [vmem:[%s249_s23 + $0x18] sm:$0xff] }
  0x13   : > { %v289_v9 = vpack.c.bf16 %v287_v8, %v286_v6 }
  0x14   : > { %514 = vmatprep.subr.bf16.mxu0 %v288_v7 }
  0x15   : > { %515 = vmatpush3.bf16.msra.mxu0 %v288_v7 }
  0x16   : > { %516 = vmatprep.subr.bf16.mxu0 %v289_v9 }
  0x19   : > { %517 = vmatpush3.bf16.msra.mxu0 %v289_v9 }
  0x1c   : > { %519 = vmatmul.mubr.msk.bf16.vlgmr.msra.gmra.mrb[0].mxu0 %vm269_vm0, %v283_v12 }
  0xef   : > { %v520_v15 = vpop.f32.mrb[0].mxu0 }
  0xf0   : > { %v348_v17 = vadd.f32 %v520_v15, %v276_v13  ;;  %v331_v18 = vpop.f32.mrb[1].mxu0 }
  0xf1   : > { %v346_v20 = vadd.f32 %v331_v18, %v274_v14  ;;  %v521_v21 = vpop.f32.mrb[2].mxu0 }
  0xf2   : > { %352 = vst.msk [vmem:[#allocation2 + $0x10] sm:$0xff] %vm269_vm0, %v348_v17  ;;  %v349_v22 = vadd.f32 %v521_v21, %v277_v16  ;;  %v334_v23 = vpop.f32.mrb[3].mxu0 }
  0xf3   : > { %350 = vst.msk [vmem:[#allocation2] sm:$0xff] %vm269_vm0, %v346_v20  ;;  %v347_v24 = vadd.f32 %v334_v23, %v275_v19 }
  0xf4   : > { %353 = vst.msk [vmem:[#allocation2 + $0x18] sm:$0xff] %vm269_vm0, %v349_v22 }
  0xf5   : > { %351 = vst.msk [vmem:[#allocation2 + $0x8] sm:$0xff] %vm269_vm0, %v347_v24 }
  0xf9   : > { %v359_v26 = vld [vmem:[#allocation2 + $0x10] sm:$0xff] }
  0xfa   : > { %v370_v27 = vadd.f32 %v505_v25, %v359_v26  ;;  %v357_v28 = vld [vmem:[#allocation2] sm:$0xff] }
  0xfb   : > { %v368_v29 = vadd.f32 %v505_v25, %v357_v28  ;;  %v360_v30 = vld [vmem:[#allocation2 + $0x18] sm:$0xff] }
  0xfc   : > { %374 = vst.msk [vmem:[%s262_s6 + $0x10] sm:$0xff] %vm269_vm0, %v370_v27  ;;  %v371_v31 = vadd.f32 %v505_v25, %v360_v30  ;;  %v358_v32 = vld [vmem:[#allocation2 + $0x8] sm:$0xff] }
  0xfd   : > { %372 = vst.msk [vmem:[%s262_s6] sm:$0xff] %vm269_vm0, %v368_v29  ;;  %v369_v33 = vadd.f32 %v505_v25, %v358_v32 }
  0xfe   : > { %375 = vst.msk [vmem:[%s262_s6 + $0x18] sm:$0xff] %vm269_vm0, %v371_v31 }
  0xff   : > { %373 = vst.msk [vmem:[%s262_s6 + $0x8] sm:$0xff] %vm269_vm0, %v369_v33 }
 0x100 PF: > { %s13_s14 = sadd.s32 1, %s569_s14   ;;  %s666_s12 = smov %s565_s13 }
 0x101   : > { %p10_p5 = scmp.ge.s32.totalorder %s13_s14, 5   ;;  %s667_s13 = smov %s669_s15 }
 0x103   :  { %12 = sbr.rel (!%p10_p5) target bundleno = 2 (0x2), region = 76 }

// kernel: optformer_encoder_layer.25
= control target key start
LH: loop header
LB: loop body
LE: loop exit
PB: predicated region body
PF: predicated region fallthrough
CT: control target
= control target key end

     0   :  { %s592_s12 = smov 0   ;;  %s594_s13 = smov 0   ;;  %s662_s0 = inlined_call_operand.vmem [shape: f32[32,32], index: 0, kind: input, shape index: {}]   ;;  %s663_s1 = inlined_call_operand.vmem [shape: f32[2,32,32], index: 1, kind: input, shape index: {}]   ;;  %s664_s2 = inlined_call_operand.vmem [shape: f32[2,1,32], index: 2, kind: input, shape index: {}]   ;;  %s665_s3 = inlined_call_operand.vmem [shape: f32[2,32,32], index: 3, kind: output, shape index: {}]  }
   0x1   :  { %s596_s14 = smov 0  }
   0x2 LB: > { %s32_s15 = sadd.s32 1, %s565_s13  ;;  %p498_p0 = scmp.ge.s32.totalorder %s569_s14, 1  ;;  %s569_s14 = sphi %s596_s14, %s13_s14   ;;  %s565_s13 = sphi %s594_s13, %s667_s13   ;;  %s561_s12 = sphi %s592_s12, %s666_s12  }
   0x3   : > { %p34_p1 = scmp.ge.s32.totalorder %s32_s15, 2  ;;  %p189_p2 = scmp.lt.s32.totalorder %s569_s14, 3 }
   0x5   : > { %s669_s15 = smov (%p34_p1, %s32_s15), 0  ;;  %p190_p3 = pnand %p498_p0, %p189_p2 }
   0x6   : > { %p242_p4 = scmp.lt.s32.totalorder (!%p190_p3), %s561_s12, 1  ;;  %vm269_vm0 = vcmask (!%p190_p3), 261120   ;;  %v278_v0 = vld [vmem:[%s662_s0] sm:$0xff] (!%p190_p3)  ;;  %v279_v1 = vld [vmem:[%s662_s0 + $0x8] sm:$0xff] (!%p190_p3)  ;;  %v571_v3 = vmov (!%p190_p3), 0.0   ;;  %v280_v10 = vld [vmem:[%s662_s0 + $0x10] sm:$0xff] (!%p190_p3) }
   0x7   : > { %193 = sbr.rel (%p190_p3) target bundleno = 256 (0x100), region = 32  ;;  %v282_v2 = vpack.c.bf16 (!%p190_p3), %v279_v1, %v278_v0  ;;  %272 = vst.msk [vmem:[#allocation2 + $0x10] sm:$0xff] (!%p190_p3), %vm269_vm0, %v571_v3  ;;  %270 = vst.msk [vmem:[#allocation2] sm:$0xff] (!%p190_p3), %vm269_vm0, %v571_v3  ;;  %v281_v11 = vld [vmem:[%s662_s0 + $0x18] sm:$0xff] (!%p190_p3) }
   0x8   : > { %271 = vst.msk [vmem:[#allocation2 + $0x8] sm:$0xff] (!%p190_p3), %vm269_vm0, %v571_v3  ;;  %273 = vst.msk [vmem:[#allocation2 + $0x18] sm:$0xff] (!%p190_p3), %vm269_vm0, %v571_v3  ;;  %v283_v12 = vpack.c.bf16 (!%p190_p3), %v281_v11, %v280_v10 }
   0x9   : > { %518 = vmatprep.mubr.msk.bf16.mxu0 (!%p190_p3), %vm269_vm0, %v282_v2 }
   0xe   : > { %s671_s12 = smov (!%p242_p4, %s561_s12), 1  ;;  %v276_v13 = vld [vmem:[#allocation2 + $0x10] sm:$0xff]  ;;  %v274_v14 = vld [vmem:[#allocation2] sm:$0xff] }
   0xf   : > { %s508_s20 = sshll.u32 %s671_s12, 5  ;;  %v277_v16 = vld [vmem:[#allocation2 + $0x18] sm:$0xff]  ;;  %v275_v19 = vld [vmem:[#allocation2 + $0x8] sm:$0xff]  ;;  %s253_s30 = scalar_lea.vmem %s664_s2, %s671_s12 }
  0x10   : > { %s249_s23 = scalar_lea.vmem %s663_s1, %s508_s20  ;;  %v505_v25 = vld [vmem:[%s253_s30] ss:$0 sm:$0xff]  ;;  %s262_s6 = scalar_lea.vmem %s665_s3, %s508_s20 }
  0x11   : > { %v284_v4 = vld [vmem:[%s249_s23] sm:$0xff]  ;;  %v285_v5 = vld [vmem:[%s249_s23 + $0x8] sm:$0xff]  ;;  %v286_v6 = vld [vmem:[%s249_s23 + $0x10] sm:$0xff] }
  0x12   : > { %v288_v7 = vpack.c.bf16 %v285_v5, %v284_v4  ;;  %v287_v8 = vld [vmem:[%s249_s23 + $0x18] sm:$0xff] }
  0x13   : > { %v289_v9 = vpack.c.bf16 %v287_v8, %v286_v6 }
  0x14   : > { %514 = vmatprep.subr.bf16.mxu0 %v288_v7 }
  0x15   : > { %515 = vmatpush3.bf16.msra.mxu0 %v288_v7 }
  0x16   : > { %516 = vmatprep.subr.bf16.mxu0 %v289_v9 }
  0x19   : > { %517 = vmatpush3.bf16.msra.mxu0 %v289_v9 }
  0x1c   : > { %519 = vmatmul.mubr.msk.bf16.vlgmr.msra.gmra.mrb[0].mxu0 %vm269_vm0, %v283_v12 }
  0xef   : > { %v520_v15 = vpop.f32.mrb[0].mxu0 }
  0xf0   : > { %v348_v17 = vadd.f32 %v520_v15, %v276_v13  ;;  %v331_v18 = vpop.f32.mrb[1].mxu0 }
  0xf1   : > { %v346_v20 = vadd.f32 %v331_v18, %v274_v14  ;;  %v521_v21 = vpop.f32.mrb[2].mxu0 }
  0xf2   : > { %352 = vst.msk [vmem:[#allocation2 + $0x10] sm:$0xff] %vm269_vm0, %v348_v17  ;;  %v349_v22 = vadd.f32 %v521_v21, %v277_v16  ;;  %v334_v23 = vpop.f32.mrb[3].mxu0 }
  0xf3   : > { %350 = vst.msk [vmem:[#allocation2] sm:$0xff] %vm269_vm0, %v346_v20  ;;  %v347_v24 = vadd.f32 %v334_v23, %v275_v19 }
  0xf4   : > { %353 = vst.msk [vmem:[#allocation2 + $0x18] sm:$0xff] %vm269_vm0, %v349_v22 }
  0xf5   : > { %351 = vst.msk [vmem:[#allocation2 + $0x8] sm:$0xff] %vm269_vm0, %v347_v24 }
  0xf9   : > { %v359_v26 = vld [vmem:[#allocation2 + $0x10] sm:$0xff] }
  0xfa   : > { %v370_v27 = vadd.f32 %v505_v25, %v359_v26  ;;  %v357_v28 = vld [vmem:[#allocation2] sm:$0xff] }
  0xfb   : > { %v368_v29 = vadd.f32 %v505_v25, %v357_v28  ;;  %v360_v30 = vld [vmem:[#allocation2 + $0x18] sm:$0xff] }
  0xfc   : > { %374 = vst.msk [vmem:[%s262_s6 + $0x10] sm:$0xff] %vm269_vm0, %v370_v27  ;;  %v371_v31 = vadd.f32 %v505_v25, %v360_v30  ;;  %v358_v32 = vld [vmem:[#allocation2 + $0x8] sm:$0xff] }
  0xfd   : > { %372 = vst.msk [vmem:[%s262_s6] sm:$0xff] %vm269_vm0, %v368_v29  ;;  %v369_v33 = vadd.f32 %v505_v25, %v358_v32 }
  0xfe   : > { %375 = vst.msk [vmem:[%s262_s6 + $0x18] sm:$0xff] %vm269_vm0, %v371_v31 }
  0xff   : > { %373 = vst.msk [vmem:[%s262_s6 + $0x8] sm:$0xff] %vm269_vm0, %v369_v33 }
 0x100 PF: > { %s13_s14 = sadd.s32 1, %s569_s14   ;;  %s666_s12 = smov %s565_s13 }
 0x101   : > { %p10_p5 = scmp.ge.s32.totalorder %s13_s14, 4   ;;  %s667_s13 = smov %s669_s15 }
 0x103   :  { %12 = sbr.rel (!%p10_p5) target bundleno = 2 (0x2), region = 76 }

// kernel: optformer_encoder_layer.23
= control target key start
LH: loop header
LB: loop body
LE: loop exit
PB: predicated region body
PF: predicated region fallthrough
CT: control target
= control target key end

     0   :  { %vm28_vm0 = vcmask 261120   ;;  %v248_v3 = vmov 0.0   ;;  %s363_s1 = inlined_call_operand.vmem [shape: f32[32,32], index: 1, kind: input, shape index: {}]   ;;  %s364_s0 = inlined_call_operand.vmem [shape: f32[32,32], index: 0, kind: input, shape index: {}]   ;;  %s365_s2 = inlined_call_operand.vmem [shape: f32[1,32], index: 2, kind: input, shape index: {}]   ;;  %s366_s3 = inlined_call_operand.vmem [shape: f32[32,32], index: 3, kind: input, shape index: {}]   ;;  %s367_s4 = inlined_call_operand.vmem [shape: f32[1,32], index: 4, kind: input, shape index: {}]   ;;  %s368_s5 = inlined_call_operand.vmem [shape: f32[1,32], index: 5, kind: input, shape index: {}]   ;;  %s369_s6 = inlined_call_operand.vmem [shape: f32[32,32], index: 6, kind: output, shape index: {}]  }
   0x1   :  { %v43_v0 = vld [vmem:[%s363_s1] sm:$0xff]  ;;  %v44_v1 = vld [vmem:[%s363_s1 + $0x8] sm:$0xff]  ;;  %v45_v2 = vld [vmem:[%s363_s1 + $0x10] sm:$0xff]  ;;  %31 = vst.msk [vmem:[#allocation2 + $0x10] sm:$0xff] %vm28_vm0, %v248_v3 }
   0x2   :  { %29 = vst.msk [vmem:[#allocation2] sm:$0xff] %vm28_vm0, %v248_v3  ;;  %30 = vst.msk [vmem:[#allocation2 + $0x8] sm:$0xff] %vm28_vm0, %v248_v3  ;;  %v47_v4 = vpack.c.bf16 %v44_v1, %v43_v0  ;;  %v46_v5 = vld [vmem:[%s363_s1 + $0x18] sm:$0xff]  ;;  %v37_v6 = vld [vmem:[%s364_s0] sm:$0xff] }
   0x3   :  { %32 = vst.msk [vmem:[#allocation2 + $0x18] sm:$0xff] %vm28_vm0, %v248_v3  ;;  %v38_v7 = vld [vmem:[%s364_s0 + $0x8] sm:$0xff]  ;;  %v48_v8 = vpack.c.bf16 %v46_v5, %v45_v2  ;;  %v39_v10 = vld [vmem:[%s364_s0 + $0x10] sm:$0xff]  ;;  %v40_v11 = vld [vmem:[%s364_s0 + $0x18] sm:$0xff] }
   0x4   :  { %v41_v9 = vpack.c.bf16 %v38_v7, %v37_v6  ;;  %231 = vmatprep.subr.bf16.mxu0 %v47_v4  ;;  %v42_v12 = vpack.c.bf16 %v40_v11, %v39_v10  ;;  %v224_v25 = vld [vmem:[%s365_s2] ss:$0 sm:$0xff]  ;;  %v133_v27 = vld [vmem:[%s366_s3 + $0x10] sm:$0xff]  ;;  %v134_v33 = vld [vmem:[%s366_s3 + $0x18] sm:$0xff] }
   0x5   :  { %232 = vmatpush3.bf16.msra.mxu0 %v47_v4  ;;  %v131_v30 = vld [vmem:[%s366_s3] sm:$0xff]  ;;  %v132_v37 = vld [vmem:[%s366_s3 + $0x8] sm:$0xff] }
   0x6   :  { %235 = vmatprep.mubr.msk.bf16.mxu0 %vm28_vm0, %v41_v9  ;;  %233 = vmatprep.subr.bf16.mxu0 %v48_v8 }
   0x8   :  { %v35_v13 = vld [vmem:[#allocation2 + $0x10] sm:$0xff] }
   0x9   :  { %234 = vmatpush3.bf16.msra.mxu0 %v48_v8  ;;  %v33_v14 = vld [vmem:[#allocation2] sm:$0xff]  ;;  %v34_v19 = vld [vmem:[#allocation2 + $0x8] sm:$0xff] }
   0xa   :  { %v36_v16 = vld [vmem:[#allocation2 + $0x18] sm:$0xff] }
   0xc   :  { %236 = vmatmul.mubr.msk.bf16.vlgmr.msra.gmra.mrb[0].mxu0 %vm28_vm0, %v42_v12 }
  0xdf   :  { %v237_v15 = vpop.f32.mrb[0].mxu0 }
  0xe0   :  { %v107_v17 = vadd.f32 %v237_v15, %v35_v13  ;;  %v90_v18 = vpop.f32.mrb[1].mxu0  ;;  %v225_v15 = vld [vmem:[%s367_s4] ss:$0 sm:$0xff] }
  0xe1   :  { %v105_v20 = vadd.f32 %v90_v18, %v33_v14  ;;  %v238_v21 = vpop.f32.mrb[2].mxu0 }
  0xe2   :  { %111 = vst.msk [vmem:[#allocation2 + $0x10] sm:$0xff] %vm28_vm0, %v107_v17  ;;  %v108_v22 = vadd.f32 %v238_v21, %v36_v16  ;;  %v93_v23 = vpop.f32.mrb[3].mxu0  ;;  %v226_v17 = vld [vmem:[%s368_s5] ss:$0 sm:$0xff] }
  0xe3   :  { %109 = vst.msk [vmem:[#allocation2] sm:$0xff] %vm28_vm0, %v105_v20  ;;  %v106_v24 = vadd.f32 %v93_v23, %v34_v19 }
  0xe4   :  { %112 = vst.msk [vmem:[#allocation2 + $0x18] sm:$0xff] %vm28_vm0, %v108_v22 }
  0xe5   :  { %110 = vst.msk [vmem:[#allocation2 + $0x8] sm:$0xff] %vm28_vm0, %v106_v24 }
  0xe9   :  { %v118_v26 = vld [vmem:[#allocation2 + $0x10] sm:$0xff] }
  0xea   :  { %v129_v28 = vadd.f32 %v224_v25, %v118_v26  ;;  %v116_v29 = vld [vmem:[#allocation2] sm:$0xff] }
  0xeb   :  { %v127_v31 = vadd.f32 %v224_v25, %v116_v29  ;;  %v119_v32 = vld [vmem:[#allocation2 + $0x18] sm:$0xff] }
  0xec   :  { %v137_v34 = vadd.f32 %v133_v27, %v129_v28  ;;  %v130_v35 = vadd.f32 %v224_v25, %v119_v32  ;;  %v117_v36 = vld [vmem:[#allocation2 + $0x8] sm:$0xff] }
  0xed   :  { %v135_v38 = vadd.f32 %v131_v30, %v127_v31  ;;  %v128_v39 = vadd.f32 %v224_v25, %v117_v36 }
  0xee   :  { %v145_v40 = vsel %vm28_vm0, %v137_v34, 0.0  ;;  %v138_v41 = vadd.f32 %v134_v33, %v130_v35 }
  0xef   :  { %146 = vadd.xlane.f32.xlu1 %v145_v40  ;;  %v139_v42 = vsel %vm28_vm0, %v135_v38, 0.0  ;;  %v136_v43 = vadd.f32 %v132_v37, %v128_v39 }
  0xf0   :  { %140 = vadd.xlane.f32.xlu0 %v139_v42  ;;  %v148_v44 = vsel %vm28_vm0, %v138_v41, 0.0 }
  0xf1   :  { %v142_v45 = vsel %vm28_vm0, %v136_v43, 0.0 }
  0xf3   :  { %149 = vadd.xlane.f32.xlu1 %v148_v44 }
  0xf4   :  { %143 = vadd.xlane.f32.xlu0 %v142_v45 }
 0x17c   :  { %v147_v46 = vpop.xlane.xlu1 %146 }
 0x17d   :  { %v154_v47 = vmul.f32 0.03125, %v147_v46  ;;  %v141_v48 = vpop.xlane.xlu0 %140 }
 0x17e   :  { %v152_v49 = vmul.f32 0.03125, %v141_v48 }
 0x17f   :  { %v158_v50 = vsub.f32 %v137_v34, %v154_v47 }
 0x180   :  { %v156_v51 = vsub.f32 %v135_v38, %v152_v49  ;;  %v150_v52 = vpop.xlane.xlu1 %149 }
 0x181   :  { %v155_v53 = vmul.f32 0.03125, %v150_v52  ;;  %v144_v54 = vpop.xlane.xlu0 %143  ;;  %v162_v60 = vmul.f32 %v158_v50, %v158_v50 }
 0x182   :  { %v153_v55 = vmul.f32 0.03125, %v144_v54  ;;  %v160_v56 = vmul.f32 %v156_v51, %v156_v51 }
 0x183   :  { %v159_v57 = vsub.f32 %v138_v41, %v155_v53  ;;  %v170_v62 = vsel %vm28_vm0, %v162_v60, 0.0 }
 0x184   :  { %v157_v58 = vsub.f32 %v136_v43, %v153_v55  ;;  %v164_v59 = vsel %vm28_vm0, %v160_v56, 0.0 }
 0x185   :  { %165 = vadd.xlane.f32.xlu0 %v164_v59  ;;  %v163_v0 = vmul.f32 %v159_v57, %v159_v57 }
 0x186   :  { %v161_v61 = vmul.f32 %v157_v58, %v157_v58 }
 0x187   :  { %v173_v1 = vsel %vm28_vm0, %v163_v0, 0.0 }
 0x188   :  { %v167_v63 = vsel %vm28_vm0, %v161_v61, 0.0 }
 0x189   :  { %171 = vadd.xlane.f32.xlu0 %v170_v62  ;;  %168 = vadd.xlane.f32.xlu1 %v167_v63 }
 0x18d   :  { %174 = vadd.xlane.f32.xlu1 %v173_v1 }
 0x212   :  { %v166_v2 = vpop.xlane.xlu0 %165 }
 0x213   :  { %v176_v3 = vmul.f32 0.03125, %v166_v2 }
 0x215   :  { %v180_v4 = vadd.f32 1e-05, %v176_v3 }
 0x216   :  { %v169_v5 = vpop.xlane.xlu1 %168  ;;  %v172_v6 = vpop.xlane.xlu0 %171 }
 0x217   :  { %240 = vrsqrt.f32 %v180_v4  ;;  %v177_v7 = vmul.f32 0.03125, %v169_v5  ;;  %v178_v8 = vmul.f32 0.03125, %v172_v6 }
 0x219   :  { %v181_v9 = vadd.f32 1e-05, %v177_v7  ;;  %v182_v10 = vadd.f32 1e-05, %v178_v8 }
 0x21a   :  { %v175_v11 = vpop.xlane.xlu1 %174 }
 0x21b   :  { %242 = vrsqrt.f32 %v181_v9  ;;  %v179_v12 = vmul.f32 0.03125, %v175_v11 }
 0x21c   :  { %244 = vrsqrt.f32 %v182_v10 }
 0x21d   :  { %v183_v13 = vadd.f32 1e-05, %v179_v12 }
 0x21f   :  { %246 = vrsqrt.f32 %v183_v13 }
 0x221   :  { %v241_v14 = vpop.eup %240 }
 0x222   :  { %v188_v16 = vmul.f32 %v241_v14, %v156_v51 }
 0x224   :  { %v199_v18 = vmul.f32 %v225_v15, %v188_v16 }
 0x225   :  { %v243_v19 = vpop.eup %242 }
 0x226   :  { %v245_v20 = vpop.eup %244  ;;  %v210_v21 = vadd.f32 %v226_v17, %v199_v18  ;;  %v189_v22 = vmul.f32 %v243_v19, %v157_v58 }
 0x227   :  { %v190_v23 = vmul.f32 %v245_v20, %v158_v50 }
 0x228   :  { %214 = vst.msk [vmem:[%s369_s6] sm:$0xff] %vm28_vm0, %v210_v21  ;;  %v200_v24 = vmul.f32 %v225_v15, %v189_v22 }
 0x229   :  { %v247_v25 = vpop.eup %246  ;;  %v201_v26 = vmul.f32 %v225_v15, %v190_v23 }
 0x22a   :  { %v211_v27 = vadd.f32 %v226_v17, %v200_v24  ;;  %v191_v28 = vmul.f32 %v247_v25, %v159_v57 }
 0x22b   :  { %v212_v29 = vadd.f32 %v226_v17, %v201_v26 }
 0x22c   :  { %215 = vst.msk [vmem:[%s369_s6 + $0x8] sm:$0xff] %vm28_vm0, %v211_v27  ;;  %v202_v30 = vmul.f32 %v225_v15, %v191_v28 }
 0x22d   :  { %216 = vst.msk [vmem:[%s369_s6 + $0x10] sm:$0xff] %vm28_vm0, %v212_v29 }
 0x22e   :  { %v213_v31 = vadd.f32 %v226_v17, %v202_v30 }
 0x230   :  { %217 = vst.msk [vmem:[%s369_s6 + $0x18] sm:$0xff] %vm28_vm0, %v213_v31 }

// kernel: optformer_encoder_layer.22
= control target key start
LH: loop header
LB: loop body
LE: loop exit
PB: predicated region body
PF: predicated region fallthrough
CT: control target
= control target key end

     0   :  { %s1551_s15 = smov 0   ;;  %s1553_s16 = smov 0   ;;  %s1873_s0 = inlined_call_operand.vmem [shape: f32[3,2,16,32], index: 0, kind: input, shape index: {}, may-alias: {0,1,2}]   ;;  %s1874_s1 = inlined_call_operand.vmem [shape: f32[3,2,16,32], index: 1, kind: input, shape index: {}, may-alias: {0,1,2}]   ;;  %s1875_s2 = inlined_call_operand.vmem [shape: f32[3,2,16,32], index: 2, kind: input, shape index: {}, may-alias: {0,1,2}]   ;;  %s1876_s3 = inlined_call_operand.vmem [shape: f32[2,1,16], index: 3, kind: input, shape index: {}]   ;;  %s1877_s4 = inlined_call_operand.vmem [shape: f32[2,16,32], index: 4, kind: output, shape index: {}]  }
   0x1   :  { %s1555_s17 = smov 0  }
   0x2 LB: > { %s33_s18 = sadd.s32 1, %s1507_s16  ;;  %p1296_p0 = scmp.ge.s32.totalorder %s1511_s17, 1  ;;  %s1511_s17 = sphi %s1555_s17, %s14_s17   ;;  %s1507_s16 = sphi %s1553_s16, %s1879_s16   ;;  %s1503_s15 = sphi %s1551_s15, %s1878_s15  }
   0x3   : > { %p35_p1 = scmp.ge.s32.totalorder %s33_s18, 2  ;;  %p239_p2 = scmp.lt.s32.totalorder %s1511_s17, 3 }
   0x5   : > { %s1881_s18 = smov (%p35_p1, %s33_s18), 0  ;;  %p240_p3 = pnand %p1296_p0, %p239_p2 }
   0x6   : > { %p300_p4 = scmp.lt.s32.totalorder (!%p240_p3), %s1503_s15, 1  ;;  %v1513_v0 = vmov (!%p240_p3), 0.0   ;;  %vm1514_vm0 = vmmov (!%p240_p3), 0   ;;  %vm376_vm1 = vcmask (!%p240_p3), 64512   ;;  %vm352_vm2 = vcmask (!%p240_p3), 31744   ;;  %s1517_s29 = smov (!%p240_p3), 120  }
   0x7   : > { %243 = sbr.rel (%p240_p3) target bundleno = 1445 (0x5a5), region = 36  ;;  %1340 = vmatprep.subr.bf16.mxu0 (!%p240_p3), %v1513_v0  ;;  %1342 = vmatprep.mubr.msk.bf16.mxu0 (!%p240_p3), %vm1514_vm0, %v1513_v0  ;;  %v1515_v8 = vmov (!%p240_p3), -inf   ;;  %355 = vst.msk [vmem:[#allocation3] sm:$0xff] (!%p240_p3), %vm352_vm2, %v1513_v0  ;;  %356 = vst.msk [vmem:[#allocation3 + $0x8] sm:$0xff] (!%p240_p3), %vm352_vm2, %v1513_v0  ;;  %vm426_vm3 = vcmask (!%p240_p3), 130048   ;;  %v1516_v18 = vmov (!%p240_p3), 0  }
   0x8   : > { %1346 = vmatprep.subr.bf16.mxu1 (!%p240_p3), %v1513_v0  ;;  %1348 = vmatprep.mubr.msk.bf16.mxu1 (!%p240_p3), %vm1514_vm0, %v1513_v0  ;;  %353 = vst.msk [vmem:[#allocation2] sm:$0xff] (!%p240_p3), %vm352_vm2, %v1515_v8  ;;  %354 = vst.msk [vmem:[#allocation2 + $0x8] sm:$0xff] (!%p240_p3), %vm352_vm2, %v1515_v8  ;;  %vm469_vm4 = vcmask (!%p240_p3), 7168   ;;  %s1518_s7 = smov (!%p240_p3), 112   ;;  %s1519_s8 = smov (!%p240_p3), 104   ;;  %vm634_vm5 = vcmask (!%p240_p3), 15368  }
   0x9   : > { %1425 = vset.pattern.permute.xlu1 (!%p240_p3), %v1516_v18  ;;  %vm810_vm6 = vcmask (!%p240_p3), 23568   ;;  %vm985_vm7 = vcmask (!%p240_p3), 31768   ;;  %vm357_vm8 = vcmask (!%p240_p3), 261120   ;;  %s1523_s9 = smov (!%p240_p3), 8   ;;  %s1524_s10 = smov (!%p240_p3), 16   ;;  %vm710_vm9 = vcmask (!%p240_p3), 130112  }
   0xa   : > { %358 = vst.msk [vmem:[#allocation4] sm:$0xff] (!%p240_p3), %vm357_vm8, %v1513_v0  ;;  %359 = vst.msk [vmem:[#allocation4 + $0x8] sm:$0xff] (!%p240_p3), %vm357_vm8, %v1513_v0  ;;  %s1525_s11 = smov (!%p240_p3), 24   ;;  %vm885_vm10 = vcmask (!%p240_p3), 195712   ;;  %vm1060_vm11 = vcmask (!%p240_p3), 261312  }
   0xe   : > { %s1883_s15 = smov (!%p300_p4, %s1503_s15), 1 }
   0xf   : > { %s1575_s19 = sshll.u32 %s1883_s15, 4  ;;  %s336_s28 = scalar_lea.vmem %s1876_s3, %s1883_s15  ;;  %v1603_v19 = vld [vmem:[#allocation2] sm:$0xff]  ;;  %v1608_v22 = vld [vmem:[#allocation2 + $0x8] sm:$0xff] }
  0x10   : > { %s1221_s22 = scalar_lea.vmem %s1874_s1, %s1575_s19  ;;  %s307_s25 = scalar_lea.vmem %s1873_s0, %s1575_s19  ;;  %v1595_v9 = vld [vmem:[%s336_s28] ss:$0 sm:$0xff] }
  0x11   : > { %v1305_v1 = vld [vmem:[%s1221_s22 + $0x20] sm:$0xff]  ;;  %v1306_v2 = vld [vmem:[%s1221_s22 + $0x28] sm:$0xff]  ;;  %s1226_s6 = scalar_lea.vmem %s1875_s2, %s1575_s19  ;;  %s345_s14 = scalar_lea.vmem %s1877_s4, %s1575_s19 }
  0x12   : > { %v365_v3 = vpack.c.bf16 %v1306_v2, %v1305_v1  ;;  %v360_v5 = vld [vmem:[%s307_s25] sm:$0xff]  ;;  %v361_v6 = vld [vmem:[%s307_s25 + $0x8] sm:$0xff] }
  0x13   : > { %v362_v7 = vpack.c.bf16 %v361_v6, %v360_v5  ;;  %v1307_v27 = vld [vmem:[%s1226_s6 + $0x40] sm:$0xff]  ;;  %v1308_v28 = vld [vmem:[%s1226_s6 + $0x48] sm:$0xff] }
  0x14   : > { %v381_v4 = vsel %vm376_vm1, %v365_v3, 0  ;;  %v1628_v29 = vpack.c.bf16 %v1308_v28, %v1307_v27 }
  0x15   : > { %1341 = vmatpush3.bf16.xpose.msra.mxu0 %v381_v4 }
  0x16   : > { %1358 = vmatprep.subr.bf16.mxu0 %v1513_v0  ;;  %1347 = vmatpush3.bf16.msra.mxu1 %v1628_v29 }
  0x17   : > { %1352 = vmatprep.subr.bf16.mxu1 %v1513_v0 }
  0x1c   : > { %1343 = vmatmul.mubr.msk.bf16.vlgmr.msra.gmra.mrb[0].mxu0 %vm376_vm1, %v362_v7 }
  0x1d   : > { %1360 = vmatprep.mubr.msk.bf16.mxu0 %vm1514_vm0, %v1513_v0 }
  0xef   : > { %v417_v10 = vpop.f32.mrb[0].mxu0 }
  0xf0   : > { %v418_v11 = vadd.f32 %v1595_v9, %v417_v10  ;;  %v1344_v12 = vpop.f32.mrb[1].mxu0 }
  0xf1   : > { %v420_v13 = vpop.f32.mrb[2].mxu0 }
  0xf2   : > { %v421_v14 = vadd.f32 %v1595_v9, %v420_v13  ;;  %v1345_v15 = vpop.f32.mrb[3].mxu0  ;;  %v427_v16 = vsel %vm426_vm3, %v418_v11, -inf  ;;  %v1520_v13 = vmov 1  }
  0xf3   : > { %428 = vmax.xlane.f32.xlu0 %v427_v16 }
  0xf4   : > { %v430_v17 = vsel %vm426_vm3, %v421_v14, -inf  ;;  %1426 = vset.pattern.permute.xlu0 %v1520_v13 }
  0xf7   : > { %431 = vmax.xlane.f32.xlu0 %v430_v17 }
 0x10d   : > { %541 = vrot.lane.b32.xlu0 %v365_v3, %s1517_s29 }
 0x180   : > { %v429_v20 = vpop.xlane.xlu0 %428 }
 0x181   : > { %v1606_v21 = vmax.f32 %v1603_v19, %v429_v20 }
 0x183   : > { %v435_v23 = vsub.f32 %v1603_v19, %v1606_v21  ;;  %535 = vst.msk [vmem:[#allocation2] sm:$0xff] %vm469_vm4, %v1606_v21  ;;  %443 = vperm.xlu1 %1425, %v1606_v21  }
 0x184   : > { %v432_v24 = vpop.xlane.xlu0 %431 }
 0x185   : > { %v1616_v25 = vmax.f32 %v1608_v22, %v432_v24 }
 0x187   : > { %v436_v26 = vsub.f32 %v1608_v22, %v1616_v25  ;;  %536 = vst.msk [vmem:[#allocation2 + $0x8] sm:$0xff] %vm469_vm4, %v1616_v25  ;;  %448 = vperm.xlu1 %1425, %v1616_v25  }
 0x188   : > { %v542_v36 = vpop.permute.xlu0 %541 }
 0x189   : > { %v547_v40 = vsel %vm376_vm1, %v542_v36, 0 }
 0x18a   : > { %v1693_v15 = vld [vmem:[#allocation2] sm:$0xff] }
 0x18b   : > { %538 = vrot.lane.b32.xlu1 %v362_v7, %s1517_s29 }
 0x18c   : > { %1427 = vset.pattern.permute.xlu1 %v1520_v13 }
 0x18e   : > { %v1698_v17 = vld [vmem:[#allocation2 + $0x8] sm:$0xff] }
 0x18f   : > { %717 = vrot.lane.b32.xlu1 %v365_v3, %s1518_s7 }
 0x193   : > { %715 = vrot.lane.b32.xlu1 %v362_v7, %s1518_s7 }
 0x197   : > { %892 = vrot.lane.b32.xlu1 %v365_v3, %s1519_s8 }
 0x19b   : > { %890 = vrot.lane.b32.xlu1 %v362_v7, %s1519_s8 }
 0x202   : > { %v444_v30 = vpop.permute.xlu1 %443 }
 0x203   : > { %v451_v31 = vsub.f32 %v418_v11, %v444_v30 }
 0x205   : > { %v453_v32 = vmul.f32 1.442695, %v451_v31  ;;  %v1521_v31 = vmov 2  }
 0x206   : > { %v449_v33 = vpop.permute.xlu1 %448 }
 0x207   : > { %v452_v34 = vsub.f32 %v421_v14, %v449_v33  ;;  %1441 = vpow2.f32 %v453_v32 }
 0x209   : > { %v455_v35 = vmul.f32 1.442695, %v452_v34 }
 0x20a   : > { %v539_v37 = vpop.permute.xlu1 %538 }
 0x20b   : > { %1443 = vpow2.f32 %v455_v35 }
 0x20e   : > { %v718_v42 = vpop.permute.xlu1 %717 }
 0x20f   : > { %v723_v44 = vsel %vm376_vm1, %v718_v42, 0 }
 0x211   : > { %v1636_v38 = vpop.eup %1441 }
 0x212   : > { %v716_v43 = vpop.permute.xlu1 %715 }
 0x215   : > { %v1638_v39 = vpop.eup %1443 }
 0x216   : > { %v486_v41 = vpack.c.bf16 %v1638_v39, %v1636_v38  ;;  %v893_v45 = vpop.permute.xlu1 %892 }
 0x217   : > { %v898_v46 = vsel %vm376_vm1, %v893_v45, 0 }
 0x218   : > { %1349 = vmatmul.mubr.msk.bf16.vlgmr.msra.gmra.mrb[0].mxu1 %vm426_vm3, %v486_v41 }
 0x219   : > { %1353 = vmatpush3.bf16.xpose.msra.mxu1 %v547_v40  ;;  %1354 = vmatprep.mubr.msk.bf16.mxu1 %vm1514_vm0, %v1513_v0 }
 0x21a   : > { %1364 = vmatprep.subr.bf16.mxu1 %v1513_v0  ;;  %v891_v47 = vpop.permute.xlu1 %890 }
 0x220   : > { %1355 = vmatmul.mubr.msk.bf16.vlgmr.msra.gmra.mrb[4].mxu1 %vm376_vm1, %v539_v37 }
 0x221   : > { %1365 = vmatpush3.bf16.xpose.msra.mxu1 %v723_v44  ;;  %1366 = vmatprep.mubr.msk.bf16.mxu1 %vm1514_vm0, %v1513_v0 }
 0x222   : > { %1376 = vmatprep.subr.bf16.mxu1 %v1513_v0 }
 0x228   : > { %1367 = vmatmul.mubr.msk.bf16.vlgmr.msra.gmra.mrb[8].mxu1 %vm376_vm1, %v716_v43 }
 0x229   : > { %1377 = vmatpush3.bf16.xpose.msra.mxu1 %v898_v46  ;;  %1378 = vmatprep.mubr.msk.bf16.mxu1 %vm1514_vm0, %v1513_v0  ;;  %v1522_v46 = vmov 3  }
 0x230   : > { %1379 = vmatmul.mubr.msk.bf16.vlgmr.msra.gmra.mrb[12].mxu1 %vm376_vm1, %v891_v47 }
 0x2eb   : > { %v1657_v48 = vpop.f32.mrb[0].mxu1 }
 0x2ec   : > { %v1350_v49 = vpop.f32.mrb[1].mxu1 }
 0x2ed   : > { %v1659_v50 = vpop.f32.mrb[2].mxu1 }
 0x2ee   : > { %v1351_v51 = vpop.f32.mrb[3].mxu1 }
 0x2f3   : > { %v583_v52 = vpop.f32.mrb[4].mxu1 }
 0x2f4   : > { %v1662_v53 = vadd.f32 %v1595_v9, %v583_v52  ;;  %v1356_v54 = vpop.f32.mrb[5].mxu1  ;;  %v464_v52 = vsel %vm426_vm3, %v1638_v39, 0.0  ;;  %v439_v39 = vmul.f32 1.442695, %v436_v26 }
 0x2f5   : > { %v586_v55 = vpop.f32.mrb[6].mxu1  ;;  %v437_v54 = vmul.f32 1.442695, %v435_v23 }
 0x2f6   : > { %v1665_v56 = vadd.f32 %v1595_v9, %v586_v55  ;;  %v1357_v57 = vpop.f32.mrb[7].mxu1  ;;  %v592_v58 = vsel %vm426_vm3, %v1662_v53, -inf }
 0x2f7   : > { %593 = vmax.xlane.f32.xlu1 %v592_v58  ;;  %1445 = vpow2.f32 %v437_v54 }
 0x2f8   : > { %v595_v59 = vsel %vm426_vm3, %v1665_v56, -inf  ;;  %1447 = vpow2.f32 %v439_v39  ;;  %v472_v39 = vld [vmem:[#allocation4] sm:$0xff] }
 0x2f9   : > { %596 = vmax.xlane.f32.xlu0 %v595_v59 }
 0x2fb   : > { %v759_v60 = vpop.f32.mrb[8].mxu1 }
 0x2fc   : > { %v1672_v61 = vadd.f32 %v1595_v9, %v759_v60  ;;  %v1368_v62 = vpop.f32.mrb[9].mxu1 }
 0x2fd   : > { %v762_v63 = vpop.f32.mrb[10].mxu1 }
 0x2fe   : > { %v1675_v1 = vadd.f32 %v1595_v9, %v762_v63  ;;  %v768_v2 = vsel %vm426_vm3, %v1672_v61, -inf  ;;  %v1369_v3 = vpop.f32.mrb[11].mxu1 }
 0x2ff   : > { %769 = vmax.xlane.f32.xlu0 %v768_v2 }
 0x300   : > { %v771_v4 = vsel %vm426_vm3, %v1675_v1, -inf }
 0x301   : > { %772 = vmax.xlane.f32.xlu1 %v771_v4  ;;  %v1770_v55 = vpop.eup %1445 }
 0x302   : > { %v1778_v19 = vpop.eup %1447 }
 0x303   : > { %v934_v5 = vpop.f32.mrb[12].mxu1 }
 0x304   : > { %v1682_v6 = vadd.f32 %v1595_v9, %v934_v5  ;;  %v1380_v7 = vpop.f32.mrb[13].mxu1 }
 0x305   : > { %v937_v8 = vpop.f32.mrb[14].mxu1 }
 0x306   : > { %v1685_v10 = vadd.f32 %v1595_v9, %v937_v8  ;;  %v943_v11 = vsel %vm426_vm3, %v1682_v6, -inf  ;;  %v1381_v12 = vpop.f32.mrb[15].mxu1 }
 0x307   : > { %944 = vmax.xlane.f32.xlu0 %v943_v11 }
 0x308   : > { %v946_v14 = vsel %vm426_vm3, %v1685_v10, -inf }
 0x309   : > { %947 = vmax.xlane.f32.xlu1 %v946_v14 }
 0x384   : > { %v594_v16 = vpop.xlane.xlu1 %593 }
 0x385   : > { %v1696_v9 = vmax.f32 %v1693_v15, %v594_v16 }
 0x386   : > { %v597_v20 = vpop.xlane.xlu0 %596 }
 0x387   : > { %v600_v24 = vsub.f32 %v1693_v15, %v1696_v9  ;;  %713 = vst.msk [vmem:[#allocation2] sm:$0xff] %vm634_vm5, %v1696_v9  ;;  %v1705_v27 = vmax.f32 %v1698_v17, %v597_v20  ;;  %608 = vperm.xlu0 %1426, %v1696_v9  }
 0x389   : > { %v601_v28 = vsub.f32 %v1698_v17, %v1705_v27  ;;  %714 = vst.msk [vmem:[#allocation2 + $0x8] sm:$0xff] %vm634_vm5, %v1705_v27  ;;  %613 = vperm.xlu1 %1427, %v1705_v27  }
 0x38b   : > { %1003 = vrot.lane.b32.xlu0 %v1628_v29, %s1519_s8 }
 0x38c   : > { %v770_v30 = vpop.xlane.xlu0 %769  ;;  %1430 = vset.pattern.permute.xlu0 %v1516_v18 }
 0x38d   : > { %1428 = vset.pattern.permute.xlu1 %v1521_v31 }
 0x38e   : > { %v1717_v32 = vld [vmem:[#allocation2] sm:$0xff]  ;;  %v773_v33 = vpop.xlane.xlu1 %772 }
 0x38f   : > { %v1720_v34 = vmax.f32 %v1717_v32, %v770_v30 }
 0x390   : > { %v1722_v35 = vld [vmem:[#allocation2 + $0x8] sm:$0xff] }
 0x391   : > { %v776_v36 = vsub.f32 %v1717_v32, %v1720_v34  ;;  %888 = vst.msk [vmem:[#allocation2] sm:$0xff] %vm810_vm6, %v1720_v34  ;;  %v1729_v37 = vmax.f32 %v1722_v35, %v773_v33  ;;  %784 = vperm.xlu1 %1428, %v1720_v34  }
 0x393   : > { %v777_v40 = vsub.f32 %v1722_v35, %v1729_v37  ;;  %889 = vst.msk [vmem:[#allocation2 + $0x8] sm:$0xff] %vm810_vm6, %v1729_v37 }
 0x394   : > { %v945_v41 = vpop.xlane.xlu0 %944 }
 0x395   : > { %789 = vperm.xlu1 %1428, %v1729_v37  }
 0x396   : > { %v948_v43 = vpop.xlane.xlu1 %947 }
 0x398   : > { %v1737_v42 = vld [vmem:[#allocation2] sm:$0xff] }
 0x399   : > { %v1740_v44 = vmax.f32 %v1737_v42, %v945_v41  ;;  %653 = vrot.lane.b32.xlu1 %v1628_v29, %s1517_s29 }
 0x39a   : > { %v1744_v45 = vld [vmem:[#allocation2 + $0x8] sm:$0xff]  ;;  %1429 = vset.pattern.permute.xlu1 %v1522_v46 }
 0x39b   : > { %v951_v47 = vsub.f32 %v1737_v42, %v1740_v44  ;;  %1063 = vst.msk [vmem:[#allocation2] sm:$0xff] %vm985_vm7, %v1740_v44  ;;  %v1752_v49 = vmax.f32 %v1744_v45, %v948_v43 }
 0x39d   : > { %v952_v51 = vsub.f32 %v1744_v45, %v1752_v49  ;;  %1064 = vst.msk [vmem:[#allocation2 + $0x8] sm:$0xff] %vm985_vm7, %v1752_v49  ;;  %959 = vperm.xlu1 %1429, %v1740_v44   ;;  %v953_v32 = vmul.f32 1.442695, %v951_v47 }
 0x39f   : > { %v955_v35 = vmul.f32 1.442695, %v952_v51 }
 0x3a1   : > { %964 = vperm.xlu1 %1429, %v1752_v49  }
 0x3a5   : > { %828 = vrot.lane.b32.xlu1 %v1628_v29, %s1518_s7  ;;  %v461_v29 = vsel %vm426_vm3, %v1636_v38, 0.0 }
 0x3a6   : > { %1431 = vset.pattern.permute.xlu1 %v1516_v18 }
 0x3aa   : > { %465 = vadd.xlane.f32.xlu0 %v464_v52  ;;  %v458_v52 = vld [vmem:[#allocation3 + $0x8] sm:$0xff] }
 0x3ab   : > { %v460_v54 = vmul.f32 %v1778_v19, %v458_v52 }
 0x3c0   : > { %476 = vperm.xlu0 %1430, %v1770_v55  }
 0x3c9   : > { %462 = vadd.xlane.f32.xlu1 %v461_v29 }
 0x3da   : > { %481 = vperm.xlu1 %1431, %v1778_v19  }
 0x3de   : > { %1432 = vset.pattern.permute.xlu1 %v1520_v13 }
 0x406   : > { %v609_v21 = vpop.permute.xlu0 %608 }
 0x407   : > { %v616_v23 = vsub.f32 %v1662_v53, %v609_v21 }
 0x408   : > { %v614_v57 = vpop.permute.xlu1 %613 }
 0x409   : > { %v618_v58 = vmul.f32 1.442695, %v616_v23  ;;  %v617_v59 = vsub.f32 %v1665_v56, %v614_v57  ;;  %v602_v56 = vmul.f32 1.442695, %v600_v24 }
 0x40b   : > { %1449 = vpow2.f32 %v618_v58  ;;  %v620_v38 = vmul.f32 1.442695, %v617_v59  ;;  %v778_v59 = vmul.f32 1.442695, %v776_v36 }
 0x40d   : > { %1451 = vpow2.f32 %v620_v38  ;;  %v457_v38 = vld [vmem:[#allocation3] sm:$0xff] }
 0x40e   : > { %v459_v19 = vmul.f32 %v1770_v55, %v457_v38 }
 0x410   : > { %v785_v60 = vpop.permute.xlu1 %784 }
 0x411   : > { %v792_v22 = vsub.f32 %v1672_v61, %v785_v60  ;;  %v780_v60 = vmul.f32 1.442695, %v777_v40 }
 0x413   : > { %v794_v3 = vmul.f32 1.442695, %v792_v22 }
 0x414   : > { %v790_v25 = vpop.permute.xlu1 %789 }
 0x415   : > { %v1450_v26 = vpop.eup %1449  ;;  %v793_v62 = vsub.f32 %v1675_v1, %v790_v25  ;;  %v604_v1 = vmul.f32 1.442695, %v601_v28 }
 0x416   : > { %v626_v63 = vsel %vm426_vm3, %v1450_v26, 0.0 }
 0x417   : > { %v1452_v2 = vpop.eup %1451  ;;  %v796_v4 = vmul.f32 1.442695, %v793_v62  ;;  %627 = vadd.xlane.f32.xlu1 %v626_v63 }
 0x418   : > { %v654_v53 = vpop.permute.xlu1 %653  ;;  %v629_v5 = vsel %vm426_vm3, %v1452_v2, 0.0  ;;  %v651_v61 = vpack.c.bf16 %v1452_v2, %v1450_v26 }
 0x419   : > { %1453 = vpow2.f32 %v796_v4  ;;  %630 = vadd.xlane.f32.xlu0 %v629_v5  ;;  %1359 = vmatpush3.bf16.msra.mxu0 %v654_v53 }
 0x41a   : > { %1370 = vmatprep.subr.bf16.mxu0 %v1513_v0  ;;  %1455 = vpow2.f32 %v794_v3 }
 0x41b   : > { %1457 = vpow2.f32 %v602_v56 }
 0x41c   : > { %1361 = vmatmul.mubr.msk.bf16.vlgmr.msra.gmra.mrb[4].mxu0 %vm426_vm3, %v651_v61  ;;  %v960_v7 = vpop.permute.xlu1 %959  ;;  %1459 = vpow2.f32 %v604_v1 }
 0x41d   : > { %v967_v8 = vsub.f32 %v1682_v6, %v960_v7  ;;  %1372 = vmatprep.mubr.msk.bf16.mxu0 %vm1514_vm0, %v1513_v0  ;;  %v1004_v6 = vpop.permute.xlu0 %1003 }
 0x41f   : > { %v969_v11 = vmul.f32 1.442695, %v967_v8 }
 0x420   : > { %v965_v12 = vpop.permute.xlu1 %964 }
 0x421   : > { %1461 = vpow2.f32 %v969_v11  ;;  %v968_v14 = vsub.f32 %v1685_v10, %v965_v12 }
 0x423   : > { %v1454_v15 = vpop.eup %1453  ;;  %v971_v16 = vmul.f32 1.442695, %v968_v14 }
 0x424   : > { %v829_v9 = vpop.permute.xlu1 %828  ;;  %v805_v17 = vsel %vm426_vm3, %v1454_v15, 0.0  ;;  %v1456_v20 = vpop.eup %1455 }
 0x425   : > { %1463 = vpow2.f32 %v971_v16  ;;  %806 = vadd.xlane.f32.xlu0 %v805_v17  ;;  %1371 = vmatpush3.bf16.msra.mxu0 %v829_v9  ;;  %v827_v24 = vpack.c.bf16 %v1454_v15, %v1456_v20  ;;  %v1458_v27 = vpop.eup %1457  ;;  %v802_v58 = vsel %vm426_vm3, %v1456_v20, 0.0 }
 0x426   : > { %1382 = vmatprep.subr.bf16.mxu0 %v1513_v0  ;;  %v1460_v10 = vpop.eup %1459  ;;  %1465 = vpow2.f32 %v778_v59 }
 0x427   : > { %1467 = vpow2.f32 %v780_v60 }
 0x428   : > { %641 = vperm.xlu1 %1432, %v1458_v27   ;;  %1373 = vmatmul.mubr.msk.bf16.vlgmr.msra.gmra.mrb[8].mxu0 %vm426_vm3, %v827_v24  ;;  %1469 = vpow2.f32 %v953_v32 }
 0x429   : > { %1383 = vmatpush3.bf16.msra.mxu0 %v1004_v6  ;;  %1384 = vmatprep.mubr.msk.bf16.mxu0 %vm1514_vm0, %v1513_v0  ;;  %1471 = vpow2.f32 %v955_v35 }
 0x42b   : > { %v1462_v28 = vpop.eup %1461 }
 0x42c   : > { %646 = vperm.xlu1 %1432, %v1460_v10   ;;  %v977_v30 = vsel %vm426_vm3, %v1462_v28, 0.0 }
 0x42d   : > { %978 = vadd.xlane.f32.xlu0 %v977_v30 }
 0x42f   : > { %v1464_v33 = vpop.eup %1463 }
 0x430   : > { %v980_v41 = vsel %vm426_vm3, %v1464_v33, 0.0  ;;  %v1002_v43 = vpack.c.bf16 %v1464_v33, %v1462_v28  ;;  %1433 = vset.pattern.permute.xlu1 %v1521_v31  ;;  %v1466_v37 = vpop.eup %1465 }
 0x431   : > { %981 = vadd.xlane.f32.xlu0 %v980_v41  ;;  %v1468_v40 = vpop.eup %1467 }
 0x432   : > { %1385 = vmatmul.mubr.msk.bf16.vlgmr.msra.gmra.mrb[12].mxu0 %vm426_vm3, %v1002_v43  ;;  %v1470_v55 = vpop.eup %1469 }
 0x433   : > { %v1472_v42 = vpop.eup %1471 }
 0x437   : > { %v466_v29 = vpop.xlane.xlu0 %465 }
 0x438   : > { %v468_v0 = vadd.f32 %v466_v29, %v460_v54 }
 0x43a   : > { %471 = vst.msk [vmem:[#allocation3 + $0x8] sm:$0xff] %vm469_vm4, %v468_v0 }
 0x43f   : > { %v477_v21 = vpop.permute.xlu0 %476 }
 0x440   : > { %v484_v23 = vmul.f32 %v477_v21, %v472_v39 }
 0x441   : > { %v623_v44 = vld [vmem:[#allocation3 + $0x8] sm:$0xff] }
 0x442   : > { %v531_v57 = vadd.f32 %v1657_v48, %v484_v23  ;;  %v473_v48 = vld [vmem:[#allocation4 + $0x8] sm:$0xff]  ;;  %v625_v51 = vmul.f32 %v1460_v10, %v623_v44 }
 0x444   : > { %533 = vst.msk [vmem:[#allocation4] sm:$0xff] %vm376_vm1, %v531_v57 }
 0x44b   : > { %v637_v39 = vld [vmem:[#allocation4] sm:$0xff] }
 0x450   : > { %803 = vadd.xlane.f32.xlu1 %v802_v58 }
 0x456   : > { %v463_v22 = vpop.xlane.xlu1 %462 }
 0x457   : > { %v467_v25 = vadd.f32 %v463_v22, %v459_v19 }
 0x459   : > { %470 = vst.msk [vmem:[#allocation3] sm:$0xff] %vm469_vm4, %v467_v25 }
 0x45a   : > { %v482_v26 = vpop.permute.xlu1 %481 }
 0x45b   : > { %v485_v34 = vmul.f32 %v482_v26, %v473_v48 }
 0x45d   : > { %v532_v36 = vadd.f32 %v1659_v50, %v485_v34 }
 0x45f   : > { %534 = vst.msk [vmem:[#allocation4 + $0x8] sm:$0xff] %vm376_vm1, %v532_v36 }
 0x460   : > { %v622_v50 = vld [vmem:[#allocation3] sm:$0xff] }
 0x461   : > { %817 = vperm.xlu1 %1433, %v1466_v37   ;;  %v624_v47 = vmul.f32 %v1458_v27, %v622_v50 }
 0x465   : > { %822 = vperm.xlu1 %1433, %v1468_v40  }
 0x466   : > { %v638_v26 = vld [vmem:[#allocation4 + $0x8] sm:$0xff] }
 0x469   : > { %1434 = vset.pattern.permute.xlu1 %v1522_v46 }
 0x46a   : > { %992 = vperm.xlu1 %1434, %v1470_v55  }
 0x46e   : > { %997 = vperm.xlu1 %1434, %v1472_v42  }
 0x472   : > { %1435 = vset.pattern.permute.xlu1 %v1516_v18 }
 0x4a4   : > { %v628_v45 = vpop.xlane.xlu1 %627 }
 0x4a5   : > { %v632_v49 = vadd.f32 %v628_v45, %v624_v47 }
 0x4a6   : > { %v631_v62 = vpop.xlane.xlu0 %630 }
 0x4a7   : > { %635 = vst.msk [vmem:[#allocation3] sm:$0xff] %vm634_vm5, %v632_v49  ;;  %v633_v63 = vadd.f32 %v631_v62, %v625_v51 }
 0x4a8   : > { %v642_v7 = vpop.permute.xlu1 %641 }
 0x4a9   : > { %636 = vst.msk [vmem:[#allocation3 + $0x8] sm:$0xff] %vm634_vm5, %v633_v63 }
 0x4ac   : > { %v1836_v8 = vpop.permute.xlu1 %646 }
 0x4ad   : > { %v650_v32 = vmul.f32 %v1836_v8, %v638_v26 }
 0x4ae   : > { %v798_v11 = vld [vmem:[#allocation3] sm:$0xff] }
 0x4af   : > { %v800_v12 = vmul.f32 %v1466_v37, %v798_v11 }
 0x4b0   : > { %v799_v2 = vld [vmem:[#allocation3 + $0x8] sm:$0xff] }
 0x4b1   : > { %v801_v3 = vmul.f32 %v1468_v40, %v799_v2 }
 0x4b2   : > { %v807_v4 = vpop.xlane.xlu0 %806 }
 0x4b3   : > { %v809_v53 = vadd.f32 %v807_v4, %v801_v3 }
 0x4b5   : > { %812 = vst.msk [vmem:[#allocation3 + $0x8] sm:$0xff] %vm810_vm6, %v809_v53 }
 0x4ba   : > { %v979_v5 = vpop.xlane.xlu0 %978 }
 0x4bc   : > { %v974_v18 = vld [vmem:[#allocation3 + $0x8] sm:$0xff] }
 0x4bd   : > { %v976_v56 = vmul.f32 %v1472_v42, %v974_v18 }
 0x4be   : > { %v982_v61 = vpop.xlane.xlu0 %981 }
 0x4bf   : > { %v984_v1 = vadd.f32 %v982_v61, %v976_v56 }
 0x4c1   : > { %987 = vst.msk [vmem:[#allocation3 + $0x8] sm:$0xff] %vm985_vm7, %v984_v1 }
 0x4c8   : > { %v1071_v28 = vld [vmem:[#allocation3 + $0x8] sm:$0xff] }
 0x4dd   : > { %v804_v14 = vpop.xlane.xlu1 %803 }
 0x4de   : > { %v808_v15 = vadd.f32 %v804_v14, %v800_v12 }
 0x4e0   : > { %811 = vst.msk [vmem:[#allocation3] sm:$0xff] %vm810_vm6, %v808_v15 }
 0x4e1   : > { %v818_v0 = vpop.permute.xlu1 %817 }
 0x4e5   : > { %v823_v23 = vpop.permute.xlu1 %822 }
 0x4e7   : > { %v973_v16 = vld [vmem:[#allocation3] sm:$0xff] }
 0x4e8   : > { %v975_v9 = vmul.f32 %v1470_v55, %v973_v16 }
 0x4e9   : > { %v993_v58 = vpop.permute.xlu1 %992 }
 0x4ea   : > { %v983_v17 = vadd.f32 %v979_v5, %v975_v9 }
 0x4ec   : > { %986 = vst.msk [vmem:[#allocation3] sm:$0xff] %vm985_vm7, %v983_v17 }
 0x4ed   : > { %v998_v59 = vpop.permute.xlu1 %997 }
 0x4ef   : > { %v693_v20 = vpop.f32.mrb[4].mxu0 }
 0x4f0   : > { %702 = vrot.lane.b32.xlu0 %v693_v20, %s1523_s9  ;;  %v1362_v24 = vpop.f32.mrb[5].mxu0 }
 0x4f1   : > { %v696_v6 = vpop.f32.mrb[6].mxu0 }
 0x4f2   : > { %v1363_v27 = vpop.f32.mrb[7].mxu0 }
 0x4f3   : > { %v1070_v10 = vld [vmem:[#allocation3] sm:$0xff] }
 0x4f4   : > { %1074 = vperm.xlu1 %1435, %v1070_v10   ;;  %1079 = vperm.xlu0 %1430, %v1071_v28  }
 0x4f8   : > { %1436 = vset.pattern.permute.xlu1 %v1520_v13  ;;  %1437 = vset.pattern.permute.xlu0 %v1520_v13 }
 0x4f9   : > { %1094 = vperm.xlu1 %1436, %v1070_v10  }
 0x4fb   : > { %v868_v30 = vpop.f32.mrb[8].mxu0 }
 0x4fc   : > { %877 = vrot.lane.b32.xlu0 %v868_v30, %s1524_s10  ;;  %v1374_v33 = vpop.f32.mrb[9].mxu0 }
 0x4fd   : > { %704 = vrot.lane.b32.xlu1 %v696_v6, %s1523_s9  ;;  %v871_v41 = vpop.f32.mrb[10].mxu0 }
 0x4fe   : > { %v1375_v43 = vpop.f32.mrb[11].mxu0  ;;  %1438 = vset.pattern.permute.xlu1 %v1521_v31  ;;  %v649_v31 = vmul.f32 %v642_v7, %v637_v39 }
 0x500   : > { %1099 = vperm.xlu0 %1437, %v1071_v28  }
 0x501   : > { %1114 = vperm.xlu1 %1438, %v1070_v10  }
 0x504   : > { %1439 = vset.pattern.permute.xlu0 %v1522_v46 }
 0x505   : > { %1119 = vperm.xlu1 %1438, %v1071_v28   ;;  %1134 = vperm.xlu0 %1439, %v1070_v10   ;;  %v1043_v52 = vpop.f32.mrb[12].mxu0 }
 0x506   : > { %v1386_v54 = vpop.f32.mrb[13].mxu0 }
 0x507   : > { %v1046_v29 = vpop.f32.mrb[14].mxu0 }
 0x508   : > { %v1387_v13 = vpop.f32.mrb[15].mxu0 }
 0x509   : > { %879 = vrot.lane.b32.xlu1 %v871_v41, %s1524_s10 }
 0x50a   : > { %1440 = vset.pattern.permute.xlu1 %v1522_v46 }
 0x50d   : > { %1052 = vrot.lane.b32.xlu1 %v1043_v52, %s1525_s11 }
 0x511   : > { %1054 = vrot.lane.b32.xlu1 %v1046_v29, %s1525_s11 }
 0x515   : > { %1139 = vperm.xlu1 %1440, %v1071_v28  }
 0x562   : > { %v703_v21 = vpop.permute.xlu0 %702 }
 0x563   : > { %v708_v57 = vadd.f32 %v703_v21, %v649_v31 }
 0x565   : > { %711 = vst.msk [vmem:[#allocation4] sm:$0xff] %vm710_vm9, %v708_v57 }
 0x56c   : > { %v813_v60 = vld [vmem:[#allocation4] sm:$0xff] }
 0x56d   : > { %v825_v22 = vmul.f32 %v818_v0, %v813_v60 }
 0x573   : > { %v1075_v38 = vpop.permute.xlu1 %1074  ;;  %v1080_v19 = vpop.permute.xlu0 %1079 }
 0x574   : > { %1473 = vrcp.f32 %v1075_v38 }
 0x577   : > { %v878_v46 = vpop.permute.xlu0 %877 }
 0x578   : > { %v883_v25 = vadd.f32 %v878_v46, %v825_v22  ;;  %v1095_v48 = vpop.permute.xlu1 %1094 }
 0x579   : > { %1475 = vrcp.f32 %v1095_v48 }
 0x57a   : > { %886 = vst.msk [vmem:[#allocation4] sm:$0xff] %vm885_vm10, %v883_v25 }
 0x57c   : > { %v705_v34 = vpop.permute.xlu1 %704 }
 0x57d   : > { %v709_v36 = vadd.f32 %v705_v34, %v650_v32 }
 0x57e   : > { %v1474_v53 = vpop.eup %1473 }
 0x57f   : > { %712 = vst.msk [vmem:[#allocation4 + $0x8] sm:$0xff] %vm710_vm9, %v709_v36  ;;  %v1100_v40 = vpop.permute.xlu0 %1099 }
 0x580   : > { %v1115_v35 = vpop.permute.xlu1 %1114 }
 0x581   : > { %v988_v44 = vld [vmem:[#allocation4] sm:$0xff]  ;;  %1477 = vrcp.f32 %v1115_v35 }
 0x582   : > { %v1000_v45 = vmul.f32 %v993_v58, %v988_v44 }
 0x583   : > { %v1476_v18 = vpop.eup %1475 }
 0x584   : > { %v1120_v37 = vpop.permute.xlu1 %1119  ;;  %v1135_v49 = vpop.permute.xlu0 %1134 }
 0x585   : > { %1479 = vrcp.f32 %v1135_v49 }
 0x586   : > { %v814_v55 = vld [vmem:[#allocation4 + $0x8] sm:$0xff]  ;;  %1481 = vrcp.f32 %v1080_v19 }
 0x587   : > { %v826_v42 = vmul.f32 %v823_v23, %v814_v55  ;;  %1483 = vrcp.f32 %v1100_v40 }
 0x588   : > { %v880_v50 = vpop.permute.xlu1 %879 }
 0x589   : > { %v884_v47 = vadd.f32 %v880_v50, %v826_v42 }
 0x58b   : > { %887 = vst.msk [vmem:[#allocation4 + $0x8] sm:$0xff] %vm885_vm10, %v884_v47  ;;  %v1478_v7 = vpop.eup %1477 }
 0x58c   : > { %v1053_v51 = vpop.permute.xlu1 %1052 }
 0x58d   : > { %v1058_v62 = vadd.f32 %v1053_v51, %v1000_v45 }
 0x58f   : > { %1061 = vst.msk [vmem:[#allocation4] sm:$0xff] %vm1060_vm11, %v1058_v62  ;;  %v1480_v8 = vpop.eup %1479 }
 0x590   : > { %v1055_v63 = vpop.permute.xlu1 %1054  ;;  %v1482_v14 = vpop.eup %1481 }
 0x591   : > { %v1484_v15 = vpop.eup %1483 }
 0x592   : > { %v989_v2 = vld [vmem:[#allocation4 + $0x8] sm:$0xff] }
 0x593   : > { %v1001_v3 = vmul.f32 %v998_v59, %v989_v2 }
 0x594   : > { %v1140_v4 = vpop.permute.xlu1 %1139 }
 0x595   : > { %v1059_v5 = vadd.f32 %v1055_v63, %v1001_v3  ;;  %1485 = vrcp.f32 %v1140_v4 }
 0x596   : > { %1487 = vrcp.f32 %v1120_v37  ;;  %v1068_v56 = vld [vmem:[#allocation4] sm:$0xff] }
 0x597   : > { %v1083_v61 = vmul.f32 %v1474_v53, %v1068_v56  ;;  %v1103_v1 = vmul.f32 %v1476_v18, %v1068_v56  ;;  %1062 = vst.msk [vmem:[#allocation4 + $0x8] sm:$0xff] %vm1060_vm11, %v1059_v5  ;;  %v1123_v11 = vmul.f32 %v1478_v7, %v1068_v56  ;;  %v1143_v12 = vmul.f32 %v1480_v8, %v1068_v56 }
 0x599   : > { %1086 = vst.msk [vmem:[%s345_s14] sm:$0xff] %vm376_vm1, %v1083_v61 }
 0x59a   : > { %1106 = vst.msk [vmem:[%s345_s14] sm:$0xff] %vm710_vm9, %v1103_v1 }
 0x59b   : > { %1126 = vst.msk [vmem:[%s345_s14] sm:$0xff] %vm885_vm10, %v1123_v11 }
 0x59c   : > { %1146 = vst.msk [vmem:[%s345_s14] sm:$0xff] %vm1060_vm11, %v1143_v12 }
 0x59e   : > { %v1069_v16 = vld [vmem:[#allocation4 + $0x8] sm:$0xff] }
 0x59f   : > { %v1486_v9 = vpop.eup %1485  ;;  %v1085_v17 = vmul.f32 %v1482_v14, %v1069_v16  ;;  %v1105_v20 = vmul.f32 %v1484_v15, %v1069_v16 }
 0x5a0   : > { %v1488_v24 = vpop.eup %1487  ;;  %v1145_v27 = vmul.f32 %v1486_v9, %v1069_v16 }
 0x5a1   : > { %1087 = vst.msk [vmem:[%s345_s14 + $0x8] sm:$0xff] %vm376_vm1, %v1085_v17  ;;  %v1125_v6 = vmul.f32 %v1488_v24, %v1069_v16 }
 0x5a2   : > { %1107 = vst.msk [vmem:[%s345_s14 + $0x8] sm:$0xff] %vm710_vm9, %v1105_v20 }
 0x5a3   : > { %1127 = vst.msk [vmem:[%s345_s14 + $0x8] sm:$0xff] %vm885_vm10, %v1125_v6 }
 0x5a4   : > { %1147 = vst.msk [vmem:[%s345_s14 + $0x8] sm:$0xff] %vm1060_vm11, %v1145_v27 }
 0x5a5 PF: > { %s14_s17 = sadd.s32 1, %s1511_s17   ;;  %s1878_s15 = smov %s1507_s16 }
 0x5a6   : > { %p11_p5 = scmp.ge.s32.totalorder %s14_s17, 4   ;;  %s1879_s16 = smov %s1881_s18 }
 0x5a8   :  { %13 = sbr.rel (!%p11_p5) target bundleno = 2 (0x2), region = 83 }

// kernel: optformer_encoder_layer.32
= control target key start
LH: loop header
LB: loop body
LE: loop exit
PB: predicated region body
PF: predicated region fallthrough
CT: control target
= control target key end

     0   :  { %vm19_vm0 = vcmask 523264   ;;  %v120_v0 = vmov 0.0   ;;  %vm121_vm1 = vmmov 0   ;;  %vm33_vm2 = vcmask 261120   ;;  %s175_s1 = inlined_call_operand.vmem [shape: f32[32,64], index: 1, kind: input, shape index: {}]   ;;  %s176_s0 = inlined_call_operand.vmem [shape: f32[16,32], index: 0, kind: input, shape index: {}]   ;;  %s177_s2 = inlined_call_operand.vmem [shape: f32[1,64], index: 2, kind: input, shape index: {}]   ;;  %s178_s3 = inlined_call_operand.vmem [shape: f32[16,64], index: 3, kind: output, shape index: {}]  }
   0x1   :  { %110 = vmatprep.subr.bf16.mxu0 %v120_v0  ;;  %v27_v1 = vld [vmem:[%s175_s1] sm:$0xff]  ;;  %v28_v2 = vld [vmem:[%s175_s1 + $0x8] sm:$0xff]  ;;  %v29_v3 = vld [vmem:[%s175_s1 + $0x10] sm:$0xff]  ;;  %114 = vmatprep.mubr.msk.bf16.mxu0 %vm121_vm1, %v120_v0  ;;  %20 = vst.msk [vmem:[#allocation2] sm:$0xff] %vm19_vm0, %v120_v0 }
   0x2   :  { %21 = vst.msk [vmem:[#allocation2 + $0x8] sm:$0xff] %vm19_vm0, %v120_v0  ;;  %v31_v4 = vpack.c.bf16 %v28_v2, %v27_v1  ;;  %v30_v5 = vld [vmem:[%s175_s1 + $0x18] sm:$0xff]  ;;  %v24_v7 = vld [vmem:[%s176_s0] sm:$0xff]  ;;  %v25_v8 = vld [vmem:[%s176_s0 + $0x8] sm:$0xff] }
   0x3   :  { %v32_v6 = vpack.c.bf16 %v30_v5, %v29_v3  ;;  %v26_v9 = vpack.c.bf16 %v25_v8, %v24_v7  ;;  %v106_v18 = vld [vmem:[%s177_s2] ss:$0 sm:$0xff] }
   0x4   :  { %111 = vmatpush3.bf16.msra.mxu0 %v31_v4 }
   0x5   :  { %112 = vmatprep.subr.bf16.mxu0 %v120_v0 }
   0x8   :  { %113 = vmatpush3.bf16.msra.mxu0 %v32_v6  ;;  %v22_v10 = vld [vmem:[#allocation2] sm:$0xff] }
   0x9   :  { %v23_v12 = vld [vmem:[#allocation2 + $0x8] sm:$0xff] }
   0xb   :  { %115 = vmatmul.mubr.msk.bf16.vlgmr.msra.gmra.mrb[0].mxu0 %vm33_vm2, %v26_v9 }
  0xde   :  { %v71_v11 = vpop.f32.mrb[0].mxu0 }
  0xdf   :  { %v78_v13 = vadd.f32 %v71_v11, %v22_v10  ;;  %v116_v14 = vpop.f32.mrb[1].mxu0 }
  0xe0   :  { %v74_v15 = vpop.f32.mrb[2].mxu0 }
  0xe1   :  { %81 = vst.msk [vmem:[#allocation2] sm:$0xff] %vm19_vm0, %v78_v13  ;;  %v79_v16 = vadd.f32 %v74_v15, %v23_v12  ;;  %v117_v17 = vpop.f32.mrb[3].mxu0 }
  0xe3   :  { %82 = vst.msk [vmem:[#allocation2 + $0x8] sm:$0xff] %vm19_vm0, %v79_v16 }
  0xe8   :  { %v86_v19 = vld [vmem:[#allocation2] sm:$0xff] }
  0xe9   :  { %v95_v20 = vadd.f32 %v106_v18, %v86_v19 }
  0xea   :  { %v87_v21 = vld [vmem:[#allocation2 + $0x8] sm:$0xff] }
  0xeb   :  { %v97_v22 = vmax.f32 %v95_v20, 0.0  ;;  %v96_v23 = vadd.f32 %v106_v18, %v87_v21 }
  0xed   :  { %99 = vst.msk [vmem:[%s178_s3] sm:$0xff] %vm19_vm0, %v97_v22  ;;  %v98_v24 = vmax.f32 %v96_v23, 0.0 }
  0xef   :  { %100 = vst.msk [vmem:[%s178_s3 + $0x8] sm:$0xff] %vm19_vm0, %v98_v24 }

// kernel: optformer_encoder_layer.26
= control target key start
LH: loop header
LB: loop body
LE: loop exit
PB: predicated region body
PF: predicated region fallthrough
CT: control target
= control target key end

     0   :  { %s1290_s15 = smov 0   ;;  %s1292_s16 = smov 0   ;;  %s1489_s0 = inlined_call_operand.vmem [shape: f32[2,8,32], index: 0, kind: input, shape index: {}]   ;;  %s1490_s1 = inlined_call_operand.vmem [shape: f32[2,2,16,32], index: 1, kind: input, shape index: {}, may-alias: {1,2}]   ;;  %s1491_s2 = inlined_call_operand.vmem [shape: f32[2,2,16,32], index: 2, kind: input, shape index: {}, may-alias: {1,2}]   ;;  %s1492_s3 = inlined_call_operand.vmem [shape: f32[2,1,16], index: 3, kind: input, shape index: {}]   ;;  %s1493_s4 = inlined_call_operand.vmem [shape: f32[2,8,32], index: 4, kind: output, shape index: {}]  }
   0x1   :  { %s1294_s17 = smov 0  }
   0x2 LB: > { %s33_s18 = sadd.s32 1, %s1246_s16  ;;  %p1068_p0 = scmp.ge.s32.totalorder %s1250_s17, 1  ;;  %s1250_s17 = sphi %s1294_s17, %s14_s17   ;;  %s1246_s16 = sphi %s1292_s16, %s1495_s16   ;;  %s1242_s15 = sphi %s1290_s15, %s1494_s15  }
   0x3   : > { %p35_p1 = scmp.ge.s32.totalorder %s33_s18, 2  ;;  %p235_p2 = scmp.lt.s32.totalorder %s1250_s17, 3 }
   0x5   : > { %s1497_s18 = smov (%p35_p1, %s33_s18), 0  ;;  %p236_p3 = pnand %p1068_p0, %p235_p2 }
   0x6   : > { %p290_p4 = scmp.lt.s32.totalorder (!%p236_p3), %s1242_s15, 1  ;;  %v1252_v0 = vmov (!%p236_p3), 0.0   ;;  %vm1253_vm0 = vmmov (!%p236_p3), 0   ;;  %vm356_vm1 = vcmask (!%p236_p3), 64512   ;;  %vm336_vm2 = vcmask (!%p236_p3), 31744   ;;  %s1256_s30 = smov (!%p236_p3), 120  }
   0x7   : > { %239 = sbr.rel (%p236_p3) target bundleno = 1424 (0x590), region = 36  ;;  %1106 = vmatprep.subr.bf16.mxu0 (!%p236_p3), %v1252_v0  ;;  %1108 = vmatprep.mubr.msk.bf16.mxu0 (!%p236_p3), %vm1253_vm0, %v1252_v0  ;;  %v1254_v7 = vmov (!%p236_p3), -inf   ;;  %338 = vst.msk [vmem:[#allocation3] sm:$0xff] (!%p236_p3), %vm336_vm2, %v1252_v0  ;;  %vm404_vm3 = vcmask (!%p236_p3), 130048   ;;  %v1255_v15 = vmov (!%p236_p3), 0   ;;  %s1257_s5 = smov (!%p236_p3), 112  }
   0x8   : > { %1112 = vmatprep.subr.bf16.mxu1 (!%p236_p3), %v1252_v0  ;;  %1114 = vmatprep.mubr.msk.bf16.mxu1 (!%p236_p3), %vm1253_vm0, %v1252_v0  ;;  %337 = vst.msk [vmem:[#allocation2] sm:$0xff] (!%p236_p3), %vm336_vm2, %v1254_v7  ;;  %s1258_s6 = smov (!%p236_p3), 104   ;;  %vm426_vm4 = vcmask (!%p236_p3), 7168   ;;  %v1259_v59 = vmov (!%p236_p3), 1   ;;  %v1260_v60 = vmov (!%p236_p3), 2   ;;  %vm556_vm5 = vcmask (!%p236_p3), 15368  }
   0x9   : > { %1191 = vset.pattern.permute.xlu0 (!%p236_p3), %v1255_v15  ;;  %1192 = vset.pattern.permute.xlu1 (!%p236_p3), %v1259_v59  ;;  %vm339_vm6 = vcmask (!%p236_p3), 261120   ;;  %vm693_vm7 = vcmask (!%p236_p3), 23568   ;;  %vm829_vm8 = vcmask (!%p236_p3), 31768   ;;  %s1262_s10 = smov (!%p236_p3), 8   ;;  %s1263_s11 = smov (!%p236_p3), 16   ;;  %vm618_vm9 = vcmask (!%p236_p3), 130112  }
   0xa   : > { %340 = vst.msk [vmem:[#allocation4] sm:$0xff] (!%p236_p3), %vm339_vm6, %v1252_v0  ;;  %s1264_s12 = smov (!%p236_p3), 24   ;;  %vm754_vm10 = vcmask (!%p236_p3), 195712   ;;  %vm890_vm11 = vcmask (!%p236_p3), 261312  }
   0xe   : > { %s1499_s15 = smov (!%p290_p4, %s1242_s15), 1 }
   0xf   : > { %s1088_s19 = sshll.u32 %s1499_s15, 4  ;;  %s1069_s20 = sshll.u32 %s1499_s15, 3  ;;  %v1349_v16 = vld [vmem:[#allocation2] sm:$0xff] }
  0x10   : > { %s305_s23 = scalar_lea.vmem %s1490_s1, %s1088_s19  ;;  %s296_s26 = scalar_lea.vmem %s1489_s0, %s1069_s20 }
  0x11   : > { %v343_v1 = vld [vmem:[%s305_s23] sm:$0xff]  ;;  %v344_v2 = vld [vmem:[%s305_s23 + $0x8] sm:$0xff]  ;;  %s323_s29 = scalar_lea.vmem %s1492_s3, %s1499_s15  ;;  %s1002_s9 = scalar_lea.vmem %s1491_s2, %s1088_s19 }
  0x12   : > { %v345_v3 = vpack.c.bf16 %v344_v2, %v343_v1  ;;  %v341_v5 = vld [vmem:[%s296_s26] sm:$0xff]  ;;  %v1076_v21 = vld [vmem:[%s1002_s9 + $0x28] sm:$0xff]  ;;  %s330_s19 = scalar_lea.vmem %s1493_s4, %s1069_s20 }
  0x13   : > { %v342_v6 = vpack.c.bf16 %v341_v5, %v341_v5  ;;  %v1338_v8 = vld [vmem:[%s323_s29] ss:$0 sm:$0xff] }
  0x14   : > { %v361_v4 = vsel %vm356_vm1, %v345_v3, 0  ;;  %486 = vrot.lane.b32.xlu1 %v345_v3, %s1256_s30  ;;  %v1075_v20 = vld [vmem:[%s1002_s9 + $0x20] sm:$0xff] }
  0x15   : > { %1107 = vmatpush3.bf16.xpose.msra.mxu0 %v361_v4  ;;  %v1364_v22 = vpack.c.bf16 %v1076_v21, %v1075_v20 }
  0x16   : > { %1124 = vmatprep.subr.bf16.mxu0 %v1252_v0 }
  0x17   : > { %1113 = vmatpush3.bf16.msra.mxu1 %v1364_v22 }
  0x18   : > { %483 = vrot.lane.b32.xlu1 %v342_v6, %s1256_s30  ;;  %1118 = vmatprep.subr.bf16.mxu1 %v1252_v0 }
  0x1c   : > { %1109 = vmatmul.mubr.msk.bf16.vlgmr.msra.gmra.mrb[0].mxu0 %vm356_vm1, %v342_v6  ;;  %623 = vrot.lane.b32.xlu1 %v345_v3, %s1257_s5 }
  0x1d   : > { %1126 = vmatprep.mubr.msk.bf16.mxu0 %vm1253_vm0, %v1252_v0 }
  0x20   : > { %621 = vrot.lane.b32.xlu1 %v342_v6, %s1257_s5 }
  0x24   : > { %759 = vrot.lane.b32.xlu1 %v345_v3, %s1258_s6  ;;  %v1261_v3 = vmov 3  }
  0x28   : > { %757 = vrot.lane.b32.xlu1 %v342_v6, %s1258_s6 }
  0x86   : > { %v487_v26 = vpop.permute.xlu1 %486 }
  0x87   : > { %v492_v29 = vsel %vm356_vm1, %v487_v26, 0 }
  0x8a   : > { %v484_v27 = vpop.permute.xlu1 %483 }
  0x8e   : > { %v624_v31 = vpop.permute.xlu1 %623 }
  0x8f   : > { %v629_v33 = vsel %vm356_vm1, %v624_v31, 0 }
  0x92   : > { %v622_v32 = vpop.permute.xlu1 %621 }
  0x96   : > { %v760_v34 = vpop.permute.xlu1 %759 }
  0x97   : > { %v765_v35 = vsel %vm356_vm1, %v760_v34, 0 }
  0x9a   : > { %v758_v36 = vpop.permute.xlu1 %757 }
  0xef   : > { %v397_v9 = vpop.f32.mrb[0].mxu0 }
  0xf0   : > { %v398_v10 = vadd.f32 %v1338_v8, %v397_v9  ;;  %v1110_v11 = vpop.f32.mrb[1].mxu0 }
  0xf1   : > { %v400_v12 = vpop.f32.mrb[2].mxu0 }
  0xf2   : > { %v1111_v13 = vpop.f32.mrb[3].mxu0  ;;  %v405_v14 = vsel %vm404_vm3, %v398_v10, -inf }
  0xf3   : > { %406 = vmax.xlane.f32.xlu0 %v405_v14 }
 0x180   : > { %v407_v17 = vpop.xlane.xlu0 %406 }
 0x181   : > { %v1352_v18 = vmax.f32 %v1349_v16, %v407_v17 }
 0x183   : > { %v409_v19 = vsub.f32 %v1349_v16, %v1352_v18  ;;  %481 = vst.msk [vmem:[#allocation2] sm:$0xff] %vm426_vm4, %v1352_v18  ;;  %414 = vperm.xlu0 %1191, %v1352_v18  }
 0x185   : > { %v410_v1 = vmul.f32 1.442695, %v409_v19 }
 0x187   : > { %1193 = vset.pattern.permute.xlu0 %v1260_v60 }
 0x18a   : > { %v534_v62 = vld [vmem:[#allocation2] sm:$0xff] }
 0x202   : > { %v415_v23 = vpop.permute.xlu0 %414 }
 0x203   : > { %v417_v24 = vsub.f32 %v398_v10, %v415_v23 }
 0x205   : > { %v418_v25 = vmul.f32 1.442695, %v417_v24  ;;  %v428_v24 = vld [vmem:[#allocation4] sm:$0xff] }
 0x207   : > { %1204 = vpow2.f32 %v418_v25 }
 0x208   : > { %1206 = vpow2.f32 %v410_v1 }
 0x211   : > { %v1368_v28 = vpop.eup %1204 }
 0x212   : > { %v435_v30 = vpack.c.bf16 %v1368_v28, %v1368_v28  ;;  %v422_v13 = vsel %vm404_vm3, %v1368_v28, 0.0 }
 0x214   : > { %1115 = vmatmul.mubr.msk.bf16.vlgmr.msra.gmra.mrb[0].mxu1 %vm404_vm3, %v435_v30 }
 0x215   : > { %1119 = vmatpush3.bf16.xpose.msra.mxu1 %v492_v29  ;;  %1120 = vmatprep.mubr.msk.bf16.mxu1 %vm1253_vm0, %v1252_v0 }
 0x216   : > { %1130 = vmatprep.subr.bf16.mxu1 %v1252_v0 }
 0x21c   : > { %1121 = vmatmul.mubr.msk.bf16.vlgmr.msra.gmra.mrb[4].mxu1 %vm356_vm1, %v484_v27 }
 0x21d   : > { %1131 = vmatpush3.bf16.xpose.msra.mxu1 %v629_v33  ;;  %1132 = vmatprep.mubr.msk.bf16.mxu1 %vm1253_vm0, %v1252_v0 }
 0x21e   : > { %1142 = vmatprep.subr.bf16.mxu1 %v1252_v0 }
 0x224   : > { %1133 = vmatmul.mubr.msk.bf16.vlgmr.msra.gmra.mrb[8].mxu1 %vm356_vm1, %v622_v32 }
 0x225   : > { %1143 = vmatpush3.bf16.xpose.msra.mxu1 %v765_v35  ;;  %1144 = vmatprep.mubr.msk.bf16.mxu1 %vm1253_vm0, %v1252_v0 }
 0x22c   : > { %1145 = vmatmul.mubr.msk.bf16.vlgmr.msra.gmra.mrb[12].mxu1 %vm356_vm1, %v758_v36 }
 0x2e7   : > { %v1387_v37 = vpop.f32.mrb[0].mxu1 }
 0x2e8   : > { %v1116_v38 = vpop.f32.mrb[1].mxu1 }
 0x2e9   : > { %v476_v39 = vpop.f32.mrb[2].mxu1 }
 0x2ea   : > { %v1117_v40 = vpop.f32.mrb[3].mxu1 }
 0x2ef   : > { %v528_v41 = vpop.f32.mrb[4].mxu1 }
 0x2f0   : > { %v1390_v42 = vadd.f32 %v1338_v8, %v528_v41  ;;  %v1122_v43 = vpop.f32.mrb[5].mxu1 }
 0x2f1   : > { %v531_v44 = vpop.f32.mrb[6].mxu1 }
 0x2f2   : > { %v1123_v45 = vpop.f32.mrb[7].mxu1  ;;  %v535_v46 = vsel %vm404_vm3, %v1390_v42, -inf  ;;  %v420_v44 = vld [vmem:[#allocation3] sm:$0xff] }
 0x2f3   : > { %536 = vmax.xlane.f32.xlu1 %v535_v46 }
 0x2f7   : > { %v665_v47 = vpop.f32.mrb[8].mxu1 }
 0x2f8   : > { %v1395_v48 = vadd.f32 %v1338_v8, %v665_v47  ;;  %v1134_v49 = vpop.f32.mrb[9].mxu1 }
 0x2f9   : > { %v668_v50 = vpop.f32.mrb[10].mxu1 }
 0x2fa   : > { %v1135_v51 = vpop.f32.mrb[11].mxu1  ;;  %v672_v52 = vsel %vm404_vm3, %v1395_v48, -inf }
 0x2fb   : > { %673 = vmax.xlane.f32.xlu0 %v672_v52 }
 0x2ff   : > { %v801_v53 = vpop.f32.mrb[12].mxu1 }
 0x300   : > { %v1400_v54 = vadd.f32 %v1338_v8, %v801_v53  ;;  %v1146_v55 = vpop.f32.mrb[13].mxu1  ;;  %v1415_v8 = vpop.eup %1206 }
 0x301   : > { %v804_v56 = vpop.f32.mrb[14].mxu1  ;;  %v421_v45 = vmul.f32 %v1415_v8, %v420_v44 }
 0x302   : > { %v1147_v57 = vpop.f32.mrb[15].mxu1  ;;  %v808_v58 = vsel %vm404_vm3, %v1400_v54, -inf }
 0x303   : > { %809 = vmax.xlane.f32.xlu1 %v808_v58 }
 0x380   : > { %v537_v61 = vpop.xlane.xlu1 %536 }
 0x381   : > { %v538_v63 = vmax.f32 %v534_v62, %v537_v61 }
 0x383   : > { %v539_v2 = vsub.f32 %v534_v62, %v538_v63  ;;  %620 = vst.msk [vmem:[#allocation2] sm:$0xff] %vm556_vm5, %v538_v63  ;;  %544 = vperm.xlu1 %1192, %v538_v63  }
 0x385   : > { %v540_v14 = vmul.f32 1.442695, %v539_v2 }
 0x387   : > { %567 = vrot.lane.b32.xlu1 %v1364_v22, %s1256_s30  ;;  %1208 = vpow2.f32 %v540_v14 }
 0x388   : > { %1194 = vset.pattern.permute.xlu1 %v1261_v3  ;;  %v674_v4 = vpop.xlane.xlu0 %673 }
 0x38a   : > { %v671_v5 = vld [vmem:[#allocation2] sm:$0xff] }
 0x38b   : > { %v675_v6 = vmax.f32 %v671_v5, %v674_v4 }
 0x38d   : > { %v676_v7 = vsub.f32 %v671_v5, %v675_v6  ;;  %756 = vst.msk [vmem:[#allocation2] sm:$0xff] %vm693_vm7, %v675_v6  ;;  %681 = vperm.xlu0 %1193, %v675_v6  }
 0x38f   : > { %v677_v39 = vmul.f32 1.442695, %v676_v7 }
 0x390   : > { %v810_v9 = vpop.xlane.xlu1 %809 }
 0x391   : > { %1195 = vset.pattern.permute.xlu0 %v1255_v15  ;;  %v1209_v16 = vpop.eup %1208 }
 0x392   : > { %431 = vperm.xlu0 %1195, %v1415_v8  }
 0x394   : > { %v1419_v10 = vld [vmem:[#allocation2] sm:$0xff] }
 0x395   : > { %v1422_v11 = vmax.f32 %v1419_v10, %v810_v9 }
 0x396   : > { %1198 = vset.pattern.permute.xlu0 %v1261_v3 }
 0x397   : > { %v812_v12 = vsub.f32 %v1419_v10, %v1422_v11  ;;  %892 = vst.msk [vmem:[#allocation2] sm:$0xff] %vm829_vm8, %v1422_v11  ;;  %817 = vperm.xlu1 %1194, %v1422_v11  }
 0x399   : > { %v813_v51 = vmul.f32 1.442695, %v812_v12 }
 0x39b   : > { %703 = vrot.lane.b32.xlu1 %v1364_v22, %s1257_s5 }
 0x39c   : > { %1196 = vset.pattern.permute.xlu1 %v1259_v59 }
 0x39f   : > { %839 = vrot.lane.b32.xlu1 %v1364_v22, %s1258_s6 }
 0x3c3   : > { %423 = vadd.xlane.f32.xlu1 %v422_v13 }
 0x3d4   : > { %561 = vperm.xlu1 %1196, %v1209_v16  }
 0x3d8   : > { %1197 = vset.pattern.permute.xlu1 %v1260_v60 }
 0x402   : > { %v545_v17 = vpop.permute.xlu1 %544 }
 0x403   : > { %v547_v18 = vsub.f32 %v1390_v42, %v545_v17 }
 0x405   : > { %v548_v19 = vmul.f32 1.442695, %v547_v18 }
 0x406   : > { %v568_v20 = vpop.permute.xlu1 %567 }
 0x407   : > { %1210 = vpow2.f32 %v548_v19  ;;  %1125 = vmatpush3.bf16.msra.mxu0 %v568_v20 }
 0x408   : > { %1136 = vmatprep.subr.bf16.mxu0 %v1252_v0 }
 0x40c   : > { %v682_v21 = vpop.permute.xlu0 %681 }
 0x40d   : > { %v684_v22 = vsub.f32 %v1395_v48, %v682_v21 }
 0x40f   : > { %v685_v23 = vmul.f32 1.442695, %v684_v22 }
 0x411   : > { %v1211_v25 = vpop.eup %1210  ;;  %1212 = vpow2.f32 %v685_v23  ;;  %v432_v26 = vpop.permute.xlu0 %431 }
 0x412   : > { %v434_v27 = vmul.f32 %v432_v26, %v428_v24  ;;  %v552_v28 = vsel %vm404_vm3, %v1211_v25, 0.0  ;;  %v565_v29 = vpack.c.bf16 %v1211_v25, %v1211_v25 }
 0x413   : > { %553 = vadd.xlane.f32.xlu0 %v552_v28 }
 0x414   : > { %v479_v30 = vadd.f32 %v1387_v37, %v434_v27  ;;  %1127 = vmatmul.mubr.msk.bf16.vlgmr.msra.gmra.mrb[4].mxu0 %vm404_vm3, %v565_v29 }
 0x415   : > { %1138 = vmatprep.mubr.msk.bf16.mxu0 %vm1253_vm0, %v1252_v0 }
 0x416   : > { %480 = vst.msk [vmem:[#allocation4] sm:$0xff] %vm356_vm1, %v479_v30  ;;  %v818_v31 = vpop.permute.xlu1 %817 }
 0x417   : > { %v820_v32 = vsub.f32 %v1400_v54, %v818_v31 }
 0x419   : > { %v821_v33 = vmul.f32 1.442695, %v820_v32 }
 0x41a   : > { %v704_v34 = vpop.permute.xlu1 %703 }
 0x41b   : > { %v1213_v35 = vpop.eup %1212  ;;  %1214 = vpow2.f32 %v821_v33  ;;  %1137 = vmatpush3.bf16.msra.mxu0 %v704_v34 }
 0x41c   : > { %v689_v36 = vsel %vm404_vm3, %v1213_v35, 0.0  ;;  %v702_v38 = vpack.c.bf16 %v1213_v35, %v1213_v35  ;;  %1148 = vmatprep.subr.bf16.mxu0 %v1252_v0  ;;  %1216 = vpow2.f32 %v677_v39 }
 0x41d   : > { %690 = vadd.xlane.f32.xlu1 %v689_v36  ;;  %1218 = vpow2.f32 %v813_v51  ;;  %v558_v13 = vld [vmem:[#allocation4] sm:$0xff] }
 0x41e   : > { %1139 = vmatmul.mubr.msk.bf16.vlgmr.msra.gmra.mrb[8].mxu0 %vm404_vm3, %v702_v38  ;;  %v840_v37 = vpop.permute.xlu1 %839 }
 0x41f   : > { %1149 = vmatpush3.bf16.msra.mxu0 %v840_v37  ;;  %1150 = vmatprep.mubr.msk.bf16.mxu0 %vm1253_vm0, %v1252_v0 }
 0x425   : > { %v1215_v40 = vpop.eup %1214 }
 0x426   : > { %v825_v41 = vsel %vm404_vm3, %v1215_v40, 0.0  ;;  %v838_v42 = vpack.c.bf16 %v1215_v40, %v1215_v40  ;;  %v1217_v43 = vpop.eup %1216 }
 0x427   : > { %826 = vadd.xlane.f32.xlu0 %v825_v41  ;;  %v1219_v56 = vpop.eup %1218 }
 0x428   : > { %1151 = vmatmul.mubr.msk.bf16.vlgmr.msra.gmra.mrb[12].mxu0 %vm404_vm3, %v838_v42 }
 0x42e   : > { %698 = vperm.xlu1 %1197, %v1217_v43  }
 0x432   : > { %1199 = vset.pattern.permute.xlu1 %v1255_v15 }
 0x450   : > { %v424_v46 = vpop.xlane.xlu1 %423 }
 0x451   : > { %v425_v47 = vadd.f32 %v424_v46, %v421_v45 }
 0x453   : > { %427 = vst.msk [vmem:[#allocation3] sm:$0xff] %vm426_vm4, %v425_v47 }
 0x454   : > { %v562_v52 = vpop.permute.xlu1 %561 }
 0x455   : > { %v564_v14 = vmul.f32 %v562_v52, %v558_v13 }
 0x45a   : > { %v550_v0 = vld [vmem:[#allocation3] sm:$0xff] }
 0x45b   : > { %v551_v48 = vmul.f32 %v1209_v16, %v550_v0 }
 0x4a0   : > { %v554_v49 = vpop.xlane.xlu0 %553 }
 0x4a1   : > { %v555_v50 = vadd.f32 %v554_v49, %v551_v48 }
 0x4a3   : > { %557 = vst.msk [vmem:[#allocation3] sm:$0xff] %vm556_vm5, %v555_v50 }
 0x4aa   : > { %v687_v53 = vld [vmem:[#allocation3] sm:$0xff]  ;;  %v691_v54 = vpop.xlane.xlu1 %690 }
 0x4ab   : > { %v688_v15 = vmul.f32 %v1217_v43, %v687_v53 }
 0x4ad   : > { %v692_v55 = vadd.f32 %v691_v54, %v688_v15 }
 0x4ae   : > { %v699_v19 = vpop.permute.xlu1 %698 }
 0x4af   : > { %694 = vst.msk [vmem:[#allocation3] sm:$0xff] %vm693_vm7, %v692_v55 }
 0x4b4   : > { %v827_v61 = vpop.xlane.xlu0 %826 }
 0x4b6   : > { %v823_v57 = vld [vmem:[#allocation3] sm:$0xff] }
 0x4b7   : > { %v824_v58 = vmul.f32 %v1219_v56, %v823_v57 }
 0x4b9   : > { %v828_v62 = vadd.f32 %v827_v61, %v824_v58 }
 0x4bb   : > { %830 = vst.msk [vmem:[#allocation3] sm:$0xff] %vm829_vm8, %v828_v62 }
 0x4c2   : > { %v897_v63 = vld [vmem:[#allocation3] sm:$0xff] }
 0x4c3   : > { %900 = vperm.xlu1 %1199, %v897_v63  }
 0x4c7   : > { %1201 = vset.pattern.permute.xlu1 %v1260_v60 }
 0x4c8   : > { %920 = vperm.xlu1 %1201, %v897_v63  }
 0x4cc   : > { %1202 = vset.pattern.permute.xlu1 %v1261_v3 }
 0x4cd   : > { %930 = vperm.xlu1 %1202, %v897_v63  }
 0x4e7   : > { %v607_v1 = vpop.f32.mrb[4].mxu0 }
 0x4e8   : > { %614 = vrot.lane.b32.xlu0 %v607_v1, %s1262_s10  ;;  %v1128_v2 = vpop.f32.mrb[5].mxu0 }
 0x4e9   : > { %v610_v4 = vpop.f32.mrb[6].mxu0 }
 0x4ea   : > { %v1129_v5 = vpop.f32.mrb[7].mxu0 }
 0x4ec   : > { %834 = vperm.xlu0 %1198, %v1219_v56  }
 0x4f0   : > { %1200 = vset.pattern.permute.xlu0 %v1259_v59 }
 0x4f1   : > { %v743_v6 = vpop.f32.mrb[8].mxu0 }
 0x4f2   : > { %750 = vrot.lane.b32.xlu0 %v743_v6, %s1263_s11  ;;  %v1140_v7 = vpop.f32.mrb[9].mxu0 }
 0x4f3   : > { %v746_v8 = vpop.f32.mrb[10].mxu0 }
 0x4f4   : > { %v1141_v9 = vpop.f32.mrb[11].mxu0 }
 0x4fb   : > { %v879_v60 = vpop.f32.mrb[12].mxu0 }
 0x4fc   : > { %886 = vrot.lane.b32.xlu0 %v879_v60, %s1264_s12  ;;  %v1152_v10 = vpop.f32.mrb[13].mxu0 }
 0x4fd   : > { %v882_v11 = vpop.f32.mrb[14].mxu0 }
 0x4fe   : > { %v1153_v12 = vpop.f32.mrb[15].mxu0 }
 0x500   : > { %910 = vperm.xlu0 %1200, %v897_v63  }
 0x504   : > { %1203 = vset.pattern.permute.xlu0 %v1261_v3 }
 0x542   : > { %v901_v23 = vpop.permute.xlu1 %900 }
 0x543   : > { %1220 = vrcp.f32 %v901_v23 }
 0x547   : > { %v921_v24 = vpop.permute.xlu1 %920 }
 0x54c   : > { %v931_v28 = vpop.permute.xlu1 %930 }
 0x54d   : > { %v1221_v30 = vpop.eup %1220 }
 0x55a   : > { %v615_v16 = vpop.permute.xlu0 %614 }
 0x55b   : > { %v617_v59 = vadd.f32 %v615_v16, %v564_v14 }
 0x55d   : > { %619 = vst.msk [vmem:[#allocation4] sm:$0xff] %vm618_vm9, %v617_v59 }
 0x564   : > { %v695_v18 = vld [vmem:[#allocation4] sm:$0xff] }
 0x565   : > { %v701_v20 = vmul.f32 %v699_v19, %v695_v18 }
 0x56b   : > { %v835_v17 = vpop.permute.xlu0 %834 }
 0x56f   : > { %v751_v21 = vpop.permute.xlu0 %750 }
 0x570   : > { %v753_v22 = vadd.f32 %v751_v21, %v701_v20 }
 0x572   : > { %755 = vst.msk [vmem:[#allocation4] sm:$0xff] %vm754_vm10, %v753_v22 }
 0x573   : > { %v887_v26 = vpop.permute.xlu0 %886 }
 0x579   : > { %v831_v3 = vld [vmem:[#allocation4] sm:$0xff] }
 0x57a   : > { %v837_v25 = vmul.f32 %v835_v17, %v831_v3 }
 0x57c   : > { %v889_v27 = vadd.f32 %v887_v26, %v837_v25 }
 0x57e   : > { %891 = vst.msk [vmem:[#allocation4] sm:$0xff] %vm890_vm11, %v889_v27 }
 0x57f   : > { %v911_v29 = vpop.permute.xlu0 %910 }
 0x580   : > { %1222 = vrcp.f32 %v911_v29 }
 0x581   : > { %1224 = vrcp.f32 %v921_v24 }
 0x582   : > { %1226 = vrcp.f32 %v931_v28 }
 0x585   : > { %v896_v31 = vld [vmem:[#allocation4] sm:$0xff] }
 0x586   : > { %v904_v32 = vmul.f32 %v1221_v30, %v896_v31 }
 0x588   : > { %905 = vst.msk [vmem:[%s330_s19] sm:$0xff] %vm356_vm1, %v904_v32 }
 0x58a   : > { %v1223_v33 = vpop.eup %1222 }
 0x58b   : > { %v1225_v34 = vpop.eup %1224  ;;  %v914_v35 = vmul.f32 %v1223_v33, %v896_v31 }
 0x58c   : > { %v1227_v36 = vpop.eup %1226  ;;  %v924_v38 = vmul.f32 %v1225_v34, %v896_v31 }
 0x58d   : > { %v934_v37 = vmul.f32 %v1227_v36, %v896_v31  ;;  %915 = vst.msk [vmem:[%s330_s19] sm:$0xff] %vm618_vm9, %v914_v35 }
 0x58e   : > { %925 = vst.msk [vmem:[%s330_s19] sm:$0xff] %vm754_vm10, %v924_v38 }
 0x58f   : > { %935 = vst.msk [vmem:[%s330_s19] sm:$0xff] %vm890_vm11, %v934_v37 }
 0x590 PF: > { %s14_s17 = sadd.s32 1, %s1250_s17   ;;  %s1494_s15 = smov %s1246_s16 }
 0x591   : > { %p11_p5 = scmp.ge.s32.totalorder %s14_s17, 4   ;;  %s1495_s16 = smov %s1497_s18 }
 0x593   :  { %13 = sbr.rel (!%p11_p5) target bundleno = 2 (0x2), region = 83 }

// kernel: optformer_encoder_layer.33
= control target key start
LH: loop header
LB: loop body
LE: loop exit
PB: predicated region body
PF: predicated region fallthrough
CT: control target
= control target key end

     0   :  { %vm28_vm0 = vcmask 261120   ;;  %v194_v0 = vmov 0.0   ;;  %vm195_vm1 = vmmov 0   ;;  %vm48_vm2 = vcmask 523264   ;;  %s292_s1 = inlined_call_operand.vmem [shape: f32[64,32], index: 1, kind: input, shape index: {}]   ;;  %s293_s0 = inlined_call_operand.vmem [shape: f32[16,64], index: 0, kind: input, shape index: {}]   ;;  %s294_s2 = inlined_call_operand.vmem [shape: f32[1,32], index: 2, kind: input, shape index: {}]   ;;  %s295_s3 = inlined_call_operand.vmem [shape: f32[16,32], index: 3, kind: input, shape index: {}]   ;;  %s296_s4 = inlined_call_operand.vmem [shape: f32[1,32], index: 4, kind: input, shape index: {}]   ;;  %s297_s5 = inlined_call_operand.vmem [shape: f32[1,32], index: 5, kind: input, shape index: {}]   ;;  %s298_s6 = inlined_call_operand.vmem [shape: f32[16,32], index: 6, kind: output, shape index: {}]  }
   0x1   :  { %176 = vmatprep.subr.bf16.mxu0 %v194_v0  ;;  %v36_v1 = vld [vmem:[%s292_s1] sm:$0xff]  ;;  %v37_v2 = vld [vmem:[%s292_s1 + $0x8] sm:$0xff]  ;;  %v38_v3 = vld [vmem:[%s292_s1 + $0x10] sm:$0xff]  ;;  %184 = vmatprep.mubr.msk.bf16.mxu0 %vm195_vm1, %v194_v0  ;;  %29 = vst.msk [vmem:[#allocation2] sm:$0xff] %vm28_vm0, %v194_v0 }
   0x2   :  { %30 = vst.msk [vmem:[#allocation2 + $0x8] sm:$0xff] %vm28_vm0, %v194_v0  ;;  %v44_v4 = vpack.c.bf16 %v37_v2, %v36_v1  ;;  %v39_v5 = vld [vmem:[%s292_s1 + $0x18] sm:$0xff]  ;;  %v40_v7 = vld [vmem:[%s292_s1 + $0x20] sm:$0xff]  ;;  %v41_v8 = vld [vmem:[%s292_s1 + $0x28] sm:$0xff] }
   0x3   :  { %v45_v6 = vpack.c.bf16 %v39_v5, %v38_v3  ;;  %v46_v9 = vpack.c.bf16 %v41_v8, %v40_v7  ;;  %v42_v10 = vld [vmem:[%s292_s1 + $0x30] sm:$0xff]  ;;  %v43_v11 = vld [vmem:[%s292_s1 + $0x38] sm:$0xff]  ;;  %v33_v13 = vld [vmem:[%s293_s0] sm:$0xff] }
   0x4   :  { %177 = vmatpush3.bf16.msra.mxu0 %v44_v4  ;;  %v47_v12 = vpack.c.bf16 %v43_v11, %v42_v10  ;;  %v34_v14 = vld [vmem:[%s293_s0 + $0x8] sm:$0xff]  ;;  %v168_v24 = vld [vmem:[%s294_s2] ss:$0 sm:$0xff] }
   0x5   :  { %178 = vmatprep.subr.bf16.mxu0 %v194_v0  ;;  %v35_v15 = vpack.c.bf16 %v34_v14, %v33_v13  ;;  %v112_v26 = vld [vmem:[%s295_s3] sm:$0xff]  ;;  %v113_v29 = vld [vmem:[%s295_s3 + $0x8] sm:$0xff] }
   0x6   :  { %v169_v52 = vld [vmem:[%s296_s4] ss:$0 sm:$0xff] }
   0x7   :  { %v170_v54 = vld [vmem:[%s297_s5] ss:$0 sm:$0xff] }
   0x8   :  { %179 = vmatpush3.bf16.msra.mxu0 %v45_v6  ;;  %v31_v16 = vld [vmem:[#allocation2] sm:$0xff] }
   0x9   :  { %180 = vmatprep.subr.bf16.mxu0 %v194_v0  ;;  %v32_v18 = vld [vmem:[#allocation2 + $0x8] sm:$0xff] }
   0xc   :  { %181 = vmatpush3.bf16.msra.mxu0 %v46_v9 }
   0xd   :  { %182 = vmatprep.subr.bf16.mxu0 %v194_v0 }
  0x10   :  { %183 = vmatpush3.bf16.msra.mxu0 %v47_v12 }
  0x13   :  { %185 = vmatmul.mubr.msk.bf16.vlgmr.msra.gmra.mrb[0].mxu0 %vm48_vm2, %v35_v15 }
  0xe6   :  { %v86_v17 = vpop.f32.mrb[0].mxu0 }
  0xe7   :  { %v93_v19 = vadd.f32 %v86_v17, %v31_v16  ;;  %v186_v20 = vpop.f32.mrb[1].mxu0 }
  0xe8   :  { %v89_v21 = vpop.f32.mrb[2].mxu0 }
  0xe9   :  { %96 = vst.msk [vmem:[#allocation2] sm:$0xff] %vm28_vm0, %v93_v19  ;;  %v94_v22 = vadd.f32 %v89_v21, %v32_v18  ;;  %v187_v23 = vpop.f32.mrb[3].mxu0 }
  0xeb   :  { %97 = vst.msk [vmem:[#allocation2 + $0x8] sm:$0xff] %vm28_vm0, %v94_v22 }
  0xf0   :  { %v101_v25 = vld [vmem:[#allocation2] sm:$0xff] }
  0xf1   :  { %v110_v27 = vadd.f32 %v168_v24, %v101_v25 }
  0xf2   :  { %v102_v28 = vld [vmem:[#allocation2 + $0x8] sm:$0xff] }
  0xf3   :  { %v114_v30 = vadd.f32 %v112_v26, %v110_v27  ;;  %v111_v31 = vadd.f32 %v168_v24, %v102_v28 }
  0xf5   :  { %v116_v32 = vsel %vm28_vm0, %v114_v30, 0.0  ;;  %v115_v33 = vadd.f32 %v113_v29, %v111_v31 }
  0xf6   :  { %117 = vadd.xlane.f32.xlu0 %v116_v32 }
  0xf7   :  { %v119_v34 = vsel %vm28_vm0, %v115_v33, 0.0 }
  0xfa   :  { %120 = vadd.xlane.f32.xlu0 %v119_v34 }
 0x183   :  { %v118_v35 = vpop.xlane.xlu0 %117 }
 0x184   :  { %v123_v36 = vmul.f32 0.03125, %v118_v35 }
 0x186   :  { %v125_v37 = vsub.f32 %v114_v30, %v123_v36 }
 0x187   :  { %v121_v38 = vpop.xlane.xlu0 %120 }
 0x188   :  { %v124_v39 = vmul.f32 0.03125, %v121_v38  ;;  %v127_v40 = vmul.f32 %v125_v37, %v125_v37 }
 0x18a   :  { %v126_v41 = vsub.f32 %v115_v33, %v124_v39  ;;  %v129_v42 = vsel %vm28_vm0, %v127_v40, 0.0 }
 0x18b   :  { %130 = vadd.xlane.f32.xlu1 %v129_v42 }
 0x18c   :  { %v128_v43 = vmul.f32 %v126_v41, %v126_v41 }
 0x18e   :  { %v132_v44 = vsel %vm28_vm0, %v128_v43, 0.0 }
 0x18f   :  { %133 = vadd.xlane.f32.xlu1 %v132_v44 }
 0x218   :  { %v131_v45 = vpop.xlane.xlu1 %130 }
 0x219   :  { %v135_v46 = vmul.f32 0.03125, %v131_v45 }
 0x21b   :  { %v137_v47 = vadd.f32 1e-05, %v135_v46 }
 0x21c   :  { %v134_v48 = vpop.xlane.xlu1 %133 }
 0x21d   :  { %190 = vrsqrt.f32 %v137_v47  ;;  %v136_v49 = vmul.f32 0.03125, %v134_v48 }
 0x21f   :  { %v138_v50 = vadd.f32 1e-05, %v136_v49 }
 0x221   :  { %192 = vrsqrt.f32 %v138_v50 }
 0x227   :  { %v191_v51 = vpop.eup %190 }
 0x228   :  { %v141_v53 = vmul.f32 %v191_v51, %v125_v37 }
 0x22a   :  { %v150_v55 = vmul.f32 %v169_v52, %v141_v53 }
 0x22b   :  { %v193_v56 = vpop.eup %192 }
 0x22c   :  { %v159_v57 = vadd.f32 %v170_v54, %v150_v55  ;;  %v142_v58 = vmul.f32 %v193_v56, %v126_v41 }
 0x22e   :  { %161 = vst.msk [vmem:[%s298_s6] sm:$0xff] %vm28_vm0, %v159_v57  ;;  %v151_v59 = vmul.f32 %v169_v52, %v142_v58 }
 0x230   :  { %v160_v60 = vadd.f32 %v170_v54, %v151_v59 }
 0x232   :  { %162 = vst.msk [vmem:[%s298_s6 + $0x8] sm:$0xff] %vm28_vm0, %v160_v60 }

// kernel: optformer_encoder_layer.28
= control target key start
LH: loop header
LB: loop body
LE: loop exit
PB: predicated region body
PF: predicated region fallthrough
CT: control target
= control target key end

     0   :  { %vm19_vm0 = vcmask 261120   ;;  %v146_v3 = vmov 0.0   ;;  %s220_s1 = inlined_call_operand.vmem [shape: f32[32,32], index: 1, kind: input, shape index: {}]   ;;  %s221_s0 = inlined_call_operand.vmem [shape: f32[32,32], index: 0, kind: input, shape index: {}]   ;;  %s222_s2 = inlined_call_operand.vmem [shape: f32[1,32], index: 2, kind: input, shape index: {}]   ;;  %s223_s3 = inlined_call_operand.vmem [shape: f32[32,32], index: 3, kind: output, shape index: {}]  }
   0x1   :  { %v34_v0 = vld [vmem:[%s220_s1] sm:$0xff]  ;;  %v35_v1 = vld [vmem:[%s220_s1 + $0x8] sm:$0xff]  ;;  %v36_v2 = vld [vmem:[%s220_s1 + $0x10] sm:$0xff]  ;;  %22 = vst.msk [vmem:[#allocation2 + $0x10] sm:$0xff] %vm19_vm0, %v146_v3 }
   0x2   :  { %20 = vst.msk [vmem:[#allocation2] sm:$0xff] %vm19_vm0, %v146_v3  ;;  %21 = vst.msk [vmem:[#allocation2 + $0x8] sm:$0xff] %vm19_vm0, %v146_v3  ;;  %v38_v4 = vpack.c.bf16 %v35_v1, %v34_v0  ;;  %v37_v5 = vld [vmem:[%s220_s1 + $0x18] sm:$0xff]  ;;  %v28_v6 = vld [vmem:[%s221_s0] sm:$0xff] }
   0x3   :  { %23 = vst.msk [vmem:[#allocation2 + $0x18] sm:$0xff] %vm19_vm0, %v146_v3  ;;  %v29_v7 = vld [vmem:[%s221_s0 + $0x8] sm:$0xff]  ;;  %v39_v8 = vpack.c.bf16 %v37_v5, %v36_v2  ;;  %v30_v10 = vld [vmem:[%s221_s0 + $0x10] sm:$0xff]  ;;  %v31_v11 = vld [vmem:[%s221_s0 + $0x18] sm:$0xff] }
   0x4   :  { %v32_v9 = vpack.c.bf16 %v29_v7, %v28_v6  ;;  %137 = vmatprep.subr.bf16.mxu0 %v38_v4  ;;  %v33_v12 = vpack.c.bf16 %v31_v11, %v30_v10  ;;  %v132_v25 = vld [vmem:[%s222_s2] ss:$0 sm:$0xff] }
   0x5   :  { %138 = vmatpush3.bf16.msra.mxu0 %v38_v4 }
   0x6   :  { %141 = vmatprep.mubr.msk.bf16.mxu0 %vm19_vm0, %v32_v9  ;;  %139 = vmatprep.subr.bf16.mxu0 %v39_v8 }
   0x8   :  { %v26_v13 = vld [vmem:[#allocation2 + $0x10] sm:$0xff] }
   0x9   :  { %140 = vmatpush3.bf16.msra.mxu0 %v39_v8  ;;  %v24_v14 = vld [vmem:[#allocation2] sm:$0xff]  ;;  %v25_v19 = vld [vmem:[#allocation2 + $0x8] sm:$0xff] }
   0xa   :  { %v27_v16 = vld [vmem:[#allocation2 + $0x18] sm:$0xff] }
   0xc   :  { %142 = vmatmul.mubr.msk.bf16.vlgmr.msra.gmra.mrb[0].mxu0 %vm19_vm0, %v33_v12 }
  0xdf   :  { %v143_v15 = vpop.f32.mrb[0].mxu0 }
  0xe0   :  { %v98_v17 = vadd.f32 %v143_v15, %v26_v13  ;;  %v81_v18 = vpop.f32.mrb[1].mxu0 }
  0xe1   :  { %v96_v20 = vadd.f32 %v81_v18, %v24_v14  ;;  %v144_v21 = vpop.f32.mrb[2].mxu0 }
  0xe2   :  { %102 = vst.msk [vmem:[#allocation2 + $0x10] sm:$0xff] %vm19_vm0, %v98_v17  ;;  %v99_v22 = vadd.f32 %v144_v21, %v27_v16  ;;  %v84_v23 = vpop.f32.mrb[3].mxu0 }
  0xe3   :  { %100 = vst.msk [vmem:[#allocation2] sm:$0xff] %vm19_vm0, %v96_v20  ;;  %v97_v24 = vadd.f32 %v84_v23, %v25_v19 }
  0xe4   :  { %103 = vst.msk [vmem:[#allocation2 + $0x18] sm:$0xff] %vm19_vm0, %v99_v22 }
  0xe5   :  { %101 = vst.msk [vmem:[#allocation2 + $0x8] sm:$0xff] %vm19_vm0, %v97_v24 }
  0xe9   :  { %v109_v26 = vld [vmem:[#allocation2 + $0x10] sm:$0xff] }
  0xea   :  { %v120_v27 = vadd.f32 %v132_v25, %v109_v26  ;;  %v107_v28 = vld [vmem:[#allocation2] sm:$0xff] }
  0xeb   :  { %v118_v29 = vadd.f32 %v132_v25, %v107_v28  ;;  %v110_v30 = vld [vmem:[#allocation2 + $0x18] sm:$0xff] }
  0xec   :  { %124 = vst.msk [vmem:[%s223_s3 + $0x10] sm:$0xff] %vm19_vm0, %v120_v27  ;;  %v121_v31 = vadd.f32 %v132_v25, %v110_v30  ;;  %v108_v32 = vld [vmem:[#allocation2 + $0x8] sm:$0xff] }
  0xed   :  { %122 = vst.msk [vmem:[%s223_s3] sm:$0xff] %vm19_vm0, %v118_v29  ;;  %v119_v33 = vadd.f32 %v132_v25, %v108_v32 }
  0xee   :  { %125 = vst.msk [vmem:[%s223_s3 + $0x18] sm:$0xff] %vm19_vm0, %v121_v31 }
  0xef   :  { %123 = vst.msk [vmem:[%s223_s3 + $0x8] sm:$0xff] %vm19_vm0, %v119_v33 }

// kernel: optformer_encoder_layer.29
= control target key start
LH: loop header
LB: loop body
LE: loop exit
PB: predicated region body
PF: predicated region fallthrough
CT: control target
= control target key end

     0   :  { %s564_s12 = smov 0   ;;  %s566_s13 = smov 0   ;;  %s618_s0 = inlined_call_operand.vmem [shape: f32[16,32], index: 0, kind: input, shape index: {}]   ;;  %s619_s1 = inlined_call_operand.vmem [shape: f32[2,32,32], index: 1, kind: input, shape index: {}]   ;;  %s620_s2 = inlined_call_operand.vmem [shape: f32[2,1,32], index: 2, kind: input, shape index: {}]   ;;  %s621_s3 = inlined_call_operand.vmem [shape: f32[2,16,32], index: 3, kind: output, shape index: {}]  }
   0x1   :  { %s568_s14 = smov 0  }
   0x2 LB: > { %s32_s15 = sadd.s32 1, %s536_s13  ;;  %p470_p0 = scmp.ge.s32.totalorder %s540_s14, 1  ;;  %s540_s14 = sphi %s568_s14, %s13_s14   ;;  %s536_s13 = sphi %s566_s13, %s623_s13   ;;  %s532_s12 = sphi %s564_s12, %s622_s12  }
   0x3   : > { %p34_p1 = scmp.ge.s32.totalorder %s32_s15, 2  ;;  %p189_p2 = scmp.lt.s32.totalorder %s540_s14, 3 }
   0x5   : > { %s625_s15 = smov (%p34_p1, %s32_s15), 0  ;;  %p190_p3 = pnand %p470_p0, %p189_p2 }
   0x6   : > { %p242_p4 = scmp.lt.s32.totalorder (!%p190_p3), %s532_s12, 1  ;;  %vm269_vm0 = vcmask (!%p190_p3), 261120   ;;  %v542_v0 = vmov (!%p190_p3), 0.0   ;;  %vm543_vm1 = vmmov (!%p190_p3), 0   ;;  %v274_v7 = vld [vmem:[%s618_s0] sm:$0xff] (!%p190_p3)  ;;  %v275_v8 = vld [vmem:[%s618_s0 + $0x8] sm:$0xff] (!%p190_p3) }
   0x7   : > { %193 = sbr.rel (%p190_p3) target bundleno = 254 (0xfe), region = 32  ;;  %484 = vmatprep.subr.bf16.mxu0 (!%p190_p3), %v542_v0  ;;  %488 = vmatprep.mubr.msk.bf16.mxu0 (!%p190_p3), %vm543_vm1, %v542_v0  ;;  %270 = vst.msk [vmem:[#allocation2] sm:$0xff] (!%p190_p3), %vm269_vm0, %v542_v0  ;;  %271 = vst.msk [vmem:[#allocation2 + $0x8] sm:$0xff] (!%p190_p3), %vm269_vm0, %v542_v0  ;;  %v276_v9 = vpack.c.bf16 (!%p190_p3), %v275_v8, %v274_v7 }
   0xe   : > { %s627_s12 = smov (!%p242_p4, %s532_s12), 1  ;;  %v272_v10 = vld [vmem:[#allocation2] sm:$0xff]  ;;  %v273_v12 = vld [vmem:[#allocation2 + $0x8] sm:$0xff] }
   0xf   : > { %s479_s16 = sshll.u32 %s627_s12, 5  ;;  %s253_s26 = scalar_lea.vmem %s620_s2, %s627_s12 }
  0x10   : > { %s249_s19 = scalar_lea.vmem %s619_s1, %s479_s16  ;;  %s480_s27 = sshll.u32 %s627_s12, 4  ;;  %v476_v18 = vld [vmem:[%s253_s26] ss:$0 sm:$0xff] }
  0x11   : > { %v277_v1 = vld [vmem:[%s249_s19] sm:$0xff]  ;;  %v278_v2 = vld [vmem:[%s249_s19 + $0x8] sm:$0xff]  ;;  %v279_v3 = vld [vmem:[%s249_s19 + $0x10] sm:$0xff]  ;;  %s262_s30 = scalar_lea.vmem %s621_s3, %s480_s27 }
  0x12   : > { %v281_v4 = vpack.c.bf16 %v278_v2, %v277_v1  ;;  %v280_v5 = vld [vmem:[%s249_s19 + $0x18] sm:$0xff] }
  0x13   : > { %v282_v6 = vpack.c.bf16 %v280_v5, %v279_v3 }
  0x14   : > { %485 = vmatpush3.bf16.msra.mxu0 %v281_v4 }
  0x15   : > { %486 = vmatprep.subr.bf16.mxu0 %v542_v0 }
  0x18   : > { %487 = vmatpush3.bf16.msra.mxu0 %v282_v6 }
  0x1b   : > { %489 = vmatmul.mubr.msk.bf16.vlgmr.msra.gmra.mrb[0].mxu0 %vm269_vm0, %v276_v9 }
  0xee   : > { %v321_v11 = vpop.f32.mrb[0].mxu0 }
  0xef   : > { %v328_v13 = vadd.f32 %v321_v11, %v272_v10  ;;  %v490_v14 = vpop.f32.mrb[1].mxu0 }
  0xf0   : > { %v324_v15 = vpop.f32.mrb[2].mxu0 }
  0xf1   : > { %330 = vst.msk [vmem:[#allocation2] sm:$0xff] %vm269_vm0, %v328_v13  ;;  %v329_v16 = vadd.f32 %v324_v15, %v273_v12  ;;  %v491_v17 = vpop.f32.mrb[3].mxu0 }
  0xf3   : > { %331 = vst.msk [vmem:[#allocation2 + $0x8] sm:$0xff] %vm269_vm0, %v329_v16 }
  0xf8   : > { %v335_v19 = vld [vmem:[#allocation2] sm:$0xff] }
  0xf9   : > { %v344_v20 = vadd.f32 %v476_v18, %v335_v19 }
  0xfa   : > { %v336_v21 = vld [vmem:[#allocation2 + $0x8] sm:$0xff] }
  0xfb   : > { %346 = vst.msk [vmem:[%s262_s30] sm:$0xff] %vm269_vm0, %v344_v20  ;;  %v345_v22 = vadd.f32 %v476_v18, %v336_v21 }
  0xfd   : > { %347 = vst.msk [vmem:[%s262_s30 + $0x8] sm:$0xff] %vm269_vm0, %v345_v22 }
  0xfe PF: > { %s13_s14 = sadd.s32 1, %s540_s14   ;;  %s622_s12 = smov %s536_s13 }
  0xff   : > { %p10_p5 = scmp.ge.s32.totalorder %s13_s14, 4   ;;  %s623_s13 = smov %s625_s15 }
 0x101   :  { %12 = sbr.rel (!%p10_p5) target bundleno = 2 (0x2), region = 76 }

// kernel: optformer_encoder_layer.34
= control target key start
LH: loop header
LB: loop body
LE: loop exit
PB: predicated region body
PF: predicated region fallthrough
CT: control target
= control target key end

     0   :  { %vm19_vm0 = vcmask 523264   ;;  %v151_v3 = vmov 0.0   ;;  %vm40_vm1 = vcmask 261120   ;;  %s223_s1 = inlined_call_operand.vmem [shape: f32[32,64], index: 1, kind: input, shape index: {}]   ;;  %s224_s0 = inlined_call_operand.vmem [shape: f32[32,32], index: 0, kind: input, shape index: {}]   ;;  %s225_s2 = inlined_call_operand.vmem [shape: f32[1,64], index: 2, kind: input, shape index: {}]   ;;  %s226_s3 = inlined_call_operand.vmem [shape: f32[32,64], index: 3, kind: output, shape index: {}]  }
   0x1   :  { %v34_v0 = vld [vmem:[%s223_s1] sm:$0xff]  ;;  %v35_v1 = vld [vmem:[%s223_s1 + $0x8] sm:$0xff]  ;;  %v36_v2 = vld [vmem:[%s223_s1 + $0x10] sm:$0xff]  ;;  %22 = vst.msk [vmem:[#allocation2 + $0x10] sm:$0xff] %vm19_vm0, %v151_v3 }
   0x2   :  { %20 = vst.msk [vmem:[#allocation2] sm:$0xff] %vm19_vm0, %v151_v3  ;;  %21 = vst.msk [vmem:[#allocation2 + $0x8] sm:$0xff] %vm19_vm0, %v151_v3  ;;  %v38_v4 = vpack.c.bf16 %v35_v1, %v34_v0  ;;  %v37_v5 = vld [vmem:[%s223_s1 + $0x18] sm:$0xff]  ;;  %v28_v6 = vld [vmem:[%s224_s0] sm:$0xff] }
   0x3   :  { %23 = vst.msk [vmem:[#allocation2 + $0x18] sm:$0xff] %vm19_vm0, %v151_v3  ;;  %v29_v7 = vld [vmem:[%s224_s0 + $0x8] sm:$0xff]  ;;  %v39_v8 = vpack.c.bf16 %v37_v5, %v36_v2  ;;  %v30_v10 = vld [vmem:[%s224_s0 + $0x10] sm:$0xff]  ;;  %v31_v11 = vld [vmem:[%s224_s0 + $0x18] sm:$0xff] }
   0x4   :  { %v32_v9 = vpack.c.bf16 %v29_v7, %v28_v6  ;;  %142 = vmatprep.subr.bf16.mxu0 %v38_v4  ;;  %v33_v12 = vpack.c.bf16 %v31_v11, %v30_v10  ;;  %v137_v25 = vld [vmem:[%s225_s2] ss:$0 sm:$0xff] }
   0x5   :  { %143 = vmatpush3.bf16.msra.mxu0 %v38_v4 }
   0x6   :  { %146 = vmatprep.mubr.msk.bf16.mxu0 %vm40_vm1, %v32_v9  ;;  %144 = vmatprep.subr.bf16.mxu0 %v39_v8 }
   0x8   :  { %v26_v13 = vld [vmem:[#allocation2 + $0x10] sm:$0xff] }
   0x9   :  { %145 = vmatpush3.bf16.msra.mxu0 %v39_v8  ;;  %v24_v14 = vld [vmem:[#allocation2] sm:$0xff]  ;;  %v25_v19 = vld [vmem:[#allocation2 + $0x8] sm:$0xff] }
   0xa   :  { %v27_v16 = vld [vmem:[#allocation2 + $0x18] sm:$0xff] }
   0xc   :  { %147 = vmatmul.mubr.msk.bf16.vlgmr.msra.gmra.mrb[0].mxu0 %vm40_vm1, %v33_v12 }
  0xdf   :  { %v148_v15 = vpop.f32.mrb[0].mxu0 }
  0xe0   :  { %v98_v17 = vadd.f32 %v148_v15, %v26_v13  ;;  %v81_v18 = vpop.f32.mrb[1].mxu0 }
  0xe1   :  { %v96_v20 = vadd.f32 %v81_v18, %v24_v14  ;;  %v149_v21 = vpop.f32.mrb[2].mxu0 }
  0xe2   :  { %103 = vst.msk [vmem:[#allocation2 + $0x10] sm:$0xff] %vm19_vm0, %v98_v17  ;;  %v99_v22 = vadd.f32 %v149_v21, %v27_v16  ;;  %v84_v23 = vpop.f32.mrb[3].mxu0 }
  0xe3   :  { %101 = vst.msk [vmem:[#allocation2] sm:$0xff] %vm19_vm0, %v96_v20  ;;  %v97_v24 = vadd.f32 %v84_v23, %v25_v19 }
  0xe4   :  { %104 = vst.msk [vmem:[#allocation2 + $0x18] sm:$0xff] %vm19_vm0, %v99_v22 }
  0xe5   :  { %102 = vst.msk [vmem:[#allocation2 + $0x8] sm:$0xff] %vm19_vm0, %v97_v24 }
  0xe9   :  { %v110_v26 = vld [vmem:[#allocation2 + $0x10] sm:$0xff] }
  0xea   :  { %v121_v27 = vadd.f32 %v137_v25, %v110_v26  ;;  %v108_v28 = vld [vmem:[#allocation2] sm:$0xff] }
  0xeb   :  { %v119_v29 = vadd.f32 %v137_v25, %v108_v28  ;;  %v111_v30 = vld [vmem:[#allocation2 + $0x18] sm:$0xff] }
  0xec   :  { %v125_v31 = vmax.f32 %v121_v27, 0.0  ;;  %v122_v32 = vadd.f32 %v137_v25, %v111_v30  ;;  %v109_v33 = vld [vmem:[#allocation2 + $0x8] sm:$0xff] }
  0xed   :  { %v123_v34 = vmax.f32 %v119_v29, 0.0  ;;  %v120_v35 = vadd.f32 %v137_v25, %v109_v33 }
  0xee   :  { %129 = vst.msk [vmem:[%s226_s3 + $0x10] sm:$0xff] %vm19_vm0, %v125_v31  ;;  %v126_v36 = vmax.f32 %v122_v32, 0.0 }
  0xef   :  { %127 = vst.msk [vmem:[%s226_s3] sm:$0xff] %vm19_vm0, %v123_v34  ;;  %v124_v37 = vmax.f32 %v120_v35, 0.0 }
  0xf0   :  { %130 = vst.msk [vmem:[%s226_s3 + $0x18] sm:$0xff] %vm19_vm0, %v126_v36 }
  0xf1   :  { %128 = vst.msk [vmem:[%s226_s3 + $0x8] sm:$0xff] %vm19_vm0, %v124_v37 }

// kernel: optformer_encoder_layer.35
= control target key start
LH: loop header
LB: loop body
LE: loop exit
PB: predicated region body
PF: predicated region fallthrough
CT: control target
= control target key end

     0   :  { %vm28_vm0 = vcmask 261120   ;;  %v261_v3 = vmov 0.0   ;;  %vm55_vm1 = vcmask 523264   ;;  %s388_s1 = inlined_call_operand.vmem [shape: f32[64,32], index: 1, kind: input, shape index: {}]   ;;  %s389_s0 = inlined_call_operand.vmem [shape: f32[32,64], index: 0, kind: input, shape index: {}]   ;;  %s390_s2 = inlined_call_operand.vmem [shape: f32[1,32], index: 2, kind: input, shape index: {}]   ;;  %s391_s3 = inlined_call_operand.vmem [shape: f32[32,32], index: 3, kind: input, shape index: {}]   ;;  %s392_s4 = inlined_call_operand.vmem [shape: f32[1,32], index: 4, kind: input, shape index: {}]   ;;  %s393_s5 = inlined_call_operand.vmem [shape: f32[1,32], index: 5, kind: input, shape index: {}]   ;;  %s394_s6 = inlined_call_operand.vmem [shape: f32[32,32], index: 6, kind: output, shape index: {}]  }
   0x1   :  { %v43_v0 = vld [vmem:[%s388_s1] sm:$0xff]  ;;  %v44_v1 = vld [vmem:[%s388_s1 + $0x8] sm:$0xff]  ;;  %v45_v2 = vld [vmem:[%s388_s1 + $0x10] sm:$0xff]  ;;  %31 = vst.msk [vmem:[#allocation2 + $0x10] sm:$0xff] %vm28_vm0, %v261_v3 }
   0x2   :  { %29 = vst.msk [vmem:[#allocation2] sm:$0xff] %vm28_vm0, %v261_v3  ;;  %30 = vst.msk [vmem:[#allocation2 + $0x8] sm:$0xff] %vm28_vm0, %v261_v3  ;;  %v51_v4 = vpack.c.bf16 %v44_v1, %v43_v0  ;;  %v46_v5 = vld [vmem:[%s388_s1 + $0x18] sm:$0xff]  ;;  %v47_v7 = vld [vmem:[%s388_s1 + $0x20] sm:$0xff] }
   0x3   :  { %32 = vst.msk [vmem:[#allocation2 + $0x18] sm:$0xff] %vm28_vm0, %v261_v3  ;;  %v52_v6 = vpack.c.bf16 %v46_v5, %v45_v2  ;;  %v48_v8 = vld [vmem:[%s388_s1 + $0x28] sm:$0xff]  ;;  %v37_v9 = vld [vmem:[%s389_s0] sm:$0xff]  ;;  %v49_v13 = vld [vmem:[%s388_s1 + $0x30] sm:$0xff] }
   0x4   :  { %240 = vmatprep.subr.bf16.mxu0 %v51_v4  ;;  %v38_v10 = vld [vmem:[%s389_s0 + $0x8] sm:$0xff]  ;;  %v53_v12 = vpack.c.bf16 %v48_v8, %v47_v7  ;;  %v50_v14 = vld [vmem:[%s388_s1 + $0x38] sm:$0xff]  ;;  %v39_v16 = vld [vmem:[%s389_s0 + $0x10] sm:$0xff] }
   0x5   :  { %241 = vmatpush3.bf16.msra.mxu0 %v51_v4  ;;  %v41_v11 = vpack.c.bf16 %v38_v10, %v37_v9  ;;  %v54_v15 = vpack.c.bf16 %v50_v14, %v49_v13  ;;  %v40_v17 = vld [vmem:[%s389_s0 + $0x18] sm:$0xff]  ;;  %v231_v31 = vld [vmem:[%s390_s2] ss:$0 sm:$0xff]  ;;  %v140_v33 = vld [vmem:[%s391_s3 + $0x10] sm:$0xff] }
   0x6   :  { %242 = vmatprep.subr.bf16.mxu0 %v52_v6  ;;  %v42_v18 = vpack.c.bf16 %v40_v17, %v39_v16  ;;  %v138_v36 = vld [vmem:[%s391_s3] sm:$0xff]  ;;  %v141_v39 = vld [vmem:[%s391_s3 + $0x18] sm:$0xff]  ;;  %v139_v43 = vld [vmem:[%s391_s3 + $0x8] sm:$0xff] }
   0x7   :  { %248 = vmatprep.mubr.msk.bf16.mxu0 %vm55_vm1, %v41_v11 }
   0x8   :  { %v35_v19 = vld [vmem:[#allocation2 + $0x10] sm:$0xff] }
   0x9   :  { %243 = vmatpush3.bf16.msra.mxu0 %v52_v6  ;;  %v33_v20 = vld [vmem:[#allocation2] sm:$0xff]  ;;  %v34_v25 = vld [vmem:[#allocation2 + $0x8] sm:$0xff] }
   0xa   :  { %244 = vmatprep.subr.bf16.mxu0 %v53_v12  ;;  %v36_v22 = vld [vmem:[#allocation2 + $0x18] sm:$0xff] }
   0xd   :  { %245 = vmatpush3.bf16.msra.mxu0 %v53_v12 }
   0xe   :  { %246 = vmatprep.subr.bf16.mxu0 %v54_v15 }
  0x11   :  { %247 = vmatpush3.bf16.msra.mxu0 %v54_v15 }
  0x14   :  { %249 = vmatmul.mubr.msk.bf16.vlgmr.msra.gmra.mrb[0].mxu0 %vm55_vm1, %v42_v18 }
  0xe7   :  { %v250_v21 = vpop.f32.mrb[0].mxu0 }
  0xe8   :  { %v113_v23 = vadd.f32 %v250_v21, %v35_v19  ;;  %v96_v24 = vpop.f32.mrb[1].mxu0  ;;  %v232_v21 = vld [vmem:[%s392_s4] ss:$0 sm:$0xff] }
  0xe9   :  { %v111_v26 = vadd.f32 %v96_v24, %v33_v20  ;;  %v251_v27 = vpop.f32.mrb[2].mxu0 }
  0xea   :  { %118 = vst.msk [vmem:[#allocation2 + $0x10] sm:$0xff] %vm28_vm0, %v113_v23  ;;  %v114_v28 = vadd.f32 %v251_v27, %v36_v22  ;;  %v99_v29 = vpop.f32.mrb[3].mxu0  ;;  %v233_v23 = vld [vmem:[%s393_s5] ss:$0 sm:$0xff] }
  0xeb   :  { %116 = vst.msk [vmem:[#allocation2] sm:$0xff] %vm28_vm0, %v111_v26  ;;  %v112_v30 = vadd.f32 %v99_v29, %v34_v25 }
  0xec   :  { %119 = vst.msk [vmem:[#allocation2 + $0x18] sm:$0xff] %vm28_vm0, %v114_v28 }
  0xed   :  { %117 = vst.msk [vmem:[#allocation2 + $0x8] sm:$0xff] %vm28_vm0, %v112_v30 }
  0xf1   :  { %v125_v32 = vld [vmem:[#allocation2 + $0x10] sm:$0xff] }
  0xf2   :  { %v136_v34 = vadd.f32 %v231_v31, %v125_v32  ;;  %v123_v35 = vld [vmem:[#allocation2] sm:$0xff] }
  0xf3   :  { %v134_v37 = vadd.f32 %v231_v31, %v123_v35  ;;  %v126_v38 = vld [vmem:[#allocation2 + $0x18] sm:$0xff] }
  0xf4   :  { %v144_v40 = vadd.f32 %v140_v33, %v136_v34  ;;  %v137_v41 = vadd.f32 %v231_v31, %v126_v38  ;;  %v124_v42 = vld [vmem:[#allocation2 + $0x8] sm:$0xff] }
  0xf5   :  { %v142_v44 = vadd.f32 %v138_v36, %v134_v37  ;;  %v135_v45 = vadd.f32 %v231_v31, %v124_v42 }
  0xf6   :  { %v152_v46 = vsel %vm28_vm0, %v144_v40, 0.0  ;;  %v145_v47 = vadd.f32 %v141_v39, %v137_v41 }
  0xf7   :  { %153 = vadd.xlane.f32.xlu1 %v152_v46  ;;  %v146_v48 = vsel %vm28_vm0, %v142_v44, 0.0  ;;  %v143_v49 = vadd.f32 %v139_v43, %v135_v45 }
  0xf8   :  { %147 = vadd.xlane.f32.xlu0 %v146_v48  ;;  %v155_v50 = vsel %vm28_vm0, %v145_v47, 0.0 }
  0xf9   :  { %v149_v51 = vsel %vm28_vm0, %v143_v49, 0.0 }
  0xfb   :  { %156 = vadd.xlane.f32.xlu1 %v155_v50 }
  0xfc   :  { %150 = vadd.xlane.f32.xlu0 %v149_v51 }
 0x184   :  { %v154_v52 = vpop.xlane.xlu1 %153 }
 0x185   :  { %v161_v53 = vmul.f32 0.03125, %v154_v52  ;;  %v148_v54 = vpop.xlane.xlu0 %147 }
 0x186   :  { %v159_v55 = vmul.f32 0.03125, %v148_v54 }
 0x187   :  { %v165_v56 = vsub.f32 %v144_v40, %v161_v53 }
 0x188   :  { %v163_v57 = vsub.f32 %v142_v44, %v159_v55  ;;  %v157_v58 = vpop.xlane.xlu1 %156 }
 0x189   :  { %v162_v59 = vmul.f32 0.03125, %v157_v58  ;;  %v151_v60 = vpop.xlane.xlu0 %150  ;;  %v169_v2 = vmul.f32 %v165_v56, %v165_v56 }
 0x18a   :  { %v160_v61 = vmul.f32 0.03125, %v151_v60  ;;  %v167_v62 = vmul.f32 %v163_v57, %v163_v57 }
 0x18b   :  { %v166_v63 = vsub.f32 %v145_v47, %v162_v59  ;;  %v177_v4 = vsel %vm28_vm0, %v169_v2, 0.0 }
 0x18c   :  { %v164_v0 = vsub.f32 %v143_v49, %v160_v61  ;;  %v171_v1 = vsel %vm28_vm0, %v167_v62, 0.0 }
 0x18d   :  { %172 = vadd.xlane.f32.xlu0 %v171_v1  ;;  %v170_v6 = vmul.f32 %v166_v63, %v166_v63 }
 0x18e   :  { %v168_v3 = vmul.f32 %v164_v0, %v164_v0 }
 0x18f   :  { %v180_v7 = vsel %vm28_vm0, %v170_v6, 0.0 }
 0x190   :  { %v174_v5 = vsel %vm28_vm0, %v168_v3, 0.0 }
 0x191   :  { %178 = vadd.xlane.f32.xlu0 %v177_v4  ;;  %175 = vadd.xlane.f32.xlu1 %v174_v5 }
 0x195   :  { %181 = vadd.xlane.f32.xlu1 %v180_v7 }
 0x21a   :  { %v173_v8 = vpop.xlane.xlu0 %172 }
 0x21b   :  { %v183_v9 = vmul.f32 0.03125, %v173_v8 }
 0x21d   :  { %v187_v10 = vadd.f32 1e-05, %v183_v9 }
 0x21e   :  { %v176_v11 = vpop.xlane.xlu1 %175  ;;  %v179_v12 = vpop.xlane.xlu0 %178 }
 0x21f   :  { %253 = vrsqrt.f32 %v187_v10  ;;  %v184_v13 = vmul.f32 0.03125, %v176_v11  ;;  %v185_v14 = vmul.f32 0.03125, %v179_v12 }
 0x221   :  { %v188_v15 = vadd.f32 1e-05, %v184_v13  ;;  %v189_v16 = vadd.f32 1e-05, %v185_v14 }
 0x222   :  { %v182_v17 = vpop.xlane.xlu1 %181 }
 0x223   :  { %255 = vrsqrt.f32 %v188_v15  ;;  %v186_v18 = vmul.f32 0.03125, %v182_v17 }
 0x224   :  { %257 = vrsqrt.f32 %v189_v16 }
 0x225   :  { %v190_v19 = vadd.f32 1e-05, %v186_v18 }
 0x227   :  { %259 = vrsqrt.f32 %v190_v19 }
 0x229   :  { %v254_v20 = vpop.eup %253 }
 0x22a   :  { %v195_v22 = vmul.f32 %v254_v20, %v163_v57 }
 0x22c   :  { %v206_v24 = vmul.f32 %v232_v21, %v195_v22 }
 0x22d   :  { %v256_v25 = vpop.eup %255 }
 0x22e   :  { %v258_v26 = vpop.eup %257  ;;  %v217_v27 = vadd.f32 %v233_v23, %v206_v24  ;;  %v196_v28 = vmul.f32 %v256_v25, %v164_v0 }
 0x22f   :  { %v197_v29 = vmul.f32 %v258_v26, %v165_v56 }
 0x230   :  { %221 = vst.msk [vmem:[%s394_s6] sm:$0xff] %vm28_vm0, %v217_v27  ;;  %v207_v30 = vmul.f32 %v232_v21, %v196_v28 }
 0x231   :  { %v260_v31 = vpop.eup %259  ;;  %v208_v32 = vmul.f32 %v232_v21, %v197_v29 }
 0x232   :  { %v218_v33 = vadd.f32 %v233_v23, %v207_v30  ;;  %v198_v34 = vmul.f32 %v260_v31, %v166_v63 }
 0x233   :  { %v219_v35 = vadd.f32 %v233_v23, %v208_v32 }
 0x234   :  { %222 = vst.msk [vmem:[%s394_s6 + $0x8] sm:$0xff] %vm28_vm0, %v218_v33  ;;  %v209_v36 = vmul.f32 %v232_v21, %v198_v34 }
 0x235   :  { %223 = vst.msk [vmem:[%s394_s6 + $0x10] sm:$0xff] %vm28_vm0, %v219_v35 }
 0x236   :  { %v220_v37 = vadd.f32 %v233_v23, %v209_v36 }
 0x238   :  { %224 = vst.msk [vmem:[%s394_s6 + $0x18] sm:$0xff] %vm28_vm0, %v220_v37 }

// kernel: optformer_encoder_layer.30
= control target key start
LH: loop header
LB: loop body
LE: loop exit
PB: predicated region body
PF: predicated region fallthrough
CT: control target
= control target key end

     0   :  { %s1523_s15 = smov 0   ;;  %s1525_s16 = smov 0   ;;  %s1856_s0 = inlined_call_operand.vmem [shape: f32[2,16,32], index: 0, kind: input, shape index: {}]   ;;  %s1857_s1 = inlined_call_operand.vmem [shape: f32[2,2,8,32], index: 1, kind: input, shape index: {}, may-alias: {1,2}]   ;;  %s1858_s2 = inlined_call_operand.vmem [shape: f32[2,2,8,32], index: 2, kind: input, shape index: {}, may-alias: {1,2}]   ;;  %s1859_s3 = inlined_call_operand.vmem [shape: f32[2,1,8], index: 3, kind: input, shape index: {}]   ;;  %s1860_s4 = inlined_call_operand.vmem [shape: f32[2,16,32], index: 4, kind: output, shape index: {}]  }
   0x1   :  { %s1527_s17 = smov 0  }
   0x2 LB: > { %s33_s18 = sadd.s32 1, %s1479_s16  ;;  %p1275_p0 = scmp.ge.s32.totalorder %s1483_s17, 1  ;;  %s1483_s17 = sphi %s1527_s17, %s14_s17   ;;  %s1479_s16 = sphi %s1525_s16, %s1862_s16   ;;  %s1475_s15 = sphi %s1523_s15, %s1861_s15  }
   0x3   : > { %p35_p1 = scmp.ge.s32.totalorder %s33_s18, 2  ;;  %p232_p2 = scmp.lt.s32.totalorder %s1483_s17, 3 }
   0x5   : > { %s1864_s18 = smov (%p35_p1, %s33_s18), 0  ;;  %p233_p3 = pnand %p1275_p0, %p232_p2 }
   0x6   : > { %p288_p4 = scmp.lt.s32.totalorder (!%p233_p3), %s1475_s15, 1  ;;  %v1485_v0 = vmov (!%p233_p3), 0.0   ;;  %vm1486_vm0 = vmmov (!%p233_p3), 0   ;;  %vm355_vm1 = vcmask (!%p233_p3), 64512   ;;  %vm333_vm2 = vcmask (!%p233_p3), 31744   ;;  %s1489_s30 = smov (!%p233_p3), 120  }
   0x7   : > { %236 = sbr.rel (%p233_p3) target bundleno = 1445 (0x5a5), region = 36  ;;  %1312 = vmatprep.subr.bf16.mxu0 (!%p233_p3), %v1485_v0  ;;  %1314 = vmatprep.mubr.msk.bf16.mxu0 (!%p233_p3), %vm1486_vm0, %v1485_v0  ;;  %v1487_v7 = vmov (!%p233_p3), -inf   ;;  %336 = vst.msk [vmem:[#allocation3] sm:$0xff] (!%p233_p3), %vm333_vm2, %v1485_v0  ;;  %337 = vst.msk [vmem:[#allocation3 + $0x8] sm:$0xff] (!%p233_p3), %vm333_vm2, %v1485_v0  ;;  %v1488_v17 = vmov (!%p233_p3), 0   ;;  %vm447_vm3 = vcmask (!%p233_p3), 7168  }
   0x8   : > { %1318 = vmatprep.subr.bf16.mxu1 (!%p233_p3), %v1485_v0  ;;  %1320 = vmatprep.mubr.msk.bf16.mxu1 (!%p233_p3), %vm1486_vm0, %v1485_v0  ;;  %334 = vst.msk [vmem:[#allocation2] sm:$0xff] (!%p233_p3), %vm333_vm2, %v1487_v7  ;;  %335 = vst.msk [vmem:[#allocation2 + $0x8] sm:$0xff] (!%p233_p3), %vm333_vm2, %v1487_v7  ;;  %vm468_vm4 = vcmask (!%p233_p3), 1043456   ;;  %s1490_s8 = smov (!%p233_p3), 112   ;;  %s1491_s9 = smov (!%p233_p3), 104   ;;  %vm616_vm5 = vcmask (!%p233_p3), 15368  }
   0x9   : > { %1397 = vset.pattern.permute.xlu1 (!%p233_p3), %v1488_v17  ;;  %vm794_vm6 = vcmask (!%p233_p3), 23568   ;;  %vm971_vm7 = vcmask (!%p233_p3), 31768   ;;  %vm338_vm8 = vcmask (!%p233_p3), 261120   ;;  %s1495_s10 = smov (!%p233_p3), 8   ;;  %s1496_s11 = smov (!%p233_p3), 16   ;;  %vm694_vm9 = vcmask (!%p233_p3), 130112  }
   0xa   : > { %339 = vst.msk [vmem:[#allocation4] sm:$0xff] (!%p233_p3), %vm338_vm8, %v1485_v0  ;;  %340 = vst.msk [vmem:[#allocation4 + $0x8] sm:$0xff] (!%p233_p3), %vm338_vm8, %v1485_v0  ;;  %s1497_s12 = smov (!%p233_p3), 24   ;;  %vm871_vm10 = vcmask (!%p233_p3), 195712   ;;  %vm1048_vm11 = vcmask (!%p233_p3), 261312  }
   0xe   : > { %s1866_s15 = smov (!%p288_p4, %s1475_s15), 1 }
   0xf   : > { %s1278_s19 = sshll.u32 %s1866_s15, 3  ;;  %s1294_s20 = sshll.u32 %s1866_s15, 4  ;;  %v1580_v18 = vld [vmem:[#allocation2] sm:$0xff]  ;;  %v1585_v21 = vld [vmem:[#allocation2 + $0x8] sm:$0xff] }
  0x10   : > { %s303_s23 = scalar_lea.vmem %s1857_s1, %s1278_s19  ;;  %s295_s26 = scalar_lea.vmem %s1856_s0, %s1294_s20 }
  0x11   : > { %v344_v1 = vld [vmem:[%s303_s23] sm:$0xff]  ;;  %v342_v5 = vld [vmem:[%s295_s26 + $0x8] sm:$0xff]  ;;  %s317_s29 = scalar_lea.vmem %s1859_s3, %s1866_s15  ;;  %s1205_s7 = scalar_lea.vmem %s1858_s2, %s1278_s19 }
  0x12   : > { %v345_v2 = vpack.c.bf16 %v344_v1, %v344_v1  ;;  %v341_v4 = vld [vmem:[%s295_s26] sm:$0xff]  ;;  %v1282_v26 = vld [vmem:[%s1205_s7 + $0x10] sm:$0xff]  ;;  %s326_s19 = scalar_lea.vmem %s1860_s4, %s1294_s20 }
  0x13   : > { %v343_v6 = vpack.c.bf16 %v342_v5, %v341_v4  ;;  %v1572_v8 = vld [vmem:[%s317_s29] ss:$0 sm:$0xff]  ;;  %v1606_v27 = vpack.c.bf16 %v1282_v26, %v1282_v26 }
  0x14   : > { %v360_v3 = vsel %vm355_vm1, %v345_v2, 0 }
  0x15   : > { %1313 = vmatpush3.bf16.xpose.msra.mxu0 %v360_v3  ;;  %v470_v28 = vsel %vm468_vm4, %v1606_v27, 0 }
  0x16   : > { %1330 = vmatprep.subr.bf16.mxu0 %v1485_v0  ;;  %1319 = vmatpush3.bf16.msra.mxu1 %v470_v28 }
  0x17   : > { %1324 = vmatprep.subr.bf16.mxu1 %v1485_v0 }
  0x1c   : > { %1315 = vmatmul.mubr.msk.bf16.vlgmr.msra.gmra.mrb[0].mxu0 %vm355_vm1, %v343_v6 }
  0x1d   : > { %1332 = vmatprep.mubr.msk.bf16.mxu0 %vm1486_vm0, %v1485_v0 }
  0xef   : > { %v396_v9 = vpop.f32.mrb[0].mxu0 }
  0xf0   : > { %v397_v10 = vadd.f32 %v1572_v8, %v396_v9  ;;  %v1316_v11 = vpop.f32.mrb[1].mxu0 }
  0xf1   : > { %v399_v12 = vpop.f32.mrb[2].mxu0 }
  0xf2   : > { %v400_v13 = vadd.f32 %v1572_v8, %v399_v12  ;;  %v1317_v14 = vpop.f32.mrb[3].mxu0  ;;  %v405_v15 = vsel %vm355_vm1, %v397_v10, -inf  ;;  %v1492_v12 = vmov 1  }
  0xf3   : > { %406 = vmax.xlane.f32.xlu0 %v405_v15 }
  0xf4   : > { %v408_v16 = vsel %vm355_vm1, %v400_v13, -inf  ;;  %1398 = vset.pattern.permute.xlu0 %v1492_v12 }
  0xf7   : > { %409 = vmax.xlane.f32.xlu0 %v408_v16 }
 0x10d   : > { %523 = vrot.lane.b32.xlu0 %v345_v2, %s1489_s30 }
 0x180   : > { %v407_v19 = vpop.xlane.xlu0 %406 }
 0x181   : > { %v1583_v20 = vmax.f32 %v1580_v18, %v407_v19 }
 0x183   : > { %v413_v22 = vsub.f32 %v1580_v18, %v1583_v20  ;;  %517 = vst.msk [vmem:[#allocation2] sm:$0xff] %vm447_vm3, %v1583_v20  ;;  %421 = vperm.xlu1 %1397, %v1583_v20  }
 0x184   : > { %v410_v23 = vpop.xlane.xlu0 %409 }
 0x185   : > { %v1593_v24 = vmax.f32 %v1585_v21, %v410_v23 }
 0x187   : > { %v414_v25 = vsub.f32 %v1585_v21, %v1593_v24  ;;  %518 = vst.msk [vmem:[#allocation2 + $0x8] sm:$0xff] %vm447_vm3, %v1593_v24  ;;  %426 = vperm.xlu1 %1397, %v1593_v24  }
 0x188   : > { %v524_v35 = vpop.permute.xlu0 %523 }
 0x189   : > { %v529_v39 = vsel %vm355_vm1, %v524_v35, 0 }
 0x18a   : > { %v1672_v14 = vld [vmem:[#allocation2] sm:$0xff] }
 0x18b   : > { %520 = vrot.lane.b32.xlu1 %v343_v6, %s1489_s30 }
 0x18c   : > { %1399 = vset.pattern.permute.xlu1 %v1492_v12 }
 0x18e   : > { %v1677_v16 = vld [vmem:[#allocation2 + $0x8] sm:$0xff] }
 0x18f   : > { %701 = vrot.lane.b32.xlu1 %v345_v2, %s1490_s8 }
 0x193   : > { %699 = vrot.lane.b32.xlu1 %v343_v6, %s1490_s8 }
 0x197   : > { %878 = vrot.lane.b32.xlu1 %v345_v2, %s1491_s9 }
 0x19b   : > { %876 = vrot.lane.b32.xlu1 %v343_v6, %s1491_s9 }
 0x202   : > { %v422_v29 = vpop.permute.xlu1 %421 }
 0x203   : > { %v429_v30 = vsub.f32 %v397_v10, %v422_v29 }
 0x205   : > { %v431_v31 = vmul.f32 1.442695, %v429_v30  ;;  %v1493_v30 = vmov 2  }
 0x206   : > { %v427_v32 = vpop.permute.xlu1 %426 }
 0x207   : > { %v430_v33 = vsub.f32 %v400_v13, %v427_v32  ;;  %1413 = vpow2.f32 %v431_v31 }
 0x209   : > { %v433_v34 = vmul.f32 1.442695, %v430_v33 }
 0x20a   : > { %v521_v36 = vpop.permute.xlu1 %520 }
 0x20b   : > { %1415 = vpow2.f32 %v433_v34 }
 0x20e   : > { %v702_v41 = vpop.permute.xlu1 %701 }
 0x20f   : > { %v707_v43 = vsel %vm355_vm1, %v702_v41, 0 }
 0x211   : > { %v1615_v37 = vpop.eup %1413 }
 0x212   : > { %v700_v42 = vpop.permute.xlu1 %699 }
 0x215   : > { %v1617_v38 = vpop.eup %1415 }
 0x216   : > { %v464_v40 = vpack.c.bf16 %v1617_v38, %v1615_v37  ;;  %v879_v44 = vpop.permute.xlu1 %878 }
 0x217   : > { %v884_v45 = vsel %vm355_vm1, %v879_v44, 0 }
 0x218   : > { %1321 = vmatmul.mubr.msk.bf16.vlgmr.msra.gmra.mrb[0].mxu1 %vm355_vm1, %v464_v40 }
 0x219   : > { %1325 = vmatpush3.bf16.xpose.msra.mxu1 %v529_v39  ;;  %1326 = vmatprep.mubr.msk.bf16.mxu1 %vm1486_vm0, %v1485_v0 }
 0x21a   : > { %1336 = vmatprep.subr.bf16.mxu1 %v1485_v0  ;;  %v877_v46 = vpop.permute.xlu1 %876 }
 0x220   : > { %1327 = vmatmul.mubr.msk.bf16.vlgmr.msra.gmra.mrb[4].mxu1 %vm355_vm1, %v521_v36 }
 0x221   : > { %1337 = vmatpush3.bf16.xpose.msra.mxu1 %v707_v43  ;;  %1338 = vmatprep.mubr.msk.bf16.mxu1 %vm1486_vm0, %v1485_v0 }
 0x222   : > { %1348 = vmatprep.subr.bf16.mxu1 %v1485_v0 }
 0x228   : > { %1339 = vmatmul.mubr.msk.bf16.vlgmr.msra.gmra.mrb[8].mxu1 %vm355_vm1, %v700_v42 }
 0x229   : > { %1349 = vmatpush3.bf16.xpose.msra.mxu1 %v884_v45  ;;  %1350 = vmatprep.mubr.msk.bf16.mxu1 %vm1486_vm0, %v1485_v0  ;;  %v1494_v45 = vmov 3  }
 0x230   : > { %1351 = vmatmul.mubr.msk.bf16.vlgmr.msra.gmra.mrb[12].mxu1 %vm355_vm1, %v877_v46 }
 0x2eb   : > { %v1636_v47 = vpop.f32.mrb[0].mxu1 }
 0x2ec   : > { %v1322_v48 = vpop.f32.mrb[1].mxu1 }
 0x2ed   : > { %v1638_v49 = vpop.f32.mrb[2].mxu1 }
 0x2ee   : > { %v1323_v50 = vpop.f32.mrb[3].mxu1 }
 0x2f3   : > { %v565_v51 = vpop.f32.mrb[4].mxu1 }
 0x2f4   : > { %v1641_v52 = vadd.f32 %v1572_v8, %v565_v51  ;;  %v1328_v53 = vpop.f32.mrb[5].mxu1  ;;  %v442_v51 = vsel %vm355_vm1, %v1617_v38, 0.0  ;;  %v417_v38 = vmul.f32 1.442695, %v414_v25 }
 0x2f5   : > { %v568_v54 = vpop.f32.mrb[6].mxu1  ;;  %v415_v53 = vmul.f32 1.442695, %v413_v22 }
 0x2f6   : > { %v1644_v55 = vadd.f32 %v1572_v8, %v568_v54  ;;  %v1329_v56 = vpop.f32.mrb[7].mxu1  ;;  %v574_v57 = vsel %vm355_vm1, %v1641_v52, -inf }
 0x2f7   : > { %575 = vmax.xlane.f32.xlu1 %v574_v57  ;;  %1417 = vpow2.f32 %v415_v53 }
 0x2f8   : > { %v577_v58 = vsel %vm355_vm1, %v1644_v55, -inf  ;;  %1419 = vpow2.f32 %v417_v38  ;;  %v436_v38 = vld [vmem:[#allocation3 + $0x8] sm:$0xff] }
 0x2f9   : > { %578 = vmax.xlane.f32.xlu0 %v577_v58 }
 0x2fb   : > { %v743_v59 = vpop.f32.mrb[8].mxu1 }
 0x2fc   : > { %v1651_v60 = vadd.f32 %v1572_v8, %v743_v59  ;;  %v1340_v61 = vpop.f32.mrb[9].mxu1 }
 0x2fd   : > { %v746_v62 = vpop.f32.mrb[10].mxu1 }
 0x2fe   : > { %v1654_v63 = vadd.f32 %v1572_v8, %v746_v62  ;;  %v752_v1 = vsel %vm355_vm1, %v1651_v60, -inf  ;;  %v1341_v2 = vpop.f32.mrb[11].mxu1 }
 0x2ff   : > { %753 = vmax.xlane.f32.xlu0 %v752_v1 }
 0x300   : > { %v755_v3 = vsel %vm355_vm1, %v1654_v63, -inf }
 0x301   : > { %756 = vmax.xlane.f32.xlu1 %v755_v3  ;;  %v1749_v54 = vpop.eup %1417 }
 0x302   : > { %v1757_v18 = vpop.eup %1419 }
 0x303   : > { %v920_v4 = vpop.f32.mrb[12].mxu1 }
 0x304   : > { %v1661_v5 = vadd.f32 %v1572_v8, %v920_v4  ;;  %v1352_v6 = vpop.f32.mrb[13].mxu1 }
 0x305   : > { %v923_v7 = vpop.f32.mrb[14].mxu1 }
 0x306   : > { %v1664_v9 = vadd.f32 %v1572_v8, %v923_v7  ;;  %v929_v10 = vsel %vm355_vm1, %v1661_v5, -inf  ;;  %v1353_v11 = vpop.f32.mrb[15].mxu1 }
 0x307   : > { %930 = vmax.xlane.f32.xlu0 %v929_v10 }
 0x308   : > { %v932_v13 = vsel %vm355_vm1, %v1664_v9, -inf }
 0x309   : > { %933 = vmax.xlane.f32.xlu1 %v932_v13 }
 0x384   : > { %v576_v15 = vpop.xlane.xlu1 %575 }
 0x385   : > { %v1675_v8 = vmax.f32 %v1672_v14, %v576_v15 }
 0x386   : > { %v579_v19 = vpop.xlane.xlu0 %578 }
 0x387   : > { %v582_v23 = vsub.f32 %v1672_v14, %v1675_v8  ;;  %697 = vst.msk [vmem:[#allocation2] sm:$0xff] %vm616_vm5, %v1675_v8  ;;  %v1684_v26 = vmax.f32 %v1677_v16, %v579_v19  ;;  %590 = vperm.xlu0 %1398, %v1675_v8  }
 0x389   : > { %v583_v28 = vsub.f32 %v1677_v16, %v1684_v26  ;;  %698 = vst.msk [vmem:[#allocation2 + $0x8] sm:$0xff] %vm616_vm5, %v1684_v26  ;;  %595 = vperm.xlu1 %1399, %v1684_v26  }
 0x38b   : > { %989 = vrot.lane.b32.xlu0 %v1606_v27, %s1491_s9 }
 0x38c   : > { %v754_v29 = vpop.xlane.xlu0 %753  ;;  %1402 = vset.pattern.permute.xlu0 %v1488_v17 }
 0x38d   : > { %1400 = vset.pattern.permute.xlu1 %v1493_v30 }
 0x38e   : > { %v1696_v31 = vld [vmem:[#allocation2] sm:$0xff]  ;;  %v757_v32 = vpop.xlane.xlu1 %756 }
 0x38f   : > { %v1699_v33 = vmax.f32 %v1696_v31, %v754_v29 }
 0x390   : > { %v1701_v34 = vld [vmem:[#allocation2 + $0x8] sm:$0xff] }
 0x391   : > { %v760_v35 = vsub.f32 %v1696_v31, %v1699_v33  ;;  %874 = vst.msk [vmem:[#allocation2] sm:$0xff] %vm794_vm6, %v1699_v33  ;;  %v1708_v36 = vmax.f32 %v1701_v34, %v757_v32  ;;  %768 = vperm.xlu1 %1400, %v1699_v33  }
 0x393   : > { %v761_v39 = vsub.f32 %v1701_v34, %v1708_v36  ;;  %875 = vst.msk [vmem:[#allocation2 + $0x8] sm:$0xff] %vm794_vm6, %v1708_v36 }
 0x394   : > { %v931_v40 = vpop.xlane.xlu0 %930 }
 0x395   : > { %773 = vperm.xlu1 %1400, %v1708_v36  }
 0x396   : > { %v934_v42 = vpop.xlane.xlu1 %933 }
 0x398   : > { %v1716_v41 = vld [vmem:[#allocation2] sm:$0xff] }
 0x399   : > { %v1719_v43 = vmax.f32 %v1716_v41, %v931_v40  ;;  %635 = vrot.lane.b32.xlu1 %v1606_v27, %s1489_s30 }
 0x39a   : > { %v1723_v44 = vld [vmem:[#allocation2 + $0x8] sm:$0xff]  ;;  %1401 = vset.pattern.permute.xlu1 %v1494_v45 }
 0x39b   : > { %v937_v46 = vsub.f32 %v1716_v41, %v1719_v43  ;;  %1051 = vst.msk [vmem:[#allocation2] sm:$0xff] %vm971_vm7, %v1719_v43  ;;  %v1731_v48 = vmax.f32 %v1723_v44, %v934_v42 }
 0x39d   : > { %v938_v50 = vsub.f32 %v1723_v44, %v1731_v48  ;;  %1052 = vst.msk [vmem:[#allocation2 + $0x8] sm:$0xff] %vm971_vm7, %v1731_v48  ;;  %945 = vperm.xlu1 %1401, %v1719_v43   ;;  %v939_v31 = vmul.f32 1.442695, %v937_v46 }
 0x39f   : > { %v941_v34 = vmul.f32 1.442695, %v938_v50 }
 0x3a1   : > { %950 = vperm.xlu1 %1401, %v1731_v48  }
 0x3a5   : > { %812 = vrot.lane.b32.xlu1 %v1606_v27, %s1490_s8  ;;  %v439_v27 = vsel %vm355_vm1, %v1615_v37, 0.0 }
 0x3a6   : > { %1403 = vset.pattern.permute.xlu1 %v1488_v17 }
 0x3aa   : > { %443 = vadd.xlane.f32.xlu0 %v442_v51 }
 0x3c0   : > { %454 = vperm.xlu0 %1402, %v1749_v54  }
 0x3c9   : > { %440 = vadd.xlane.f32.xlu1 %v439_v27 }
 0x3da   : > { %459 = vperm.xlu1 %1403, %v1757_v18  }
 0x3de   : > { %1404 = vset.pattern.permute.xlu1 %v1492_v12 }
 0x406   : > { %v591_v20 = vpop.permute.xlu0 %590 }
 0x407   : > { %v598_v22 = vsub.f32 %v1641_v52, %v591_v20  ;;  %v438_v20 = vmul.f32 %v1757_v18, %v436_v38 }
 0x408   : > { %v596_v56 = vpop.permute.xlu1 %595 }
 0x409   : > { %v600_v57 = vmul.f32 1.442695, %v598_v22  ;;  %v599_v58 = vsub.f32 %v1644_v55, %v596_v56  ;;  %v584_v55 = vmul.f32 1.442695, %v582_v23 }
 0x40a   : > { %v990_v23 = vpop.permute.xlu0 %989 }
 0x40b   : > { %1421 = vpow2.f32 %v600_v57  ;;  %v602_v37 = vmul.f32 1.442695, %v599_v58  ;;  %v995_v32 = vsel %vm468_vm4, %v990_v23, 0 }
 0x40d   : > { %1423 = vpow2.f32 %v602_v37 }
 0x410   : > { %v769_v59 = vpop.permute.xlu1 %768 }
 0x411   : > { %v776_v21 = vsub.f32 %v1651_v60, %v769_v59 }
 0x413   : > { %v778_v52 = vmul.f32 1.442695, %v776_v21  ;;  %v762_v21 = vmul.f32 1.442695, %v760_v35 }
 0x414   : > { %v774_v24 = vpop.permute.xlu1 %773 }
 0x415   : > { %v1422_v25 = vpop.eup %1421  ;;  %v777_v61 = vsub.f32 %v1654_v63, %v774_v24  ;;  %v586_v63 = vmul.f32 1.442695, %v583_v28  ;;  %v435_v24 = vld [vmem:[#allocation3] sm:$0xff] }
 0x416   : > { %v608_v62 = vsel %vm355_vm1, %v1422_v25, 0.0  ;;  %v437_v18 = vmul.f32 %v1749_v54, %v435_v24 }
 0x417   : > { %v1424_v1 = vpop.eup %1423  ;;  %v780_v2 = vmul.f32 1.442695, %v777_v61  ;;  %609 = vadd.xlane.f32.xlu1 %v608_v62 }
 0x418   : > { %v636_v3 = vpop.permute.xlu1 %635  ;;  %v611_v4 = vsel %vm355_vm1, %v1424_v1, 0.0  ;;  %v633_v6 = vpack.c.bf16 %v1424_v1, %v1422_v25  ;;  %v764_v25 = vmul.f32 1.442695, %v761_v39 }
 0x419   : > { %1425 = vpow2.f32 %v780_v2  ;;  %v641_v60 = vsel %vm468_vm4, %v636_v3, 0  ;;  %612 = vadd.xlane.f32.xlu0 %v611_v4 }
 0x41a   : > { %1331 = vmatpush3.bf16.msra.mxu0 %v641_v60  ;;  %1427 = vpow2.f32 %v778_v52 }
 0x41b   : > { %1342 = vmatprep.subr.bf16.mxu0 %v1485_v0  ;;  %1429 = vpow2.f32 %v584_v55 }
 0x41c   : > { %v946_v7 = vpop.permute.xlu1 %945  ;;  %1431 = vpow2.f32 %v586_v63 }
 0x41d   : > { %v953_v10 = vsub.f32 %v1661_v5, %v946_v7  ;;  %1333 = vmatmul.mubr.msk.bf16.vlgmr.msra.gmra.mrb[4].mxu0 %vm355_vm1, %v633_v6 }
 0x41e   : > { %1344 = vmatprep.mubr.msk.bf16.mxu0 %vm1486_vm0, %v1485_v0 }
 0x41f   : > { %v955_v11 = vmul.f32 1.442695, %v953_v10 }
 0x420   : > { %v951_v13 = vpop.permute.xlu1 %950 }
 0x421   : > { %1433 = vpow2.f32 %v955_v11  ;;  %v954_v14 = vsub.f32 %v1664_v9, %v951_v13 }
 0x423   : > { %v1426_v15 = vpop.eup %1425  ;;  %v957_v8 = vmul.f32 1.442695, %v954_v14 }
 0x424   : > { %v813_v16 = vpop.permute.xlu1 %812  ;;  %v789_v19 = vsel %vm355_vm1, %v1426_v15, 0.0  ;;  %v1428_v26 = vpop.eup %1427 }
 0x425   : > { %1435 = vpow2.f32 %v957_v8  ;;  %v818_v5 = vsel %vm468_vm4, %v813_v16, 0  ;;  %790 = vadd.xlane.f32.xlu0 %v789_v19  ;;  %v1430_v28 = vpop.eup %1429  ;;  %v811_v29 = vpack.c.bf16 %v1426_v15, %v1428_v26  ;;  %v786_v59 = vsel %vm355_vm1, %v1428_v26, 0.0 }
 0x426   : > { %1343 = vmatpush3.bf16.msra.mxu0 %v818_v5  ;;  %v1432_v9 = vpop.eup %1431  ;;  %1437 = vpow2.f32 %v762_v21 }
 0x427   : > { %1354 = vmatprep.subr.bf16.mxu0 %v1485_v0  ;;  %1439 = vpow2.f32 %v764_v25 }
 0x428   : > { %623 = vperm.xlu1 %1404, %v1430_v28   ;;  %1441 = vpow2.f32 %v939_v31 }
 0x429   : > { %1345 = vmatmul.mubr.msk.bf16.vlgmr.msra.gmra.mrb[8].mxu0 %vm355_vm1, %v811_v29  ;;  %1443 = vpow2.f32 %v941_v34 }
 0x42a   : > { %1355 = vmatpush3.bf16.msra.mxu0 %v995_v32  ;;  %1356 = vmatprep.mubr.msk.bf16.mxu0 %vm1486_vm0, %v1485_v0  ;;  %v450_v0 = vld [vmem:[#allocation4] sm:$0xff] }
 0x42b   : > { %v1434_v40 = vpop.eup %1433 }
 0x42c   : > { %628 = vperm.xlu1 %1404, %v1432_v9   ;;  %v963_v42 = vsel %vm355_vm1, %v1434_v40, 0.0 }
 0x42d   : > { %964 = vadd.xlane.f32.xlu0 %v963_v42 }
 0x42f   : > { %v1436_v51 = vpop.eup %1435 }
 0x430   : > { %v966_v53 = vsel %vm355_vm1, %v1436_v51, 0.0  ;;  %v988_v27 = vpack.c.bf16 %v1436_v51, %v1434_v40  ;;  %1405 = vset.pattern.permute.xlu1 %v1493_v30  ;;  %v1438_v36 = vpop.eup %1437 }
 0x431   : > { %967 = vadd.xlane.f32.xlu0 %v966_v53  ;;  %v1440_v39 = vpop.eup %1439 }
 0x432   : > { %1357 = vmatmul.mubr.msk.bf16.vlgmr.msra.gmra.mrb[12].mxu0 %vm355_vm1, %v988_v27  ;;  %v1442_v54 = vpop.eup %1441 }
 0x433   : > { %v1444_v41 = vpop.eup %1443 }
 0x437   : > { %v444_v22 = vpop.xlane.xlu0 %443 }
 0x438   : > { %v446_v56 = vadd.f32 %v444_v22, %v438_v20 }
 0x43a   : > { %449 = vst.msk [vmem:[#allocation3 + $0x8] sm:$0xff] %vm447_vm3, %v446_v56 }
 0x43f   : > { %v455_v57 = vpop.permute.xlu0 %454 }
 0x440   : > { %v462_v58 = vmul.f32 %v455_v57, %v450_v0 }
 0x441   : > { %v605_v43 = vld [vmem:[#allocation3 + $0x8] sm:$0xff] }
 0x442   : > { %v513_v37 = vadd.f32 %v1636_v47, %v462_v58  ;;  %v451_v47 = vld [vmem:[#allocation4 + $0x8] sm:$0xff]  ;;  %v607_v50 = vmul.f32 %v1432_v9, %v605_v43 }
 0x444   : > { %515 = vst.msk [vmem:[#allocation4] sm:$0xff] %vm355_vm1, %v513_v37 }
 0x450   : > { %787 = vadd.xlane.f32.xlu1 %v786_v59 }
 0x456   : > { %v441_v61 = vpop.xlane.xlu1 %440 }
 0x457   : > { %v445_v62 = vadd.f32 %v441_v61, %v437_v18 }
 0x459   : > { %448 = vst.msk [vmem:[#allocation3] sm:$0xff] %vm447_vm3, %v445_v62 }
 0x45a   : > { %v460_v1 = vpop.permute.xlu1 %459 }
 0x45b   : > { %v463_v33 = vmul.f32 %v460_v1, %v451_v47 }
 0x45d   : > { %v514_v35 = vadd.f32 %v1638_v49, %v463_v33 }
 0x45f   : > { %516 = vst.msk [vmem:[#allocation4 + $0x8] sm:$0xff] %vm355_vm1, %v514_v35 }
 0x460   : > { %v604_v49 = vld [vmem:[#allocation3] sm:$0xff] }
 0x461   : > { %801 = vperm.xlu1 %1405, %v1438_v36   ;;  %v606_v46 = vmul.f32 %v1430_v28, %v604_v49 }
 0x465   : > { %806 = vperm.xlu1 %1405, %v1440_v39  }
 0x466   : > { %v620_v1 = vld [vmem:[#allocation4 + $0x8] sm:$0xff] }
 0x469   : > { %1406 = vset.pattern.permute.xlu1 %v1494_v45 }
 0x46a   : > { %978 = vperm.xlu1 %1406, %v1442_v54  }
 0x46e   : > { %983 = vperm.xlu1 %1406, %v1444_v41  }
 0x472   : > { %1407 = vset.pattern.permute.xlu1 %v1488_v17 }
 0x4a4   : > { %v610_v44 = vpop.xlane.xlu1 %609 }
 0x4a5   : > { %v614_v48 = vadd.f32 %v610_v44, %v606_v46 }
 0x4a6   : > { %v613_v2 = vpop.xlane.xlu0 %612 }
 0x4a7   : > { %617 = vst.msk [vmem:[#allocation3] sm:$0xff] %vm616_vm5, %v614_v48  ;;  %v615_v52 = vadd.f32 %v613_v2, %v607_v50 }
 0x4a8   : > { %v624_v11 = vpop.permute.xlu1 %623 }
 0x4a9   : > { %618 = vst.msk [vmem:[#allocation3 + $0x8] sm:$0xff] %vm616_vm5, %v615_v52 }
 0x4ac   : > { %v1818_v13 = vpop.permute.xlu1 %628 }
 0x4ad   : > { %v632_v31 = vmul.f32 %v1818_v13, %v620_v1 }
 0x4ae   : > { %v782_v14 = vld [vmem:[#allocation3] sm:$0xff] }
 0x4af   : > { %v784_v15 = vmul.f32 %v1438_v36, %v782_v14 }
 0x4b0   : > { %v783_v3 = vld [vmem:[#allocation3 + $0x8] sm:$0xff] }
 0x4b1   : > { %v785_v4 = vmul.f32 %v1440_v39, %v783_v3 }
 0x4b2   : > { %v791_v55 = vpop.xlane.xlu0 %790 }
 0x4b3   : > { %v793_v60 = vadd.f32 %v791_v55, %v785_v4 }
 0x4b5   : > { %796 = vst.msk [vmem:[#allocation3 + $0x8] sm:$0xff] %vm794_vm6, %v793_v60 }
 0x4ba   : > { %v965_v6 = vpop.xlane.xlu0 %964 }
 0x4bc   : > { %v960_v17 = vld [vmem:[#allocation3 + $0x8] sm:$0xff] }
 0x4bd   : > { %v962_v63 = vmul.f32 %v1444_v41, %v960_v17 }
 0x4be   : > { %v968_v7 = vpop.xlane.xlu0 %967 }
 0x4bf   : > { %v970_v10 = vadd.f32 %v968_v7, %v962_v63 }
 0x4c1   : > { %973 = vst.msk [vmem:[#allocation3 + $0x8] sm:$0xff] %vm971_vm7, %v970_v10 }
 0x4c8   : > { %v1059_v40 = vld [vmem:[#allocation3 + $0x8] sm:$0xff] }
 0x4dd   : > { %v788_v8 = vpop.xlane.xlu1 %787 }
 0x4de   : > { %v792_v16 = vadd.f32 %v788_v8, %v784_v15 }
 0x4e0   : > { %795 = vst.msk [vmem:[#allocation3] sm:$0xff] %vm794_vm6, %v792_v16 }
 0x4e7   : > { %v959_v19 = vld [vmem:[#allocation3] sm:$0xff] }
 0x4e8   : > { %v961_v23 = vmul.f32 %v1442_v54, %v959_v19 }
 0x4ea   : > { %v969_v5 = vadd.f32 %v965_v6, %v961_v23 }
 0x4ec   : > { %972 = vst.msk [vmem:[#allocation3] sm:$0xff] %vm971_vm7, %v969_v5 }
 0x4f0   : > { %v677_v26 = vpop.f32.mrb[4].mxu0 }
 0x4f1   : > { %686 = vrot.lane.b32.xlu0 %v677_v26, %s1495_s10  ;;  %v1334_v28 = vpop.f32.mrb[5].mxu0 }
 0x4f2   : > { %v680_v29 = vpop.f32.mrb[6].mxu0 }
 0x4f3   : > { %v1335_v32 = vpop.f32.mrb[7].mxu0  ;;  %v1058_v9 = vld [vmem:[#allocation3] sm:$0xff] }
 0x4f4   : > { %1062 = vperm.xlu1 %1407, %v1058_v9  }
 0x4f5   : > { %1067 = vperm.xlu0 %1402, %v1059_v40  }
 0x4f8   : > { %1408 = vset.pattern.permute.xlu1 %v1492_v12 }
 0x4f9   : > { %1082 = vperm.xlu1 %1408, %v1058_v9   ;;  %1409 = vset.pattern.permute.xlu0 %v1492_v12  ;;  %v802_v12 = vpop.permute.xlu1 %801 }
 0x4fc   : > { %v854_v42 = vpop.f32.mrb[8].mxu0 }
 0x4fd   : > { %688 = vrot.lane.b32.xlu1 %v680_v29, %s1495_s10  ;;  %863 = vrot.lane.b32.xlu0 %v854_v42, %s1496_s11  ;;  %v1346_v51 = vpop.f32.mrb[9].mxu0  ;;  %v807_v57 = vpop.permute.xlu1 %806 }
 0x4fe   : > { %v857_v53 = vpop.f32.mrb[10].mxu0  ;;  %1410 = vset.pattern.permute.xlu1 %v1493_v30  ;;  %v619_v30 = vld [vmem:[#allocation4] sm:$0xff] }
 0x4ff   : > { %v1347_v27 = vpop.f32.mrb[11].mxu0  ;;  %v631_v0 = vmul.f32 %v624_v11, %v619_v30 }
 0x501   : > { %1102 = vperm.xlu1 %1410, %v1058_v9   ;;  %1087 = vperm.xlu0 %1409, %v1059_v40   ;;  %v979_v59 = vpop.permute.xlu1 %978 }
 0x505   : > { %1107 = vperm.xlu1 %1410, %v1059_v40   ;;  %1411 = vset.pattern.permute.xlu0 %v1494_v45  ;;  %v1031_v38 = vpop.f32.mrb[12].mxu0  ;;  %v984_v21 = vpop.permute.xlu1 %983 }
 0x506   : > { %1122 = vperm.xlu0 %1411, %v1058_v9   ;;  %v1358_v20 = vpop.f32.mrb[13].mxu0 }
 0x507   : > { %v1034_v22 = vpop.f32.mrb[14].mxu0 }
 0x508   : > { %v1359_v56 = vpop.f32.mrb[15].mxu0 }
 0x509   : > { %865 = vrot.lane.b32.xlu1 %v857_v53, %s1496_s11 }
 0x50a   : > { %1412 = vset.pattern.permute.xlu1 %v1494_v45 }
 0x50d   : > { %1040 = vrot.lane.b32.xlu1 %v1031_v38, %s1497_s12 }
 0x511   : > { %1042 = vrot.lane.b32.xlu1 %v1034_v22, %s1497_s12 }
 0x515   : > { %1127 = vperm.xlu1 %1412, %v1059_v40  }
 0x563   : > { %v687_v58 = vpop.permute.xlu0 %686 }
 0x564   : > { %v692_v37 = vadd.f32 %v687_v58, %v631_v0 }
 0x566   : > { %695 = vst.msk [vmem:[#allocation4] sm:$0xff] %vm694_vm9, %v692_v37 }
 0x56d   : > { %v797_v25 = vld [vmem:[#allocation4] sm:$0xff] }
 0x56e   : > { %v809_v61 = vmul.f32 %v802_v12, %v797_v25 }
 0x573   : > { %v1063_v24 = vpop.permute.xlu1 %1062 }
 0x574   : > { %v1068_v18 = vpop.permute.xlu0 %1067  ;;  %1445 = vrcp.f32 %v1063_v24 }
 0x578   : > { %v1083_v45 = vpop.permute.xlu1 %1082  ;;  %v864_v62 = vpop.permute.xlu0 %863 }
 0x579   : > { %v869_v47 = vadd.f32 %v864_v62, %v809_v61  ;;  %1447 = vrcp.f32 %v1083_v45 }
 0x57b   : > { %872 = vst.msk [vmem:[#allocation4] sm:$0xff] %vm871_vm10, %v869_v47 }
 0x57c   : > { %v689_v33 = vpop.permute.xlu1 %688 }
 0x57d   : > { %v693_v35 = vadd.f32 %v689_v33, %v632_v31 }
 0x57e   : > { %v1446_v60 = vpop.eup %1445 }
 0x57f   : > { %696 = vst.msk [vmem:[#allocation4 + $0x8] sm:$0xff] %vm694_vm9, %v693_v35 }
 0x580   : > { %v1103_v34 = vpop.permute.xlu1 %1102  ;;  %v1088_v39 = vpop.permute.xlu0 %1087 }
 0x581   : > { %1449 = vrcp.f32 %v1103_v34 }
 0x582   : > { %v974_v43 = vld [vmem:[#allocation4] sm:$0xff] }
 0x583   : > { %v986_v44 = vmul.f32 %v979_v59, %v974_v43  ;;  %v1448_v17 = vpop.eup %1447 }
 0x584   : > { %v1108_v36 = vpop.permute.xlu1 %1107 }
 0x585   : > { %v1123_v48 = vpop.permute.xlu0 %1122 }
 0x586   : > { %v798_v54 = vld [vmem:[#allocation4 + $0x8] sm:$0xff]  ;;  %1451 = vrcp.f32 %v1123_v48 }
 0x587   : > { %v810_v41 = vmul.f32 %v807_v57, %v798_v54  ;;  %1453 = vrcp.f32 %v1068_v18 }
 0x588   : > { %v866_v49 = vpop.permute.xlu1 %865  ;;  %1455 = vrcp.f32 %v1088_v39 }
 0x589   : > { %v870_v46 = vadd.f32 %v866_v49, %v810_v41 }
 0x58b   : > { %873 = vst.msk [vmem:[#allocation4 + $0x8] sm:$0xff] %vm871_vm10, %v870_v46  ;;  %v1450_v11 = vpop.eup %1449 }
 0x58c   : > { %v1041_v50 = vpop.permute.xlu1 %1040 }
 0x58d   : > { %v1046_v2 = vadd.f32 %v1041_v50, %v986_v44 }
 0x58f   : > { %1049 = vst.msk [vmem:[#allocation4] sm:$0xff] %vm1048_vm11, %v1046_v2 }
 0x590   : > { %v1043_v52 = vpop.permute.xlu1 %1042  ;;  %v1452_v13 = vpop.eup %1451 }
 0x591   : > { %v1454_v8 = vpop.eup %1453 }
 0x592   : > { %v975_v3 = vld [vmem:[#allocation4 + $0x8] sm:$0xff]  ;;  %v1456_v16 = vpop.eup %1455 }
 0x593   : > { %v987_v4 = vmul.f32 %v984_v21, %v975_v3 }
 0x594   : > { %v1128_v55 = vpop.permute.xlu1 %1127 }
 0x595   : > { %v1047_v6 = vadd.f32 %v1043_v52, %v987_v4  ;;  %1457 = vrcp.f32 %v1128_v55 }
 0x596   : > { %1459 = vrcp.f32 %v1108_v36  ;;  %v1056_v63 = vld [vmem:[#allocation4] sm:$0xff] }
 0x597   : > { %v1071_v7 = vmul.f32 %v1446_v60, %v1056_v63  ;;  %v1091_v10 = vmul.f32 %v1448_v17, %v1056_v63  ;;  %1050 = vst.msk [vmem:[#allocation4 + $0x8] sm:$0xff] %vm1048_vm11, %v1047_v6  ;;  %v1111_v14 = vmul.f32 %v1450_v11, %v1056_v63  ;;  %v1131_v15 = vmul.f32 %v1452_v13, %v1056_v63 }
 0x599   : > { %1074 = vst.msk [vmem:[%s326_s19] sm:$0xff] %vm355_vm1, %v1071_v7 }
 0x59a   : > { %1094 = vst.msk [vmem:[%s326_s19] sm:$0xff] %vm694_vm9, %v1091_v10 }
 0x59b   : > { %1114 = vst.msk [vmem:[%s326_s19] sm:$0xff] %vm871_vm10, %v1111_v14 }
 0x59c   : > { %1134 = vst.msk [vmem:[%s326_s19] sm:$0xff] %vm1048_vm11, %v1131_v15 }
 0x59e   : > { %v1057_v19 = vld [vmem:[#allocation4 + $0x8] sm:$0xff] }
 0x59f   : > { %v1458_v23 = vpop.eup %1457  ;;  %v1073_v5 = vmul.f32 %v1454_v8, %v1057_v19  ;;  %v1093_v26 = vmul.f32 %v1456_v16, %v1057_v19 }
 0x5a0   : > { %v1460_v28 = vpop.eup %1459  ;;  %v1133_v32 = vmul.f32 %v1458_v23, %v1057_v19 }
 0x5a1   : > { %1075 = vst.msk [vmem:[%s326_s19 + $0x8] sm:$0xff] %vm355_vm1, %v1073_v5  ;;  %v1113_v29 = vmul.f32 %v1460_v28, %v1057_v19 }
 0x5a2   : > { %1095 = vst.msk [vmem:[%s326_s19 + $0x8] sm:$0xff] %vm694_vm9, %v1093_v26 }
 0x5a3   : > { %1115 = vst.msk [vmem:[%s326_s19 + $0x8] sm:$0xff] %vm871_vm10, %v1113_v29 }
 0x5a4   : > { %1135 = vst.msk [vmem:[%s326_s19 + $0x8] sm:$0xff] %vm1048_vm11, %v1133_v32 }
 0x5a5 PF: > { %s14_s17 = sadd.s32 1, %s1483_s17   ;;  %s1861_s15 = smov %s1479_s16 }
 0x5a6   : > { %p11_p5 = scmp.ge.s32.totalorder %s14_s17, 4   ;;  %s1862_s16 = smov %s1864_s18 }
 0x5a8   :  { %13 = sbr.rel (!%p11_p5) target bundleno = 2 (0x2), region = 83 }

</bundles_post_ra>
